<compile_context>
chip_gen: v6e
topology: v6e:2x2x1
jax: 0.10.0
libtpu: 0.0.40
codegen_flags: <defaults>
</compile_context>

<pallas_src>
import functools

import jax
import jax.numpy as jnp
from jax.experimental import pallas as pl
from jax.experimental.pallas import tpu as pltpu

LANE = 128  # TPU lane width; K and output feature dims are padded to this.


def _fcnn_kernel(patches_ref, wf_ref, bf_ref, w2_ref, b2_ref,
                 w3_ref, b3_ref, w4_ref, b4_ref, out_ref):
    """Fused (conv+BN+Linear1) -> ReLU -> Linear2 -> ReLU -> Linear3 -> ReLU -> Linear4."""
    x = patches_ref[...]                                     # (TM, K_pad) bf16

    # conv + bias + BN + first Linear folded into (wf, bf) by the wrapper.
    h = jnp.dot(x, wf_ref[...], preferred_element_type=jnp.float32) + bf_ref[...]
    h = jnp.maximum(h, 0.0)

    h = jnp.dot(h.astype(jnp.bfloat16), w2_ref[...],
                preferred_element_type=jnp.float32) + b2_ref[...]
    h = jnp.maximum(h, 0.0)

    h = jnp.dot(h.astype(jnp.bfloat16), w3_ref[...],
                preferred_element_type=jnp.float32) + b3_ref[...]
    h = jnp.maximum(h, 0.0)

    o = jnp.dot(h.astype(jnp.bfloat16), w4_ref[...],
                preferred_element_type=jnp.float32) + b4_ref[...]

    out_ref[...] = o.astype(out_ref.dtype)                   # lane-dense (TM, 128) bf16 store


def _im2col_3x3_pad1(x_nhwc):
    """(N,H,W,C) -> (N*H*W, 9*C) patches, flattened in (ky, kx, c) order."""
    n, h, w, c = x_nhwc.shape
    xp = jnp.pad(x_nhwc, ((0, 0), (1, 1), (1, 1), (0, 0)))
    rows = []
    for ky in range(3):
        for kx in range(3):
            rows.append(xp[:, ky:ky + h, kx:kx + w, :])      # (N,H,W,C)
    patches = jnp.stack(rows, axis=3)                        # (N,H,W,9,C)
    return patches.reshape(n * h * w, 9 * c)


def _pick_tile_m(p_rows):
    """Largest row tile that (a) amortizes per-step overhead and (b) keeps >= 2
    grid steps so both v7x TensorCores get work via 'parallel' semantics."""
    for t in (2048, 1024, 512, 256, 128):
        if pl.cdiv(p_rows, t) >= 2:
            return t
    # Tiny input: single step covering all rows (round to bf16 sublane pack of 16).
    return max(16, -(-p_rows // 16) * 16)


@functools.partial(jax.jit, static_argnames=("tile_m",))
def fcnn_forward(x_nchw, params, tile_m=None):
    """Forward pass. x_nchw: (N, in_ch, H, W) float32. Returns (N, num_classes, H, W) f32."""
    n, c_in, h, w = x_nchw.shape
    p_rows = n * h * w
    if tile_m is None:
        tile_m = _pick_tile_m(p_rows)
    p_pad = pl.cdiv(p_rows, tile_m) * tile_m

    # --- glue: cast early (halves glue HBM traffic), layout, im2col ------------
    x_bf16 = x_nchw.astype(jnp.bfloat16)
    x_nhwc = jnp.transpose(x_bf16, (0, 2, 3, 1))              # NCHW -> NHWC (bf16)
    patches = _im2col_3x3_pad1(x_nhwc)                        # (P, 9*C_in) bf16

    k_raw = 9 * c_in
    k_pad = pl.cdiv(k_raw, LANE) * LANE                       # lane-align K of matmul 1
    patches = jnp.pad(patches,
                      ((0, p_pad - p_rows), (0, k_pad - k_raw)))  # (P_pad, K_pad) bf16

    # --- fold conv bias + BN (eval mode) into Linear1 --------------------------
    eps = 1e-5
    bn_scale = params["bn_gamma"] / jnp.sqrt(params["bn_var"] + eps)   # (10,)
    bn_shift = params["bn_beta"] - params["bn_mean"] * bn_scale        # (10,)

    # Conv weight (O, C, 3, 3) -> (ky, kx, c, O) -> (9*C, O) to match patch order.
    cw = jnp.transpose(params["conv_w"], (2, 3, 1, 0)).reshape(k_raw, -1)   # (9C, 10)
    cb = params["conv_b"]                                                   # (10,)

    w1, b1 = params["w1"], params["b1"]
    wf = (cw * bn_scale[None, :]) @ w1                        # (9C, 512) f32 fold
    bfused = (cb * bn_scale + bn_shift) @ w1 + b1             # (512,)
    wf = jnp.pad(wf, ((0, k_pad - k_raw), (0, 0)))            # zero rows match padded K

    w2, b2 = params["w2"], params["b2"]
    w3, b3 = params["w3"], params["b3"]
    w4, b4 = params["w4"], params["b4"]
    num_classes = w4.shape[1]

    # Pad the final feature dim to 128 lanes (zero columns, sliced off after).
    w4p = jnp.zeros((w4.shape[0], LANE), jnp.float32).at[:, :num_classes].set(w4)
    b4p = jnp.zeros((LANE,), jnp.float32).at[:num_classes].set(b4)

    def as_bf16(a):
        return a.astype(jnp.bfloat16)

    def as_row(a):
        return a.reshape(1, -1).astype(jnp.float32)

    wfm, w2m, w3m, w4m = as_bf16(wf), as_bf16(w2), as_bf16(w3), as_bf16(w4p)
    bfv, b2v, b3v, b4v = as_row(bfused), as_row(b2), as_row(b3), as_row(b4p)

    def resident(a):
        # Grid-invariant weight/bias block: constant index_map, so double-buffering
        # buys nothing -> single-buffer to reclaim VMEM (matters on v7x's 64 MiB).
        return pl.BlockSpec(a.shape, lambda i: (0,) * a.ndim,
                            pipeline_mode=pl.Buffered(1))

    grid = (p_pad // tile_m,)
    out = pl.pallas_call(
        _fcnn_kernel,
        out_shape=jax.ShapeDtypeStruct((p_pad, LANE), jnp.bfloat16),
        grid_spec=pltpu.PrefetchScalarGridSpec(
            num_scalar_prefetch=0,
            grid=grid,
            in_specs=[
                pl.BlockSpec((tile_m, k_pad), lambda i: (i, 0)),   # patches (row-tiled)
                resident(wfm), resident(bfv),                      # fused conv+BN+fc1
                resident(w2m), resident(b2v),
                resident(w3m), resident(b3v),
                resident(w4m), resident(b4v),
            ],
            out_specs=pl.BlockSpec((tile_m, LANE), lambda i: (i, 0)),
        ),
        compiler_params=pltpu.CompilerParams(
            dimension_semantics=("parallel",),
            vmem_limit_bytes=48 << 20,   # safe under v7x's 64 MiB physical VMEM
        ),
    )(patches, wfm, bfv, w2m, b2v, w3m, b3v, w4m, b4v)

    # (P_pad, 128) bf16 -> trim padding -> (N, H, W, num_classes) -> NCHW f32
    out = out[:p_rows, :num_classes].reshape(n, h, w, num_classes)
    return jnp.transpose(out, (0, 3, 1, 2)).astype(jnp.float32)


def init_params(key, in_ch, num_classes):
    """Deterministic parameter init (PyTorch-style uniform ranges)."""
    ks = jax.random.split(key, 10)

    def unif(k, shape, fan_in):
        bound = 1.0 / jnp.sqrt(fan_in)
        return jax.random.uniform(k, shape, jnp.float32, -bound, bound)

    return {
        "conv_w": unif(ks[0], (10, in_ch, 3, 3), in_ch * 9),
        "conv_b": unif(ks[1], (10,), in_ch * 9),
        "bn_gamma": jnp.ones((10,), jnp.float32),
        "bn_beta": jnp.zeros((10,), jnp.float32),
        "bn_mean": jnp.zeros((10,), jnp.float32),
        "bn_var": jnp.ones((10,), jnp.float32),
        "w1": unif(ks[2], (10, 512), 10),
        "b1": unif(ks[3], (512,), 10),
        "w2": unif(ks[4], (512, 1024), 512),
        "b2": unif(ks[5], (1024,), 512),
        "w3": unif(ks[6], (1024, 512), 1024),
        "b3": unif(ks[7], (512,), 1024),
        "w4": unif(ks[8], (512, num_classes), 512),
        "b4": unif(ks[9], (num_classes,), 512),
    }


def _reference_forward(x_nchw, params):
    """Plain-JAX f32 reference (for sanity checking the kernel)."""
    eps = 1e-5
    y = jax.lax.conv_general_dilated(
        x_nchw, params["conv_w"], window_strides=(1, 1), padding="SAME",
        dimension_numbers=("NCHW", "OIHW", "NCHW"))
    y = y + params["conv_b"][None, :, None, None]
    scale = params["bn_gamma"] / jnp.sqrt(params["bn_var"] + eps)
    shift = params["bn_beta"] - params["bn_mean"] * scale
    y = y * scale[None, :, None, None] + shift[None, :, None, None]
    y = jnp.transpose(y, (0, 2, 3, 1))                        # NHWC
    h = jax.nn.relu(y @ params["w1"] + params["b1"])
    h = jax.nn.relu(h @ params["w2"] + params["b2"])
    h = jax.nn.relu(h @ params["w3"] + params["b3"])
    o = h @ params["w4"] + params["b4"]
    return jnp.transpose(o, (0, 3, 1, 2))                     # NCHW


if __name__ == "__main__":
    in_ch, num_classes = 4, 9
    n, hgt, wid = 2, 16, 16

    key = jax.random.PRNGKey(0)
    k_x, k_p = jax.random.split(key)
    x = jax.random.normal(k_x, (n, in_ch, hgt, wid), jnp.float32)
    params = init_params(k_p, in_ch, num_classes)

    out = fcnn_forward(x, params)
    out = jax.block_until_ready(out)
    assert out.shape == (n, num_classes, hgt, wid), out.shape

    ref = jax.block_until_ready(_reference_forward(x, params))
    # bf16 MXU inputs + bf16 logits (f32 accumulation) -> bf16-appropriate tolerance.
    err = float(jnp.max(jnp.abs(out - ref)) / (jnp.max(jnp.abs(ref)) + 1e-9))
    assert err < 6e-2, err

    print("KERNEL_OK")
</pallas_src>

<mosaic_0001>
module attributes {stable_mosaic.version = 11 : i64} {
  func.func @_fcnn_kernel(%arg0: i32, %arg1: memref<256x128xbf16, #tpu.memory_space<vmem>>, %arg2: memref<128x512xbf16, #tpu.memory_space<vmem>>, %arg3: memref<1x512xf32, #tpu.memory_space<vmem>>, %arg4: memref<512x1024xbf16, #tpu.memory_space<vmem>>, %arg5: memref<1x1024xf32, #tpu.memory_space<vmem>>, %arg6: memref<1024x512xbf16, #tpu.memory_space<vmem>>, %arg7: memref<1x512xf32, #tpu.memory_space<vmem>>, %arg8: memref<512x128xbf16, #tpu.memory_space<vmem>>, %arg9: memref<1x128xf32, #tpu.memory_space<vmem>>, %arg10: memref<256x128xbf16, #tpu.memory_space<vmem>>) attributes {dimension_semantics = [#tpu.dimension_semantics<parallel>], iteration_bounds = array<i64: 2>, scalar_prefetch = 0 : i64, scratch_operands = 0 : i64, tpu.core_type = #tpu.core_type<tc>, window_params = [{transform_indices = @transform_0, window_bounds = array<i64: 256, 128>}, {pipeline_mode = #tpu.pipeline_mode<synchronous>, transform_indices = @transform_1, window_bounds = array<i64: 128, 512>}, {pipeline_mode = #tpu.pipeline_mode<synchronous>, transform_indices = @transform_2, window_bounds = array<i64: 1, 512>}, {pipeline_mode = #tpu.pipeline_mode<synchronous>, transform_indices = @transform_3, window_bounds = array<i64: 512, 1024>}, {pipeline_mode = #tpu.pipeline_mode<synchronous>, transform_indices = @transform_4, window_bounds = array<i64: 1, 1024>}, {pipeline_mode = #tpu.pipeline_mode<synchronous>, transform_indices = @transform_5, window_bounds = array<i64: 1024, 512>}, {pipeline_mode = #tpu.pipeline_mode<synchronous>, transform_indices = @transform_6, window_bounds = array<i64: 1, 512>}, {pipeline_mode = #tpu.pipeline_mode<synchronous>, transform_indices = @transform_7, window_bounds = array<i64: 512, 128>}, {pipeline_mode = #tpu.pipeline_mode<synchronous>, transform_indices = @transform_8, window_bounds = array<i64: 1, 128>}, {transform_indices = @transform_9, window_bounds = array<i64: 256, 128>}]} {
    %c0 = arith.constant 0 : index
    %c0_0 = arith.constant 0 : index
    %0 = vector.load %arg1[%c0, %c0_0] : memref<256x128xbf16, #tpu.memory_space<vmem>>, vector<256x128xbf16>
    %c0_1 = arith.constant 0 : index
    %c0_2 = arith.constant 0 : index
    %1 = vector.load %arg2[%c0_1, %c0_2] : memref<128x512xbf16, #tpu.memory_space<vmem>>, vector<128x512xbf16>
    %cst = arith.constant dense<0.000000e+00> : vector<256x512xf32>
    %2 = tpu.matmul %0, %1, %cst {dimension_numbers = #tpu.dot_dimension_numbers<[1], [0], [0], [1], [0, 0, 1, 1], [], []>} : vector<256x128xbf16>, vector<128x512xbf16>, vector<256x512xf32> -> vector<256x512xf32>
    %c0_3 = arith.constant 0 : index
    %c0_4 = arith.constant 0 : index
    %3 = vector.load %arg3[%c0_3, %c0_4] : memref<1x512xf32, #tpu.memory_space<vmem>>, vector<1x512xf32>
    %4 = vector.broadcast %3 : vector<1x512xf32> to vector<256x512xf32>
    %5 = arith.addf %2, %4 : vector<256x512xf32>
    %cst_5 = arith.constant 0.000000e+00 : f32
    %6 = vector.broadcast %cst_5 : f32 to vector<256x512xf32>
    %7 = arith.maximumf %5, %6 : vector<256x512xf32>
    %8 = arith.truncf %7 : vector<256x512xf32> to vector<256x512xbf16>
    %c0_6 = arith.constant 0 : index
    %c0_7 = arith.constant 0 : index
    %9 = vector.load %arg4[%c0_6, %c0_7] : memref<512x1024xbf16, #tpu.memory_space<vmem>>, vector<512x1024xbf16>
    %cst_8 = arith.constant dense<0.000000e+00> : vector<256x1024xf32>
    %10 = tpu.matmul %8, %9, %cst_8 {dimension_numbers = #tpu.dot_dimension_numbers<[1], [0], [0], [1], [0, 0, 1, 1], [], []>} : vector<256x512xbf16>, vector<512x1024xbf16>, vector<256x1024xf32> -> vector<256x1024xf32>
    %c0_9 = arith.constant 0 : index
    %c0_10 = arith.constant 0 : index
    %11 = vector.load %arg5[%c0_9, %c0_10] : memref<1x1024xf32, #tpu.memory_space<vmem>>, vector<1x1024xf32>
    %12 = vector.broadcast %11 : vector<1x1024xf32> to vector<256x1024xf32>
    %13 = arith.addf %10, %12 : vector<256x1024xf32>
    %cst_11 = arith.constant 0.000000e+00 : f32
    %14 = vector.broadcast %cst_11 : f32 to vector<256x1024xf32>
    %15 = arith.maximumf %13, %14 : vector<256x1024xf32>
    %16 = arith.truncf %15 : vector<256x1024xf32> to vector<256x1024xbf16>
    %c0_12 = arith.constant 0 : index
    %c0_13 = arith.constant 0 : index
    %17 = vector.load %arg6[%c0_12, %c0_13] : memref<1024x512xbf16, #tpu.memory_space<vmem>>, vector<1024x512xbf16>
    %cst_14 = arith.constant dense<0.000000e+00> : vector<256x512xf32>
    %18 = tpu.matmul %16, %17, %cst_14 {dimension_numbers = #tpu.dot_dimension_numbers<[1], [0], [0], [1], [0, 0, 1, 1], [], []>} : vector<256x1024xbf16>, vector<1024x512xbf16>, vector<256x512xf32> -> vector<256x512xf32>
    %c0_15 = arith.constant 0 : index
    %c0_16 = arith.constant 0 : index
    %19 = vector.load %arg7[%c0_15, %c0_16] : memref<1x512xf32, #tpu.memory_space<vmem>>, vector<1x512xf32>
    %20 = vector.broadcast %19 : vector<1x512xf32> to vector<256x512xf32>
    %21 = arith.addf %18, %20 : vector<256x512xf32>
    %cst_17 = arith.constant 0.000000e+00 : f32
    %22 = vector.broadcast %cst_17 : f32 to vector<256x512xf32>
    %23 = arith.maximumf %21, %22 : vector<256x512xf32>
    %24 = arith.truncf %23 : vector<256x512xf32> to vector<256x512xbf16>
    %c0_18 = arith.constant 0 : index
    %c0_19 = arith.constant 0 : index
    %25 = vector.load %arg8[%c0_18, %c0_19] : memref<512x128xbf16, #tpu.memory_space<vmem>>, vector<512x128xbf16>
    %cst_20 = arith.constant dense<0.000000e+00> : vector<256x128xf32>
    %26 = tpu.matmul %24, %25, %cst_20 {dimension_numbers = #tpu.dot_dimension_numbers<[1], [0], [0], [1], [0, 0, 1, 1], [], []>} : vector<256x512xbf16>, vector<512x128xbf16>, vector<256x128xf32> -> vector<256x128xf32>
    %c0_21 = arith.constant 0 : index
    %c0_22 = arith.constant 0 : index
    %27 = vector.load %arg9[%c0_21, %c0_22] : memref<1x128xf32, #tpu.memory_space<vmem>>, vector<1x128xf32>
    %28 = vector.broadcast %27 : vector<1x128xf32> to vector<256x128xf32>
    %29 = arith.addf %26, %28 : vector<256x128xf32>
    %30 = arith.truncf %29 : vector<256x128xf32> to vector<256x128xbf16>
    %c0_23 = arith.constant 0 : index
    %c0_24 = arith.constant 0 : index
    %31 = vector.load %arg10[%c0_23, %c0_24] : memref<256x128xbf16, #tpu.memory_space<vmem>>, vector<256x128xbf16>
    tpu.vector_store %arg10[%c0_23, %c0_24], %30 {strides = array<i32>} : memref<256x128xbf16, #tpu.memory_space<vmem>>, vector<256x128xbf16>,
    return
  }
  func.func @transform_0(%arg0: i32) -> (i32, i32) {
    %c0_i32 = arith.constant 0 : i32
    %c0_i32_0 = arith.constant 0 : i32
    return %arg0, %c0_i32 : i32, i32
  }
  func.func @transform_1(%arg0: i32) -> (i32, i32) {
    %c0_i32 = arith.constant 0 : i32
    %c0_i32_0 = arith.constant 0 : i32
    %c0_i32_1 = arith.constant 0 : i32
    return %c0_i32, %c0_i32_0 : i32, i32
  }
  func.func @transform_2(%arg0: i32) -> (i32, i32) {
    %c0_i32 = arith.constant 0 : i32
    %c0_i32_0 = arith.constant 0 : i32
    %c0_i32_1 = arith.constant 0 : i32
    return %c0_i32, %c0_i32_0 : i32, i32
  }
  func.func @transform_3(%arg0: i32) -> (i32, i32) {
    %c0_i32 = arith.constant 0 : i32
    %c0_i32_0 = arith.constant 0 : i32
    %c0_i32_1 = arith.constant 0 : i32
    return %c0_i32, %c0_i32_0 : i32, i32
  }
  func.func @transform_4(%arg0: i32) -> (i32, i32) {
    %c0_i32 = arith.constant 0 : i32
    %c0_i32_0 = arith.constant 0 : i32
    %c0_i32_1 = arith.constant 0 : i32
    return %c0_i32, %c0_i32_0 : i32, i32
  }
  func.func @transform_5(%arg0: i32) -> (i32, i32) {
    %c0_i32 = arith.constant 0 : i32
    %c0_i32_0 = arith.constant 0 : i32
    %c0_i32_1 = arith.constant 0 : i32
    return %c0_i32, %c0_i32_0 : i32, i32
  }
  func.func @transform_6(%arg0: i32) -> (i32, i32) {
    %c0_i32 = arith.constant 0 : i32
    %c0_i32_0 = arith.constant 0 : i32
    %c0_i32_1 = arith.constant 0 : i32
    return %c0_i32, %c0_i32_0 : i32, i32
  }
  func.func @transform_7(%arg0: i32) -> (i32, i32) {
    %c0_i32 = arith.constant 0 : i32
    %c0_i32_0 = arith.constant 0 : i32
    %c0_i32_1 = arith.constant 0 : i32
    return %c0_i32, %c0_i32_0 : i32, i32
  }
  func.func @transform_8(%arg0: i32) -> (i32, i32) {
    %c0_i32 = arith.constant 0 : i32
    %c0_i32_0 = arith.constant 0 : i32
    %c0_i32_1 = arith.constant 0 : i32
    return %c0_i32, %c0_i32_0 : i32, i32
  }
  func.func @transform_9(%arg0: i32) -> (i32, i32) {
    %c0_i32 = arith.constant 0 : i32
    %c0_i32_0 = arith.constant 0 : i32
    return %arg0, %c0_i32 : i32, i32
  }
}

</mosaic_0001>

<bundles_post_ra>
// kernel: fcnn_forward.1
= control target key start
LH: loop header
LB: loop body
LE: loop exit
PB: predicated region body
PF: predicated region fallthrough
CT: control target
= control target key end

     0   :  { %s10397_s30 = smov 0   ;;  %s15130_s0 = inlined_call_operand.vmem [shape: bf16[512,128], index: 0, kind: input, shape index: {}]   ;;  %s15131_s1 = inlined_call_operand.vmem [shape: bf16[128,512], index: 1, kind: input, shape index: {}]   ;;  %s15132_s2 = inlined_call_operand.vmem [shape: f32[1,512], index: 2, kind: input, shape index: {}]   ;;  %s15133_s3 = inlined_call_operand.vmem [shape: bf16[512,1024], index: 3, kind: input, shape index: {}]   ;;  %s15134_s4 = inlined_call_operand.vmem [shape: f32[1,1024], index: 4, kind: input, shape index: {}]   ;;  %s15135_s5 = inlined_call_operand.vmem [shape: bf16[1024,512], index: 5, kind: input, shape index: {}]   ;;  %s15136_s6 = inlined_call_operand.vmem [shape: f32[1,512], index: 6, kind: input, shape index: {}]   ;;  %s15137_s7 = inlined_call_operand.vmem [shape: bf16[512,128], index: 7, kind: input, shape index: {}]   ;;  %s15138_s8 = inlined_call_operand.vmem [shape: f32[1,128], index: 8, kind: input, shape index: {}]   ;;  %s15139_s9 = inlined_call_operand.vmem [shape: bf16[512,128], index: 9, kind: output, shape index: {}]  }
   0x1 LB: > { %s8858_s10 = sadd.s32 4294967295, %s10344_s30   ;;  %p8862_p0 = scmp.ge.s32.totalorder %s10344_s30, 1  ;;  %s10344_s30 = sphi %s10397_s30, %s19_s30  }
   0x2   : > { %p288_p1 = scmp.lt.s32.totalorder %s10344_s30, 3 }
   0x4   : > { %p289_p2 = pnand %p8862_p0, %p288_p1 }
   0x6   : > { %292 = sbr.rel (%p289_p2) target bundleno = 1681 (0x691), region = 56 }
   0xb   : > { %v9854_v0 = vld [vmem:[%s15131_s1 + $0xe4] ss:$16 sps:$4 sm:$0xff]   ;;  %v9856_v1 = vld [vmem:[%s15131_s1 + $0xec] ss:$16 sps:$4 sm:$0xff]   ;;  %v10346_v2 = vmov 0   ;;  %s8863_s29 = sshll.u32 %s8858_s10, 5 }
   0xc   : > { %711 = vmatprep.mubr.bf16.mxu0 %v10346_v2  ;;  %904 = vmatprep.mubr.bf16.mxu1 %v10346_v2  ;;  %v9858_v3 = vld [vmem:[%s15131_s1 + $0xe0] ss:$16 sps:$4 sm:$0xff]   ;;  %v9859_v4 = vld [vmem:[%s15131_s1 + $0xe8] ss:$16 sps:$4 sm:$0xff]   ;;  %v9860_v5 = vld [vmem:[%s15131_s1 + $0xc4] ss:$16 sps:$4 sm:$0xff]  }
   0xd   : > { %679 = vmatprep.subr.bf16.mxu0 %v9854_v0  ;;  %872 = vmatprep.subr.bf16.mxu1 %v9856_v1  ;;  %v9862_v6 = vld [vmem:[%s15131_s1 + $0xcc] ss:$16 sps:$4 sm:$0xff]   ;;  %v9864_v7 = vld [vmem:[%s15131_s1 + $0xc0] ss:$16 sps:$4 sm:$0xff]   ;;  %v9865_v8 = vld [vmem:[%s15131_s1 + $0xc8] ss:$16 sps:$4 sm:$0xff]  }
   0xe   : > { %680 = vmatpush1.bf16.msra.mxu0 %v9858_v3  ;;  %873 = vmatpush1.bf16.msra.mxu1 %v9859_v4  ;;  %v9866_v9 = vld [vmem:[%s15131_s1 + $0xa4] ss:$16 sps:$4 sm:$0xff]   ;;  %v9868_v10 = vld [vmem:[%s15131_s1 + $0xac] ss:$16 sps:$4 sm:$0xff]   ;;  %v9870_v11 = vld [vmem:[%s15131_s1 + $0xa0] ss:$16 sps:$4 sm:$0xff]  }
   0xf   : > { %681 = vmatprep.subr.bf16.mxu0 %v9860_v5  ;;  %874 = vmatprep.subr.bf16.mxu1 %v9862_v6  ;;  %v9871_v12 = vld [vmem:[%s15131_s1 + $0xa8] ss:$16 sps:$4 sm:$0xff]   ;;  %v9872_v13 = vld [vmem:[%s15131_s1 + $0x84] ss:$16 sps:$4 sm:$0xff]   ;;  %v9874_v14 = vld [vmem:[%s15131_s1 + $0x8c] ss:$16 sps:$4 sm:$0xff]  }
  0x10   : > { %p325_p3 = scmp.lt.s32.totalorder %s8863_s29, 63  ;;  %v9876_v15 = vld [vmem:[%s15131_s1 + $0x80] ss:$16 sps:$4 sm:$0xff]   ;;  %v9877_v16 = vld [vmem:[%s15131_s1 + $0x88] ss:$16 sps:$4 sm:$0xff]  }
  0x11   : > { %v9878_v17 = vld [vmem:[%s15131_s1 + $0x64] ss:$16 sps:$4 sm:$0xff]   ;;  %v9880_v18 = vld [vmem:[%s15131_s1 + $0x6c] ss:$16 sps:$4 sm:$0xff]   ;;  %v9882_v19 = vld [vmem:[%s15131_s1 + $0x60] ss:$16 sps:$4 sm:$0xff]  }
  0x12   : > { %682 = vmatpush1.bf16.msra.mxu0 %v9864_v7  ;;  %875 = vmatpush1.bf16.msra.mxu1 %v9865_v8  ;;  %s15971_s29 = smov (!%p325_p3, %s8863_s29), 63  ;;  %v9883_v20 = vld [vmem:[%s15131_s1 + $0x68] ss:$16 sps:$4 sm:$0xff]   ;;  %v9884_v21 = vld [vmem:[%s15131_s1 + $0x44] ss:$16 sps:$4 sm:$0xff]  }
  0x13   : > { %683 = vmatprep.subr.bf16.mxu0 %v9866_v9  ;;  %876 = vmatprep.subr.bf16.mxu1 %v9868_v10  ;;  %v9886_v22 = vld [vmem:[%s15131_s1 + $0x4c] ss:$16 sps:$4 sm:$0xff]   ;;  %s8864_s18 = sshll.u32 %s15971_s29, 2  ;;  %v9888_v23 = vld [vmem:[%s15131_s1 + $0x40] ss:$16 sps:$4 sm:$0xff]  }
  0x14   : > { %v9889_v24 = vld [vmem:[%s15131_s1 + $0x48] ss:$16 sps:$4 sm:$0xff]   ;;  %v9890_v25 = vld [vmem:[%s15131_s1 + $0x24] ss:$16 sps:$4 sm:$0xff]   ;;  %s10490_s26 = scalar_lea.vmem %s15130_s0, %s8864_s18  ;;  %v9892_v26 = vld [vmem:[%s15131_s1 + $0x2c] ss:$16 sps:$4 sm:$0xff]   ;;  %s15013_s21 = scalar_lea.vmem %s15139_s9, %s8864_s18 }
  0x15   : > { %v9894_v27 = vld [vmem:[%s15131_s1 + $0x20] ss:$16 sps:$4 sm:$0xff]   ;;  %v9895_v28 = vld [vmem:[%s15131_s1 + $0x28] ss:$16 sps:$4 sm:$0xff]   ;;  %v9896_v29 = vld [vmem:[%s15131_s1 + $0x4] ss:$16 sps:$4 sm:$0xff]  }
  0x16   : > { %684 = vmatpush1.bf16.msra.mxu0 %v9870_v11  ;;  %877 = vmatpush1.bf16.msra.mxu1 %v9871_v12  ;;  %v9898_v30 = vld [vmem:[%s15131_s1 + $0xc] ss:$16 sps:$4 sm:$0xff]   ;;  %v9900_v31 = vld [vmem:[%s15131_s1] ss:$16 sps:$4 sm:$0xff]   ;;  %v9901_v32 = vld [vmem:[%s15131_s1 + $0x8] ss:$16 sps:$4 sm:$0xff]  }
  0x17   : > { %685 = vmatprep.subr.bf16.mxu0 %v9872_v13  ;;  %878 = vmatprep.subr.bf16.mxu1 %v9874_v14  ;;  %v9902_v33 = vld [vmem:[%s10490_s26] sm:$0xff]   ;;  %v9903_v51 = vld [vmem:[%s10490_s26 + $0x8] sm:$0xff]   ;;  %v9904_v9 = vld [vmem:[%s10490_s26 + $0x10] sm:$0xff]  }
  0x18   : > { %v1313_v34 = vld [vmem:[%s15133_s3 + $0x1c0] sm:$0xff] }
  0x19   : > { %v1317_v35 = vld [vmem:[%s15133_s3 + $0x1e0] sm:$0xff] }
  0x1a   : > { %686 = vmatpush1.bf16.msra.mxu0 %v9876_v15  ;;  %879 = vmatpush1.bf16.msra.mxu1 %v9877_v16  ;;  %v8972_v36 = vcombine.high %v1313_v34, %v1317_v35  ;;  %v1441_v37 = vld [vmem:[%s15133_s3 + $0x5c0] sm:$0xff]  ;;  %v8971_v39 = vcombine.low %v1313_v34, %v1317_v35 }
  0x1b   : > { %687 = vmatprep.subr.bf16.mxu0 %v9878_v17  ;;  %880 = vmatprep.subr.bf16.mxu1 %v9880_v18  ;;  %v1445_v38 = vld [vmem:[%s15133_s3 + $0x5e0] sm:$0xff] }
  0x1c   : > { %v9100_v40 = vcombine.high %v1441_v37, %v1445_v38  ;;  %v1305_v41 = vld [vmem:[%s15133_s3 + $0x180] sm:$0xff]  ;;  %v9099_v42 = vcombine.low %v1441_v37, %v1445_v38 }
  0x1d   : > { %v1309_v43 = vld [vmem:[%s15133_s3 + $0x1a0] sm:$0xff] }
  0x1e   : > { %688 = vmatpush1.bf16.msra.mxu0 %v9882_v19  ;;  %881 = vmatpush1.bf16.msra.mxu1 %v9883_v20  ;;  %v1433_v44 = vld [vmem:[%s15133_s3 + $0x580] sm:$0xff]  ;;  %v8964_v46 = vcombine.high %v1305_v41, %v1309_v43  ;;  %v8963_v50 = vcombine.low %v1305_v41, %v1309_v43 }
  0x1f   : > { %689 = vmatprep.subr.bf16.mxu0 %v9884_v21  ;;  %882 = vmatprep.subr.bf16.mxu1 %v9886_v22  ;;  %v1437_v45 = vld [vmem:[%s15133_s3 + $0x5a0] sm:$0xff] }
  0x20   : > { %v9092_v47 = vcombine.high %v1433_v44, %v1437_v45  ;;  %v1297_v48 = vld [vmem:[%s15133_s3 + $0x140] sm:$0xff]  ;;  %v9091_v52 = vcombine.low %v1433_v44, %v1437_v45 }
  0x21   : > { %v1301_v49 = vld [vmem:[%s15133_s3 + $0x160] sm:$0xff] }
  0x22   : > { %690 = vmatpush1.bf16.msra.mxu0 %v9888_v23  ;;  %883 = vmatpush1.bf16.msra.mxu1 %v9889_v24  ;;  %v8956_v53 = vcombine.high %v1297_v48, %v1301_v49  ;;  %v1425_v54 = vld [vmem:[%s15133_s3 + $0x540] sm:$0xff]  ;;  %v8955_v60 = vcombine.low %v1297_v48, %v1301_v49 }
  0x23   : > { %691 = vmatprep.subr.bf16.mxu0 %v9890_v25  ;;  %884 = vmatprep.subr.bf16.mxu1 %v9892_v26  ;;  %v1429_v55 = vld [vmem:[%s15133_s3 + $0x560] sm:$0xff]  ;;  %v9905_v26 = vld [vmem:[%s10490_s26 + $0x18] sm:$0xff]  }
  0x24   : > { %v1289_v56 = vld [vmem:[%s15133_s3 + $0x100] sm:$0xff]  ;;  %v9084_v61 = vcombine.high %v1425_v54, %v1429_v55  ;;  %v9083_v62 = vcombine.low %v1425_v54, %v1429_v55 }
  0x25   : > { %v1293_v57 = vld [vmem:[%s15133_s3 + $0x120] sm:$0xff] }
  0x26   : > { %692 = vmatpush1.bf16.msra.mxu0 %v9894_v27  ;;  %885 = vmatpush1.bf16.msra.mxu1 %v9895_v28  ;;  %v1417_v58 = vld [vmem:[%s15133_s3 + $0x500] sm:$0xff]  ;;  %v8948_v63 = vcombine.high %v1289_v56, %v1293_v57  ;;  %v8947_v4 = vcombine.low %v1289_v56, %v1293_v57  ;;  %v9907_v57 = vld [vmem:[%s10490_s26 + $0x28] sm:$0xff]  }
  0x27   : > { %693 = vmatprep.subr.bf16.mxu0 %v9896_v29  ;;  %886 = vmatprep.subr.bf16.mxu1 %v9898_v30  ;;  %v1421_v59 = vld [vmem:[%s15133_s3 + $0x520] sm:$0xff] }
  0x28   : > { %v9076_v0 = vcombine.high %v1417_v58, %v1421_v59  ;;  %v1281_v1 = vld [vmem:[%s15133_s3 + $0xc0] sm:$0xff]  ;;  %v9075_v5 = vcombine.low %v1417_v58, %v1421_v59 }
  0x29   : > { %v1285_v3 = vld [vmem:[%s15133_s3 + $0xe0] sm:$0xff] }
  0x2a   : > { %694 = vmatpush1.bf16.msra.mxu0 %v9900_v31  ;;  %887 = vmatpush1.bf16.msra.mxu1 %v9901_v32  ;;  %v8940_v6 = vcombine.high %v1281_v1, %v1285_v3  ;;  %v1409_v7 = vld [vmem:[%s15133_s3 + $0x4c0] sm:$0xff]  ;;  %v8939_v14 = vcombine.low %v1281_v1, %v1285_v3 }
  0x2b   : > { %2835 = vmatprep.subr.bf16.mxu0 %v8972_v36  ;;  %3028 = vmatprep.subr.bf16.mxu1 %v9100_v40  ;;  %v1413_v8 = vld [vmem:[%s15133_s3 + $0x4e0] sm:$0xff] }
  0x2c   : > { %v1273_v10 = vld [vmem:[%s15133_s3 + $0x80] sm:$0xff]  ;;  %v9068_v15 = vcombine.high %v1409_v7, %v1413_v8  ;;  %v9067_v16 = vcombine.low %v1409_v7, %v1413_v8 }
  0x2d   : > { %712 = vmatmul.mubr.bf16.vlgmr.msra.gmra.mxu0 %v9902_v33  ;;  %905 = vmatmul.mubr.bf16.vlgmr.msra.gmra.mxu1 %v9902_v33  ;;  %v1277_v11 = vld [vmem:[%s15133_s3 + $0xa0] sm:$0xff] }
  0x2e   : > { %721 = vmatprep.mubr.bf16.mxu0 %v10346_v2  ;;  %914 = vmatprep.mubr.bf16.mxu1 %v10346_v2  ;;  %v1401_v12 = vld [vmem:[%s15133_s3 + $0x480] sm:$0xff]  ;;  %v8932_v17 = vcombine.high %v1273_v10, %v1277_v11  ;;  %v8931_v21 = vcombine.low %v1273_v10, %v1277_v11  ;;  %v9908_v11 = vld [vmem:[%s10490_s26 + $0x30] sm:$0xff]  }
  0x2f   : > { %2836 = vmatpush1.bf16.msra.mxu0 %v8971_v39  ;;  %3029 = vmatpush1.bf16.msra.mxu1 %v9099_v42  ;;  %v1405_v13 = vld [vmem:[%s15133_s3 + $0x4a0] sm:$0xff] }
  0x30   : > { %2837 = vmatprep.subr.bf16.mxu0 %v8964_v46  ;;  %3030 = vmatprep.subr.bf16.mxu1 %v9092_v47  ;;  %v9060_v18 = vcombine.high %v1401_v12, %v1405_v13  ;;  %v1265_v19 = vld [vmem:[%s15133_s3 + $0x40] sm:$0xff]  ;;  %v9059_v22 = vcombine.low %v1401_v12, %v1405_v13 }
  0x31   : > { %v1269_v20 = vld [vmem:[%s15133_s3 + $0x60] sm:$0xff] }
  0x32   : > { %v8924_v23 = vcombine.high %v1265_v19, %v1269_v20  ;;  %v1393_v24 = vld [vmem:[%s15133_s3 + $0x440] sm:$0xff]  ;;  %v8923_v31 = vcombine.low %v1265_v19, %v1269_v20 }
  0x33   : > { %2838 = vmatpush1.bf16.msra.mxu0 %v8963_v50  ;;  %3031 = vmatpush1.bf16.msra.mxu1 %v9091_v52  ;;  %v1397_v25 = vld [vmem:[%s15133_s3 + $0x460] sm:$0xff] }
  0x34   : > { %2839 = vmatprep.subr.bf16.mxu0 %v8956_v53  ;;  %3032 = vmatprep.subr.bf16.mxu1 %v9084_v61  ;;  %v1257_v27 = vld [vmem:[%s15133_s3] sm:$0xff]  ;;  %v9052_v32 = vcombine.high %v1393_v24, %v1397_v25  ;;  %v9051_v35 = vcombine.low %v1393_v24, %v1397_v25 }
  0x35   : > { %722 = vmatmul.mubr.bf16.gmra.mxu0 %v9903_v51  ;;  %915 = vmatmul.mubr.bf16.gmra.mxu1 %v9903_v51  ;;  %v1261_v28 = vld [vmem:[%s15133_s3 + $0x20] sm:$0xff] }
  0x36   : > { %731 = vmatprep.mubr.bf16.mxu0 %v10346_v2  ;;  %924 = vmatprep.mubr.bf16.mxu1 %v10346_v2  ;;  %v1385_v29 = vld [vmem:[%s15133_s3 + $0x400] sm:$0xff]  ;;  %v8916_v36 = vcombine.high %v1257_v27, %v1261_v28  ;;  %v8915_v41 = vcombine.low %v1257_v27, %v1261_v28  ;;  %v9909_v28 = vld [vmem:[%s10490_s26 + $0x38] sm:$0xff]  }
  0x37   : > { %2840 = vmatpush1.bf16.msra.mxu0 %v8955_v60  ;;  %3033 = vmatpush1.bf16.msra.mxu1 %v9083_v62  ;;  %v1389_v30 = vld [vmem:[%s15133_s3 + $0x420] sm:$0xff] }
  0x38   : > { %2841 = vmatprep.subr.bf16.mxu0 %v8948_v63  ;;  %3034 = vmatprep.subr.bf16.mxu1 %v9076_v0  ;;  %v1377_v33 = vld [vmem:[%s15133_s3 + $0x3c0] sm:$0xff]  ;;  %v9044_v37 = vcombine.high %v1385_v29, %v1389_v30  ;;  %v9043_v44 = vcombine.low %v1385_v29, %v1389_v30 }
  0x39   : > { %v1381_v34 = vld [vmem:[%s15133_s3 + $0x3e0] sm:$0xff] }
  0x3a   : > { %v1505_v38 = vld [vmem:[%s15133_s3 + $0x7c0] sm:$0xff]  ;;  %v9036_v45 = vcombine.high %v1377_v33, %v1381_v34  ;;  %v9035_v48 = vcombine.low %v1377_v33, %v1381_v34 }
  0x3b   : > { %2842 = vmatpush1.bf16.msra.mxu0 %v8947_v4  ;;  %3035 = vmatpush1.bf16.msra.mxu1 %v9075_v5  ;;  %v1509_v39 = vld [vmem:[%s15133_s3 + $0x7e0] sm:$0xff] }
  0x3c   : > { %2843 = vmatprep.subr.bf16.mxu0 %v8940_v6  ;;  %3036 = vmatprep.subr.bf16.mxu1 %v9068_v15  ;;  %v9906_v40 = vld [vmem:[%s10490_s26 + $0x20] sm:$0xff]   ;;  %v9164_v49 = vcombine.high %v1505_v38, %v1509_v39  ;;  %v9163_v52 = vcombine.low %v1505_v38, %v1509_v39 }
  0x3d   : > { %732 = vmatmul.mubr.bf16.gmra.mxu0 %v9904_v9  ;;  %925 = vmatmul.mubr.bf16.gmra.mxu1 %v9904_v9  ;;  %v1369_v42 = vld [vmem:[%s15133_s3 + $0x380] sm:$0xff] }
  0x3e   : > { %741 = vmatprep.mubr.bf16.mxu0 %v10346_v2  ;;  %934 = vmatprep.mubr.bf16.mxu1 %v10346_v2  ;;  %v1373_v43 = vld [vmem:[%s15133_s3 + $0x3a0] sm:$0xff] }
  0x3f   : > { %2844 = vmatpush1.bf16.msra.mxu0 %v8939_v14  ;;  %3037 = vmatpush1.bf16.msra.mxu1 %v9067_v16  ;;  %v1497_v46 = vld [vmem:[%s15133_s3 + $0x780] sm:$0xff]  ;;  %v9028_v53 = vcombine.high %v1369_v42, %v1373_v43  ;;  %v9027_v58 = vcombine.low %v1369_v42, %v1373_v43 }
  0x40   : > { %2845 = vmatprep.subr.bf16.mxu0 %v8932_v17  ;;  %3038 = vmatprep.subr.bf16.mxu1 %v9060_v18  ;;  %v1501_v47 = vld [vmem:[%s15133_s3 + $0x7a0] sm:$0xff] }
  0x41   : > { %v1361_v50 = vld [vmem:[%s15133_s3 + $0x340] sm:$0xff]  ;;  %v9156_v54 = vcombine.high %v1497_v46, %v1501_v47  ;;  %v9155_v61 = vcombine.low %v1497_v46, %v1501_v47  ;;  %v10741_v46 = vld [vmem:[%s15133_s3 + $0x1c8] sm:$0xff] }
  0x42   : > { %v1365_v51 = vld [vmem:[%s15133_s3 + $0x360] sm:$0xff]  ;;  %v10746_v47 = vld [vmem:[%s15133_s3 + $0x1e8] sm:$0xff] }
  0x43   : > { %2846 = vmatpush1.bf16.msra.mxu0 %v8931_v21  ;;  %3039 = vmatpush1.bf16.msra.mxu1 %v9059_v22  ;;  %v1489_v55 = vld [vmem:[%s15133_s3 + $0x740] sm:$0xff]  ;;  %v9020_v62 = vcombine.high %v1361_v50, %v1365_v51  ;;  %v9019_v1 = vcombine.low %v1361_v50, %v1365_v51  ;;  %v8974_v50 = vcombine.high %v10741_v46, %v10746_v47  ;;  %v10756_v51 = vld [vmem:[%s15133_s3 + $0x5c8] sm:$0xff] }
  0x44   : > { %2847 = vmatprep.subr.bf16.mxu0 %v8924_v23  ;;  %3040 = vmatprep.subr.bf16.mxu1 %v9052_v32  ;;  %v1493_v56 = vld [vmem:[%s15133_s3 + $0x760] sm:$0xff] }
  0x45   : > { %742 = vmatmul.mubr.bf16.gmra.mxu0 %v9905_v26  ;;  %935 = vmatmul.mubr.bf16.gmra.mxu1 %v9905_v26  ;;  %v1353_v59 = vld [vmem:[%s15133_s3 + $0x300] sm:$0xff]  ;;  %v9148_v3 = vcombine.high %v1489_v55, %v1493_v56  ;;  %v9147_v6 = vcombine.low %v1489_v55, %v1493_v56  ;;  %v9915_v56 = vld [vmem:[%s10490_s26 + $0x68] sm:$0xff]  }
  0x46   : > { %751 = vmatprep.mubr.bf16.mxu0 %v10346_v2  ;;  %944 = vmatprep.mubr.bf16.mxu1 %v10346_v2  ;;  %v1357_v60 = vld [vmem:[%s15133_s3 + $0x320] sm:$0xff] }
  0x47   : > { %2848 = vmatpush1.bf16.msra.mxu0 %v8923_v31  ;;  %3041 = vmatpush1.bf16.msra.mxu1 %v9051_v35  ;;  %v1481_v63 = vld [vmem:[%s15133_s3 + $0x700] sm:$0xff]  ;;  %v9012_v7 = vcombine.high %v1353_v59, %v1357_v60  ;;  %v9011_v12 = vcombine.low %v1353_v59, %v1357_v60  ;;  %v403_v59 = vlaneseq }
  0x48   : > { %2849 = vmatprep.subr.bf16.mxu0 %v8916_v36  ;;  %3042 = vmatprep.subr.bf16.mxu1 %v9044_v37  ;;  %v1485_v0 = vld [vmem:[%s15133_s3 + $0x720] sm:$0xff]  ;;  %v9911_v36 = vld [vmem:[%s10490_s26 + $0x48] sm:$0xff]  }
  0x49   : > { %v1345_v4 = vld [vmem:[%s15133_s3 + $0x2c0] sm:$0xff]  ;;  %v9140_v8 = vcombine.high %v1481_v63, %v1485_v0  ;;  %v9139_v15 = vcombine.low %v1481_v63, %v1485_v0  ;;  %v10779_v60 = vshrl.u32 %v403_v59, 7 }
  0x4a   : > { %v1349_v5 = vld [vmem:[%s15133_s3 + $0x2e0] sm:$0xff] }
  0x4b   : > { %2850 = vmatpush1.bf16.msra.mxu0 %v8915_v41  ;;  %3043 = vmatpush1.bf16.msra.mxu1 %v9043_v44  ;;  %v1473_v9 = vld [vmem:[%s15133_s3 + $0x6c0] sm:$0xff]  ;;  %v9004_v16 = vcombine.high %v1345_v4, %v1349_v5  ;;  %v9003_v19 = vcombine.low %v1345_v4, %v1349_v5  ;;  %15354 = vst [vmem:[#allocation2_spill] sm:$0xff] %v10779_v60  ;;  %v10788_v63 = vsub.s32 0, %v10779_v60  ;;  %v10791_v0 = vsub.s32 2, %v10779_v60 }
  0x4c   : > { %2851 = vmatprep.subr.bf16.mxu0 %v9036_v45  ;;  %3044 = vmatprep.subr.bf16.mxu1 %v9164_v49  ;;  %v1477_v10 = vld [vmem:[%s15133_s3 + $0x6e0] sm:$0xff]  ;;  %v9912_v45 = vld [vmem:[%s10490_s26 + $0x50] sm:$0xff]   ;;  %v8973_v49 = vcombine.low %v10741_v46, %v10746_v47  ;;  %v10917_v46 = vld [vmem:[%s15133_s3 + $0x508] sm:$0xff] }
  0x4d   : > { %752 = vmatmul.mubr.bf16.gmra.mxu0 %v9906_v40  ;;  %945 = vmatmul.mubr.bf16.gmra.mxu1 %v9906_v40  ;;  %v1337_v13 = vld [vmem:[%s15133_s3 + $0x280] sm:$0xff]  ;;  %v9132_v20 = vcombine.high %v1473_v9, %v1477_v10  ;;  %v9131_v23 = vcombine.low %v1473_v9, %v1477_v10  ;;  %15357 = vst [vmem:[#allocation5_spill] sm:$0xff] %v10788_v63  ;;  %15358 = vst [vmem:[#allocation6_spill] sm:$0xff] %v10791_v0 }
  0x4e   : > { %761 = vmatprep.mubr.bf16.mxu0 %v10346_v2  ;;  %954 = vmatprep.mubr.bf16.mxu1 %v10346_v2  ;;  %v1341_v14 = vld [vmem:[%s15133_s3 + $0x2a0] sm:$0xff] }
  0x4f   : > { %2852 = vmatpush2.bf16.msra.mxu0 %v9035_v48  ;;  %3045 = vmatpush2.bf16.msra.mxu1 %v9163_v52  ;;  %v1465_v17 = vld [vmem:[%s15133_s3 + $0x680] sm:$0xff]  ;;  %v8996_v24 = vcombine.high %v1337_v13, %v1341_v14  ;;  %v8995_v29 = vcombine.low %v1337_v13, %v1341_v14  ;;  %v9913_v48 = vld [vmem:[%s10490_s26 + $0x58] sm:$0xff]   ;;  %v10761_v52 = vld [vmem:[%s15133_s3 + $0x5e8] sm:$0xff] }
  0x50   : > { %2853 = vmatprep.subr.bf16.mxu0 %v9028_v53  ;;  %3046 = vmatprep.subr.bf16.mxu1 %v9156_v54  ;;  %v1469_v18 = vld [vmem:[%s15133_s3 + $0x6a0] sm:$0xff]  ;;  %v9101_v53 = vcombine.low %v10756_v51, %v10761_v52  ;;  %v9102_v54 = vcombine.high %v10756_v51, %v10761_v52 }
  0x51   : > { %v1329_v21 = vld [vmem:[%s15133_s3 + $0x240] sm:$0xff]  ;;  %v9124_v25 = vcombine.high %v1465_v17, %v1469_v18  ;;  %v9123_v30 = vcombine.low %v1465_v17, %v1469_v18 }
  0x52   : > { %v1333_v22 = vld [vmem:[%s15133_s3 + $0x260] sm:$0xff] }
  0x53   : > { %2854 = vmatpush2.bf16.msra.mxu0 %v9027_v58  ;;  %3047 = vmatpush2.bf16.msra.mxu1 %v9155_v61  ;;  %v1457_v26 = vld [vmem:[%s15133_s3 + $0x640] sm:$0xff]  ;;  %v8988_v31 = vcombine.high %v1329_v21, %v1333_v22  ;;  %v8987_v32 = vcombine.low %v1329_v21, %v1333_v22  ;;  %v9917_v58 = vld [vmem:[%s10490_s26 + $0x78] sm:$0xff]   ;;  %v10782_v61 = vsub.s32 1, %v10779_v60  ;;  %v10819_v22 = vld [vmem:[%s15133_s3 + $0x1d0] sm:$0xff] }
  0x54   : > { %2855 = vmatprep.subr.bf16.mxu0 %v9020_v62  ;;  %3048 = vmatprep.subr.bf16.mxu1 %v9148_v3  ;;  %v1461_v27 = vld [vmem:[%s15133_s3 + $0x660] sm:$0xff]  ;;  %v10785_v62 = vsub.s32 3, %v10779_v60 }
  0x55   : > { %762 = vmatmul.mubr.bf16.gmra.mxu0 %v9907_v57  ;;  %955 = vmatmul.mubr.bf16.gmra.mxu1 %v9907_v57  ;;  %v9116_v33 = vcombine.high %v1457_v26, %v1461_v27  ;;  %v9115_v34 = vcombine.low %v1457_v26, %v1461_v27  ;;  %v9910_v35 = vld [vmem:[%s10490_s26 + $0x40] sm:$0xff]   ;;  %v9916_v57 = vld [vmem:[%s10490_s26 + $0x70] sm:$0xff]   ;;  %15355 = vst [vmem:[#allocation3_spill] sm:$0xff] %v10782_v61  ;;  %v10824_v27 = vld [vmem:[%s15133_s3 + $0x188] sm:$0xff] }
  0x56   : > { %771 = vmatprep.mubr.bf16.mxu0 %v10346_v2  ;;  %964 = vmatprep.mubr.bf16.mxu1 %v10346_v2  ;;  %v1321_v37 = vld [vmem:[%s15133_s3 + $0x200] sm:$0xff]  ;;  %15356 = vst [vmem:[#allocation4_spill] sm:$0xff] %v10785_v62 }
  0x57   : > { %2856 = vmatpush2.bf16.msra.mxu0 %v9019_v1  ;;  %3049 = vmatpush2.bf16.msra.mxu1 %v9147_v6  ;;  %v1325_v38 = vld [vmem:[%s15133_s3 + $0x220] sm:$0xff] }
  0x58   : > { %2857 = vmatprep.subr.bf16.mxu0 %v9012_v7  ;;  %3050 = vmatprep.subr.bf16.mxu1 %v9140_v8  ;;  %v1449_v39 = vld [vmem:[%s15133_s3 + $0x600] sm:$0xff]  ;;  %v8980_v40 = vcombine.high %v1321_v37, %v1325_v38  ;;  %v8979_v42 = vcombine.low %v1321_v37, %v1325_v38 }
  0x59   : > { %v1453_v41 = vld [vmem:[%s15133_s3 + $0x620] sm:$0xff] }
  0x5a   : > { %v9107_v43 = vcombine.low %v1449_v39, %v1453_v41  ;;  %v9108_v44 = vcombine.high %v1449_v39, %v1453_v41  ;;  %v9914_v55 = vld [vmem:[%s10490_s26 + $0x60] sm:$0xff]  }
  0x5b   : > { %2858 = vmatpush2.bf16.msra.mxu0 %v9011_v12  ;;  %3051 = vmatpush2.bf16.msra.mxu1 %v9139_v15 }
  0x5c   : > { %2859 = vmatprep.subr.bf16.mxu0 %v9004_v16  ;;  %3052 = vmatprep.subr.bf16.mxu1 %v9132_v20 }
  0x5d   : > { %772 = vmatmul.mubr.bf16.gmra.mxu0 %v9908_v11  ;;  %965 = vmatmul.mubr.bf16.gmra.mxu1 %v9908_v11 }
  0x5e   : > { %781 = vmatprep.mubr.bf16.mxu0 %v10346_v2  ;;  %974 = vmatprep.mubr.bf16.mxu1 %v10346_v2 }
  0x5f   : > { %2860 = vmatpush2.bf16.msra.mxu0 %v9003_v19  ;;  %3053 = vmatpush2.bf16.msra.mxu1 %v9131_v23 }
  0x60   : > { %2861 = vmatprep.subr.bf16.mxu0 %v8996_v24  ;;  %3054 = vmatprep.subr.bf16.mxu1 %v9124_v25 }
  0x63   : > { %2862 = vmatpush2.bf16.msra.mxu0 %v8995_v29  ;;  %3055 = vmatpush2.bf16.msra.mxu1 %v9123_v30  ;;  %v10834_v29 = vld [vmem:[%s15133_s3 + $0x1f0] sm:$0xff] }
  0x64   : > { %2863 = vmatprep.subr.bf16.mxu0 %v8988_v31  ;;  %3056 = vmatprep.subr.bf16.mxu1 %v9116_v33 }
  0x65   : > { %782 = vmatmul.mubr.bf16.gmra.mxu0 %v9909_v28  ;;  %975 = vmatmul.mubr.bf16.gmra.mxu1 %v9909_v28  ;;  %v10829_v28 = vld [vmem:[%s15133_s3 + $0x1a8] sm:$0xff] }
  0x66   : > { %791 = vmatprep.mubr.bf16.mxu0 %v10346_v2  ;;  %984 = vmatprep.mubr.bf16.mxu1 %v10346_v2 }
  0x67   : > { %2864 = vmatpush2.bf16.msra.mxu0 %v8987_v32  ;;  %3057 = vmatpush2.bf16.msra.mxu1 %v9115_v34  ;;  %v10839_v34 = vld [vmem:[%s15133_s3 + $0x588] sm:$0xff] }
  0x68   : > { %2865 = vmatprep.subr.bf16.mxu0 %v8980_v40  ;;  %3058 = vmatprep.subr.bf16.mxu1 %v9108_v44  ;;  %v8966_v44 = vcombine.high %v10824_v27, %v10829_v28 }
  0x6b   : > { %2866 = vmatpush2.bf16.msra.mxu0 %v8979_v42  ;;  %3059 = vmatpush2.bf16.msra.mxu1 %v9107_v43  ;;  %v8965_v43 = vcombine.low %v10824_v27, %v10829_v28 }
  0x6c   : > { %3221 = vmatprep.subr.bf16.mxu0 %v8974_v50  ;;  %3414 = vmatprep.subr.bf16.mxu1 %v9102_v54 }
  0x6d   : > { %792 = vmatmul.mubr.bf16.gmra.mxu0 %v9910_v35  ;;  %985 = vmatmul.mubr.bf16.gmra.mxu1 %v9910_v35  ;;  %v10844_v35 = vld [vmem:[%s15133_s3 + $0x5a8] sm:$0xff] }
  0x6e   : > { %801 = vmatprep.mubr.bf16.mxu0 %v10346_v2  ;;  %994 = vmatprep.mubr.bf16.mxu1 %v10346_v2 }
  0x75   : > { %802 = vmatmul.mubr.bf16.gmra.mxu0 %v9911_v36  ;;  %995 = vmatmul.mubr.bf16.gmra.mxu1 %v9911_v36 }
  0x76   : > { %811 = vmatprep.mubr.bf16.mxu0 %v10346_v2  ;;  %1004 = vmatprep.mubr.bf16.mxu1 %v10346_v2 }
  0x7d   : > { %812 = vmatmul.mubr.bf16.gmra.mxu0 %v9912_v45  ;;  %1005 = vmatmul.mubr.bf16.gmra.mxu1 %v9912_v45 }
  0x7e   : > { %821 = vmatprep.mubr.bf16.mxu0 %v10346_v2  ;;  %1014 = vmatprep.mubr.bf16.mxu1 %v10346_v2 }
  0x85   : > { %822 = vmatmul.mubr.bf16.gmra.mxu0 %v9913_v48  ;;  %1015 = vmatmul.mubr.bf16.gmra.mxu1 %v9913_v48 }
  0x86   : > { %831 = vmatprep.mubr.bf16.mxu0 %v10346_v2  ;;  %1024 = vmatprep.mubr.bf16.mxu1 %v10346_v2 }
  0x8d   : > { %832 = vmatmul.mubr.bf16.gmra.mxu0 %v9914_v55  ;;  %1025 = vmatmul.mubr.bf16.gmra.mxu1 %v9914_v55 }
  0x8e   : > { %841 = vmatprep.mubr.bf16.mxu0 %v10346_v2  ;;  %1034 = vmatprep.mubr.bf16.mxu1 %v10346_v2 }
  0x95   : > { %842 = vmatmul.mubr.bf16.gmra.mxu0 %v9915_v56  ;;  %1035 = vmatmul.mubr.bf16.gmra.mxu1 %v9915_v56  ;;  %v9094_v56 = vcombine.high %v10839_v34, %v10844_v35 }
  0x96   : > { %851 = vmatprep.mubr.bf16.mxu0 %v10346_v2  ;;  %1044 = vmatprep.mubr.bf16.mxu1 %v10346_v2 }
  0x9d   : > { %852 = vmatmul.mubr.bf16.gmra.mxu0 %v9916_v57  ;;  %1045 = vmatmul.mubr.bf16.gmra.mxu1 %v9916_v57  ;;  %v10866_v57 = vld [vmem:[%s15133_s3 + $0x148] sm:$0xff] }
  0x9e   : > { %861 = vmatprep.mubr.bf16.mxu0 %v10346_v2  ;;  %1054 = vmatprep.mubr.bf16.mxu1 %v10346_v2  ;;  %v401_v2 = vld [vmem:[%s15132_s2] sm:$0xf] }
  0x9f   : > { %v10797_v4 = vrot.slane %v401_v2, %v10782_v61  ;;  %v10800_v5 = vrot.slane %v401_v2, %v10785_v62  ;;  %v10803_v6 = vrot.slane %v401_v2, %v10788_v63  ;;  %v10806_v7 = vrot.slane %v401_v2, %v10791_v0 }
  0xa5   : > { %862 = vmatmul.mubr.bf16.gmra.mxu0 %v9917_v58  ;;  %1055 = vmatmul.mubr.bf16.gmra.mxu1 %v9917_v58  ;;  %v10871_v58 = vld [vmem:[%s15133_s3 + $0x168] sm:$0xff] }
  0xed   : > { %v713_v1 = vpop.f32.mrf.mxu0  ;;  %v906_v3 = vpop.f32.mrf.mxu1 }
  0xee   : > { %v714_v16 = vadd.f32 %v713_v1, %v10803_v6  ;;  %v907_v17 = vadd.f32 %v906_v3, %v10806_v7  ;;  %v10881_v3 = vld [vmem:[%s15133_s3 + $0x548] sm:$0xff] }
  0xef   : > { %v715_v8 = vpop.f32.mrf.mxu0  ;;  %v908_v9 = vpop.f32.mrf.mxu1 }
  0xf0   : > { %v716_v12 = vadd.f32 %v715_v8, %v10797_v4  ;;  %v909_v13 = vadd.f32 %v908_v9, %v10800_v5  ;;  %v1065_v36 = vmax.f32 %v714_v16, 0.0  ;;  %v1067_v37 = vmax.f32 %v907_v17, 0.0  ;;  %v10886_v8 = vld [vmem:[%s15133_s3 + $0x568] sm:$0xff] }
  0xf1   : > { %v717_v10 = vpop.f32.mrf.mxu0  ;;  %v910_v11 = vpop.f32.mrf.mxu1  ;;  %v8957_v16 = vcombine.low %v10866_v57, %v10871_v58  ;;  %v10907_v17 = vld [vmem:[%s15133_s3 + $0x108] sm:$0xff] }
  0xf2   : > { %v718_v14 = vadd.f32 %v717_v10, %v10803_v6  ;;  %v911_v15 = vadd.f32 %v910_v11, %v10806_v7  ;;  %v1066_v30 = vmax.f32 %v716_v12, 0.0  ;;  %v1068_v31 = vmax.f32 %v909_v13, 0.0 }
  0xf3   : > { %v719_v18 = vpop.f32.mrf.mxu0  ;;  %v912_v19 = vpop.f32.mrf.mxu1  ;;  %v9093_v13 = vcombine.low %v10839_v34, %v10844_v35 }
  0xf4   : > { %v720_v20 = vadd.f32 %v719_v18, %v10797_v4  ;;  %v913_v21 = vadd.f32 %v912_v19, %v10800_v5  ;;  %v1069_v23 = vmax.f32 %v718_v14, 0.0  ;;  %v1071_v24 = vmax.f32 %v911_v15, 0.0  ;;  %v10912_v18 = vld [vmem:[%s15133_s3 + $0x128] sm:$0xff] }
  0xf5   : > { %v723_v25 = vpop.f32.mrf.mxu0  ;;  %v916_v26 = vpop.f32.mrf.mxu1  ;;  %v9085_v19 = vcombine.low %v10881_v3, %v10886_v8 }
  0xf6   : > { %v1070_v32 = vmax.f32 %v720_v20, 0.0  ;;  %v1072_v33 = vmax.f32 %v913_v21, 0.0  ;;  %v10856_v45 = vpack.c.bf16 %v1069_v23, %v1065_v36  ;;  %v10858_v48 = vpack.c.bf16 %v1071_v24, %v1067_v37  ;;  %v10926_v20 = vld [vmem:[%s15133_s3 + $0x528] sm:$0xff]  ;;  %v10931_v21 = vld [vmem:[%s15133_s3 + $0x5d0] sm:$0xff] }
  0xf7   : > { %v725_v38 = vpop.f32.mrf.mxu0  ;;  %v918_v39 = vpop.f32.mrf.mxu1  ;;  %v724_v9 = vadd.f32 %v723_v25, %v10803_v6  ;;  %v917_v10 = vadd.f32 %v916_v26, %v10806_v7  ;;  %v10936_v23 = vld [vmem:[%s15133_s3 + $0x5f0] sm:$0xff]  ;;  %v8950_v37 = vcombine.high %v10907_v17, %v10912_v18 }
  0xf8   : > { %v10848_v41 = vpack.c.bf16 %v1070_v32, %v1066_v30  ;;  %v10850_v42 = vpack.c.bf16 %v1072_v33, %v1068_v31  ;;  %15361 = vst [vmem:[#allocation9_spill] sm:$0xff] %v10858_v48  ;;  %v726_v50 = vadd.f32 %v725_v38, %v10797_v4  ;;  %v919_v59 = vadd.f32 %v918_v39, %v10800_v5 }
  0xf9   : > { %v727_v54 = vpop.f32.mrf.mxu0  ;;  %v920_v55 = vpop.f32.mrf.mxu1  ;;  %v1073_v28 = vmax.f32 %v724_v9, 0.0  ;;  %v1075_v30 = vmax.f32 %v917_v10, 0.0  ;;  %v9086_v33 = vcombine.high %v10881_v3, %v10886_v8  ;;  %v9078_v38 = vcombine.high %v10917_v46, %v10926_v20 }
  0xfa   : > { %15359 = vst [vmem:[#allocation7_spill] sm:$0xff] %v10848_v41  ;;  %15360 = vst [vmem:[#allocation8_spill] sm:$0xff] %v10850_v42  ;;  %v728_v2 = vadd.f32 %v727_v54, %v10803_v6  ;;  %v921_v1 = vadd.f32 %v920_v55, %v10806_v7  ;;  %2867 = vmatprep.mubr.bf16.mxu0 %v10848_v41  ;;  %3060 = vmatprep.mubr.bf16.mxu1 %v10850_v42  ;;  %v1074_v24 = vmax.f32 %v726_v50, 0.0 }
  0xfb   : > { %v729_v11 = vpop.f32.mrf.mxu0  ;;  %v922_v12 = vpop.f32.mrf.mxu1  ;;  %2868 = vmatmul.mubr.bf16.vlgmr.msra.gmra.mxu0 %v10856_v45  ;;  %3061 = vmatmul.mubr.bf16.vlgmr.msra.gmra.mxu1 %v10858_v48  ;;  %v1076_v25 = vmax.f32 %v919_v59, 0.0  ;;  %v10968_v59 = vld [vmem:[%s15133_s3 + $0xe8] sm:$0xff]  ;;  %v8949_v9 = vcombine.low %v10907_v17, %v10912_v18 }
  0xfc   : > { %v730_v14 = vadd.f32 %v729_v11, %v10797_v4  ;;  %v923_v15 = vadd.f32 %v922_v12, %v10800_v5  ;;  %3222 = vmatpush1.bf16.msra.mxu0 %v8973_v49  ;;  %3415 = vmatpush1.bf16.msra.mxu1 %v9101_v53  ;;  %v1077_v47 = vmax.f32 %v728_v2, 0.0  ;;  %v1079_v49 = vmax.f32 %v921_v1, 0.0 }
  0xfd   : > { %v733_v51 = vpop.f32.mrf.mxu0  ;;  %v926_v52 = vpop.f32.mrf.mxu1  ;;  %3223 = vmatprep.subr.bf16.mxu0 %v8966_v44  ;;  %3416 = vmatprep.subr.bf16.mxu1 %v9094_v56  ;;  %v8958_v53 = vcombine.high %v10866_v57, %v10871_v58  ;;  %v10963_v58 = vld [vmem:[%s15133_s3 + $0xc8] sm:$0xff]  ;;  %v9077_v12 = vcombine.low %v10917_v46, %v10926_v20 }
  0xfe   : > { %v1078_v26 = vmax.f32 %v730_v14, 0.0  ;;  %v1080_v27 = vmax.f32 %v923_v15, 0.0  ;;  %v10950_v39 = vpack.c.bf16 %v1077_v47, %v1073_v28  ;;  %v10952_v44 = vpack.c.bf16 %v1079_v49, %v1075_v30  ;;  %v1414_v14 = vld [vmem:[%s15133_s3 + $0x4e8] sm:$0xff] }
  0xff   : > { %v735_v31 = vpop.f32.mrf.mxu0  ;;  %v928_v32 = vpop.f32.mrf.mxu1  ;;  %v734_v2 = vadd.f32 %v733_v51, %v10803_v6  ;;  %v927_v1 = vadd.f32 %v926_v52, %v10806_v7  ;;  %v10991_v15 = vld [vmem:[%s15133_s3 + $0x88] sm:$0xff]  ;;  %v8941_v46 = vcombine.low %v10963_v58, %v10968_v59  ;;  %v8942_v49 = vcombine.high %v10963_v58, %v10968_v59 }
 0x100   : > { %v10942_v35 = vpack.c.bf16 %v1078_v26, %v1074_v24  ;;  %v10944_v36 = vpack.c.bf16 %v1080_v27, %v1076_v25  ;;  %3224 = vmatpush1.bf16.msra.mxu0 %v8965_v43  ;;  %v736_v50 = vadd.f32 %v735_v31, %v10797_v4  ;;  %3417 = vmatpush1.bf16.msra.mxu1 %v9093_v13  ;;  %v10983_v13 = vld [vmem:[%s15133_s3 + $0x4c8] sm:$0xff] }
 0x101   : > { %v737_v54 = vpop.f32.mrf.mxu0  ;;  %v930_v55 = vpop.f32.mrf.mxu1  ;;  %3225 = vmatprep.subr.bf16.mxu0 %v8958_v53  ;;  %v929_v56 = vadd.f32 %v928_v32, %v10800_v5  ;;  %3418 = vmatprep.subr.bf16.mxu1 %v9086_v33  ;;  %v11000_v51 = vld [vmem:[%s15133_s3 + $0xa8] sm:$0xff]  ;;  %v1081_v26 = vmax.f32 %v734_v2, 0.0  ;;  %v1083_v27 = vmax.f32 %v927_v1, 0.0  ;;  %v9069_v31 = vcombine.low %v10983_v13, %v1414_v14 }
 0x102   : > { %v738_v43 = vadd.f32 %v737_v54, %v10803_v6  ;;  %v931_v57 = vadd.f32 %v930_v55, %v10806_v7  ;;  %2877 = vmatprep.mubr.bf16.mxu0 %v10942_v35  ;;  %3070 = vmatprep.mubr.bf16.mxu1 %v10944_v36  ;;  %v11005_v52 = vld [vmem:[%s15133_s3 + $0x488] sm:$0xff]  ;;  %v9070_v32 = vcombine.high %v10983_v13, %v1414_v14 }
 0x103   : > { %v739_v3 = vpop.f32.mrf.mxu0  ;;  %v932_v8 = vpop.f32.mrf.mxu1  ;;  %2878 = vmatmul.mubr.bf16.gmra.mxu0 %v10950_v39  ;;  %3071 = vmatmul.mubr.bf16.gmra.mxu1 %v10952_v44  ;;  %v11010_v53 = vld [vmem:[%s15133_s3 + $0x4a8] sm:$0xff]  ;;  %v1084_v20 = vmax.f32 %v929_v56, 0.0 }
 0x104   : > { %v740_v10 = vadd.f32 %v739_v3, %v10797_v4  ;;  %v933_v11 = vadd.f32 %v932_v8, %v10800_v5  ;;  %3226 = vmatpush1.bf16.msra.mxu0 %v8957_v16  ;;  %v1085_v17 = vmax.f32 %v738_v43, 0.0  ;;  %v1087_v16 = vmax.f32 %v931_v57, 0.0  ;;  %3419 = vmatpush1.bf16.msra.mxu1 %v9085_v19  ;;  %v11035_v1 = vld [vmem:[%s15133_s3 + $0x48] sm:$0xff] }
 0x105   : > { %v743_v18 = vpop.f32.mrf.mxu0  ;;  %v936_v47 = vpop.f32.mrf.mxu1  ;;  %3227 = vmatprep.subr.bf16.mxu0 %v8950_v37  ;;  %v1082_v19 = vmax.f32 %v736_v50, 0.0  ;;  %3420 = vmatprep.subr.bf16.mxu1 %v9078_v38  ;;  %v8934_v50 = vcombine.high %v10991_v15, %v11000_v51  ;;  %v9062_v54 = vcombine.high %v11005_v52, %v11010_v53  ;;  %v11040_v3 = vld [vmem:[%s15133_s3 + $0x68] sm:$0xff] }
 0x106   : > { %v1086_v24 = vmax.f32 %v740_v10, 0.0  ;;  %v1088_v25 = vmax.f32 %v933_v11, 0.0  ;;  %v11022_v38 = vpack.c.bf16 %v1085_v17, %v1081_v26  ;;  %v11024_v55 = vpack.c.bf16 %v1087_v16, %v1083_v27  ;;  %v11055_v16 = vld [vmem:[%s15133_s3 + $0x448] sm:$0xff] }
 0x107   : > { %v745_v28 = vpop.f32.mrf.mxu0  ;;  %v938_v30 = vpop.f32.mrf.mxu1  ;;  %v744_v8 = vadd.f32 %v743_v18, %v10803_v6  ;;  %v9061_v17 = vcombine.low %v11005_v52, %v11010_v53  ;;  %v1398_v18 = vld [vmem:[%s15133_s3 + $0x468] sm:$0xff]  ;;  %v8925_v52 = vcombine.low %v11035_v1, %v11040_v3  ;;  %v8926_v53 = vcombine.high %v11035_v1, %v11040_v3 }
 0x108   : > { %v11014_v33 = vpack.c.bf16 %v1086_v24, %v1082_v19  ;;  %v11016_v37 = vpack.c.bf16 %v1088_v25, %v1084_v20  ;;  %3228 = vmatpush1.bf16.msra.mxu0 %v8949_v9  ;;  %v746_v56 = vadd.f32 %v745_v28, %v10797_v4  ;;  %3421 = vmatpush1.bf16.msra.mxu1 %v9077_v12  ;;  %v11072_v19 = vld [vmem:[%s15133_s3 + $0x28] sm:$0xff] }
 0x109   : > { %v747_v43 = vpop.f32.mrf.mxu0  ;;  %v940_v57 = vpop.f32.mrf.mxu1  ;;  %3229 = vmatprep.subr.bf16.mxu0 %v8942_v49  ;;  %v939_v58 = vadd.f32 %v938_v30, %v10800_v5  ;;  %v937_v9 = vadd.f32 %v936_v47, %v10806_v7  ;;  %v8933_v12 = vcombine.low %v10991_v15, %v11000_v51  ;;  %3422 = vmatprep.subr.bf16.mxu1 %v9070_v32  ;;  %v11063_v15 = vld [vmem:[%s15133_s3 + $0x8] sm:$0xff]  ;;  %v1089_v30 = vmax.f32 %v744_v8, 0.0 }
 0x10a   : > { %v748_v59 = vadd.f32 %v747_v43, %v10803_v6  ;;  %v941_v2 = vadd.f32 %v940_v57, %v10806_v7  ;;  %2887 = vmatprep.mubr.bf16.mxu0 %v11014_v33  ;;  %3080 = vmatprep.mubr.bf16.mxu1 %v11016_v37  ;;  %v11077_v20 = vld [vmem:[%s15133_s3 + $0x408] sm:$0xff]  ;;  %v1090_v25 = vmax.f32 %v746_v56, 0.0  ;;  %v9053_v43 = vcombine.low %v11055_v16, %v1398_v18 }
 0x10b   : > { %v749_v10 = vpop.f32.mrf.mxu0  ;;  %v942_v11 = vpop.f32.mrf.mxu1  ;;  %2888 = vmatmul.mubr.bf16.gmra.mxu0 %v11022_v38  ;;  %3081 = vmatmul.mubr.bf16.gmra.mxu1 %v11024_v55  ;;  %v11082_v24 = vld [vmem:[%s15133_s3 + $0x428] sm:$0xff]  ;;  %v1092_v26 = vmax.f32 %v939_v58, 0.0  ;;  %v9054_v57 = vcombine.high %v11055_v16, %v1398_v18  ;;  %v8918_v56 = vcombine.high %v11063_v15, %v11072_v19 }
 0x10c   : > { %v750_v13 = vadd.f32 %v749_v10, %v10797_v4  ;;  %v943_v14 = vadd.f32 %v942_v11, %v10800_v5  ;;  %3230 = vmatpush1.bf16.msra.mxu0 %v8941_v46  ;;  %v1093_v47 = vmax.f32 %v748_v59, 0.0  ;;  %v1095_v46 = vmax.f32 %v941_v2, 0.0  ;;  %3423 = vmatpush1.bf16.msra.mxu1 %v9069_v31 }
 0x10d   : > { %v753_v49 = vpop.f32.mrf.mxu0  ;;  %v946_v51 = vpop.f32.mrf.mxu1  ;;  %3231 = vmatprep.subr.bf16.mxu0 %v8934_v50  ;;  %3424 = vmatprep.subr.bf16.mxu1 %v9062_v54  ;;  %v1091_v31 = vmax.f32 %v937_v9, 0.0  ;;  %v9046_v58 = vcombine.high %v11077_v20, %v11082_v24 }
 0x10e   : > { %v1094_v27 = vmax.f32 %v750_v13, 0.0  ;;  %v1096_v28 = vmax.f32 %v943_v14, 0.0  ;;  %v11094_v54 = vpack.c.bf16 %v1093_v47, %v1089_v30  ;;  %v11107_v13 = vld [vmem:[%s15133_s3 + $0x3c8] sm:$0xff]  ;;  %v947_v16 = vadd.f32 %v946_v51, %v10806_v7 }
 0x10f   : > { %v755_v32 = vpop.f32.mrf.mxu0  ;;  %v948_v50 = vpop.f32.mrf.mxu1  ;;  %v11096_v1 = vpack.c.bf16 %v1095_v46, %v1091_v31  ;;  %v11112_v14 = vld [vmem:[%s15133_s3 + $0x3e8] sm:$0xff]  ;;  %v8917_v46 = vcombine.low %v11063_v15, %v11072_v19 }
 0x110   : > { %v11086_v59 = vpack.c.bf16 %v1094_v27, %v1090_v25  ;;  %v11088_v2 = vpack.c.bf16 %v1096_v28, %v1092_v26  ;;  %3232 = vmatpush1.bf16.msra.mxu0 %v8933_v12  ;;  %v756_v3 = vadd.f32 %v755_v32, %v10797_v4  ;;  %3425 = vmatpush1.bf16.msra.mxu1 %v9061_v17  ;;  %v11127_v51 = vld [vmem:[%s15133_s3 + $0x7c8] sm:$0xff] }
 0x111   : > { %v757_v8 = vpop.f32.mrf.mxu0  ;;  %v950_v9 = vpop.f32.mrf.mxu1  ;;  %3233 = vmatprep.subr.bf16.mxu0 %v8926_v53  ;;  %v949_v10 = vadd.f32 %v948_v50, %v10800_v5  ;;  %v754_v17 = vadd.f32 %v753_v49, %v10803_v6  ;;  %3426 = vmatprep.subr.bf16.mxu1 %v9054_v57  ;;  %v9045_v49 = vcombine.low %v11077_v20, %v11082_v24  ;;  %v1510_v26 = vld [vmem:[%s15133_s3 + $0x7e8] sm:$0xff] }
 0x112   : > { %v758_v11 = vadd.f32 %v757_v8, %v10803_v6  ;;  %v951_v12 = vadd.f32 %v950_v9, %v10806_v7  ;;  %2897 = vmatprep.mubr.bf16.mxu0 %v11086_v59  ;;  %3090 = vmatprep.mubr.bf16.mxu1 %v11088_v2  ;;  %v11135_v15 = vld [vmem:[%s15133_s3 + $0x388] sm:$0xff]  ;;  %v9037_v20 = vcombine.low %v11107_v13, %v11112_v14  ;;  %v1098_v50 = vmax.f32 %v756_v3, 0.0 }
 0x113   : > { %v759_v18 = vpop.f32.mrf.mxu0  ;;  %v952_v47 = vpop.f32.mrf.mxu1  ;;  %2898 = vmatmul.mubr.bf16.gmra.mxu0 %v11094_v54  ;;  %3091 = vmatmul.mubr.bf16.gmra.mxu1 %v11096_v1  ;;  %v9038_v24 = vcombine.high %v11107_v13, %v11112_v14  ;;  %v11144_v30 = vld [vmem:[%s15133_s3 + $0x3a8] sm:$0xff]  ;;  %v1097_v8 = vmax.f32 %v754_v17, 0.0  ;;  %v1099_v9 = vmax.f32 %v947_v16, 0.0  ;;  %v9165_v13 = vcombine.low %v11127_v51, %v1510_v26 }
 0x114   : > { %v760_v53 = vadd.f32 %v759_v18, %v10797_v4  ;;  %v953_v25 = vadd.f32 %v952_v47, %v10800_v5  ;;  %3234 = vmatpush1.bf16.msra.mxu0 %v8925_v52  ;;  %v1101_v19 = vmax.f32 %v758_v11, 0.0  ;;  %v1103_v52 = vmax.f32 %v951_v12, 0.0  ;;  %3427 = vmatpush1.bf16.msra.mxu1 %v9053_v43  ;;  %v11149_v31 = vld [vmem:[%s15133_s3 + $0x788] sm:$0xff] }
 0x115   : > { %v763_v27 = vpop.f32.mrf.mxu0  ;;  %v956_v28 = vpop.f32.mrf.mxu1  ;;  %3235 = vmatprep.subr.bf16.mxu0 %v8918_v56  ;;  %v11154_v32 = vld [vmem:[%s15133_s3 + $0x7a8] sm:$0xff]  ;;  %v1100_v43 = vmax.f32 %v949_v10, 0.0  ;;  %3428 = vmatprep.subr.bf16.mxu1 %v9046_v58  ;;  %v9166_v14 = vcombine.high %v11127_v51, %v1510_v26  ;;  %v9030_v3 = vcombine.high %v11135_v15, %v11144_v30 }
 0x116   : > { %v1102_v57 = vmax.f32 %v760_v53, 0.0  ;;  %v1104_v56 = vmax.f32 %v953_v25, 0.0  ;;  %v9158_v10 = vcombine.high %v11149_v31, %v11154_v32  ;;  %v11166_v58 = vpack.c.bf16 %v1101_v19, %v1097_v8  ;;  %v11179_v19 = vld [vmem:[%s15133_s3 + $0x348] sm:$0xff] }
 0x117   : > { %v765_v11 = vpop.f32.mrf.mxu0  ;;  %v958_v12 = vpop.f32.mrf.mxu1  ;;  %v11168_v17 = vpack.c.bf16 %v1103_v52, %v1099_v9  ;;  %v764_v52 = vadd.f32 %v763_v27, %v10803_v6  ;;  %v9157_v27 = vcombine.low %v11149_v31, %v11154_v32  ;;  %v1494_v9 = vld [vmem:[%s15133_s3 + $0x768] sm:$0xff] }
 0x118   : > { %v11158_v18 = vpack.c.bf16 %v1102_v57, %v1098_v50  ;;  %v11160_v47 = vpack.c.bf16 %v1104_v56, %v1100_v43  ;;  %3236 = vmatpush1.bf16.msra.mxu0 %v8917_v46  ;;  %v766_v16 = vadd.f32 %v765_v11, %v10797_v4  ;;  %3429 = vmatpush1.bf16.msra.mxu1 %v9045_v49  ;;  %v11184_v49 = vld [vmem:[%s15133_s3 + $0x368] sm:$0xff] }
 0x119   : > { %v767_v53 = vpop.f32.mrf.mxu0  ;;  %v960_v25 = vpop.f32.mrf.mxu1  ;;  %3237 = vmatprep.subr.bf16.mxu0 %v9038_v24  ;;  %v959_v51 = vadd.f32 %v958_v12, %v10800_v5  ;;  %v957_v24 = vadd.f32 %v956_v28, %v10806_v7  ;;  %v9029_v57 = vcombine.low %v11135_v15, %v11144_v30  ;;  %3430 = vmatprep.subr.bf16.mxu1 %v9166_v14  ;;  %v11199_v28 = vld [vmem:[%s15133_s3 + $0x748] sm:$0xff] }
 0x11a   : > { %v768_v46 = vadd.f32 %v767_v53, %v10803_v6  ;;  %v961_v26 = vadd.f32 %v960_v25, %v10806_v7  ;;  %2907 = vmatprep.mubr.bf16.mxu0 %v11158_v18  ;;  %3100 = vmatprep.mubr.bf16.mxu1 %v11160_v47  ;;  %v11207_v15 = vld [vmem:[%s15133_s3 + $0x308] sm:$0xff]  ;;  %v9021_v31 = vcombine.low %v11179_v19, %v11184_v49 }
 0x11b   : > { %v769_v50 = vpop.f32.mrf.mxu0  ;;  %v962_v43 = vpop.f32.mrf.mxu1  ;;  %2908 = vmatmul.mubr.bf16.gmra.mxu0 %v11166_v58  ;;  %3101 = vmatmul.mubr.bf16.gmra.mxu1 %v11168_v17  ;;  %v9022_v32 = vcombine.high %v11179_v19, %v11184_v49  ;;  %v11216_v14 = vld [vmem:[%s15133_s3 + $0x328] sm:$0xff]  ;;  %v1108_v25 = vmax.f32 %v959_v51, 0.0  ;;  %v1105_v19 = vmax.f32 %v764_v52, 0.0  ;;  %v1107_v49 = vmax.f32 %v957_v24, 0.0 }
 0x11c   : > { %v770_v56 = vadd.f32 %v769_v50, %v10797_v4  ;;  %v963_v8 = vadd.f32 %v962_v43, %v10800_v5  ;;  %3238 = vmatpush2.bf16.msra.mxu0 %v9037_v20  ;;  %v1109_v30 = vmax.f32 %v768_v46, 0.0  ;;  %v1111_v20 = vmax.f32 %v961_v26, 0.0  ;;  %3431 = vmatpush2.bf16.msra.mxu1 %v9165_v13  ;;  %v11221_v53 = vld [vmem:[%s15133_s3 + $0x708] sm:$0xff] }
 0x11d   : > { %v773_v11 = vpop.f32.mrf.mxu0  ;;  %v966_v12 = vpop.f32.mrf.mxu1  ;;  %3239 = vmatprep.subr.bf16.mxu0 %v9030_v3  ;;  %v11226_v13 = vld [vmem:[%s15133_s3 + $0x728] sm:$0xff]  ;;  %v1106_v3 = vmax.f32 %v766_v16, 0.0  ;;  %3432 = vmatprep.subr.bf16.mxu1 %v9158_v10  ;;  %v9149_v34 = vcombine.low %v11199_v28, %v1494_v9  ;;  %v9150_v40 = vcombine.high %v11199_v28, %v1494_v9  ;;  %v9014_v16 = vcombine.high %v11207_v15, %v11216_v14 }
 0x11e   : > { %v1110_v46 = vmax.f32 %v770_v56, 0.0  ;;  %v1112_v26 = vmax.f32 %v963_v8, 0.0  ;;  %v9142_v51 = vcombine.high %v11221_v53, %v11226_v13  ;;  %v11238_v10 = vpack.c.bf16 %v1109_v30, %v1105_v19  ;;  %v11251_v30 = vld [vmem:[%s15133_s3 + $0x2c8] sm:$0xff] }
 0x11f   : > { %v775_v50 = vpop.f32.mrf.mxu0  ;;  %v968_v43 = vpop.f32.mrf.mxu1  ;;  %v11240_v52 = vpack.c.bf16 %v1111_v20, %v1107_v49  ;;  %v774_v20 = vadd.f32 %v773_v11, %v10803_v6  ;;  %v9141_v11 = vcombine.low %v11221_v53, %v11226_v13  ;;  %v1478_v49 = vld [vmem:[%s15133_s3 + $0x6e8] sm:$0xff] }
 0x120   : > { %v11230_v60 = vpack.c.bf16 %v1110_v46, %v1106_v3  ;;  %v11232_v62 = vpack.c.bf16 %v1112_v26, %v1108_v25  ;;  %3240 = vmatpush2.bf16.msra.mxu0 %v9029_v57  ;;  %15362 = vst [vmem:[#allocation10_spill] sm:$0xff] %v11238_v10  ;;  %v776_v24 = vadd.f32 %v775_v50, %v10797_v4 }
 0x121   : > { %15363 = vst [vmem:[#allocation11_spill] sm:$0xff] %v11240_v52  ;;  %v777_v56 = vpop.f32.mrf.mxu0  ;;  %v970_v8 = vpop.f32.mrf.mxu1  ;;  %3433 = vmatpush2.bf16.msra.mxu1 %v9157_v27  ;;  %3241 = vmatprep.subr.bf16.mxu0 %v9022_v32  ;;  %v969_v28 = vadd.f32 %v968_v43, %v10800_v5  ;;  %v11256_v27 = vld [vmem:[%s15133_s3 + $0x2e8] sm:$0xff]  ;;  %v967_v32 = vadd.f32 %v966_v12, %v10806_v7 }
 0x122   : > { %v778_v57 = vadd.f32 %v777_v56, %v10803_v6  ;;  %v971_v9 = vadd.f32 %v970_v8, %v10806_v7  ;;  %2917 = vmatprep.mubr.bf16.mxu0 %v11230_v60  ;;  %3110 = vmatprep.mubr.bf16.mxu1 %v11232_v62  ;;  %v9013_v46 = vcombine.low %v11207_v15, %v11216_v14  ;;  %v11271_v12 = vld [vmem:[%s15133_s3 + $0x6c8] sm:$0xff] }
 0x123   : > { %v779_v3 = vpop.f32.mrf.mxu0  ;;  %v972_v25 = vpop.f32.mrf.mxu1  ;;  %2918 = vmatmul.mubr.bf16.gmra.mxu0 %v11238_v10  ;;  %3111 = vmatmul.mubr.bf16.gmra.mxu1 %v11240_v52  ;;  %v11279_v15 = vld [vmem:[%s15133_s3 + $0x288] sm:$0xff]  ;;  %v9005_v53 = vcombine.low %v11251_v30, %v11256_v27  ;;  %v9006_v13 = vcombine.high %v11251_v30, %v11256_v27  ;;  %v1116_v8 = vmax.f32 %v969_v28, 0.0  ;;  %v1113_v30 = vmax.f32 %v774_v20, 0.0 }
 0x124   : > { %v780_v26 = vadd.f32 %v779_v3, %v10797_v4  ;;  %v973_v19 = vadd.f32 %v972_v25, %v10800_v5  ;;  %3242 = vmatpush2.bf16.msra.mxu0 %v9021_v31  ;;  %3434 = vmatprep.subr.bf16.mxu1 %v9150_v40  ;;  %v1117_v14 = vmax.f32 %v778_v57, 0.0  ;;  %v1119_v31 = vmax.f32 %v971_v9, 0.0  ;;  %v11288_v43 = vld [vmem:[%s15133_s3 + $0x2a8] sm:$0xff] }
 0x125   : > { %v783_v40 = vpop.f32.mrf.mxu0  ;;  %v976_v50 = vpop.f32.mrf.mxu1  ;;  %3435 = vmatpush2.bf16.msra.mxu1 %v9149_v34  ;;  %3243 = vmatprep.subr.bf16.mxu0 %v9014_v16  ;;  %v11293_v56 = vld [vmem:[%s15133_s3 + $0x688] sm:$0xff]  ;;  %v1114_v16 = vmax.f32 %v776_v24, 0.0  ;;  %v1115_v27 = vmax.f32 %v967_v32, 0.0  ;;  %v9133_v0 = vcombine.low %v11271_v12, %v1478_v49  ;;  %v9134_v61 = vcombine.high %v11271_v12, %v1478_v49 }
 0x126   : > { %v11298_v34 = vld [vmem:[%s15133_s3 + $0x6a8] sm:$0xff]  ;;  %v1118_v57 = vmax.f32 %v780_v26, 0.0  ;;  %v1120_v9 = vmax.f32 %v973_v19, 0.0  ;;  %3436 = vmatprep.subr.bf16.mxu1 %v9142_v51  ;;  %v8998_v24 = vcombine.high %v11279_v15, %v11288_v43  ;;  %v11310_v51 = vpack.c.bf16 %v1117_v14, %v1113_v30 }
 0x127   : > { %v785_v3 = vpop.f32.mrf.mxu0  ;;  %v978_v25 = vpop.f32.mrf.mxu1  ;;  %v9126_v28 = vcombine.high %v11293_v56, %v11298_v34  ;;  %v11312_v20 = vpack.c.bf16 %v1119_v31, %v1115_v27  ;;  %v11323_v14 = vld [vmem:[%s15133_s3 + $0x248] sm:$0xff]  ;;  %v784_v31 = vadd.f32 %v783_v40, %v10803_v6  ;;  %v9125_v40 = vcombine.low %v11293_v56, %v11298_v34 }
 0x128   : > { %v11302_v63 = vpack.c.bf16 %v1118_v57, %v1114_v16  ;;  %v11304_v52 = vpack.c.bf16 %v1120_v9, %v1116_v8  ;;  %3244 = vmatpush2.bf16.msra.mxu0 %v9013_v46  ;;  %15366 = vst [vmem:[#allocation14_spill] sm:$0xff] %v11310_v51  ;;  %v786_v32 = vadd.f32 %v785_v3, %v10797_v4  ;;  %v1462_v27 = vld [vmem:[%s15133_s3 + $0x668] sm:$0xff] }
 0x129   : > { %15367 = vst [vmem:[#allocation15_spill] sm:$0xff] %v11312_v20  ;;  %v787_v26 = vpop.f32.mrf.mxu0  ;;  %v980_v19 = vpop.f32.mrf.mxu1  ;;  %3437 = vmatpush2.bf16.msra.mxu1 %v9141_v11  ;;  %3245 = vmatprep.subr.bf16.mxu0 %v9006_v13  ;;  %v979_v12 = vadd.f32 %v978_v25, %v10800_v5  ;;  %v11328_v11 = vld [vmem:[%s15133_s3 + $0x268] sm:$0xff]  ;;  %v977_v13 = vadd.f32 %v976_v50, %v10806_v7 }
 0x12a   : > { %15364 = vst [vmem:[#allocation12_spill] sm:$0xff] %v11302_v63  ;;  %15365 = vst [vmem:[#allocation13_spill] sm:$0xff] %v11304_v52  ;;  %v788_v46 = vadd.f32 %v787_v26, %v10803_v6  ;;  %v981_v49 = vadd.f32 %v980_v19, %v10806_v7  ;;  %2927 = vmatprep.mubr.bf16.mxu0 %v11302_v63  ;;  %3120 = vmatprep.mubr.bf16.mxu1 %v11304_v52  ;;  %v1458_v50 = vld [vmem:[%s15133_s3 + $0x648] sm:$0xff] }
 0x12b   : > { %v789_v16 = vpop.f32.mrf.mxu0  ;;  %v982_v8 = vpop.f32.mrf.mxu1  ;;  %2928 = vmatmul.mubr.bf16.gmra.mxu0 %v11310_v51  ;;  %3121 = vmatmul.mubr.bf16.gmra.mxu1 %v11312_v20  ;;  %v8997_v57 = vcombine.low %v11279_v15, %v11288_v43  ;;  %v11349_v15 = vld [vmem:[%s15133_s3 + $0x208] sm:$0xff]  ;;  %v8989_v56 = vcombine.low %v11323_v14, %v11328_v11  ;;  %v8990_v34 = vcombine.high %v11323_v14, %v11328_v11  ;;  %v1124_v19 = vmax.f32 %v979_v12, 0.0 }
 0x12c   : > { %v790_v9 = vadd.f32 %v789_v16, %v10797_v4  ;;  %v983_v30 = vadd.f32 %v982_v8, %v10800_v5  ;;  %3246 = vmatpush2.bf16.msra.mxu0 %v9005_v53  ;;  %3438 = vmatprep.subr.bf16.mxu1 %v9134_v61  ;;  %v1125_v43 = vmax.f32 %v788_v46, 0.0  ;;  %v1127_v3 = vmax.f32 %v981_v49, 0.0  ;;  %v1326_v25 = vld [vmem:[%s15133_s3 + $0x228] sm:$0xff] }
 0x12d   : > { %v793_v53 = vpop.f32.mrf.mxu0  ;;  %v986_v61 = vpop.f32.mrf.mxu1  ;;  %3439 = vmatpush2.bf16.msra.mxu1 %v9133_v0  ;;  %3247 = vmatprep.subr.bf16.mxu0 %v8998_v24  ;;  %v11361_v26 = vld [vmem:[%s15133_s3 + $0x608] sm:$0xff]  ;;  %v1122_v24 = vmax.f32 %v786_v32, 0.0  ;;  %v1121_v14 = vmax.f32 %v784_v31, 0.0  ;;  %v1123_v11 = vmax.f32 %v977_v13, 0.0  ;;  %v9117_v20 = vcombine.low %v1458_v50, %v1462_v27 }
 0x12e   : > { %v11366_v0 = vld [vmem:[%s15133_s3 + $0x628] sm:$0xff]  ;;  %v1126_v46 = vmax.f32 %v790_v9, 0.0  ;;  %v1128_v49 = vmax.f32 %v983_v30, 0.0  ;;  %3440 = vmatprep.subr.bf16.mxu1 %v9126_v28  ;;  %v9118_v51 = vcombine.high %v1458_v50, %v1462_v27  ;;  %v8982_v10 = vcombine.high %v11349_v15, %v1326_v25 }
 0x12f   : > { %v795_v16 = vpop.f32.mrf.mxu0  ;;  %v988_v8 = vpop.f32.mrf.mxu1  ;;  %v9110_v32 = vcombine.high %v11361_v26, %v11366_v0  ;;  %v11375_v12 = vpack.c.bf16 %v1125_v43, %v1121_v14  ;;  %v11377_v9 = vpack.c.bf16 %v1127_v3, %v1123_v11  ;;  %v794_v27 = vadd.f32 %v793_v53, %v10803_v6 }
 0x130   : > { %v11368_v52 = vpack.c.bf16 %v1126_v46, %v1122_v24  ;;  %v11370_v63 = vpack.c.bf16 %v1128_v49, %v1124_v19  ;;  %3248 = vmatpush2.bf16.msra.mxu0 %v8997_v57  ;;  %v796_v28 = vadd.f32 %v795_v16, %v10797_v4  ;;  %v989_v30 = vadd.f32 %v988_v8, %v10800_v5 }
 0x131   : > { %15369 = vst [vmem:[#allocation17_spill] sm:$0xff] %v11377_v9  ;;  %v797_v31 = vpop.f32.mrf.mxu0  ;;  %v990_v13 = vpop.f32.mrf.mxu1  ;;  %3441 = vmatpush2.bf16.msra.mxu1 %v9125_v40  ;;  %3249 = vmatprep.subr.bf16.mxu0 %v8990_v34  ;;  %v987_v43 = vadd.f32 %v986_v61, %v10806_v7  ;;  %v8981_v19 = vcombine.low %v11349_v15, %v1326_v25 }
 0x132   : > { %15368 = vst [vmem:[#allocation16_spill] sm:$0xff] %v11370_v63  ;;  %v798_v50 = vadd.f32 %v797_v31, %v10803_v6  ;;  %v991_v57 = vadd.f32 %v990_v13, %v10806_v7  ;;  %2937 = vmatprep.mubr.bf16.mxu0 %v11368_v52  ;;  %3130 = vmatprep.mubr.bf16.mxu1 %v11370_v63  ;;  %v1130_v16 = vmax.f32 %v796_v28, 0.0  ;;  %v1132_v8 = vmax.f32 %v989_v30, 0.0 }
 0x133   : > { %v799_v3 = vpop.f32.mrf.mxu0  ;;  %v992_v24 = vpop.f32.mrf.mxu1  ;;  %2938 = vmatmul.mubr.bf16.gmra.mxu0 %v11375_v12  ;;  %3131 = vmatmul.mubr.bf16.gmra.mxu1 %v11377_v9  ;;  %v9109_v61 = vcombine.low %v11361_v26, %v11366_v0  ;;  %v8976_v11 = vcombine.high %v10819_v22, %v10834_v29 }
 0x134   : > { %v800_v40 = vadd.f32 %v799_v3, %v10797_v4  ;;  %v993_v34 = vadd.f32 %v992_v24, %v10800_v5  ;;  %3250 = vmatpush2.bf16.msra.mxu0 %v8989_v56  ;;  %3442 = vmatprep.subr.bf16.mxu1 %v9118_v51  ;;  %v1133_v46 = vmax.f32 %v798_v50, 0.0  ;;  %v1135_v49 = vmax.f32 %v991_v57, 0.0 }
 0x135   : > { %v803_v14 = vpop.f32.mrf.mxu0  ;;  %v996_v53 = vpop.f32.mrf.mxu1  ;;  %3443 = vmatpush2.bf16.msra.mxu1 %v9117_v20  ;;  %3251 = vmatprep.subr.bf16.mxu0 %v8982_v10  ;;  %v1129_v51 = vmax.f32 %v794_v27, 0.0  ;;  %v1131_v56 = vmax.f32 %v987_v43, 0.0  ;;  %v9104_v10 = vcombine.high %v10931_v21, %v10936_v23 }
 0x136   : > { %v1134_v31 = vmax.f32 %v800_v40, 0.0  ;;  %v1136_v13 = vmax.f32 %v993_v34, 0.0  ;;  %3444 = vmatprep.subr.bf16.mxu1 %v9110_v32  ;;  %v804_v3 = vadd.f32 %v803_v14, %v10803_v6  ;;  %v997_v24 = vadd.f32 %v996_v53, %v10806_v7 }
 0x137   : > { %v805_v15 = vpop.f32.mrf.mxu0  ;;  %v998_v25 = vpop.f32.mrf.mxu1  ;;  %v11402_v20 = vpack.c.bf16 %v1133_v46, %v1129_v51  ;;  %v11404_v26 = vpack.c.bf16 %v1135_v49, %v1131_v56 }
 0x138   : > { %v11396_v50 = vpack.c.bf16 %v1134_v31, %v1130_v16  ;;  %v11398_v57 = vpack.c.bf16 %v1136_v13, %v1132_v8  ;;  %3252 = vmatpush2.bf16.msra.mxu0 %v8981_v19  ;;  %v806_v0 = vadd.f32 %v805_v15, %v10797_v4  ;;  %v999_v30 = vadd.f32 %v998_v25, %v10800_v5 }
 0x139   : > { %15372 = vst [vmem:[#allocation20_spill] sm:$0xff] %v11402_v20  ;;  %15373 = vst [vmem:[#allocation21_spill] sm:$0xff] %v11404_v26  ;;  %v807_v28 = vpop.f32.mrf.mxu0  ;;  %v1000_v32 = vpop.f32.mrf.mxu1  ;;  %3445 = vmatpush2.bf16.msra.mxu1 %v9109_v61  ;;  %3607 = vmatprep.subr.bf16.mxu0 %v8976_v11  ;;  %v1137_v53 = vmax.f32 %v804_v3, 0.0  ;;  %v1139_v51 = vmax.f32 %v997_v24, 0.0 }
 0x13a   : > { %15370 = vst [vmem:[#allocation18_spill] sm:$0xff] %v11396_v50  ;;  %15371 = vst [vmem:[#allocation19_spill] sm:$0xff] %v11398_v57  ;;  %v808_v27 = vadd.f32 %v807_v28, %v10803_v6  ;;  %v1001_v43 = vadd.f32 %v1000_v32, %v10806_v7  ;;  %2947 = vmatprep.mubr.bf16.mxu0 %v11396_v50  ;;  %3140 = vmatprep.mubr.bf16.mxu1 %v11398_v57  ;;  %v1138_v8 = vmax.f32 %v806_v0, 0.0 }
 0x13b   : > { %v809_v40 = vpop.f32.mrf.mxu0  ;;  %v1002_v34 = vpop.f32.mrf.mxu1  ;;  %2948 = vmatmul.mubr.bf16.gmra.mxu0 %v11402_v20  ;;  %3141 = vmatmul.mubr.bf16.gmra.mxu1 %v11404_v26  ;;  %v1140_v31 = vmax.f32 %v999_v30, 0.0 }
 0x13c   : > { %v810_v19 = vadd.f32 %v809_v40, %v10797_v4  ;;  %v1003_v46 = vadd.f32 %v1002_v34, %v10800_v5  ;;  %3800 = vmatprep.subr.bf16.mxu1 %v9104_v10  ;;  %v1141_v49 = vmax.f32 %v808_v27, 0.0  ;;  %v1143_v61 = vmax.f32 %v1001_v43, 0.0 }
 0x13d   : > { %v813_v11 = vpop.f32.mrf.mxu0  ;;  %v1006_v16 = vpop.f32.mrf.mxu1 }
 0x13e   : > { %v1142_v14 = vmax.f32 %v810_v19, 0.0  ;;  %v1144_v13 = vmax.f32 %v1003_v46, 0.0  ;;  %v11422_v32 = vpack.c.bf16 %v1141_v49, %v1137_v53  ;;  %v11424_v40 = vpack.c.bf16 %v1143_v61, %v1139_v51 }
 0x13f   : > { %v815_v56 = vpop.f32.mrf.mxu0  ;;  %v1008_v15 = vpop.f32.mrf.mxu1  ;;  %v814_v24 = vadd.f32 %v813_v11, %v10803_v6  ;;  %v1007_v34 = vadd.f32 %v1006_v16, %v10806_v7 }
 0x140   : > { %v11418_v25 = vpack.c.bf16 %v1142_v14, %v1138_v8  ;;  %v11420_v28 = vpack.c.bf16 %v1144_v13, %v1140_v31  ;;  %15376 = vst [vmem:[#allocation24_spill] sm:$0xff] %v11422_v32  ;;  %15377 = vst [vmem:[#allocation25_spill] sm:$0xff] %v11424_v40  ;;  %v816_v10 = vadd.f32 %v815_v56, %v10797_v4 }
 0x141   : > { %v817_v27 = vpop.f32.mrf.mxu0  ;;  %v1010_v43 = vpop.f32.mrf.mxu1  ;;  %v1009_v0 = vadd.f32 %v1008_v15, %v10800_v5  ;;  %v1145_v15 = vmax.f32 %v814_v24, 0.0  ;;  %v1147_v16 = vmax.f32 %v1007_v34, 0.0 }
 0x142   : > { %15374 = vst [vmem:[#allocation22_spill] sm:$0xff] %v11418_v25  ;;  %15375 = vst [vmem:[#allocation23_spill] sm:$0xff] %v11420_v28  ;;  %v818_v30 = vadd.f32 %v817_v27, %v10803_v6  ;;  %v1011_v3 = vadd.f32 %v1010_v43, %v10806_v7  ;;  %2957 = vmatprep.mubr.bf16.mxu0 %v11418_v25  ;;  %3150 = vmatprep.mubr.bf16.mxu1 %v11420_v28  ;;  %v1146_v53 = vmax.f32 %v816_v10, 0.0 }
 0x143   : > { %v819_v19 = vpop.f32.mrf.mxu0  ;;  %v1012_v46 = vpop.f32.mrf.mxu1  ;;  %2958 = vmatmul.mubr.bf16.gmra.mxu0 %v11422_v32  ;;  %3151 = vmatmul.mubr.bf16.gmra.mxu1 %v11424_v40  ;;  %v1148_v51 = vmax.f32 %v1009_v0, 0.0 }
 0x144   : > { %v820_v49 = vadd.f32 %v819_v19, %v10797_v4  ;;  %v1013_v61 = vadd.f32 %v1012_v46, %v10800_v5  ;;  %v1149_v8 = vmax.f32 %v818_v30, 0.0  ;;  %v1151_v31 = vmax.f32 %v1011_v3, 0.0 }
 0x145   : > { %v823_v14 = vpop.f32.mrf.mxu0  ;;  %v1016_v13 = vpop.f32.mrf.mxu1 }
 0x146   : > { %v1150_v56 = vmax.f32 %v820_v49, 0.0  ;;  %v1152_v11 = vmax.f32 %v1013_v61, 0.0  ;;  %v11442_v40 = vpack.c.bf16 %v1149_v8, %v1145_v15  ;;  %v11444_v19 = vpack.c.bf16 %v1151_v31, %v1147_v16 }
 0x147   : > { %v825_v27 = vpop.f32.mrf.mxu0  ;;  %v1018_v43 = vpop.f32.mrf.mxu1  ;;  %v824_v34 = vadd.f32 %v823_v14, %v10803_v6  ;;  %v1017_v49 = vadd.f32 %v1016_v13, %v10806_v7 }
 0x148   : > { %v11438_v28 = vpack.c.bf16 %v1150_v56, %v1146_v53  ;;  %v11440_v32 = vpack.c.bf16 %v1152_v11, %v1148_v51  ;;  %15380 = vst [vmem:[#allocation28_spill] sm:$0xff] %v11442_v40  ;;  %15381 = vst [vmem:[#allocation29_spill] sm:$0xff] %v11444_v19  ;;  %v826_v30 = vadd.f32 %v825_v27, %v10797_v4 }
 0x149   : > { %v827_v3 = vpop.f32.mrf.mxu0  ;;  %v1020_v46 = vpop.f32.mrf.mxu1  ;;  %v1019_v10 = vadd.f32 %v1018_v43, %v10800_v5  ;;  %v1155_v13 = vmax.f32 %v1017_v49, 0.0 }
 0x14a   : > { %15378 = vst [vmem:[#allocation26_spill] sm:$0xff] %v11438_v28  ;;  %15379 = vst [vmem:[#allocation27_spill] sm:$0xff] %v11440_v32  ;;  %v828_v0 = vadd.f32 %v827_v3, %v10803_v6  ;;  %v1021_v24 = vadd.f32 %v1020_v46, %v10806_v7  ;;  %2967 = vmatprep.mubr.bf16.mxu0 %v11438_v28  ;;  %3160 = vmatprep.mubr.bf16.mxu1 %v11440_v32  ;;  %v1154_v16 = vmax.f32 %v826_v30, 0.0 }
 0x14b   : > { %v829_v61 = vpop.f32.mrf.mxu0  ;;  %v1022_v8 = vpop.f32.mrf.mxu1  ;;  %2968 = vmatmul.mubr.bf16.gmra.mxu0 %v11442_v40  ;;  %3161 = vmatmul.mubr.bf16.gmra.mxu1 %v11444_v19  ;;  %v1156_v27 = vmax.f32 %v1019_v10, 0.0  ;;  %v1153_v3 = vmax.f32 %v824_v34, 0.0 }
 0x14c   : > { %v830_v31 = vadd.f32 %v829_v61, %v10797_v4  ;;  %v1023_v53 = vadd.f32 %v1022_v8, %v10800_v5  ;;  %v1157_v51 = vmax.f32 %v828_v0, 0.0  ;;  %v1159_v56 = vmax.f32 %v1021_v24, 0.0 }
 0x14d   : > { %v833_v11 = vpop.f32.mrf.mxu0  ;;  %v1026_v15 = vpop.f32.mrf.mxu1 }
 0x14e   : > { %v1158_v43 = vmax.f32 %v830_v31, 0.0  ;;  %v1160_v14 = vmax.f32 %v1023_v53, 0.0  ;;  %v11462_v19 = vpack.c.bf16 %v1157_v51, %v1153_v3  ;;  %v11464_v61 = vpack.c.bf16 %v1159_v56, %v1155_v13 }
 0x14f   : > { %v835_v46 = vpop.f32.mrf.mxu0  ;;  %v1028_v32 = vpop.f32.mrf.mxu1  ;;  %v834_v49 = vadd.f32 %v833_v11, %v10803_v6  ;;  %v1027_v31 = vadd.f32 %v1026_v15, %v10806_v7 }
 0x150   : > { %v11458_v28 = vpack.c.bf16 %v1158_v43, %v1154_v16  ;;  %v11460_v40 = vpack.c.bf16 %v1160_v14, %v1156_v27  ;;  %15384 = vst [vmem:[#allocation32_spill] sm:$0xff] %v11462_v19  ;;  %15385 = vst [vmem:[#allocation33_spill] sm:$0xff] %v11464_v61  ;;  %v836_v0 = vadd.f32 %v835_v46, %v10797_v4 }
 0x151   : > { %v837_v24 = vpop.f32.mrf.mxu0  ;;  %v1030_v8 = vpop.f32.mrf.mxu1  ;;  %v1029_v30 = vadd.f32 %v1028_v32, %v10800_v5  ;;  %v1163_v15 = vmax.f32 %v1027_v31, 0.0 }
 0x152   : > { %15382 = vst [vmem:[#allocation30_spill] sm:$0xff] %v11458_v28  ;;  %15383 = vst [vmem:[#allocation31_spill] sm:$0xff] %v11460_v40  ;;  %v838_v10 = vadd.f32 %v837_v24, %v10803_v6  ;;  %v1031_v34 = vadd.f32 %v1030_v8, %v10806_v7  ;;  %2977 = vmatprep.mubr.bf16.mxu0 %v11458_v28  ;;  %3170 = vmatprep.mubr.bf16.mxu1 %v11460_v40  ;;  %v1162_v3 = vmax.f32 %v836_v0, 0.0 }
 0x153   : > { %v839_v53 = vpop.f32.mrf.mxu0  ;;  %v1032_v51 = vpop.f32.mrf.mxu1  ;;  %2978 = vmatmul.mubr.bf16.gmra.mxu0 %v11462_v19  ;;  %3171 = vmatmul.mubr.bf16.gmra.mxu1 %v11464_v61  ;;  %v1164_v13 = vmax.f32 %v1029_v30, 0.0  ;;  %v1161_v24 = vmax.f32 %v834_v49, 0.0 }
 0x154   : > { %v840_v32 = vadd.f32 %v839_v53, %v10797_v4  ;;  %v1033_v56 = vadd.f32 %v1032_v51, %v10800_v5  ;;  %v1165_v16 = vmax.f32 %v838_v10, 0.0  ;;  %v1167_v27 = vmax.f32 %v1031_v34, 0.0 }
 0x155   : > { %v843_v43 = vpop.f32.mrf.mxu0  ;;  %v1036_v14 = vpop.f32.mrf.mxu1 }
 0x156   : > { %v1166_v46 = vmax.f32 %v840_v32, 0.0  ;;  %v1168_v11 = vmax.f32 %v1033_v56, 0.0  ;;  %v11482_v61 = vpack.c.bf16 %v1165_v16, %v1161_v24  ;;  %v11484_v53 = vpack.c.bf16 %v1167_v27, %v1163_v15 }
 0x157   : > { %v845_v8 = vpop.f32.mrf.mxu0  ;;  %v1038_v40 = vpop.f32.mrf.mxu1  ;;  %v844_v31 = vadd.f32 %v843_v43, %v10803_v6  ;;  %v1037_v32 = vadd.f32 %v1036_v14, %v10806_v7 }
 0x158   : > { %v11478_v28 = vpack.c.bf16 %v1166_v46, %v1162_v3  ;;  %v11480_v19 = vpack.c.bf16 %v1168_v11, %v1164_v13  ;;  %15388 = vst [vmem:[#allocation36_spill] sm:$0xff] %v11482_v61  ;;  %15389 = vst [vmem:[#allocation37_spill] sm:$0xff] %v11484_v53  ;;  %v846_v10 = vadd.f32 %v845_v8, %v10797_v4 }
 0x159   : > { %v847_v34 = vpop.f32.mrf.mxu0  ;;  %v1040_v51 = vpop.f32.mrf.mxu1  ;;  %v1039_v0 = vadd.f32 %v1038_v40, %v10800_v5  ;;  %v1171_v14 = vmax.f32 %v1037_v32, 0.0 }
 0x15a   : > { %15386 = vst [vmem:[#allocation34_spill] sm:$0xff] %v11478_v28  ;;  %15387 = vst [vmem:[#allocation35_spill] sm:$0xff] %v11480_v19  ;;  %v848_v30 = vadd.f32 %v847_v34, %v10803_v6  ;;  %v1041_v49 = vadd.f32 %v1040_v51, %v10806_v7  ;;  %2987 = vmatprep.mubr.bf16.mxu0 %v11478_v28  ;;  %3180 = vmatprep.mubr.bf16.mxu1 %v11480_v19  ;;  %v1170_v24 = vmax.f32 %v846_v10, 0.0 }
 0x15b   : > { %v849_v56 = vpop.f32.mrf.mxu0  ;;  %v1042_v16 = vpop.f32.mrf.mxu1  ;;  %2988 = vmatmul.mubr.bf16.gmra.mxu0 %v11482_v61  ;;  %3181 = vmatmul.mubr.bf16.gmra.mxu1 %v11484_v53  ;;  %v1172_v15 = vmax.f32 %v1039_v0, 0.0  ;;  %v1169_v34 = vmax.f32 %v844_v31, 0.0 }
 0x15c   : > { %v850_v40 = vadd.f32 %v849_v56, %v10797_v4  ;;  %v1043_v27 = vadd.f32 %v1042_v16, %v10800_v5  ;;  %v1173_v3 = vmax.f32 %v848_v30, 0.0  ;;  %v1175_v13 = vmax.f32 %v1041_v49, 0.0 }
 0x15d   : > { %v853_v46 = vpop.f32.mrf.mxu0  ;;  %v1046_v11 = vpop.f32.mrf.mxu1 }
 0x15e   : > { %v1174_v8 = vmax.f32 %v850_v40, 0.0  ;;  %v1176_v43 = vmax.f32 %v1043_v27, 0.0  ;;  %v11502_v53 = vpack.c.bf16 %v1173_v3, %v1169_v34  ;;  %v11504_v56 = vpack.c.bf16 %v1175_v13, %v1171_v14 }
 0x15f   : > { %v855_v51 = vpop.f32.mrf.mxu0  ;;  %v1048_v19 = vpop.f32.mrf.mxu1  ;;  %v854_v32 = vadd.f32 %v853_v46, %v10803_v6  ;;  %v1047_v40 = vadd.f32 %v1046_v11, %v10806_v7 }
 0x160   : > { %v11498_v28 = vpack.c.bf16 %v1174_v8, %v1170_v24  ;;  %v11500_v61 = vpack.c.bf16 %v1176_v43, %v1172_v15  ;;  %15392 = vst [vmem:[#allocation40_spill] sm:$0xff] %v11502_v53  ;;  %15393 = vst [vmem:[#allocation41_spill] sm:$0xff] %v11504_v56  ;;  %v856_v30 = vadd.f32 %v855_v51, %v10797_v4 }
 0x161   : > { %v857_v49 = vpop.f32.mrf.mxu0  ;;  %v1050_v16 = vpop.f32.mrf.mxu1  ;;  %v1049_v10 = vadd.f32 %v1048_v19, %v10800_v5  ;;  %v1179_v11 = vmax.f32 %v1047_v40, 0.0 }
 0x162   : > { %15390 = vst [vmem:[#allocation38_spill] sm:$0xff] %v11498_v28  ;;  %15391 = vst [vmem:[#allocation39_spill] sm:$0xff] %v11500_v61  ;;  %v858_v0 = vadd.f32 %v857_v49, %v10803_v6  ;;  %v1051_v31 = vadd.f32 %v1050_v16, %v10806_v7  ;;  %2997 = vmatprep.mubr.bf16.mxu0 %v11498_v28  ;;  %3190 = vmatprep.mubr.bf16.mxu1 %v11500_v61  ;;  %v1178_v34 = vmax.f32 %v856_v30, 0.0 }
 0x163   : > { %v859_v27 = vpop.f32.mrf.mxu0  ;;  %v1052_v3 = vpop.f32.mrf.mxu1  ;;  %2998 = vmatmul.mubr.bf16.gmra.mxu0 %v11502_v53  ;;  %3191 = vmatmul.mubr.bf16.gmra.mxu1 %v11504_v56  ;;  %v1180_v14 = vmax.f32 %v1049_v10, 0.0  ;;  %v1177_v49 = vmax.f32 %v854_v32, 0.0 }
 0x164   : > { %v860_v19 = vadd.f32 %v859_v27, %v10797_v4  ;;  %v1053_v13 = vadd.f32 %v1052_v3, %v10800_v5  ;;  %v1181_v24 = vmax.f32 %v858_v0, 0.0  ;;  %v1183_v15 = vmax.f32 %v1051_v31, 0.0 }
 0x165   : > { %v863_v8 = vpop.f32.mrf.mxu0  ;;  %v1056_v43 = vpop.f32.mrf.mxu1 }
 0x166   : > { %v1182_v51 = vmax.f32 %v860_v19, 0.0  ;;  %v1184_v46 = vmax.f32 %v1053_v13, 0.0  ;;  %v11522_v56 = vpack.c.bf16 %v1181_v24, %v1177_v49  ;;  %v11524_v27 = vpack.c.bf16 %v1183_v15, %v1179_v11 }
 0x167   : > { %v865_v16 = vpop.f32.mrf.mxu0  ;;  %v1058_v61 = vpop.f32.mrf.mxu1  ;;  %v864_v40 = vadd.f32 %v863_v8, %v10803_v6  ;;  %v1057_v19 = vadd.f32 %v1056_v43, %v10806_v7 }
 0x168   : > { %v11518_v28 = vpack.c.bf16 %v1182_v51, %v1178_v34  ;;  %v11520_v53 = vpack.c.bf16 %v1184_v46, %v1180_v14  ;;  %v866_v0 = vadd.f32 %v865_v16, %v10797_v4  ;;  %v1059_v30 = vadd.f32 %v1058_v61, %v10800_v5 }
 0x169   : > { %v867_v31 = vpop.f32.mrf.mxu0  ;;  %v1060_v3 = vpop.f32.mrf.mxu1  ;;  %v1185_v16 = vmax.f32 %v864_v40, 0.0  ;;  %v1303_v40 = vld [vmem:[%s15133_s3 + $0x170] sm:$0xff] }
 0x16a   : > { %15394 = vst [vmem:[#allocation42_spill] sm:$0xff] %v11518_v28  ;;  %15395 = vst [vmem:[#allocation43_spill] sm:$0xff] %v11520_v53  ;;  %v868_v10 = vadd.f32 %v867_v31, %v10803_v6  ;;  %v1061_v32 = vadd.f32 %v1060_v3, %v10806_v7  ;;  %3007 = vmatprep.mubr.bf16.mxu0 %v11518_v28  ;;  %3200 = vmatprep.mubr.bf16.mxu1 %v11520_v53  ;;  %v1186_v51 = vmax.f32 %v866_v0, 0.0  ;;  %v1435_v0 = vld [vmem:[%s15133_s3 + $0x590] sm:$0xff] }
 0x16b   : > { %v869_v13 = vpop.f32.mrf.mxu0  ;;  %v1062_v24 = vpop.f32.mrf.mxu1  ;;  %3008 = vmatmul.mubr.bf16.gmra.mxu0 %v11522_v56  ;;  %3201 = vmatmul.mubr.bf16.gmra.mxu1 %v11524_v27  ;;  %v1188_v46 = vmax.f32 %v1059_v30, 0.0  ;;  %v1187_v6 = vmax.f32 %v1057_v19, 0.0  ;;  %v1439_v3 = vld [vmem:[%s15133_s3 + $0x5b0] sm:$0xff] }
 0x16c   : > { %v870_v61 = vadd.f32 %v869_v13, %v10797_v4  ;;  %v1063_v15 = vadd.f32 %v1062_v24, %v10800_v5  ;;  %v1189_v34 = vmax.f32 %v868_v10, 0.0  ;;  %v1191_v14 = vmax.f32 %v1061_v32, 0.0  ;;  %v1307_v4 = vld [vmem:[%s15133_s3 + $0x190] sm:$0xff] }
 0x16d   : > { %v1311_v5 = vld [vmem:[%s15133_s3 + $0x1b0] sm:$0xff]  ;;  %v9096_v10 = vcombine.high %v1435_v0, %v1439_v3  ;;  %v15397_v24 = vcombine.low %v10819_v22, %v10834_v29  ;;  %v11592_v22 = vld [vmem:[%s15133_s3 + $0x1d8] sm:$0xff] }
 0x16e   : > { %v1190_v49 = vmax.f32 %v870_v61, 0.0  ;;  %v1192_v11 = vmax.f32 %v1063_v15, 0.0  ;;  %v11542_v43 = vpack.c.bf16 %v1189_v34, %v1185_v16  ;;  %v11544_v31 = vpack.c.bf16 %v1191_v14, %v1187_v6  ;;  %v1299_v32 = vld [vmem:[%s15133_s3 + $0x150] sm:$0xff]  ;;  %v11597_v29 = vld [vmem:[%s15133_s3 + $0x1f8] sm:$0xff] }
 0x16f   : > { %v8968_v30 = vcombine.high %v1307_v4, %v1311_v5  ;;  %v1427_v19 = vld [vmem:[%s15133_s3 + $0x550] sm:$0xff]  ;;  %v8967_v61 = vcombine.low %v1307_v4, %v1311_v5  ;;  %v15398_v15 = vcombine.low %v10931_v21, %v10936_v23  ;;  %v9095_v34 = vcombine.low %v1435_v0, %v1439_v3  ;;  %v11613_v16 = vld [vmem:[%s15133_s3 + $0x5d8] sm:$0xff] }
 0x170   : > { %v11538_v8 = vpack.c.bf16 %v1190_v49, %v1186_v51  ;;  %v11540_v7 = vpack.c.bf16 %v1192_v11, %v1188_v46  ;;  %15396 = vst [vmem:[#allocation44_spill] sm:$0xff] %v11544_v31  ;;  %v1431_v13 = vld [vmem:[%s15133_s3 + $0x570] sm:$0xff]  ;;  %v8960_v14 = vcombine.high %v1299_v32, %v1303_v40  ;;  %v11618_v6 = vld [vmem:[%s15133_s3 + $0x5f8] sm:$0xff]  ;;  %v8959_v4 = vcombine.low %v1299_v32, %v1303_v40 }
 0x171   : > { %v9088_v51 = vcombine.high %v1427_v19, %v1431_v13  ;;  %v1291_v46 = vld [vmem:[%s15133_s3 + $0x110] sm:$0xff]  ;;  %v9087_v5 = vcombine.low %v1427_v19, %v1431_v13 }
 0x172   : > { %3017 = vmatprep.mubr.bf16.mxu0 %v11538_v8  ;;  %3210 = vmatprep.mubr.bf16.mxu1 %v11540_v7  ;;  %v1295_v21 = vld [vmem:[%s15133_s3 + $0x130] sm:$0xff] }
 0x173   : > { %3018 = vmatmul.mubr.bf16.gmra.mxu0 %v11542_v43  ;;  %3211 = vmatmul.mubr.bf16.gmra.mxu1 %v11544_v31  ;;  %v1419_v23 = vld [vmem:[%s15133_s3 + $0x510] sm:$0xff]  ;;  %v8952_v3 = vcombine.high %v1291_v46, %v1295_v21  ;;  %v8951_v13 = vcombine.low %v1291_v46, %v1295_v21 }
 0x174   : > { %3253 = vmatprep.mubr.bf16.mxu0 %v10848_v41  ;;  %3446 = vmatprep.mubr.bf16.mxu1 %v10850_v42  ;;  %v1423_v49 = vld [vmem:[%s15133_s3 + $0x530] sm:$0xff] }
 0x175   : > { %v1287_v32 = vld [vmem:[%s15133_s3 + $0xf0] sm:$0xff] }
 0x176   : > { %v1411_v40 = vld [vmem:[%s15133_s3 + $0x4d0] sm:$0xff] }
 0x177   : > { %v1415_v19 = vld [vmem:[%s15133_s3 + $0x4f0] sm:$0xff] }
 0x178   : > { %v1407_v46 = vld [vmem:[%s15133_s3 + $0x4b0] sm:$0xff] }
 0x179   : > { %v1351_v0 = vld [vmem:[%s15133_s3 + $0x2f0] sm:$0xff] }
 0x17a   : > { %v1339_v11 = vld [vmem:[%s15133_s3 + $0x290] sm:$0xff] }
 0x17b   : > { %3254 = vmatmul.mubr.bf16.vlgmr.msra.gmra.mxu0 %v10856_v45  ;;  %3447 = vmatmul.mubr.bf16.vlgmr.msra.gmra.mxu1 %v10858_v48 }
 0x17c   : > { %3608 = vmatpush1.bf16.msra.mxu0 %v15397_v24  ;;  %3263 = vmatprep.mubr.bf16.mxu0 %v10942_v35  ;;  %v9079_v24 = vcombine.low %v1419_v23, %v1423_v49 }
 0x17d   : > { %3456 = vmatprep.mubr.bf16.mxu1 %v10944_v36  ;;  %3801 = vmatpush1.bf16.msra.mxu1 %v15398_v15  ;;  %v9072_v15 = vcombine.high %v1411_v40, %v1415_v19 }
 0x17e   : > { %3609 = vmatprep.subr.bf16.mxu0 %v8968_v30  ;;  %3802 = vmatprep.subr.bf16.mxu1 %v9096_v10  ;;  %v9080_v30 = vcombine.high %v1419_v23, %v1423_v49  ;;  %v1283_v10 = vld [vmem:[%s15133_s3 + $0xd0] sm:$0xff]  ;;  %v9071_v23 = vcombine.low %v1411_v40, %v1415_v19 }
 0x17f   : > { %v8943_v21 = vcombine.low %v1283_v10, %v1287_v32 }
 0x180   : > { %3610 = vmatpush1.bf16.msra.mxu0 %v8967_v61  ;;  %v8944_v61 = vcombine.high %v1283_v10, %v1287_v32  ;;  %v1399_v10 = vld [vmem:[%s15133_s3 + $0x470] sm:$0xff] }
 0x181   : > { %3803 = vmatpush1.bf16.msra.mxu1 %v9095_v34  ;;  %3611 = vmatprep.subr.bf16.mxu0 %v8960_v14  ;;  %v1275_v34 = vld [vmem:[%s15133_s3 + $0x90] sm:$0xff] }
 0x182   : > { %3804 = vmatprep.subr.bf16.mxu1 %v9088_v51  ;;  %v1279_v14 = vld [vmem:[%s15133_s3 + $0xb0] sm:$0xff] }
 0x183   : > { %3264 = vmatmul.mubr.bf16.gmra.mxu0 %v10950_v39  ;;  %3457 = vmatmul.mubr.bf16.gmra.mxu1 %v10952_v44  ;;  %v1403_v51 = vld [vmem:[%s15133_s3 + $0x490] sm:$0xff]  ;;  %v8936_v49 = vcombine.high %v1275_v34, %v1279_v14  ;;  %v8935_v32 = vcombine.low %v1275_v34, %v1279_v14 }
 0x184   : > { %3273 = vmatprep.mubr.bf16.mxu0 %v11014_v33  ;;  %3466 = vmatprep.mubr.bf16.mxu1 %v11016_v37  ;;  %v9063_v40 = vcombine.low %v1403_v51, %v1407_v46  ;;  %v1391_v34 = vld [vmem:[%s15133_s3 + $0x430] sm:$0xff] }
 0x185   : > { %3612 = vmatpush1.bf16.msra.mxu0 %v8959_v4  ;;  %3805 = vmatpush1.bf16.msra.mxu1 %v9087_v5  ;;  %v9064_v4 = vcombine.high %v1403_v51, %v1407_v46  ;;  %v1267_v5 = vld [vmem:[%s15133_s3 + $0x50] sm:$0xff] }
 0x186   : > { %3613 = vmatprep.subr.bf16.mxu0 %v8952_v3  ;;  %3806 = vmatprep.subr.bf16.mxu1 %v9080_v30  ;;  %v1271_v3 = vld [vmem:[%s15133_s3 + $0x70] sm:$0xff] }
 0x187   : > { %v1395_v30 = vld [vmem:[%s15133_s3 + $0x450] sm:$0xff]  ;;  %v8928_v19 = vcombine.high %v1267_v5, %v1271_v3  ;;  %v8927_v14 = vcombine.low %v1267_v5, %v1271_v3 }
 0x188   : > { %v9055_v51 = vcombine.low %v1395_v30, %v1399_v10  ;;  %v1511_v5 = vld [vmem:[%s15133_s3 + $0x7f0] sm:$0xff] }
 0x189   : > { %3614 = vmatpush1.bf16.msra.mxu0 %v8951_v13  ;;  %3807 = vmatpush1.bf16.msra.mxu1 %v9079_v24  ;;  %v9056_v13 = vcombine.high %v1395_v30, %v1399_v10  ;;  %v1259_v24 = vld [vmem:[%s15133_s3 + $0x10] sm:$0xff] }
 0x18a   : > { %3615 = vmatprep.subr.bf16.mxu0 %v8944_v61  ;;  %3808 = vmatprep.subr.bf16.mxu1 %v9072_v15  ;;  %v1263_v61 = vld [vmem:[%s15133_s3 + $0x30] sm:$0xff] }
 0x18b   : > { %3274 = vmatmul.mubr.bf16.gmra.mxu0 %v11022_v38  ;;  %3467 = vmatmul.mubr.bf16.gmra.mxu1 %v11024_v55  ;;  %v1387_v15 = vld [vmem:[%s15133_s3 + $0x410] sm:$0xff]  ;;  %v8920_v46 = vcombine.high %v1259_v24, %v1263_v61  ;;  %v8919_v3 = vcombine.low %v1259_v24, %v1263_v61 }
 0x18c   : > { %3283 = vmatprep.mubr.bf16.mxu0 %v11086_v59  ;;  %3476 = vmatprep.mubr.bf16.mxu1 %v11088_v2  ;;  %v9047_v30 = vcombine.low %v1387_v15, %v1391_v34  ;;  %v1503_v24 = vld [vmem:[%s15133_s3 + $0x7b0] sm:$0xff] }
 0x18d   : > { %3616 = vmatpush1.bf16.msra.mxu0 %v8943_v21  ;;  %3809 = vmatpush1.bf16.msra.mxu1 %v9071_v23  ;;  %v9048_v21 = vcombine.high %v1387_v15, %v1391_v34  ;;  %v1379_v23 = vld [vmem:[%s15133_s3 + $0x3d0] sm:$0xff] }
 0x18e   : > { %3617 = vmatprep.subr.bf16.mxu0 %v8936_v49  ;;  %3810 = vmatprep.subr.bf16.mxu1 %v9064_v4  ;;  %v1383_v49 = vld [vmem:[%s15133_s3 + $0x3f0] sm:$0xff] }
 0x18f   : > { %v1507_v4 = vld [vmem:[%s15133_s3 + $0x7d0] sm:$0xff]  ;;  %v9040_v10 = vcombine.high %v1379_v23, %v1383_v49  ;;  %v9039_v61 = vcombine.low %v1379_v23, %v1383_v49 }
 0x190   : > { %v9167_v15 = vcombine.low %v1507_v4, %v1511_v5  ;;  %v1495_v23 = vld [vmem:[%s15133_s3 + $0x770] sm:$0xff] }
 0x191   : > { %3618 = vmatpush1.bf16.msra.mxu0 %v8935_v32  ;;  %3811 = vmatpush1.bf16.msra.mxu1 %v9063_v40  ;;  %v9168_v32 = vcombine.high %v1507_v4, %v1511_v5  ;;  %v1371_v40 = vld [vmem:[%s15133_s3 + $0x390] sm:$0xff] }
 0x192   : > { %3619 = vmatprep.subr.bf16.mxu0 %v8928_v19  ;;  %3812 = vmatprep.subr.bf16.mxu1 %v9056_v13  ;;  %v1375_v19 = vld [vmem:[%s15133_s3 + $0x3b0] sm:$0xff] }
 0x193   : > { %3284 = vmatmul.mubr.bf16.gmra.mxu0 %v11094_v54  ;;  %3477 = vmatmul.mubr.bf16.gmra.mxu1 %v11096_v1  ;;  %v1499_v13 = vld [vmem:[%s15133_s3 + $0x790] sm:$0xff]  ;;  %v9032_v34 = vcombine.high %v1371_v40, %v1375_v19  ;;  %v9031_v49 = vcombine.low %v1371_v40, %v1375_v19 }
 0x194   : > { %3293 = vmatprep.mubr.bf16.mxu0 %v11158_v18  ;;  %3486 = vmatprep.mubr.bf16.mxu1 %v11160_v47  ;;  %v9159_v4 = vcombine.low %v1499_v13, %v1503_v24  ;;  %v1487_v40 = vld [vmem:[%s15133_s3 + $0x730] sm:$0xff] }
 0x195   : > { %3620 = vmatpush1.bf16.msra.mxu0 %v8927_v14  ;;  %3813 = vmatpush1.bf16.msra.mxu1 %v9055_v51  ;;  %v9160_v14 = vcombine.high %v1499_v13, %v1503_v24  ;;  %v1363_v51 = vld [vmem:[%s15133_s3 + $0x350] sm:$0xff] }
 0x196   : > { %3621 = vmatprep.subr.bf16.mxu0 %v8920_v46  ;;  %3814 = vmatprep.subr.bf16.mxu1 %v9048_v21  ;;  %v1367_v46 = vld [vmem:[%s15133_s3 + $0x370] sm:$0xff] }
 0x197   : > { %v1491_v21 = vld [vmem:[%s15133_s3 + $0x750] sm:$0xff]  ;;  %v9024_v5 = vcombine.high %v1363_v51, %v1367_v46  ;;  %v9023_v19 = vcombine.low %v1363_v51, %v1367_v46 }
 0x198   : > { %v9151_v13 = vcombine.low %v1491_v21, %v1495_v23  ;;  %v1475_v51 = vld [vmem:[%s15133_s3 + $0x6d0] sm:$0xff] }
 0x199   : > { %3622 = vmatpush1.bf16.msra.mxu0 %v8919_v3  ;;  %3815 = vmatpush1.bf16.msra.mxu1 %v9047_v30  ;;  %v9152_v3 = vcombine.high %v1491_v21, %v1495_v23  ;;  %v1355_v30 = vld [vmem:[%s15133_s3 + $0x310] sm:$0xff]  ;;  %v15402_v23 = vld [vmem:[#allocation13_spill] sm:$0xff] }
 0x19a   : > { %3623 = vmatprep.subr.bf16.mxu0 %v9040_v10  ;;  %3816 = vmatprep.subr.bf16.mxu1 %v9168_v32  ;;  %v1359_v10 = vld [vmem:[%s15133_s3 + $0x330] sm:$0xff] }
 0x19b   : > { %3294 = vmatmul.mubr.bf16.gmra.mxu0 %v11166_v58  ;;  %3487 = vmatmul.mubr.bf16.gmra.mxu1 %v11168_v17  ;;  %v1483_v32 = vld [vmem:[%s15133_s3 + $0x710] sm:$0xff]  ;;  %v9016_v24 = vcombine.high %v1355_v30, %v1359_v10 }
 0x19c   : > { %3303 = vmatprep.mubr.bf16.mxu0 %v11230_v60  ;;  %3496 = vmatprep.mubr.bf16.mxu1 %v11232_v62  ;;  %v1479_v46 = vld [vmem:[%s15133_s3 + $0x6f0] sm:$0xff] }
 0x19d   : > { %3624 = vmatpush2.bf16.msra.mxu0 %v9039_v61  ;;  %3817 = vmatpush2.bf16.msra.mxu1 %v9167_v15  ;;  %v9144_v61 = vcombine.high %v1483_v32, %v1487_v40  ;;  %v1347_v15 = vld [vmem:[%s15133_s3 + $0x2d0] sm:$0xff] }
 0x19e   : > { %3625 = vmatprep.subr.bf16.mxu0 %v9032_v34  ;;  %3818 = vmatprep.subr.bf16.mxu1 %v9160_v14  ;;  %v15399_v34 = vld [vmem:[#allocation10_spill] sm:$0xff]  ;;  %v15400_v14 = vld [vmem:[#allocation11_spill] sm:$0xff]  ;;  %v15401_v21 = vld [vmem:[#allocation12_spill] sm:$0xff] }
 0x1a1   : > { %3626 = vmatpush2.bf16.msra.mxu0 %v9031_v49  ;;  %3819 = vmatpush2.bf16.msra.mxu1 %v9159_v4  ;;  %v9015_v49 = vcombine.low %v1355_v30, %v1359_v10  ;;  %v9143_v4 = vcombine.low %v1483_v32, %v1487_v40  ;;  %v1471_v30 = vld [vmem:[%s15133_s3 + $0x6b0] sm:$0xff]  ;;  %v9007_v10 = vcombine.low %v1347_v15, %v1351_v0 }
 0x1a2   : > { %3627 = vmatprep.subr.bf16.mxu0 %v9024_v5  ;;  %3820 = vmatprep.subr.bf16.mxu1 %v9152_v3  ;;  %v9008_v5 = vcombine.high %v1347_v15, %v1351_v0  ;;  %v9136_v3 = vcombine.high %v1475_v51, %v1479_v46  ;;  %v9135_v32 = vcombine.low %v1475_v51, %v1479_v46  ;;  %v1459_v0 = vld [vmem:[%s15133_s3 + $0x650] sm:$0xff] }
 0x1a3   : > { %3304 = vmatmul.mubr.bf16.gmra.mxu0 %v15399_v34  ;;  %3497 = vmatmul.mubr.bf16.gmra.mxu1 %v15400_v14  ;;  %v1343_v14 = vld [vmem:[%s15133_s3 + $0x2b0] sm:$0xff] }
 0x1a4   : > { %3313 = vmatprep.mubr.bf16.mxu0 %v15401_v21  ;;  %3506 = vmatprep.mubr.bf16.mxu1 %v15402_v23  ;;  %v1467_v23 = vld [vmem:[%s15133_s3 + $0x690] sm:$0xff]  ;;  %v9000_v40 = vcombine.high %v1339_v11, %v1343_v14  ;;  %v8999_v51 = vcombine.low %v1339_v11, %v1343_v14 }
 0x1a5   : > { %3628 = vmatpush2.bf16.msra.mxu0 %v9023_v19  ;;  %3821 = vmatpush2.bf16.msra.mxu1 %v9151_v13  ;;  %v9128_v19 = vcombine.high %v1467_v23, %v1471_v30  ;;  %v1331_v13 = vld [vmem:[%s15133_s3 + $0x250] sm:$0xff]  ;;  %v9127_v46 = vcombine.low %v1467_v23, %v1471_v30 }
 0x1a6   : > { %3629 = vmatprep.subr.bf16.mxu0 %v9016_v24  ;;  %3822 = vmatprep.subr.bf16.mxu1 %v9144_v61  ;;  %v15403_v24 = vld [vmem:[#allocation14_spill] sm:$0xff]  ;;  %v15404_v61 = vld [vmem:[#allocation15_spill] sm:$0xff]  ;;  %v1335_v21 = vld [vmem:[%s15133_s3 + $0x270] sm:$0xff] }
 0x1a7   : > { %v1463_v15 = vld [vmem:[%s15133_s3 + $0x670] sm:$0xff]  ;;  %v8991_v14 = vcombine.low %v1331_v13, %v1335_v21 }
 0x1a8   : > { %v1455_v11 = vld [vmem:[%s15133_s3 + $0x630] sm:$0xff]  ;;  %v9119_v23 = vcombine.low %v1459_v0, %v1463_v15 }
 0x1a9   : > { %3630 = vmatpush2.bf16.msra.mxu0 %v9015_v49  ;;  %3823 = vmatpush2.bf16.msra.mxu1 %v9143_v4  ;;  %v8992_v49 = vcombine.high %v1331_v13, %v1335_v21  ;;  %v9120_v4 = vcombine.high %v1459_v0, %v1463_v15  ;;  %v9106_v13 = vcombine.high %v11613_v16, %v11618_v6  ;;  %v15405_v0 = vld [vmem:[#allocation5_spill] sm:$0xff] }
 0x1aa   : > { %3631 = vmatprep.subr.bf16.mxu0 %v9008_v5  ;;  %3824 = vmatprep.subr.bf16.mxu1 %v9136_v3  ;;  %v1323_v5 = vld [vmem:[%s15133_s3 + $0x210] sm:$0xff] }
 0x1ab   : > { %3314 = vmatmul.mubr.bf16.gmra.mxu0 %v15403_v24  ;;  %3507 = vmatmul.mubr.bf16.gmra.mxu1 %v15404_v61  ;;  %v1327_v3 = vld [vmem:[%s15133_s3 + $0x230] sm:$0xff] }
 0x1ac   : > { %3323 = vmatprep.mubr.bf16.mxu0 %v11368_v52  ;;  %3516 = vmatprep.mubr.bf16.mxu1 %v11370_v63  ;;  %v1451_v63 = vld [vmem:[%s15133_s3 + $0x610] sm:$0xff]  ;;  %v8984_v30 = vcombine.high %v1323_v5, %v1327_v3  ;;  %v8983_v21 = vcombine.low %v1323_v5, %v1327_v3  ;;  %v15407_v5 = vld [vmem:[#allocation23_spill] sm:$0xff] }
 0x1ad   : > { %3632 = vmatpush2.bf16.msra.mxu0 %v9007_v10  ;;  %3825 = vmatpush2.bf16.msra.mxu1 %v9135_v32  ;;  %v9112_v10 = vcombine.high %v1451_v63, %v1455_v11  ;;  %v1513_v32 = vld [vmem:[%s15134_s4] sm:$0xff] }
 0x1ae   : > { %3633 = vmatprep.subr.bf16.mxu0 %v9000_v40  ;;  %3826 = vmatprep.subr.bf16.mxu1 %v9128_v19  ;;  %v9111_v40 = vcombine.low %v1451_v63, %v1455_v11  ;;  %v8978_v19 = vcombine.high %v11592_v22, %v11597_v29  ;;  %v11802_v15 = vrot.slane %v1513_v32, %v15405_v0 }
 0x1b1   : > { %3634 = vmatpush2.bf16.msra.mxu0 %v8999_v51  ;;  %3827 = vmatpush2.bf16.msra.mxu1 %v9127_v46  ;;  %v15406_v51 = vld [vmem:[#allocation3_spill] sm:$0xff] }
 0x1b2   : > { %3635 = vmatprep.subr.bf16.mxu0 %v8992_v49  ;;  %3828 = vmatprep.subr.bf16.mxu1 %v9120_v4  ;;  %v11805_v46 = vrot.slane %v1513_v32, %v15406_v51 }
 0x1b3   : > { %3324 = vmatmul.mubr.bf16.gmra.mxu0 %v11375_v12  ;;  %3517 = vmatmul.mubr.bf16.gmra.mxu1 %v11377_v9 }
 0x1b4   : > { %3333 = vmatprep.mubr.bf16.mxu0 %v11396_v50  ;;  %3526 = vmatprep.mubr.bf16.mxu1 %v11398_v57 }
 0x1b5   : > { %3636 = vmatpush2.bf16.msra.mxu0 %v8991_v14  ;;  %3829 = vmatpush2.bf16.msra.mxu1 %v9119_v23 }
 0x1b6   : > { %3637 = vmatprep.subr.bf16.mxu0 %v8984_v30  ;;  %3830 = vmatprep.subr.bf16.mxu1 %v9112_v10 }
 0x1b9   : > { %3638 = vmatpush2.bf16.msra.mxu0 %v8983_v21  ;;  %3831 = vmatpush2.bf16.msra.mxu1 %v9111_v40 }
 0x1ba   : > { %3993 = vmatprep.subr.bf16.mxu0 %v8978_v19  ;;  %4186 = vmatprep.subr.bf16.mxu1 %v9106_v13 }
 0x1bb   : > { %v2869_v49 = vpop.f32.mrf.mxu0  ;;  %v3062_v63 = vpop.f32.mrf.mxu1  ;;  %3334 = vmatmul.mubr.bf16.gmra.mxu0 %v11402_v20  ;;  %3527 = vmatmul.mubr.bf16.gmra.mxu1 %v11404_v26  ;;  %v15410_v20 = vld [vmem:[#allocation26_spill] sm:$0xff] }
 0x1bc   : > { %v2870_v4 = vadd.f32 %v2869_v49, %v11802_v15  ;;  %3343 = vmatprep.mubr.bf16.mxu0 %v11418_v25  ;;  %3536 = vmatprep.mubr.bf16.mxu1 %v15407_v5  ;;  %v15408_v25 = vld [vmem:[#allocation24_spill] sm:$0xff]  ;;  %v15409_v5 = vld [vmem:[#allocation25_spill] sm:$0xff] }
 0x1bd   : > { %v2871_v3 = vpop.f32.mrf.mxu0  ;;  %v3064_v11 = vpop.f32.mrf.mxu1 }
 0x1be   : > { %v3063_v14 = vadd.f32 %v3062_v63, %v2870_v4  ;;  %v2872_v23 = vadd.f32 %v2871_v3, %v11805_v46 }
 0x1bf   : > { %v2873_v30 = vpop.f32.mrf.mxu0  ;;  %v3066_v10 = vpop.f32.mrf.mxu1 }
 0x1c0   : > { %v3065_v32 = vadd.f32 %v3064_v11, %v2872_v23  ;;  %v2874_v21 = vadd.f32 %v2873_v30, %v11802_v15  ;;  %v4379_v26 = vmax.f32 %v3063_v14, 0.0  ;;  %v15411_v11 = vld [vmem:[#allocation27_spill] sm:$0xff] }
 0x1c1   : > { %v2875_v40 = vpop.f32.mrf.mxu0  ;;  %v3068_v19 = vpop.f32.mrf.mxu1 }
 0x1c2   : > { %v3067_v13 = vadd.f32 %v3066_v10, %v2874_v21  ;;  %v2876_v51 = vadd.f32 %v2875_v40, %v11805_v46  ;;  %v4380_v23 = vmax.f32 %v3065_v32, 0.0 }
 0x1c3   : > { %v2879_v49 = vpop.f32.mrf.mxu0  ;;  %v3072_v0 = vpop.f32.mrf.mxu1  ;;  %3344 = vmatmul.mubr.bf16.gmra.mxu0 %v15408_v25  ;;  %3537 = vmatmul.mubr.bf16.gmra.mxu1 %v15409_v5 }
 0x1c4   : > { %v4387_v63 = vmax.f32 %v3067_v13, 0.0  ;;  %v3069_v4 = vadd.f32 %v3068_v19, %v2876_v51  ;;  %v2880_v3 = vadd.f32 %v2879_v49, %v11802_v15  ;;  %3353 = vmatprep.mubr.bf16.mxu0 %v15410_v20  ;;  %3546 = vmatprep.mubr.bf16.mxu1 %v15411_v11 }
 0x1c5   : > { %v2881_v30 = vpop.f32.mrf.mxu0  ;;  %v3074_v10 = vpop.f32.mrf.mxu1 }
 0x1c6   : > { %v11820_v21 = vpack.c.bf16 %v4387_v63, %v4379_v26  ;;  %v4388_v40 = vmax.f32 %v3069_v4, 0.0  ;;  %v3073_v57 = vadd.f32 %v3072_v0, %v2880_v3  ;;  %v2882_v25 = vadd.f32 %v2881_v30, %v11805_v46  ;;  %v15414_v26 = vld [vmem:[#allocation28_spill] sm:$0xff]  ;;  %v15415_v63 = vld [vmem:[#allocation29_spill] sm:$0xff]  ;;  %v15416_v30 = vld [vmem:[#allocation30_spill] sm:$0xff] }
 0x1c7   : > { %v2883_v50 = vpop.f32.mrf.mxu0  ;;  %v3076_v5 = vpop.f32.mrf.mxu1 }
 0x1c8   : > { %15412 = vst [vmem:[#allocation45_spill] sm:$0xff] %v11820_v21  ;;  %v3075_v14 = vadd.f32 %v3074_v10, %v2882_v25  ;;  %v2884_v51 = vadd.f32 %v2883_v50, %v11802_v15  ;;  %v11824_v19 = vpack.c.bf16 %v4388_v40, %v4380_v23  ;;  %v4395_v0 = vmax.f32 %v3073_v57, 0.0  ;;  %v15417_v50 = vld [vmem:[#allocation31_spill] sm:$0xff] }
 0x1c9   : > { %v2885_v13 = vpop.f32.mrf.mxu0  ;;  %v3078_v49 = vpop.f32.mrf.mxu1 }
 0x1ca   : > { %15413 = vst [vmem:[#allocation46_spill] sm:$0xff] %v11824_v19  ;;  %v3077_v20 = vadd.f32 %v3076_v5, %v2884_v51  ;;  %v2886_v32 = vadd.f32 %v2885_v13, %v11805_v46  ;;  %v4396_v23 = vmax.f32 %v3075_v14, 0.0 }
 0x1cb   : > { %v2889_v11 = vpop.f32.mrf.mxu0  ;;  %v3082_v9 = vpop.f32.mrf.mxu1  ;;  %3354 = vmatmul.mubr.bf16.gmra.mxu0 %v15414_v26  ;;  %3547 = vmatmul.mubr.bf16.gmra.mxu1 %v15415_v63 }
 0x1cc   : > { %v4403_v4 = vmax.f32 %v3077_v20, 0.0  ;;  %v3079_v3 = vadd.f32 %v3078_v49, %v2886_v32  ;;  %v2890_v25 = vadd.f32 %v2889_v11, %v11802_v15  ;;  %3363 = vmatprep.mubr.bf16.mxu0 %v15416_v30  ;;  %3556 = vmatprep.mubr.bf16.mxu1 %v15417_v50 }
 0x1cd   : > { %v2891_v10 = vpop.f32.mrf.mxu0  ;;  %v3084_v5 = vpop.f32.mrf.mxu1 }
 0x1ce   : > { %v11832_v40 = vpack.c.bf16 %v4403_v4, %v4395_v0  ;;  %v4404_v51 = vmax.f32 %v3079_v3, 0.0  ;;  %v3083_v13 = vadd.f32 %v3082_v9, %v2890_v25  ;;  %v2892_v21 = vadd.f32 %v2891_v10, %v11805_v46  ;;  %v15420_v0 = vld [vmem:[#allocation32_spill] sm:$0xff]  ;;  %v15421_v4 = vld [vmem:[#allocation33_spill] sm:$0xff]  ;;  %v15422_v10 = vld [vmem:[#allocation34_spill] sm:$0xff] }
 0x1cf   : > { %v2893_v19 = vpop.f32.mrf.mxu0  ;;  %v3086_v63 = vpop.f32.mrf.mxu1 }
 0x1d0   : > { %15418 = vst [vmem:[#allocation47_spill] sm:$0xff] %v11832_v40  ;;  %v3085_v57 = vadd.f32 %v3084_v5, %v2892_v21  ;;  %v2894_v20 = vadd.f32 %v2893_v19, %v11802_v15  ;;  %v11836_v49 = vpack.c.bf16 %v4404_v51, %v4396_v23  ;;  %v4411_v9 = vmax.f32 %v3083_v13, 0.0  ;;  %v15423_v19 = vld [vmem:[#allocation35_spill] sm:$0xff] }
 0x1d1   : > { %v2895_v11 = vpop.f32.mrf.mxu0  ;;  %v3088_v32 = vpop.f32.mrf.mxu1 }
 0x1d2   : > { %15419 = vst [vmem:[#allocation48_spill] sm:$0xff] %v11836_v49  ;;  %v3087_v30 = vadd.f32 %v3086_v63, %v2894_v20  ;;  %v2896_v14 = vadd.f32 %v2895_v11, %v11805_v46  ;;  %v4412_v23 = vmax.f32 %v3085_v57, 0.0 }
 0x1d3   : > { %v2899_v50 = vpop.f32.mrf.mxu0  ;;  %v3092_v26 = vpop.f32.mrf.mxu1  ;;  %3364 = vmatmul.mubr.bf16.gmra.mxu0 %v15420_v0  ;;  %3557 = vmatmul.mubr.bf16.gmra.mxu1 %v15421_v4 }
 0x1d4   : > { %v4419_v3 = vmax.f32 %v3087_v30, 0.0  ;;  %v3089_v25 = vadd.f32 %v3088_v32, %v2896_v14  ;;  %v2900_v21 = vadd.f32 %v2899_v50, %v11802_v15  ;;  %3373 = vmatprep.mubr.bf16.mxu0 %v15422_v10  ;;  %3566 = vmatprep.mubr.bf16.mxu1 %v15423_v19 }
 0x1d5   : > { %v2901_v5 = vpop.f32.mrf.mxu0  ;;  %v3094_v63 = vpop.f32.mrf.mxu1 }
 0x1d6   : > { %v11844_v51 = vpack.c.bf16 %v4419_v3, %v4411_v9  ;;  %v4420_v20 = vmax.f32 %v3089_v25, 0.0  ;;  %v3093_v11 = vadd.f32 %v3092_v26, %v2900_v21  ;;  %v2902_v40 = vadd.f32 %v2901_v5, %v11805_v46  ;;  %v15426_v9 = vld [vmem:[#allocation36_spill] sm:$0xff]  ;;  %v15427_v3 = vld [vmem:[#allocation37_spill] sm:$0xff]  ;;  %v15428_v5 = vld [vmem:[#allocation38_spill] sm:$0xff] }
 0x1d7   : > { %v2903_v49 = vpop.f32.mrf.mxu0  ;;  %v3096_v4 = vpop.f32.mrf.mxu1 }
 0x1d8   : > { %15424 = vst [vmem:[#allocation49_spill] sm:$0xff] %v11844_v51  ;;  %v3095_v13 = vadd.f32 %v3094_v63, %v2902_v40  ;;  %v2904_v30 = vadd.f32 %v2903_v49, %v11802_v15  ;;  %v11848_v32 = vpack.c.bf16 %v4420_v20, %v4412_v23  ;;  %v4427_v26 = vmax.f32 %v3093_v11, 0.0  ;;  %v15429_v49 = vld [vmem:[#allocation39_spill] sm:$0xff] }
 0x1d9   : > { %v2905_v50 = vpop.f32.mrf.mxu0  ;;  %v3098_v14 = vpop.f32.mrf.mxu1 }
 0x1da   : > { %15425 = vst [vmem:[#allocation50_spill] sm:$0xff] %v11848_v32  ;;  %v3097_v10 = vadd.f32 %v3096_v4, %v2904_v30  ;;  %v2906_v57 = vadd.f32 %v2905_v50, %v11805_v46  ;;  %v4428_v23 = vmax.f32 %v3095_v13, 0.0 }
 0x1db   : > { %v2909_v19 = vpop.f32.mrf.mxu0  ;;  %v3102_v0 = vpop.f32.mrf.mxu1  ;;  %3374 = vmatmul.mubr.bf16.gmra.mxu0 %v15426_v9  ;;  %3567 = vmatmul.mubr.bf16.gmra.mxu1 %v15427_v3 }
 0x1dc   : > { %v4435_v25 = vmax.f32 %v3097_v10, 0.0  ;;  %v3099_v21 = vadd.f32 %v3098_v14, %v2906_v57  ;;  %v2910_v40 = vadd.f32 %v2909_v19, %v11802_v15  ;;  %3383 = vmatprep.mubr.bf16.mxu0 %v15428_v5  ;;  %3576 = vmatprep.mubr.bf16.mxu1 %v15429_v49 }
 0x1dd   : > { %v2911_v63 = vpop.f32.mrf.mxu0  ;;  %v3104_v4 = vpop.f32.mrf.mxu1 }
 0x1de   : > { %v11856_v20 = vpack.c.bf16 %v4435_v25, %v4427_v26  ;;  %v4436_v30 = vmax.f32 %v3099_v21, 0.0  ;;  %v3103_v50 = vadd.f32 %v3102_v0, %v2910_v40  ;;  %v2912_v51 = vadd.f32 %v2911_v63, %v11805_v46  ;;  %v15432_v26 = vld [vmem:[#allocation40_spill] sm:$0xff]  ;;  %v15433_v25 = vld [vmem:[#allocation41_spill] sm:$0xff] }
 0x1df   : > { %v2913_v32 = vpop.f32.mrf.mxu0  ;;  %v3106_v3 = vpop.f32.mrf.mxu1 }
 0x1e0   : > { %15430 = vst [vmem:[#allocation51_spill] sm:$0xff] %v11856_v20  ;;  %v3105_v11 = vadd.f32 %v3104_v4, %v2912_v51  ;;  %v2914_v10 = vadd.f32 %v2913_v32, %v11802_v15  ;;  %v11860_v14 = vpack.c.bf16 %v4436_v30, %v4428_v23  ;;  %v4443_v0 = vmax.f32 %v3103_v50, 0.0 }
 0x1e1   : > { %v2915_v19 = vpop.f32.mrf.mxu0  ;;  %v3108_v57 = vpop.f32.mrf.mxu1 }
 0x1e2   : > { %15431 = vst [vmem:[#allocation52_spill] sm:$0xff] %v11860_v14  ;;  %v3107_v5 = vadd.f32 %v3106_v3, %v2914_v10  ;;  %v2916_v13 = vadd.f32 %v2915_v19, %v11805_v46  ;;  %v4444_v32 = vmax.f32 %v3105_v11, 0.0 }
 0x1e3   : > { %v2919_v49 = vpop.f32.mrf.mxu0  ;;  %v3112_v9 = vpop.f32.mrf.mxu1  ;;  %3384 = vmatmul.mubr.bf16.gmra.mxu0 %v15432_v26  ;;  %3577 = vmatmul.mubr.bf16.gmra.mxu1 %v15433_v25 }
 0x1e4   : > { %v4451_v21 = vmax.f32 %v3107_v5, 0.0  ;;  %v3109_v40 = vadd.f32 %v3108_v57, %v2916_v13  ;;  %v2920_v51 = vadd.f32 %v2919_v49, %v11802_v15  ;;  %3393 = vmatprep.mubr.bf16.mxu0 %v11518_v28  ;;  %3586 = vmatprep.mubr.bf16.mxu1 %v11520_v53 }
 0x1e5   : > { %v2921_v23 = vpop.f32.mrf.mxu0  ;;  %v3114_v3 = vpop.f32.mrf.mxu1 }
 0x1e6   : > { %v11868_v63 = vpack.c.bf16 %v4451_v21, %v4443_v0  ;;  %v4452_v4 = vmax.f32 %v3109_v40, 0.0  ;;  %v3113_v30 = vadd.f32 %v3112_v9, %v2920_v51  ;;  %v2922_v10 = vadd.f32 %v2921_v23, %v11805_v46 }
 0x1e7   : > { %v2923_v19 = vpop.f32.mrf.mxu0  ;;  %v3116_v20 = vpop.f32.mrf.mxu1 }
 0x1e8   : > { %15434 = vst [vmem:[#allocation40_spill] sm:$0xff] %v11868_v63  ;;  %v3115_v50 = vadd.f32 %v3114_v3, %v2922_v10  ;;  %v2924_v5 = vadd.f32 %v2923_v19, %v11802_v15  ;;  %v11872_v57 = vpack.c.bf16 %v4452_v4, %v4444_v32  ;;  %v4459_v9 = vmax.f32 %v3113_v30, 0.0 }
 0x1e9   : > { %v2925_v49 = vpop.f32.mrf.mxu0  ;;  %v3118_v13 = vpop.f32.mrf.mxu1 }
 0x1ea   : > { %15435 = vst [vmem:[#allocation41_spill] sm:$0xff] %v11872_v57  ;;  %v3117_v14 = vadd.f32 %v3116_v20, %v2924_v5  ;;  %v2926_v11 = vadd.f32 %v2925_v49, %v11805_v46  ;;  %v4460_v51 = vmax.f32 %v3115_v50, 0.0 }
 0x1eb   : > { %v2929_v53 = vpop.f32.mrf.mxu0  ;;  %v3122_v28 = vpop.f32.mrf.mxu1  ;;  %3394 = vmatmul.mubr.bf16.gmra.mxu0 %v11522_v56  ;;  %3587 = vmatmul.mubr.bf16.gmra.mxu1 %v11524_v27 }
 0x1ec   : > { %v4467_v0 = vmax.f32 %v3117_v14, 0.0  ;;  %v3119_v21 = vadd.f32 %v3118_v13, %v2926_v11  ;;  %v2930_v40 = vadd.f32 %v2929_v53, %v11802_v15  ;;  %3403 = vmatprep.mubr.bf16.mxu0 %v11538_v8  ;;  %3596 = vmatprep.mubr.bf16.mxu1 %v11540_v7 }
 0x1ed   : > { %v2931_v32 = vpop.f32.mrf.mxu0  ;;  %v3124_v20 = vpop.f32.mrf.mxu1 }
 0x1ee   : > { %v11880_v23 = vpack.c.bf16 %v4467_v0, %v4459_v9  ;;  %v4468_v3 = vmax.f32 %v3119_v21, 0.0  ;;  %v3123_v4 = vadd.f32 %v3122_v28, %v2930_v40  ;;  %v2932_v10 = vadd.f32 %v2931_v32, %v11805_v46 }
 0x1ef   : > { %v2933_v19 = vpop.f32.mrf.mxu0  ;;  %v3126_v5 = vpop.f32.mrf.mxu1 }
 0x1f0   : > { %15436 = vst [vmem:[#allocation53_spill] sm:$0xff] %v11880_v23  ;;  %v3125_v30 = vadd.f32 %v3124_v20, %v2932_v10  ;;  %v2934_v14 = vadd.f32 %v2933_v19, %v11802_v15  ;;  %v11884_v49 = vpack.c.bf16 %v4468_v3, %v4460_v51  ;;  %v4475_v28 = vmax.f32 %v3123_v4, 0.0  ;;  %v1308_v4 = vld [vmem:[%s15133_s3 + $0x198] sm:$0xff] }
 0x1f1   : > { %v2935_v53 = vpop.f32.mrf.mxu0  ;;  %v3128_v13 = vpop.f32.mrf.mxu1 }
 0x1f2   : > { %15437 = vst [vmem:[#allocation54_spill] sm:$0xff] %v11884_v49  ;;  %v3127_v11 = vadd.f32 %v3126_v5, %v2934_v14  ;;  %v2936_v50 = vadd.f32 %v2935_v53, %v11805_v46  ;;  %v4476_v40 = vmax.f32 %v3125_v30, 0.0  ;;  %v1436_v30 = vld [vmem:[%s15133_s3 + $0x598] sm:$0xff]  ;;  %v15440_v49 = vcombine.low %v11592_v22, %v11597_v29 }
 0x1f3   : > { %v2939_v63 = vpop.f32.mrf.mxu0  ;;  %v3132_v57 = vpop.f32.mrf.mxu1  ;;  %3404 = vmatmul.mubr.bf16.gmra.mxu0 %v11542_v43  ;;  %3597 = vmatmul.mubr.bf16.gmra.mxu1 %v11544_v31 }
 0x1f4   : > { %v4483_v9 = vmax.f32 %v3127_v11, 0.0  ;;  %v3129_v0 = vadd.f32 %v3128_v13, %v2936_v50  ;;  %v2940_v21 = vadd.f32 %v2939_v63, %v11802_v15  ;;  %3639 = vmatprep.mubr.bf16.mxu0 %v10848_v41  ;;  %3832 = vmatprep.mubr.bf16.mxu1 %v10850_v42  ;;  %v1312_v63 = vld [vmem:[%s15133_s3 + $0x1b8] sm:$0xff] }
 0x1f5   : > { %v2941_v51 = vpop.f32.mrf.mxu0  ;;  %v3134_v32 = vpop.f32.mrf.mxu1 }
 0x1f6   : > { %v11892_v20 = vpack.c.bf16 %v4483_v9, %v4475_v28  ;;  %v4484_v3 = vmax.f32 %v3129_v0, 0.0  ;;  %v3133_v10 = vadd.f32 %v3132_v57, %v2940_v21  ;;  %v2942_v19 = vadd.f32 %v2941_v51, %v11805_v46  ;;  %v1440_v57 = vld [vmem:[%s15133_s3 + $0x5b8] sm:$0xff] }
 0x1f7   : > { %v2943_v5 = vpop.f32.mrf.mxu0  ;;  %v3136_v14 = vpop.f32.mrf.mxu1  ;;  %v11913_v9 = vld [vmem:[%s15133_s3 + $0x158] sm:$0xff]  ;;  %v8970_v51 = vcombine.high %v1308_v4, %v1312_v63 }
 0x1f8   : > { %15438 = vst [vmem:[#allocation55_spill] sm:$0xff] %v11892_v20  ;;  %v3135_v53 = vadd.f32 %v3134_v32, %v2942_v19  ;;  %v2944_v13 = vadd.f32 %v2943_v5, %v11802_v15  ;;  %v11908_v11 = vpack.c.bf16 %v4484_v3, %v4476_v40  ;;  %v9098_v20 = vcombine.high %v1436_v30, %v1440_v57  ;;  %v11919_v32 = vld [vmem:[%s15133_s3 + $0x178] sm:$0xff] }
 0x1f9   : > { %v2945_v50 = vpop.f32.mrf.mxu0  ;;  %v3138_v28 = vpop.f32.mrf.mxu1  ;;  %v11924_v40 = vld [vmem:[%s15133_s3 + $0x558] sm:$0xff] }
 0x1fa   : > { %15439 = vst [vmem:[#allocation56_spill] sm:$0xff] %v11908_v11  ;;  %v3137_v0 = vadd.f32 %v3136_v14, %v2944_v13  ;;  %v2946_v21 = vadd.f32 %v2945_v50, %v11805_v46  ;;  %v11929_v3 = vld [vmem:[%s15133_s3 + $0x578] sm:$0xff]  ;;  %v8969_v14 = vcombine.low %v1308_v4, %v1312_v63  ;;  %v4491_v13 = vmax.f32 %v3133_v10, 0.0 }
 0x1fb   : > { %v2949_v19 = vpop.f32.mrf.mxu0  ;;  %v3142_v5 = vpop.f32.mrf.mxu1  ;;  %3640 = vmatmul.mubr.bf16.vlgmr.msra.gmra.mxu0 %v10856_v45  ;;  %3833 = vmatmul.mubr.bf16.vlgmr.msra.gmra.mxu1 %v10858_v48  ;;  %v4492_v42 = vmax.f32 %v3135_v53, 0.0  ;;  %v15441_v48 = vcombine.low %v11613_v16, %v11618_v6  ;;  %v9097_v10 = vcombine.low %v1436_v30, %v1440_v57  ;;  %v8962_v4 = vcombine.high %v11913_v9, %v11919_v32  ;;  %v1292_v16 = vld [vmem:[%s15133_s3 + $0x118] sm:$0xff] }
 0x1fc   : > { %v4499_v50 = vmax.f32 %v3137_v0, 0.0  ;;  %v3139_v11 = vadd.f32 %v3138_v28, %v2946_v21  ;;  %v2950_v23 = vadd.f32 %v2949_v19, %v11802_v15  ;;  %3994 = vmatpush1.bf16.msra.mxu0 %v15440_v49  ;;  %3649 = vmatprep.mubr.bf16.mxu0 %v10942_v35  ;;  %v9090_v63 = vcombine.high %v11924_v40, %v11929_v3  ;;  %v1296_v30 = vld [vmem:[%s15133_s3 + $0x138] sm:$0xff] }
 0x1fd   : > { %3842 = vmatprep.mubr.bf16.mxu1 %v10944_v36  ;;  %v2951_v41 = vpop.f32.mrf.mxu0  ;;  %v3144_v31 = vpop.f32.mrf.mxu1  ;;  %4187 = vmatpush1.bf16.msra.mxu1 %v15441_v48  ;;  %v1420_v57 = vld [vmem:[%s15133_s3 + $0x518] sm:$0xff]  ;;  %v8961_v21 = vcombine.low %v11913_v9, %v11919_v32 }
 0x1fe   : > { %v11946_v22 = vpack.c.bf16 %v4499_v50, %v4491_v13  ;;  %v4500_v29 = vmax.f32 %v3139_v11, 0.0  ;;  %v3143_v49 = vadd.f32 %v3142_v5, %v2950_v23  ;;  %v2952_v53 = vadd.f32 %v2951_v41, %v11805_v46  ;;  %3995 = vmatprep.subr.bf16.mxu0 %v8970_v51  ;;  %4188 = vmatprep.subr.bf16.mxu1 %v9098_v20  ;;  %v1424_v41 = vld [vmem:[%s15133_s3 + $0x538] sm:$0xff] }
 0x1ff   : > { %v2953_v48 = vpop.f32.mrf.mxu0  ;;  %v3146_v6 = vpop.f32.mrf.mxu1  ;;  %v9089_v51 = vcombine.low %v11924_v40, %v11929_v3  ;;  %v11971_v19 = vld [vmem:[%s15133_s3 + $0xd8] sm:$0xff]  ;;  %v8953_v50 = vcombine.low %v1292_v16, %v1296_v30 }
 0x200   : > { %15442 = vst [vmem:[#allocation57_spill] sm:$0xff] %v11946_v22  ;;  %v3145_v23 = vadd.f32 %v3144_v31, %v2952_v53  ;;  %v2954_v20 = vadd.f32 %v2953_v48, %v11802_v15  ;;  %3996 = vmatpush1.bf16.msra.mxu0 %v8969_v14  ;;  %v11962_v11 = vpack.c.bf16 %v4500_v29, %v4492_v42  ;;  %v11977_v13 = vld [vmem:[%s15133_s3 + $0xf8] sm:$0xff] }
 0x201   : > { %v2955_v28 = vpop.f32.mrf.mxu0  ;;  %v3148_v0 = vpop.f32.mrf.mxu1  ;;  %4189 = vmatpush1.bf16.msra.mxu1 %v9097_v10  ;;  %3997 = vmatprep.subr.bf16.mxu0 %v8962_v4  ;;  %v8954_v42 = vcombine.high %v1292_v16, %v1296_v30  ;;  %v9082_v14 = vcombine.high %v1420_v57, %v1424_v41  ;;  %v11982_v9 = vld [vmem:[%s15133_s3 + $0x4d8] sm:$0xff]  ;;  %v4507_v10 = vmax.f32 %v3143_v49, 0.0 }
 0x202   : > { %15443 = vst [vmem:[#allocation58_spill] sm:$0xff] %v11962_v11  ;;  %v3147_v31 = vadd.f32 %v3146_v6, %v2954_v20  ;;  %v2956_v5 = vadd.f32 %v2955_v28, %v11805_v46  ;;  %4190 = vmatprep.subr.bf16.mxu1 %v9090_v63  ;;  %v11987_v32 = vld [vmem:[%s15133_s3 + $0x4f8] sm:$0xff]  ;;  %v4508_v53 = vmax.f32 %v3145_v23, 0.0  ;;  %v9081_v20 = vcombine.low %v1420_v57, %v1424_v41 }
 0x203   : > { %v2959_v40 = vpop.f32.mrf.mxu0  ;;  %v3152_v3 = vpop.f32.mrf.mxu1  ;;  %3650 = vmatmul.mubr.bf16.gmra.mxu0 %v10950_v39  ;;  %3843 = vmatmul.mubr.bf16.gmra.mxu1 %v10952_v44  ;;  %v8946_v28 = vcombine.high %v11971_v19, %v11977_v13  ;;  %v9074_v49 = vcombine.high %v11982_v9, %v11987_v32  ;;  %v1276_v23 = vld [vmem:[%s15133_s3 + $0x98] sm:$0xff] }
 0x204   : > { %v4515_v4 = vmax.f32 %v3147_v31, 0.0  ;;  %v3149_v63 = vadd.f32 %v3148_v0, %v2956_v5  ;;  %v2960_v29 = vadd.f32 %v2959_v40, %v11802_v15  ;;  %3659 = vmatprep.mubr.bf16.mxu0 %v11014_v33  ;;  %3852 = vmatprep.mubr.bf16.mxu1 %v11016_v37  ;;  %v1280_v57 = vld [vmem:[%s15133_s3 + $0xb8] sm:$0xff] }
 0x205   : > { %v2961_v48 = vpop.f32.mrf.mxu0  ;;  %v3154_v6 = vpop.f32.mrf.mxu1  ;;  %3998 = vmatpush1.bf16.msra.mxu0 %v8961_v21  ;;  %4191 = vmatpush1.bf16.msra.mxu1 %v9089_v51  ;;  %v1404_v51 = vld [vmem:[%s15133_s3 + $0x498] sm:$0xff] }
 0x206   : > { %v11998_v16 = vpack.c.bf16 %v4515_v4, %v4507_v10  ;;  %v4516_v30 = vmax.f32 %v3149_v63, 0.0  ;;  %v3153_v0 = vadd.f32 %v3152_v3, %v2960_v29  ;;  %v2962_v31 = vadd.f32 %v2961_v48, %v11805_v46  ;;  %3999 = vmatprep.subr.bf16.mxu0 %v8954_v42  ;;  %4192 = vmatprep.subr.bf16.mxu1 %v9082_v14  ;;  %v1408_v5 = vld [vmem:[%s15133_s3 + $0x4b8] sm:$0xff] }
 0x207   : > { %v2963_v41 = vpop.f32.mrf.mxu0  ;;  %v3156_v21 = vpop.f32.mrf.mxu1  ;;  %v8945_v4 = vcombine.low %v11971_v19, %v11977_v13  ;;  %v9073_v63 = vcombine.low %v11982_v9, %v11987_v32  ;;  %v8938_v29 = vcombine.high %v1276_v23, %v1280_v57  ;;  %v12023_v48 = vld [vmem:[%s15133_s3 + $0x58] sm:$0xff] }
 0x208   : > { %15444 = vst [vmem:[#allocation59_spill] sm:$0xff] %v11998_v16  ;;  %v3155_v42 = vadd.f32 %v3154_v6, %v2962_v31  ;;  %v2964_v14 = vadd.f32 %v2963_v41, %v11802_v15  ;;  %v12014_v40 = vpack.c.bf16 %v4516_v30, %v4508_v53  ;;  %v9066_v30 = vcombine.high %v1404_v51, %v1408_v5  ;;  %v12034_v19 = vld [vmem:[%s15133_s3 + $0x458] sm:$0xff] }
 0x209   : > { %v2965_v3 = vpop.f32.mrf.mxu0  ;;  %v3158_v10 = vpop.f32.mrf.mxu1  ;;  %4000 = vmatpush1.bf16.msra.mxu0 %v8953_v50  ;;  %4193 = vmatpush1.bf16.msra.mxu1 %v9081_v20  ;;  %v12029_v50 = vld [vmem:[%s15133_s3 + $0x78] sm:$0xff]  ;;  %v8937_v20 = vcombine.low %v1276_v23, %v1280_v57  ;;  %v9065_v16 = vcombine.low %v1404_v51, %v1408_v5 }
 0x20a   : > { %15445 = vst [vmem:[#allocation60_spill] sm:$0xff] %v12014_v40  ;;  %v3157_v6 = vadd.f32 %v3156_v21, %v2964_v14  ;;  %v2966_v53 = vadd.f32 %v2965_v3, %v11805_v46  ;;  %4001 = vmatprep.subr.bf16.mxu0 %v8946_v28  ;;  %4194 = vmatprep.subr.bf16.mxu1 %v9074_v49  ;;  %v12039_v13 = vld [vmem:[%s15133_s3 + $0x478] sm:$0xff]  ;;  %v4523_v28 = vmax.f32 %v3153_v0, 0.0  ;;  %v4524_v21 = vmax.f32 %v3155_v42, 0.0 }
 0x20b   : > { %v2969_v9 = vpop.f32.mrf.mxu0  ;;  %v3162_v32 = vpop.f32.mrf.mxu1  ;;  %3660 = vmatmul.mubr.bf16.gmra.mxu0 %v11022_v38  ;;  %3853 = vmatmul.mubr.bf16.gmra.mxu1 %v11024_v55  ;;  %v8930_v40 = vcombine.high %v12023_v48, %v12029_v50  ;;  %v9058_v0 = vcombine.high %v12034_v19, %v12039_v13  ;;  %v1260_v42 = vld [vmem:[%s15133_s3 + $0x18] sm:$0xff] }
 0x20c   : > { %v4531_v49 = vmax.f32 %v3157_v6, 0.0  ;;  %v3159_v31 = vadd.f32 %v3158_v10, %v2966_v53  ;;  %v2970_v41 = vadd.f32 %v2969_v9, %v11802_v15  ;;  %3669 = vmatprep.mubr.bf16.mxu0 %v11086_v59  ;;  %3862 = vmatprep.mubr.bf16.mxu1 %v11088_v2  ;;  %v1264_v51 = vld [vmem:[%s15133_s3 + $0x38] sm:$0xff] }
 0x20d   : > { %v2971_v14 = vpop.f32.mrf.mxu0  ;;  %v3164_v3 = vpop.f32.mrf.mxu1  ;;  %4002 = vmatpush1.bf16.msra.mxu0 %v8945_v4  ;;  %4195 = vmatpush1.bf16.msra.mxu1 %v9073_v63  ;;  %v1388_v63 = vld [vmem:[%s15133_s3 + $0x418] sm:$0xff] }
 0x20e   : > { %v12050_v23 = vpack.c.bf16 %v4531_v49, %v4523_v28  ;;  %v4532_v57 = vmax.f32 %v3159_v31, 0.0  ;;  %v3163_v10 = vadd.f32 %v3162_v32, %v2970_v41  ;;  %v2972_v6 = vadd.f32 %v2971_v14, %v11805_v46  ;;  %4003 = vmatprep.subr.bf16.mxu0 %v8938_v29  ;;  %4196 = vmatprep.subr.bf16.mxu1 %v9066_v30  ;;  %v1392_v53 = vld [vmem:[%s15133_s3 + $0x438] sm:$0xff] }
 0x20f   : > { %v2973_v5 = vpop.f32.mrf.mxu0  ;;  %v3166_v4 = vpop.f32.mrf.mxu1  ;;  %v8929_v49 = vcombine.low %v12023_v48, %v12029_v50  ;;  %v9057_v31 = vcombine.low %v12034_v19, %v12039_v13  ;;  %v8922_v41 = vcombine.high %v1260_v42, %v1264_v51  ;;  %v12075_v14 = vld [vmem:[%s15133_s3 + $0x3d8] sm:$0xff] }
 0x210   : > { %15446 = vst [vmem:[#allocation61_spill] sm:$0xff] %v12050_v23  ;;  %v3165_v29 = vadd.f32 %v3164_v3, %v2972_v6  ;;  %v2974_v30 = vadd.f32 %v2973_v5, %v11802_v15  ;;  %v12066_v9 = vpack.c.bf16 %v4532_v57, %v4524_v21  ;;  %v9050_v57 = vcombine.high %v1388_v63, %v1392_v53  ;;  %v12086_v48 = vld [vmem:[%s15133_s3 + $0x7d8] sm:$0xff] }
 0x211   : > { %v2975_v32 = vpop.f32.mrf.mxu0  ;;  %v3168_v28 = vpop.f32.mrf.mxu1  ;;  %4004 = vmatpush1.bf16.msra.mxu0 %v8937_v20  ;;  %4197 = vmatpush1.bf16.msra.mxu1 %v9065_v16  ;;  %v12081_v16 = vld [vmem:[%s15133_s3 + $0x3f8] sm:$0xff]  ;;  %v4539_v20 = vmax.f32 %v3163_v10, 0.0  ;;  %v9049_v23 = vcombine.low %v1388_v63, %v1392_v53 }
 0x212   : > { %15447 = vst [vmem:[#allocation62_spill] sm:$0xff] %v12066_v9  ;;  %v3167_v3 = vadd.f32 %v3166_v4, %v2974_v30  ;;  %v2976_v21 = vadd.f32 %v2975_v32, %v11805_v46  ;;  %4005 = vmatprep.subr.bf16.mxu0 %v8930_v40  ;;  %4198 = vmatprep.subr.bf16.mxu1 %v9058_v0  ;;  %v12091_v50 = vld [vmem:[%s15133_s3 + $0x7f8] sm:$0xff]  ;;  %v4540_v4 = vmax.f32 %v3165_v29, 0.0 }
 0x213   : > { %v2979_v19 = vpop.f32.mrf.mxu0  ;;  %v3172_v13 = vpop.f32.mrf.mxu1  ;;  %3670 = vmatmul.mubr.bf16.gmra.mxu0 %v11094_v54  ;;  %3863 = vmatmul.mubr.bf16.gmra.mxu1 %v11096_v1  ;;  %v8921_v40 = vcombine.low %v1260_v42, %v1264_v51  ;;  %v9042_v9 = vcombine.high %v12075_v14, %v12081_v16  ;;  %v9170_v10 = vcombine.high %v12086_v48, %v12091_v50  ;;  %v1372_v29 = vld [vmem:[%s15133_s3 + $0x398] sm:$0xff] }
 0x214   : > { %v4547_v0 = vmax.f32 %v3167_v3, 0.0  ;;  %v3169_v6 = vadd.f32 %v3168_v28, %v2976_v21  ;;  %v2980_v5 = vadd.f32 %v2979_v19, %v11802_v15  ;;  %3679 = vmatprep.mubr.bf16.mxu0 %v11158_v18  ;;  %3872 = vmatprep.mubr.bf16.mxu1 %v11160_v47  ;;  %v1376_v63 = vld [vmem:[%s15133_s3 + $0x3b8] sm:$0xff] }
 0x215   : > { %v2981_v30 = vpop.f32.mrf.mxu0  ;;  %v3174_v32 = vpop.f32.mrf.mxu1  ;;  %4006 = vmatpush1.bf16.msra.mxu0 %v8929_v49  ;;  %4199 = vmatpush1.bf16.msra.mxu1 %v9057_v31  ;;  %v1500_v31 = vld [vmem:[%s15133_s3 + $0x798] sm:$0xff] }
 0x216   : > { %v12102_v42 = vpack.c.bf16 %v4547_v0, %v4539_v20  ;;  %v4548_v51 = vmax.f32 %v3169_v6, 0.0  ;;  %v3173_v28 = vadd.f32 %v3172_v13, %v2980_v5  ;;  %v2982_v3 = vadd.f32 %v2981_v30, %v11805_v46  ;;  %4007 = vmatprep.subr.bf16.mxu0 %v8922_v41  ;;  %4200 = vmatprep.subr.bf16.mxu1 %v9050_v57  ;;  %v1504_v21 = vld [vmem:[%s15133_s3 + $0x7b8] sm:$0xff] }
 0x217   : > { %v2983_v53 = vpop.f32.mrf.mxu0  ;;  %v3176_v49 = vpop.f32.mrf.mxu1  ;;  %v9041_v0 = vcombine.low %v12075_v14, %v12081_v16  ;;  %v9169_v6 = vcombine.low %v12086_v48, %v12091_v50  ;;  %v9034_v5 = vcombine.high %v1372_v29, %v1376_v63  ;;  %v12127_v30 = vld [vmem:[%s15133_s3 + $0x358] sm:$0xff] }
 0x218   : > { %15448 = vst [vmem:[#allocation63_spill] sm:$0xff] %v12102_v42  ;;  %v3175_v41 = vadd.f32 %v3174_v32, %v2982_v3  ;;  %v2984_v57 = vadd.f32 %v2983_v53, %v11802_v15  ;;  %v12118_v19 = vpack.c.bf16 %v4548_v51, %v4540_v4  ;;  %v9162_v51 = vcombine.high %v1500_v31, %v1504_v21  ;;  %v12138_v14 = vld [vmem:[%s15133_s3 + $0x758] sm:$0xff] }
 0x219   : > { %v2985_v13 = vpop.f32.mrf.mxu0  ;;  %v3178_v20 = vpop.f32.mrf.mxu1  ;;  %4008 = vmatpush1.bf16.msra.mxu0 %v8921_v40  ;;  %4201 = vmatpush1.bf16.msra.mxu1 %v9049_v23  ;;  %v12133_v23 = vld [vmem:[%s15133_s3 + $0x378] sm:$0xff]  ;;  %v4555_v40 = vmax.f32 %v3173_v28, 0.0  ;;  %v9161_v42 = vcombine.low %v1500_v31, %v1504_v21 }
 0x21a   : > { %15449 = vst [vmem:[#allocation64_spill] sm:$0xff] %v12118_v19  ;;  %v3177_v32 = vadd.f32 %v3176_v49, %v2984_v57  ;;  %v2986_v4 = vadd.f32 %v2985_v13, %v11805_v46  ;;  %4009 = vmatprep.subr.bf16.mxu0 %v9042_v9  ;;  %4202 = vmatprep.subr.bf16.mxu1 %v9170_v10  ;;  %v12143_v16 = vld [vmem:[%s15133_s3 + $0x778] sm:$0xff]  ;;  %v4556_v49 = vmax.f32 %v3175_v41, 0.0 }
 0x21b   : > { %v2989_v48 = vpop.f32.mrf.mxu0  ;;  %v3182_v50 = vpop.f32.mrf.mxu1  ;;  %3680 = vmatmul.mubr.bf16.gmra.mxu0 %v11166_v58  ;;  %3873 = vmatmul.mubr.bf16.gmra.mxu1 %v11168_v17  ;;  %v9033_v9 = vcombine.low %v1372_v29, %v1376_v63  ;;  %v9026_v19 = vcombine.high %v12127_v30, %v12133_v23  ;;  %v9154_v28 = vcombine.high %v12138_v14, %v12143_v16  ;;  %v1356_v41 = vld [vmem:[%s15133_s3 + $0x318] sm:$0xff] }
 0x21c   : > { %v4563_v10 = vmax.f32 %v3177_v32, 0.0  ;;  %v3179_v3 = vadd.f32 %v3178_v20, %v2986_v4  ;;  %v2990_v53 = vadd.f32 %v2989_v48, %v11802_v15  ;;  %3689 = vmatprep.mubr.bf16.mxu0 %v11230_v60  ;;  %3882 = vmatprep.mubr.bf16.mxu1 %v11232_v62  ;;  %v1360_v31 = vld [vmem:[%s15133_s3 + $0x338] sm:$0xff] }
 0x21d   : > { %v2991_v57 = vpop.f32.mrf.mxu0  ;;  %v3184_v13 = vpop.f32.mrf.mxu1  ;;  %4010 = vmatpush2.bf16.msra.mxu0 %v9041_v0  ;;  %4203 = vmatpush2.bf16.msra.mxu1 %v9169_v6  ;;  %v1484_v6 = vld [vmem:[%s15133_s3 + $0x718] sm:$0xff] }
 0x21e   : > { %v12154_v29 = vpack.c.bf16 %v4563_v10, %v4555_v40  ;;  %v4564_v63 = vmax.f32 %v3179_v3, 0.0  ;;  %v3183_v20 = vadd.f32 %v3182_v50, %v2990_v53  ;;  %v2992_v32 = vadd.f32 %v2991_v57, %v11805_v46  ;;  %4011 = vmatprep.subr.bf16.mxu0 %v9034_v5  ;;  %4204 = vmatprep.subr.bf16.mxu1 %v9162_v51  ;;  %v1488_v4 = vld [vmem:[%s15133_s3 + $0x738] sm:$0xff] }
 0x21f   : > { %v2993_v21 = vpop.f32.mrf.mxu0  ;;  %v3186_v0 = vpop.f32.mrf.mxu1  ;;  %v9025_v10 = vcombine.low %v12127_v30, %v12133_v23  ;;  %v9153_v3 = vcombine.low %v12138_v14, %v12143_v16  ;;  %v9018_v53 = vcombine.high %v1356_v41, %v1360_v31  ;;  %v12179_v57 = vld [vmem:[%s15133_s3 + $0x2d8] sm:$0xff]  ;;  %v9145_v11 = vcombine.low %v1484_v6, %v1488_v4 }
 0x220   : > { %15450 = vst [vmem:[#allocation65_spill] sm:$0xff] %v12154_v29  ;;  %v3185_v5 = vadd.f32 %v3184_v13, %v2992_v32  ;;  %v2994_v51 = vadd.f32 %v2993_v21, %v11802_v15  ;;  %v12170_v48 = vpack.c.bf16 %v4564_v63, %v4556_v49  ;;  %v9146_v63 = vcombine.high %v1484_v6, %v1488_v4  ;;  %v12190_v30 = vld [vmem:[%s15133_s3 + $0x6d8] sm:$0xff] }
 0x221   : > { %v2995_v50 = vpop.f32.mrf.mxu0  ;;  %v3188_v40 = vpop.f32.mrf.mxu1  ;;  %4012 = vmatpush2.bf16.msra.mxu0 %v9033_v9  ;;  %4205 = vmatpush2.bf16.msra.mxu1 %v9161_v42  ;;  %v12185_v42 = vld [vmem:[%s15133_s3 + $0x2f8] sm:$0xff]  ;;  %v9017_v9 = vcombine.low %v1356_v41, %v1360_v31 }
 0x222   : > { %15451 = vst [vmem:[#allocation66_spill] sm:$0xff] %v12170_v48  ;;  %v3187_v13 = vadd.f32 %v3186_v0, %v2994_v51  ;;  %v2996_v49 = vadd.f32 %v2995_v50, %v11805_v46  ;;  %4013 = vmatprep.subr.bf16.mxu0 %v9026_v19  ;;  %4206 = vmatprep.subr.bf16.mxu1 %v9154_v28  ;;  %v12195_v23 = vld [vmem:[%s15133_s3 + $0x6f8] sm:$0xff]  ;;  %v15452_v19 = vld [vmem:[#allocation11_spill] sm:$0xff]  ;;  %v4571_v28 = vmax.f32 %v3183_v20, 0.0  ;;  %v15453_v51 = vld [vmem:[#allocation12_spill] sm:$0xff]  ;;  %v4572_v29 = vmax.f32 %v3185_v5, 0.0 }
 0x223   : > { %v2999_v14 = vpop.f32.mrf.mxu0  ;;  %v3192_v16 = vpop.f32.mrf.mxu1  ;;  %3690 = vmatmul.mubr.bf16.gmra.mxu0 %v15399_v34  ;;  %3883 = vmatmul.mubr.bf16.gmra.mxu1 %v15452_v19  ;;  %v15454_v50 = vld [vmem:[#allocation13_spill] sm:$0xff]  ;;  %v9010_v34 = vcombine.high %v12179_v57, %v12185_v42  ;;  %v9138_v20 = vcombine.high %v12190_v30, %v12195_v23 }
 0x224   : > { %v4579_v32 = vmax.f32 %v3187_v13, 0.0  ;;  %v3189_v21 = vadd.f32 %v3188_v40, %v2996_v49  ;;  %v3000_v0 = vadd.f32 %v2999_v14, %v11802_v15  ;;  %3699 = vmatprep.mubr.bf16.mxu0 %v15453_v51  ;;  %3892 = vmatprep.mubr.bf16.mxu1 %v15454_v50  ;;  %v1340_v5 = vld [vmem:[%s15133_s3 + $0x298] sm:$0xff] }
 0x225   : > { %v3001_v48 = vpop.f32.mrf.mxu0  ;;  %v3194_v22 = vpop.f32.mrf.mxu1  ;;  %4014 = vmatpush2.bf16.msra.mxu0 %v9025_v10  ;;  %4207 = vmatpush2.bf16.msra.mxu1 %v9153_v3  ;;  %v1344_v6 = vld [vmem:[%s15133_s3 + $0x2b8] sm:$0xff] }
 0x226   : > { %v12206_v41 = vpack.c.bf16 %v4579_v32, %v4571_v28  ;;  %v4580_v31 = vmax.f32 %v3189_v21, 0.0  ;;  %v3193_v40 = vadd.f32 %v3192_v16, %v3000_v0  ;;  %v3002_v13 = vadd.f32 %v3001_v48, %v11805_v46  ;;  %4015 = vmatprep.subr.bf16.mxu0 %v9018_v53  ;;  %4208 = vmatprep.subr.bf16.mxu1 %v9146_v63  ;;  %v1468_v3 = vld [vmem:[%s15133_s3 + $0x698] sm:$0xff] }
 0x227   : > { %v3003_v4 = vpop.f32.mrf.mxu0  ;;  %v3196_v10 = vpop.f32.mrf.mxu1  ;;  %v1472_v48 = vld [vmem:[%s15133_s3 + $0x6b8] sm:$0xff]  ;;  %v9009_v28 = vcombine.low %v12179_v57, %v12185_v42  ;;  %v9137_v32 = vcombine.low %v12190_v30, %v12195_v23  ;;  %v9002_v21 = vcombine.high %v1340_v5, %v1344_v6 }
 0x228   : > { %15455 = vst [vmem:[#allocation11_spill] sm:$0xff] %v12206_v41  ;;  %v3195_v53 = vadd.f32 %v3194_v22, %v3002_v13  ;;  %v3004_v49 = vadd.f32 %v3003_v4, %v11802_v15  ;;  %v12222_v63 = vpack.c.bf16 %v4580_v31, %v4572_v29  ;;  %v12231_v0 = vld [vmem:[%s15133_s3 + $0x258] sm:$0xff]  ;;  %v9130_v31 = vcombine.high %v1468_v3, %v1472_v48 }
 0x229   : > { %v3005_v14 = vpop.f32.mrf.mxu0  ;;  %v3198_v16 = vpop.f32.mrf.mxu1  ;;  %4016 = vmatpush2.bf16.msra.mxu0 %v9017_v9  ;;  %4209 = vmatpush2.bf16.msra.mxu1 %v9145_v11  ;;  %v1336_v11 = vld [vmem:[%s15133_s3 + $0x278] sm:$0xff]  ;;  %v4587_v9 = vmax.f32 %v3193_v40, 0.0 }
 0x22a   : > { %15456 = vst [vmem:[#allocation12_spill] sm:$0xff] %v12222_v63  ;;  %v3197_v22 = vadd.f32 %v3196_v10, %v3004_v49  ;;  %v3006_v29 = vadd.f32 %v3005_v14, %v11805_v46  ;;  %4017 = vmatprep.subr.bf16.mxu0 %v9010_v34  ;;  %4210 = vmatprep.subr.bf16.mxu1 %v9138_v20  ;;  %v1460_v57 = vld [vmem:[%s15133_s3 + $0x658] sm:$0xff]  ;;  %v15457_v10 = vld [vmem:[#allocation16_spill] sm:$0xff]  ;;  %v4588_v49 = vmax.f32 %v3195_v53, 0.0 }
 0x22b   : > { %v1464_v42 = vld [vmem:[%s15133_s3 + $0x678] sm:$0xff]  ;;  %v3009_v30 = vpop.f32.mrf.mxu0  ;;  %v3202_v23 = vpop.f32.mrf.mxu1  ;;  %3700 = vmatmul.mubr.bf16.gmra.mxu0 %v15403_v24  ;;  %3893 = vmatmul.mubr.bf16.gmra.mxu1 %v15404_v61  ;;  %v9001_v34 = vcombine.low %v1340_v5, %v1344_v6  ;;  %v9129_v63 = vcombine.low %v1468_v3, %v1472_v48  ;;  %v8994_v24 = vcombine.high %v12231_v0, %v1336_v11 }
 0x22c   : > { %v4595_v20 = vmax.f32 %v3197_v22, 0.0  ;;  %v3199_v13 = vadd.f32 %v3198_v16, %v3006_v29  ;;  %v3010_v4 = vadd.f32 %v3009_v30, %v11802_v15  ;;  %3709 = vmatprep.mubr.bf16.mxu0 %v11368_v52  ;;  %3902 = vmatprep.mubr.bf16.mxu1 %v15457_v10  ;;  %v9122_v50 = vcombine.high %v1460_v57, %v1464_v42  ;;  %v1324_v53 = vld [vmem:[%s15133_s3 + $0x218] sm:$0xff] }
 0x22d   : > { %v3011_v14 = vpop.f32.mrf.mxu0  ;;  %v3204_v41 = vpop.f32.mrf.mxu1  ;;  %4018 = vmatpush2.bf16.msra.mxu0 %v9009_v28  ;;  %4211 = vmatpush2.bf16.msra.mxu1 %v9137_v32  ;;  %v1328_v16 = vld [vmem:[%s15133_s3 + $0x238] sm:$0xff] }
 0x22e   : > { %v12249_v61 = vpack.c.bf16 %v4595_v20, %v4587_v9  ;;  %v4596_v40 = vmax.f32 %v3199_v13, 0.0  ;;  %v3203_v5 = vadd.f32 %v3202_v23, %v3010_v4  ;;  %v3012_v6 = vadd.f32 %v3011_v14, %v11805_v46  ;;  %4019 = vmatprep.subr.bf16.mxu0 %v9002_v21  ;;  %4212 = vmatprep.subr.bf16.mxu1 %v9130_v31  ;;  %v1452_v28 = vld [vmem:[%s15133_s3 + $0x618] sm:$0xff] }
 0x22f   : > { %v3013_v3 = vpop.f32.mrf.mxu0  ;;  %v3206_v48 = vpop.f32.mrf.mxu1  ;;  %v1456_v32 = vld [vmem:[%s15133_s3 + $0x638] sm:$0xff]  ;;  %v8993_v23 = vcombine.low %v12231_v0, %v1336_v11  ;;  %v9121_v9 = vcombine.low %v1460_v57, %v1464_v42  ;;  %v8986_v20 = vcombine.high %v1324_v53, %v1328_v16  ;;  %v15461_v0 = vld [vmem:[#allocation18_spill] sm:$0xff]  ;;  %v15462_v11 = vld [vmem:[#allocation19_spill] sm:$0xff] }
 0x230   : > { %15458 = vst [vmem:[#allocation16_spill] sm:$0xff] %v12249_v61  ;;  %v3205_v21 = vadd.f32 %v3204_v41, %v3012_v6  ;;  %v3014_v22 = vadd.f32 %v3013_v3, %v11802_v15  ;;  %v12265_v29 = vpack.c.bf16 %v4596_v40, %v4588_v49  ;;  %v9114_v14 = vcombine.high %v1452_v28, %v1456_v32  ;;  %v15460_v49 = vld [vmem:[#allocation17_spill] sm:$0xff] }
 0x231   : > { %v3015_v31 = vpop.f32.mrf.mxu0  ;;  %v3208_v30 = vpop.f32.mrf.mxu1  ;;  %4020 = vmatpush2.bf16.msra.mxu0 %v9001_v34  ;;  %4213 = vmatpush2.bf16.msra.mxu1 %v9129_v63  ;;  %v4603_v40 = vmax.f32 %v3203_v5, 0.0  ;;  %v9113_v3 = vcombine.low %v1452_v28, %v1456_v32  ;;  %v10334_v28 = vld [vmem:[%s15134_s4] sm:$0xff] }
 0x232   : > { %15459 = vst [vmem:[#allocation67_spill] sm:$0xff] %v12265_v29  ;;  %v3207_v13 = vadd.f32 %v3206_v48, %v3014_v22  ;;  %v3016_v4 = vadd.f32 %v3015_v31, %v11805_v46  ;;  %4021 = vmatprep.subr.bf16.mxu0 %v8994_v24  ;;  %4214 = vmatprep.subr.bf16.mxu1 %v9122_v50  ;;  %v4604_v57 = vmax.f32 %v3205_v21, 0.0  ;;  %v9923_v21 = vld [vmem:[%s15135_s5 + $0x2e4] ss:$16 sps:$4 sm:$0xff]  }
 0x233   : > { %v3019_v61 = vpop.f32.mrf.mxu0  ;;  %v3212_v41 = vpop.f32.mrf.mxu1  ;;  %3710 = vmatmul.mubr.bf16.gmra.mxu0 %v11375_v12  ;;  %3903 = vmatmul.mubr.bf16.gmra.mxu1 %v15460_v49  ;;  %v8985_v50 = vcombine.low %v1324_v53, %v1328_v16  ;;  %v15464_v32 = vld [vmem:[#allocation6_spill] sm:$0xff] }
 0x234   : > { %v4611_v6 = vmax.f32 %v3207_v13, 0.0  ;;  %v3209_v34 = vadd.f32 %v3208_v30, %v3016_v4  ;;  %v3020_v63 = vadd.f32 %v3019_v61, %v11802_v15  ;;  %3719 = vmatprep.mubr.bf16.mxu0 %v15461_v0  ;;  %3912 = vmatprep.mubr.bf16.mxu1 %v15462_v11  ;;  %v9920_v61 = vld [vmem:[%s15135_s5 + $0xe4] ss:$16 sps:$4 sm:$0xff]  }
 0x235   : > { %v3021_v42 = vpop.f32.mrf.mxu0  ;;  %v3214_v24 = vpop.f32.mrf.mxu1  ;;  %4022 = vmatpush2.bf16.msra.mxu0 %v8993_v23  ;;  %4215 = vmatpush2.bf16.msra.mxu1 %v9121_v9  ;;  %v12288_v9 = vrot.slane %v10334_v28, %v15464_v32 }
 0x236   : > { %v12274_v48 = vpack.c.bf16 %v4611_v6, %v4603_v40  ;;  %v4612_v22 = vmax.f32 %v3209_v34, 0.0  ;;  %v3213_v31 = vadd.f32 %v3212_v41, %v3020_v63  ;;  %v3022_v5 = vadd.f32 %v3021_v42, %v11805_v46  ;;  %4023 = vmatprep.subr.bf16.mxu0 %v8986_v20  ;;  %4216 = vmatprep.subr.bf16.mxu1 %v9114_v14  ;;  %v15466_v40 = vld [vmem:[#allocation4_spill] sm:$0xff]  ;;  %v15468_v42 = vld [vmem:[#allocation21_spill] sm:$0xff] }
 0x237   : > { %v3023_v30 = vpop.f32.mrf.mxu0  ;;  %v3216_v23 = vpop.f32.mrf.mxu1  ;;  %v12294_v6 = vrot.slane %v10334_v28, %v15466_v40  ;;  %v15467_v63 = vld [vmem:[#allocation20_spill] sm:$0xff] }
 0x238   : > { %15463 = vst [vmem:[#allocation17_spill] sm:$0xff] %v12274_v48  ;;  %v3215_v53 = vadd.f32 %v3214_v24, %v3022_v5  ;;  %v3024_v16 = vadd.f32 %v3023_v30, %v11802_v15  ;;  %v12290_v20 = vpack.c.bf16 %v4612_v22, %v4604_v57  ;;  %v4619_v57 = vmax.f32 %v3213_v31, 0.0  ;;  %v15470_v5 = vld [vmem:[#allocation23_spill] sm:$0xff] }
 0x239   : > { %v3025_v13 = vpop.f32.mrf.mxu0  ;;  %v3218_v4 = vpop.f32.mrf.mxu1  ;;  %4024 = vmatpush2.bf16.msra.mxu0 %v8985_v50  ;;  %4217 = vmatpush2.bf16.msra.mxu1 %v9113_v3  ;;  %v15469_v3 = vld [vmem:[#allocation22_spill] sm:$0xff] }
 0x23a   : > { %15465 = vst [vmem:[#allocation18_spill] sm:$0xff] %v12290_v20  ;;  %v3217_v14 = vadd.f32 %v3216_v23, %v3024_v16  ;;  %v3026_v41 = vadd.f32 %v3025_v13, %v11805_v46  ;;  %6321 = vmatprep.subr.bf16.mxu0 %v9920_v61  ;;  %6514 = vmatprep.subr.bf16.mxu1 %v9923_v21  ;;  %v4620_v46 = vmax.f32 %v3215_v53, 0.0 }
 0x23b   : > { %v3255_v15 = vpop.f32.mrf.mxu0  ;;  %v3448_v34 = vpop.f32.mrf.mxu1  ;;  %3720 = vmatmul.mubr.bf16.gmra.mxu0 %v15467_v63  ;;  %3913 = vmatmul.mubr.bf16.gmra.mxu1 %v15468_v42 }
 0x23c   : > { %v4627_v24 = vmax.f32 %v3217_v14, 0.0  ;;  %v3219_v22 = vadd.f32 %v3218_v4, %v3026_v41  ;;  %v3256_v50 = vadd.f32 %v3255_v15, %v12288_v9  ;;  %3729 = vmatprep.mubr.bf16.mxu0 %v15469_v3  ;;  %3922 = vmatprep.mubr.bf16.mxu1 %v15470_v5 }
 0x23d   : > { %v3257_v30 = vpop.f32.mrf.mxu0  ;;  %v3450_v23 = vpop.f32.mrf.mxu1 }
 0x23e   : > { %v12301_v61 = vpack.c.bf16 %v4627_v24, %v4619_v57  ;;  %v4628_v21 = vmax.f32 %v3219_v22, 0.0  ;;  %v3449_v16 = vadd.f32 %v3448_v34, %v3256_v50  ;;  %v3258_v28 = vadd.f32 %v3257_v30, %v12294_v6  ;;  %v15473_v57 = vld [vmem:[#allocation24_spill] sm:$0xff]  ;;  %v15474_v24 = vld [vmem:[#allocation25_spill] sm:$0xff] }
 0x23f   : > { %v3259_v13 = vpop.f32.mrf.mxu0  ;;  %v3452_v40 = vpop.f32.mrf.mxu1 }
 0x240   : > { %15471 = vst [vmem:[#allocation19_spill] sm:$0xff] %v12301_v61  ;;  %v3451_v31 = vadd.f32 %v3450_v23, %v3258_v28  ;;  %v3260_v4 = vadd.f32 %v3259_v13, %v12288_v9  ;;  %v12305_v14 = vpack.c.bf16 %v4628_v21, %v4620_v46  ;;  %v4381_v34 = vmax.f32 %v3449_v16, 0.0  ;;  %v15475_v23 = vld [vmem:[#allocation26_spill] sm:$0xff]  ;;  %v15476_v46 = vld [vmem:[#allocation27_spill] sm:$0xff] }
 0x241   : > { %v3261_v41 = vpop.f32.mrf.mxu0  ;;  %v3454_v15 = vpop.f32.mrf.mxu1 }
 0x242   : > { %15472 = vst [vmem:[#allocation20_spill] sm:$0xff] %v12305_v14  ;;  %v3453_v32 = vadd.f32 %v3452_v40, %v3260_v4  ;;  %v3262_v53 = vadd.f32 %v3261_v41, %v12294_v6  ;;  %v4382_v21 = vmax.f32 %v3451_v31, 0.0 }
 0x243   : > { %v3265_v48 = vpop.f32.mrf.mxu0  ;;  %v3458_v20 = vpop.f32.mrf.mxu1  ;;  %3730 = vmatmul.mubr.bf16.gmra.mxu0 %v15473_v57  ;;  %3923 = vmatmul.mubr.bf16.gmra.mxu1 %v15474_v24 }
 0x244   : > { %v4389_v22 = vmax.f32 %v3453_v32, 0.0  ;;  %v3455_v50 = vadd.f32 %v3454_v15, %v3262_v53  ;;  %v3266_v30 = vadd.f32 %v3265_v48, %v12288_v9  ;;  %3739 = vmatprep.mubr.bf16.mxu0 %v15475_v23  ;;  %3932 = vmatprep.mubr.bf16.mxu1 %v15476_v46 }
 0x245   : > { %v3267_v28 = vpop.f32.mrf.mxu0  ;;  %v3460_v40 = vpop.f32.mrf.mxu1 }
 0x246   : > { %v12313_v13 = vpack.c.bf16 %v4389_v22, %v4381_v34  ;;  %v4390_v4 = vmax.f32 %v3455_v50, 0.0  ;;  %v3459_v41 = vadd.f32 %v3458_v20, %v3266_v30  ;;  %v3268_v61 = vadd.f32 %v3267_v28, %v12294_v6  ;;  %v15479_v34 = vld [vmem:[#allocation28_spill] sm:$0xff]  ;;  %v15480_v22 = vld [vmem:[#allocation29_spill] sm:$0xff]  ;;  %v15481_v28 = vld [vmem:[#allocation30_spill] sm:$0xff] }
 0x247   : > { %v3269_v14 = vpop.f32.mrf.mxu0  ;;  %v3462_v29 = vpop.f32.mrf.mxu1 }
 0x248   : > { %15477 = vst [vmem:[#allocation21_spill] sm:$0xff] %v12313_v13  ;;  %v3461_v16 = vadd.f32 %v3460_v40, %v3268_v61  ;;  %v3270_v32 = vadd.f32 %v3269_v14, %v12288_v9  ;;  %v12317_v15 = vpack.c.bf16 %v4390_v4, %v4382_v21  ;;  %v4397_v20 = vmax.f32 %v3459_v41, 0.0  ;;  %v15482_v14 = vld [vmem:[#allocation31_spill] sm:$0xff] }
 0x249   : > { %v3271_v48 = vpop.f32.mrf.mxu0  ;;  %v3464_v53 = vpop.f32.mrf.mxu1 }
 0x24a   : > { %15478 = vst [vmem:[#allocation22_spill] sm:$0xff] %v12317_v15  ;;  %v3463_v23 = vadd.f32 %v3462_v29, %v3270_v32  ;;  %v3272_v31 = vadd.f32 %v3271_v48, %v12294_v6  ;;  %v4398_v21 = vmax.f32 %v3461_v16, 0.0 }
 0x24b   : > { %v3275_v46 = vpop.f32.mrf.mxu0  ;;  %v3468_v24 = vpop.f32.mrf.mxu1  ;;  %3740 = vmatmul.mubr.bf16.gmra.mxu0 %v15479_v34  ;;  %3933 = vmatmul.mubr.bf16.gmra.mxu1 %v15480_v22 }
 0x24c   : > { %v4405_v50 = vmax.f32 %v3463_v23, 0.0  ;;  %v3465_v30 = vadd.f32 %v3464_v53, %v3272_v31  ;;  %v3276_v61 = vadd.f32 %v3275_v46, %v12288_v9  ;;  %3749 = vmatprep.mubr.bf16.mxu0 %v15481_v28  ;;  %3942 = vmatprep.mubr.bf16.mxu1 %v15482_v14 }
 0x24d   : > { %v3277_v40 = vpop.f32.mrf.mxu0  ;;  %v3470_v29 = vpop.f32.mrf.mxu1 }
 0x24e   : > { %v12325_v4 = vpack.c.bf16 %v4405_v50, %v4397_v20  ;;  %v4406_v32 = vmax.f32 %v3465_v30, 0.0  ;;  %v3469_v48 = vadd.f32 %v3468_v24, %v3276_v61  ;;  %v3278_v13 = vadd.f32 %v3277_v40, %v12294_v6  ;;  %v15485_v20 = vld [vmem:[#allocation32_spill] sm:$0xff]  ;;  %v15486_v50 = vld [vmem:[#allocation33_spill] sm:$0xff]  ;;  %v15487_v40 = vld [vmem:[#allocation34_spill] sm:$0xff] }
 0x24f   : > { %v3279_v15 = vpop.f32.mrf.mxu0  ;;  %v3472_v22 = vpop.f32.mrf.mxu1 }
 0x250   : > { %15483 = vst [vmem:[#allocation23_spill] sm:$0xff] %v12325_v4  ;;  %v3471_v41 = vadd.f32 %v3470_v29, %v3278_v13  ;;  %v3280_v23 = vadd.f32 %v3279_v15, %v12288_v9  ;;  %v12329_v53 = vpack.c.bf16 %v4406_v32, %v4398_v21  ;;  %v4413_v24 = vmax.f32 %v3469_v48, 0.0  ;;  %v15488_v15 = vld [vmem:[#allocation35_spill] sm:$0xff] }
 0x251   : > { %v3281_v46 = vpop.f32.mrf.mxu0  ;;  %v3474_v31 = vpop.f32.mrf.mxu1 }
 0x252   : > { %15484 = vst [vmem:[#allocation24_spill] sm:$0xff] %v12329_v53  ;;  %v3473_v28 = vadd.f32 %v3472_v22, %v3280_v23  ;;  %v3282_v16 = vadd.f32 %v3281_v46, %v12294_v6  ;;  %v4414_v21 = vmax.f32 %v3471_v41, 0.0 }
 0x253   : > { %v3285_v14 = vpop.f32.mrf.mxu0  ;;  %v3478_v34 = vpop.f32.mrf.mxu1  ;;  %3750 = vmatmul.mubr.bf16.gmra.mxu0 %v15485_v20  ;;  %3943 = vmatmul.mubr.bf16.gmra.mxu1 %v15486_v50 }
 0x254   : > { %v4421_v30 = vmax.f32 %v3473_v28, 0.0  ;;  %v3475_v61 = vadd.f32 %v3474_v31, %v3282_v16  ;;  %v3286_v13 = vadd.f32 %v3285_v14, %v12288_v9  ;;  %3759 = vmatprep.mubr.bf16.mxu0 %v15487_v40  ;;  %3952 = vmatprep.mubr.bf16.mxu1 %v15488_v15 }
 0x255   : > { %v3287_v29 = vpop.f32.mrf.mxu0  ;;  %v3480_v22 = vpop.f32.mrf.mxu1 }
 0x256   : > { %v12337_v32 = vpack.c.bf16 %v4421_v30, %v4413_v24  ;;  %v4422_v23 = vmax.f32 %v3475_v61, 0.0  ;;  %v3479_v46 = vadd.f32 %v3478_v34, %v3286_v13  ;;  %v3288_v4 = vadd.f32 %v3287_v29, %v12294_v6  ;;  %v15491_v24 = vld [vmem:[#allocation36_spill] sm:$0xff]  ;;  %v15492_v30 = vld [vmem:[#allocation37_spill] sm:$0xff]  ;;  %v15493_v29 = vld [vmem:[#allocation38_spill] sm:$0xff] }
 0x257   : > { %v3289_v53 = vpop.f32.mrf.mxu0  ;;  %v3482_v50 = vpop.f32.mrf.mxu1 }
 0x258   : > { %15489 = vst [vmem:[#allocation68_spill] sm:$0xff] %v12337_v32  ;;  %v3481_v48 = vadd.f32 %v3480_v22, %v3288_v4  ;;  %v3290_v28 = vadd.f32 %v3289_v53, %v12288_v9  ;;  %v12341_v31 = vpack.c.bf16 %v4422_v23, %v4414_v21  ;;  %v4429_v34 = vmax.f32 %v3479_v46, 0.0  ;;  %v15494_v53 = vld [vmem:[#allocation39_spill] sm:$0xff] }
 0x259   : > { %v3291_v14 = vpop.f32.mrf.mxu0  ;;  %v3484_v16 = vpop.f32.mrf.mxu1 }
 0x25a   : > { %15490 = vst [vmem:[#allocation69_spill] sm:$0xff] %v12341_v31  ;;  %v3483_v40 = vadd.f32 %v3482_v50, %v3290_v28  ;;  %v3292_v41 = vadd.f32 %v3291_v14, %v12294_v6  ;;  %v4430_v21 = vmax.f32 %v3481_v48, 0.0 }
 0x25b   : > { %v3295_v15 = vpop.f32.mrf.mxu0  ;;  %v3488_v20 = vpop.f32.mrf.mxu1  ;;  %3760 = vmatmul.mubr.bf16.gmra.mxu0 %v15491_v24  ;;  %3953 = vmatmul.mubr.bf16.gmra.mxu1 %v15492_v30 }
 0x25c   : > { %v4437_v61 = vmax.f32 %v3483_v40, 0.0  ;;  %v3485_v13 = vadd.f32 %v3484_v16, %v3292_v41  ;;  %v3296_v4 = vadd.f32 %v3295_v15, %v12288_v9  ;;  %3769 = vmatprep.mubr.bf16.mxu0 %v15493_v29  ;;  %3962 = vmatprep.mubr.bf16.mxu1 %v15494_v53 }
 0x25d   : > { %v3297_v22 = vpop.f32.mrf.mxu0  ;;  %v3490_v50 = vpop.f32.mrf.mxu1 }
 0x25e   : > { %v12349_v23 = vpack.c.bf16 %v4437_v61, %v4429_v34  ;;  %v4438_v28 = vmax.f32 %v3485_v13, 0.0  ;;  %v3489_v14 = vadd.f32 %v3488_v20, %v3296_v4  ;;  %v3298_v32 = vadd.f32 %v3297_v22, %v12294_v6  ;;  %v15497_v13 = vld [vmem:[#allocation42_spill] sm:$0xff] }
 0x25f   : > { %v3299_v31 = vpop.f32.mrf.mxu0  ;;  %v3492_v30 = vpop.f32.mrf.mxu1 }
 0x260   : > { %15495 = vst [vmem:[#allocation70_spill] sm:$0xff] %v12349_v23  ;;  %v3491_v46 = vadd.f32 %v3490_v50, %v3298_v32  ;;  %v3300_v40 = vadd.f32 %v3299_v31, %v12288_v9  ;;  %v12353_v16 = vpack.c.bf16 %v4438_v28, %v4430_v21  ;;  %v4445_v20 = vmax.f32 %v3489_v14, 0.0  ;;  %v15498_v31 = vld [vmem:[#allocation43_spill] sm:$0xff] }
 0x261   : > { %v3301_v15 = vpop.f32.mrf.mxu0  ;;  %v3494_v41 = vpop.f32.mrf.mxu1 }
 0x262   : > { %15496 = vst [vmem:[#allocation71_spill] sm:$0xff] %v12353_v16  ;;  %v3493_v29 = vadd.f32 %v3492_v30, %v3300_v40  ;;  %v3302_v48 = vadd.f32 %v3301_v15, %v12294_v6  ;;  %v4446_v4 = vmax.f32 %v3491_v46, 0.0 }
 0x263   : > { %v3305_v53 = vpop.f32.mrf.mxu0  ;;  %v3498_v24 = vpop.f32.mrf.mxu1  ;;  %3770 = vmatmul.mubr.bf16.gmra.mxu0 %v15432_v26  ;;  %3963 = vmatmul.mubr.bf16.gmra.mxu1 %v15433_v25 }
 0x264   : > { %v4453_v34 = vmax.f32 %v3493_v29, 0.0  ;;  %v3495_v61 = vadd.f32 %v3494_v41, %v3302_v48  ;;  %v3306_v32 = vadd.f32 %v3305_v53, %v12288_v9  ;;  %3779 = vmatprep.mubr.bf16.mxu0 %v15497_v13  ;;  %3972 = vmatprep.mubr.bf16.mxu1 %v15498_v31 }
 0x265   : > { %v3307_v21 = vpop.f32.mrf.mxu0  ;;  %v3500_v30 = vpop.f32.mrf.mxu1 }
 0x266   : > { %v12361_v22 = vpack.c.bf16 %v4453_v34, %v4445_v20  ;;  %v4454_v50 = vmax.f32 %v3495_v61, 0.0  ;;  %v3499_v28 = vadd.f32 %v3498_v24, %v3306_v32  ;;  %v3308_v40 = vadd.f32 %v3307_v21, %v12294_v6 }
 0x267   : > { %v3309_v15 = vpop.f32.mrf.mxu0  ;;  %v3502_v23 = vpop.f32.mrf.mxu1 }
 0x268   : > { %15499 = vst [vmem:[#allocation72_spill] sm:$0xff] %v12361_v22  ;;  %v3501_v14 = vadd.f32 %v3500_v30, %v3308_v40  ;;  %v3310_v29 = vadd.f32 %v3309_v15, %v12288_v9  ;;  %v12365_v41 = vpack.c.bf16 %v4454_v50, %v4446_v4  ;;  %v4461_v24 = vmax.f32 %v3499_v28, 0.0 }
 0x269   : > { %v3311_v53 = vpop.f32.mrf.mxu0  ;;  %v3504_v48 = vpop.f32.mrf.mxu1 }
 0x26a   : > { %15500 = vst [vmem:[#allocation73_spill] sm:$0xff] %v12365_v41  ;;  %v3503_v16 = vadd.f32 %v3502_v23, %v3310_v29  ;;  %v3312_v46 = vadd.f32 %v3311_v53, %v12294_v6  ;;  %v4462_v32 = vmax.f32 %v3501_v14, 0.0 }
 0x26b   : > { %v3315_v31 = vpop.f32.mrf.mxu0  ;;  %v3508_v13 = vpop.f32.mrf.mxu1  ;;  %3780 = vmatmul.mubr.bf16.gmra.mxu0 %v11522_v56  ;;  %3973 = vmatmul.mubr.bf16.gmra.mxu1 %v11524_v27 }
 0x26c   : > { %v4469_v20 = vmax.f32 %v3503_v16, 0.0  ;;  %v3505_v34 = vadd.f32 %v3504_v48, %v3312_v46  ;;  %v3316_v61 = vadd.f32 %v3315_v31, %v12288_v9  ;;  %3789 = vmatprep.mubr.bf16.mxu0 %v11538_v8  ;;  %3982 = vmatprep.mubr.bf16.mxu1 %v11540_v7 }
 0x26d   : > { %v3317_v4 = vpop.f32.mrf.mxu0  ;;  %v3510_v23 = vpop.f32.mrf.mxu1 }
 0x26e   : > { %v12373_v21 = vpack.c.bf16 %v4469_v20, %v4461_v24  ;;  %v4470_v30 = vmax.f32 %v3505_v34, 0.0  ;;  %v3509_v50 = vadd.f32 %v3508_v13, %v3316_v61  ;;  %v3318_v40 = vadd.f32 %v3317_v4, %v12294_v6  ;;  %v15503_v24 = vld [vmem:[#allocation44_spill] sm:$0xff]  ;;  %v15504_v4 = vld [vmem:[#allocation7_spill] sm:$0xff] }
 0x26f   : > { %v3319_v15 = vpop.f32.mrf.mxu0  ;;  %v3512_v29 = vpop.f32.mrf.mxu1 }
 0x270   : > { %15501 = vst [vmem:[#allocation74_spill] sm:$0xff] %v12373_v21  ;;  %v3511_v28 = vadd.f32 %v3510_v23, %v3318_v40  ;;  %v3320_v16 = vadd.f32 %v3319_v15, %v12288_v9  ;;  %v12377_v53 = vpack.c.bf16 %v4470_v30, %v4462_v32  ;;  %v4477_v13 = vmax.f32 %v3509_v50, 0.0  ;;  %v15505_v32 = vld [vmem:[#allocation8_spill] sm:$0xff] }
 0x271   : > { %v3321_v31 = vpop.f32.mrf.mxu0  ;;  %v3514_v48 = vpop.f32.mrf.mxu1 }
 0x272   : > { %15502 = vst [vmem:[#allocation75_spill] sm:$0xff] %v12377_v53  ;;  %v3513_v46 = vadd.f32 %v3512_v29, %v3320_v16  ;;  %v3322_v14 = vadd.f32 %v3321_v31, %v12294_v6  ;;  %v4478_v23 = vmax.f32 %v3511_v28, 0.0 }
 0x273   : > { %v3325_v22 = vpop.f32.mrf.mxu0  ;;  %v3518_v41 = vpop.f32.mrf.mxu1  ;;  %3790 = vmatmul.mubr.bf16.gmra.mxu0 %v11542_v43  ;;  %3983 = vmatmul.mubr.bf16.gmra.mxu1 %v15503_v24 }
 0x274   : > { %v4485_v20 = vmax.f32 %v3513_v46, 0.0  ;;  %v3515_v34 = vadd.f32 %v3514_v48, %v3322_v14  ;;  %v3326_v61 = vadd.f32 %v3325_v22, %v12288_v9  ;;  %4025 = vmatprep.mubr.bf16.mxu0 %v15504_v4  ;;  %4218 = vmatprep.mubr.bf16.mxu1 %v15505_v32  ;;  %v9918_v22 = vld [vmem:[%s15135_s5 + $0xe0] ss:$16 sps:$4 sm:$0xff]   ;;  %v15508_v32 = vld [vmem:[#allocation9_spill] sm:$0xff] }
 0x275   : > { %v3327_v30 = vpop.f32.mrf.mxu0  ;;  %v3520_v40 = vpop.f32.mrf.mxu1 }
 0x276   : > { %v12385_v15 = vpack.c.bf16 %v4485_v20, %v4477_v13  ;;  %v4486_v29 = vmax.f32 %v3515_v34, 0.0  ;;  %v3519_v16 = vadd.f32 %v3518_v41, %v3326_v61  ;;  %v3328_v31 = vadd.f32 %v3327_v30, %v12294_v6  ;;  %v9921_v13 = vld [vmem:[%s15135_s5 + $0x2e0] ss:$16 sps:$4 sm:$0xff]   ;;  %v9926_v34 = vld [vmem:[%s15135_s5 + $0xc4] ss:$16 sps:$4 sm:$0xff]  }
 0x277   : > { %v3329_v21 = vpop.f32.mrf.mxu0  ;;  %v3522_v53 = vpop.f32.mrf.mxu1 }
 0x278   : > { %15506 = vst [vmem:[#allocation44_spill] sm:$0xff] %v12385_v15  ;;  %v3521_v50 = vadd.f32 %v3520_v40, %v3328_v31  ;;  %v3330_v48 = vadd.f32 %v3329_v21, %v12288_v9  ;;  %v12392_v46 = vpack.c.bf16 %v4486_v29, %v4478_v23  ;;  %v9929_v21 = vld [vmem:[%s15135_s5 + $0x2c4] ss:$16 sps:$4 sm:$0xff]   ;;  %v4493_v23 = vmax.f32 %v3519_v16, 0.0  ;;  %v9924_v29 = vld [vmem:[%s15135_s5 + $0xc0] ss:$16 sps:$4 sm:$0xff]  }
 0x279   : > { %v3331_v28 = vpop.f32.mrf.mxu0  ;;  %v3524_v14 = vpop.f32.mrf.mxu1  ;;  %v9932_v16 = vld [vmem:[%s15135_s5 + $0xa4] ss:$16 sps:$4 sm:$0xff]  }
 0x27a   : > { %15507 = vst [vmem:[#allocation7_spill] sm:$0xff] %v12392_v46  ;;  %v3523_v41 = vadd.f32 %v3522_v53, %v3330_v48  ;;  %v3332_v20 = vadd.f32 %v3331_v28, %v12294_v6  ;;  %v4494_v31 = vmax.f32 %v3521_v50, 0.0 }
 0x27b   : > { %v3335_v61 = vpop.f32.mrf.mxu0  ;;  %v3528_v4 = vpop.f32.mrf.mxu1  ;;  %4026 = vmatmul.mubr.bf16.vlgmr.msra.gmra.mxu0 %v10856_v45  ;;  %4219 = vmatmul.mubr.bf16.vlgmr.msra.gmra.mxu1 %v15508_v32  ;;  %v9927_v45 = vld [vmem:[%s15135_s5 + $0x2c0] ss:$16 sps:$4 sm:$0xff]  }
 0x27c   : > { %v4501_v30 = vmax.f32 %v3523_v41, 0.0  ;;  %v3525_v40 = vadd.f32 %v3524_v14, %v3332_v20  ;;  %v3336_v53 = vadd.f32 %v3335_v61, %v12288_v9  ;;  %6322 = vmatpush1.bf16.msra.mxu0 %v9918_v22  ;;  %4035 = vmatprep.mubr.bf16.mxu0 %v10942_v35 }
 0x27d   : > { %4228 = vmatprep.mubr.bf16.mxu1 %v10944_v36  ;;  %v3337_v48 = vpop.f32.mrf.mxu0  ;;  %v3530_v28 = vpop.f32.mrf.mxu1  ;;  %6515 = vmatpush1.bf16.msra.mxu1 %v9921_v13  ;;  %v9935_v36 = vld [vmem:[%s15135_s5 + $0x2a4] ss:$16 sps:$4 sm:$0xff]  }
 0x27e   : > { %v12418_v22 = vpack.c.bf16 %v4501_v30, %v4493_v23  ;;  %v4502_v35 = vmax.f32 %v3525_v40, 0.0  ;;  %v3529_v14 = vadd.f32 %v3528_v4, %v3336_v53  ;;  %v3338_v41 = vadd.f32 %v3337_v48, %v12294_v6  ;;  %6323 = vmatprep.subr.bf16.mxu0 %v9926_v34  ;;  %6516 = vmatprep.subr.bf16.mxu1 %v9929_v21  ;;  %v9930_v34 = vld [vmem:[%s15135_s5 + $0xa0] ss:$16 sps:$4 sm:$0xff]   ;;  %v9938_v53 = vld [vmem:[%s15135_s5 + $0x84] ss:$16 sps:$4 sm:$0xff]  }
 0x27f   : > { %v3339_v50 = vpop.f32.mrf.mxu0  ;;  %v3532_v13 = vpop.f32.mrf.mxu1  ;;  %v9933_v21 = vld [vmem:[%s15135_s5 + $0x2a0] ss:$16 sps:$4 sm:$0xff]  }
 0x280   : > { %15509 = vst [vmem:[#allocation8_spill] sm:$0xff] %v12418_v22  ;;  %v3531_v20 = vadd.f32 %v3530_v28, %v3338_v41  ;;  %v3340_v61 = vadd.f32 %v3339_v50, %v12288_v9  ;;  %6324 = vmatpush1.bf16.msra.mxu0 %v9924_v29  ;;  %v12425_v32 = vpack.c.bf16 %v4502_v35, %v4494_v31  ;;  %v9941_v29 = vld [vmem:[%s15135_s5 + $0x284] ss:$16 sps:$4 sm:$0xff]   ;;  %v4509_v28 = vmax.f32 %v3529_v14, 0.0 }
 0x281   : > { %v3341_v23 = vpop.f32.mrf.mxu0  ;;  %v3534_v30 = vpop.f32.mrf.mxu1  ;;  %6517 = vmatpush1.bf16.msra.mxu1 %v9927_v45  ;;  %6325 = vmatprep.subr.bf16.mxu0 %v9932_v16 }
 0x282   : > { %15510 = vst [vmem:[#allocation9_spill] sm:$0xff] %v12425_v32  ;;  %v3533_v4 = vadd.f32 %v3532_v13, %v3340_v61  ;;  %v3342_v40 = vadd.f32 %v3341_v23, %v12294_v6  ;;  %6518 = vmatprep.subr.bf16.mxu1 %v9935_v36  ;;  %v4510_v41 = vmax.f32 %v3531_v20, 0.0  ;;  %v9947_v20 = vld [vmem:[%s15135_s5 + $0x264] ss:$16 sps:$4 sm:$0xff]  }
 0x283   : > { %v3345_v31 = vpop.f32.mrf.mxu0  ;;  %v3538_v48 = vpop.f32.mrf.mxu1  ;;  %4036 = vmatmul.mubr.bf16.gmra.mxu0 %v10950_v39  ;;  %4229 = vmatmul.mubr.bf16.gmra.mxu1 %v10952_v44  ;;  %v9936_v39 = vld [vmem:[%s15135_s5 + $0x80] ss:$16 sps:$4 sm:$0xff]  }
 0x284   : > { %v4517_v45 = vmax.f32 %v3533_v4, 0.0  ;;  %v3535_v16 = vadd.f32 %v3534_v30, %v3342_v40  ;;  %v3346_v35 = vadd.f32 %v3345_v31, %v12288_v9  ;;  %4045 = vmatprep.mubr.bf16.mxu0 %v11014_v33  ;;  %4238 = vmatprep.mubr.bf16.mxu1 %v11016_v37  ;;  %v9939_v44 = vld [vmem:[%s15135_s5 + $0x280] ss:$16 sps:$4 sm:$0xff]   ;;  %v9944_v37 = vld [vmem:[%s15135_s5 + $0x64] ss:$16 sps:$4 sm:$0xff]  }
 0x285   : > { %v3347_v36 = vpop.f32.mrf.mxu0  ;;  %v3540_v50 = vpop.f32.mrf.mxu1  ;;  %6326 = vmatpush1.bf16.msra.mxu0 %v9930_v34  ;;  %6519 = vmatpush1.bf16.msra.mxu1 %v9933_v21 }
 0x286   : > { %v12451_v14 = vpack.c.bf16 %v4517_v45, %v4509_v28  ;;  %v4518_v13 = vmax.f32 %v3535_v16, 0.0  ;;  %v3539_v61 = vadd.f32 %v3538_v48, %v3346_v35  ;;  %v3348_v33 = vadd.f32 %v3347_v36, %v12294_v6  ;;  %6327 = vmatprep.subr.bf16.mxu0 %v9938_v53  ;;  %6520 = vmatprep.subr.bf16.mxu1 %v9941_v29  ;;  %v9942_v53 = vld [vmem:[%s15135_s5 + $0x60] ss:$16 sps:$4 sm:$0xff]   ;;  %v9950_v45 = vld [vmem:[%s15135_s5 + $0x44] ss:$16 sps:$4 sm:$0xff]  }
 0x287   : > { %v3349_v23 = vpop.f32.mrf.mxu0  ;;  %v3542_v30 = vpop.f32.mrf.mxu1  ;;  %v9945_v29 = vld [vmem:[%s15135_s5 + $0x260] ss:$16 sps:$4 sm:$0xff]   ;;  %v9953_v16 = vld [vmem:[%s15135_s5 + $0x244] ss:$16 sps:$4 sm:$0xff]  }
 0x288   : > { %15511 = vst [vmem:[#allocation76_spill] sm:$0xff] %v12451_v14  ;;  %v3541_v34 = vadd.f32 %v3540_v50, %v3348_v33  ;;  %v3350_v21 = vadd.f32 %v3349_v23, %v12288_v9  ;;  %v12461_v4 = vpack.c.bf16 %v4518_v13, %v4510_v41  ;;  %v4525_v36 = vmax.f32 %v3539_v61, 0.0 }
 0x289   : > { %v3351_v40 = vpop.f32.mrf.mxu0  ;;  %v3544_v31 = vpop.f32.mrf.mxu1  ;;  %6328 = vmatpush1.bf16.msra.mxu0 %v9936_v39  ;;  %6521 = vmatpush1.bf16.msra.mxu1 %v9939_v44 }
 0x28a   : > { %15512 = vst [vmem:[#allocation77_spill] sm:$0xff] %v12461_v4  ;;  %v3543_v48 = vadd.f32 %v3542_v30, %v3350_v21  ;;  %v3352_v28 = vadd.f32 %v3351_v40, %v12294_v6  ;;  %6329 = vmatprep.subr.bf16.mxu0 %v9944_v37  ;;  %6522 = vmatprep.subr.bf16.mxu1 %v9947_v20  ;;  %v4526_v13 = vmax.f32 %v3541_v34, 0.0  ;;  %v9959_v30 = vld [vmem:[%s15135_s5 + $0x224] ss:$16 sps:$4 sm:$0xff]  }
 0x28b   : > { %v3355_v35 = vpop.f32.mrf.mxu0  ;;  %v3548_v41 = vpop.f32.mrf.mxu1  ;;  %4046 = vmatmul.mubr.bf16.gmra.mxu0 %v11022_v38  ;;  %4239 = vmatmul.mubr.bf16.gmra.mxu1 %v11024_v55  ;;  %v9948_v38 = vld [vmem:[%s15135_s5 + $0x40] ss:$16 sps:$4 sm:$0xff]  }
 0x28c   : > { %v4533_v50 = vmax.f32 %v3543_v48, 0.0  ;;  %v3545_v39 = vadd.f32 %v3544_v31, %v3352_v28  ;;  %v3356_v44 = vadd.f32 %v3355_v35, %v12288_v9  ;;  %4055 = vmatprep.mubr.bf16.mxu0 %v11086_v59  ;;  %4248 = vmatprep.mubr.bf16.mxu1 %v11088_v2  ;;  %v9951_v55 = vld [vmem:[%s15135_s5 + $0x240] ss:$16 sps:$4 sm:$0xff]   ;;  %v9956_v2 = vld [vmem:[%s15135_s5 + $0x24] ss:$16 sps:$4 sm:$0xff]  }
 0x28d   : > { %v3357_v33 = vpop.f32.mrf.mxu0  ;;  %v3550_v37 = vpop.f32.mrf.mxu1  ;;  %6330 = vmatpush1.bf16.msra.mxu0 %v9942_v53  ;;  %6523 = vmatpush1.bf16.msra.mxu1 %v9945_v29  ;;  %v9954_v28 = vld [vmem:[%s15135_s5 + $0x20] ss:$16 sps:$4 sm:$0xff]  }
 0x28e   : > { %v12487_v61 = vpack.c.bf16 %v4533_v50, %v4525_v36  ;;  %v4534_v20 = vmax.f32 %v3545_v39, 0.0  ;;  %v3549_v23 = vadd.f32 %v3548_v41, %v3356_v44  ;;  %v3358_v59 = vadd.f32 %v3357_v33, %v12294_v6  ;;  %6331 = vmatprep.subr.bf16.mxu0 %v9950_v45  ;;  %6524 = vmatprep.subr.bf16.mxu1 %v9953_v16  ;;  %v9957_v45 = vld [vmem:[%s15135_s5 + $0x220] ss:$16 sps:$4 sm:$0xff]   ;;  %v9962_v41 = vld [vmem:[%s15135_s5 + $0x4] ss:$16 sps:$4 sm:$0xff]  }
 0x28f   : > { %v3359_v34 = vpop.f32.mrf.mxu0  ;;  %v3552_v21 = vpop.f32.mrf.mxu1  ;;  %v9965_v36 = vld [vmem:[%s15135_s5 + $0x204] ss:$16 sps:$4 sm:$0xff]  }
 0x290   : > { %15513 = vst [vmem:[#allocation78_spill] sm:$0xff] %v12487_v61  ;;  %v3551_v40 = vadd.f32 %v3550_v37, %v3358_v59  ;;  %v3360_v31 = vadd.f32 %v3359_v34, %v12288_v9  ;;  %v12497_v53 = vpack.c.bf16 %v4534_v20, %v4526_v13  ;;  %v4541_v44 = vmax.f32 %v3549_v23, 0.0 }
 0x291   : > { %v3361_v29 = vpop.f32.mrf.mxu0  ;;  %v3554_v48 = vpop.f32.mrf.mxu1  ;;  %6332 = vmatpush1.bf16.msra.mxu0 %v9948_v38  ;;  %6525 = vmatpush1.bf16.msra.mxu1 %v9951_v55 }
 0x292   : > { %15514 = vst [vmem:[#allocation79_spill] sm:$0xff] %v12497_v53  ;;  %v3553_v16 = vadd.f32 %v3552_v21, %v3360_v31  ;;  %v3362_v35 = vadd.f32 %v3361_v29, %v12294_v6  ;;  %6333 = vmatprep.subr.bf16.mxu0 %v9956_v2  ;;  %6526 = vmatprep.subr.bf16.mxu1 %v9959_v30  ;;  %v4542_v38 = vmax.f32 %v3551_v40, 0.0  ;;  %v9971_v30 = vld [vmem:[%s15135_s5 + $0x3e4] ss:$16 sps:$4 sm:$0xff]  }
 0x293   : > { %v3365_v50 = vpop.f32.mrf.mxu0  ;;  %v3558_v39 = vpop.f32.mrf.mxu1  ;;  %4056 = vmatmul.mubr.bf16.gmra.mxu0 %v11094_v54  ;;  %4249 = vmatmul.mubr.bf16.gmra.mxu1 %v11096_v1  ;;  %v9960_v54 = vld [vmem:[%s15135_s5] ss:$16 sps:$4 sm:$0xff]  }
 0x294   : > { %v4549_v13 = vmax.f32 %v3553_v16, 0.0  ;;  %v3555_v33 = vadd.f32 %v3554_v48, %v3362_v35  ;;  %v3366_v37 = vadd.f32 %v3365_v50, %v12288_v9  ;;  %4065 = vmatprep.mubr.bf16.mxu0 %v11158_v18  ;;  %4258 = vmatprep.mubr.bf16.mxu1 %v11160_v47  ;;  %v9963_v1 = vld [vmem:[%s15135_s5 + $0x200] ss:$16 sps:$4 sm:$0xff]   ;;  %v9968_v47 = vld [vmem:[%s15135_s5 + $0x1e4] ss:$16 sps:$4 sm:$0xff]  }
 0x295   : > { %v3367_v55 = vpop.f32.mrf.mxu0  ;;  %v3560_v20 = vpop.f32.mrf.mxu1  ;;  %6334 = vmatpush1.bf16.msra.mxu0 %v9954_v28  ;;  %6527 = vmatpush1.bf16.msra.mxu1 %v9957_v45  ;;  %v9966_v45 = vld [vmem:[%s15135_s5 + $0x1e0] ss:$16 sps:$4 sm:$0xff]   ;;  %v9977_v50 = vld [vmem:[%s15135_s5 + $0x3c4] ss:$16 sps:$4 sm:$0xff]  }
 0x296   : > { %v12523_v23 = vpack.c.bf16 %v4549_v13, %v4541_v44  ;;  %v4550_v59 = vmax.f32 %v3555_v33, 0.0  ;;  %v3559_v2 = vadd.f32 %v3558_v39, %v3366_v37  ;;  %v3368_v18 = vadd.f32 %v3367_v55, %v12294_v6  ;;  %6335 = vmatprep.subr.bf16.mxu0 %v9962_v41  ;;  %6528 = vmatprep.subr.bf16.mxu1 %v9965_v36  ;;  %v9969_v16 = vld [vmem:[%s15135_s5 + $0x3e0] ss:$16 sps:$4 sm:$0xff]   ;;  %v9974_v36 = vld [vmem:[%s15135_s5 + $0x1c4] ss:$16 sps:$4 sm:$0xff]  }
 0x297   : > { %v3369_v34 = vpop.f32.mrf.mxu0  ;;  %v3562_v21 = vpop.f32.mrf.mxu1 }
 0x298   : > { %15515 = vst [vmem:[#allocation80_spill] sm:$0xff] %v12523_v23  ;;  %v3561_v40 = vadd.f32 %v3560_v20, %v3368_v18  ;;  %v3370_v31 = vadd.f32 %v3369_v34, %v12288_v9  ;;  %v12533_v29 = vpack.c.bf16 %v4550_v59, %v4542_v38  ;;  %v4557_v13 = vmax.f32 %v3559_v2, 0.0  ;;  %v9983_v18 = vld [vmem:[%s15135_s5 + $0x3a4] ss:$16 sps:$4 sm:$0xff]  }
 0x299   : > { %v3371_v48 = vpop.f32.mrf.mxu0  ;;  %v3564_v28 = vpop.f32.mrf.mxu1  ;;  %6336 = vmatpush1.bf16.msra.mxu0 %v9960_v54  ;;  %6529 = vmatpush1.bf16.msra.mxu1 %v9963_v1 }
 0x29a   : > { %15516 = vst [vmem:[#allocation81_spill] sm:$0xff] %v12533_v29  ;;  %v3563_v35 = vadd.f32 %v3562_v21, %v3370_v31  ;;  %v3372_v41 = vadd.f32 %v3371_v48, %v12294_v6  ;;  %6337 = vmatprep.subr.bf16.mxu0 %v9968_v47  ;;  %6530 = vmatprep.subr.bf16.mxu1 %v9971_v30  ;;  %v4558_v55 = vmax.f32 %v3561_v40, 0.0 }
 0x29b   : > { %v3375_v39 = vpop.f32.mrf.mxu0  ;;  %v3568_v44 = vpop.f32.mrf.mxu1  ;;  %4066 = vmatmul.mubr.bf16.gmra.mxu0 %v11166_v58  ;;  %4259 = vmatmul.mubr.bf16.gmra.mxu1 %v11168_v17  ;;  %v9972_v58 = vld [vmem:[%s15135_s5 + $0x1c0] ss:$16 sps:$4 sm:$0xff]  }
 0x29c   : > { %v4565_v33 = vmax.f32 %v3563_v35, 0.0  ;;  %v3565_v37 = vadd.f32 %v3564_v28, %v3372_v41  ;;  %v3376_v38 = vadd.f32 %v3375_v39, %v12288_v9  ;;  %4075 = vmatprep.mubr.bf16.mxu0 %v11230_v60  ;;  %4268 = vmatprep.mubr.bf16.mxu1 %v11232_v62  ;;  %v9975_v17 = vld [vmem:[%s15135_s5 + $0x3c0] ss:$16 sps:$4 sm:$0xff]   ;;  %v9980_v62 = vld [vmem:[%s15135_s5 + $0x1a4] ss:$16 sps:$4 sm:$0xff]  }
 0x29d   : > { %v3377_v20 = vpop.f32.mrf.mxu0  ;;  %v3570_v54 = vpop.f32.mrf.mxu1  ;;  %6338 = vmatpush2.bf16.msra.mxu0 %v9966_v45  ;;  %6531 = vmatpush2.bf16.msra.mxu1 %v9969_v16  ;;  %v9978_v28 = vld [vmem:[%s15135_s5 + $0x1a0] ss:$16 sps:$4 sm:$0xff]   ;;  %v9986_v41 = vld [vmem:[%s15135_s5 + $0x184] ss:$16 sps:$4 sm:$0xff]  }
 0x29e   : > { %v12559_v1 = vpack.c.bf16 %v4565_v33, %v4557_v13  ;;  %v4566_v59 = vmax.f32 %v3565_v37, 0.0  ;;  %v3569_v2 = vadd.f32 %v3568_v44, %v3376_v38  ;;  %v3378_v60 = vadd.f32 %v3377_v20, %v12294_v6  ;;  %6339 = vmatprep.subr.bf16.mxu0 %v9974_v36  ;;  %6532 = vmatprep.subr.bf16.mxu1 %v9977_v50  ;;  %v9981_v45 = vld [vmem:[%s15135_s5 + $0x3a0] ss:$16 sps:$4 sm:$0xff]   ;;  %v9989_v36 = vld [vmem:[%s15135_s5 + $0x384] ss:$16 sps:$4 sm:$0xff]  }
 0x29f   : > { %v3379_v47 = vpop.f32.mrf.mxu0  ;;  %v3572_v30 = vpop.f32.mrf.mxu1  ;;  %v15519_v44 = vld [vmem:[#allocation10_spill] sm:$0xff] }
 0x2a0   : > { %15517 = vst [vmem:[#allocation82_spill] sm:$0xff] %v12559_v1  ;;  %v3571_v34 = vadd.f32 %v3570_v54, %v3378_v60  ;;  %v3380_v21 = vadd.f32 %v3379_v47, %v12288_v9  ;;  %v12569_v40 = vpack.c.bf16 %v4566_v59, %v4558_v55  ;;  %v4573_v13 = vmax.f32 %v3569_v2, 0.0  ;;  %v15520_v55 = vld [vmem:[#allocation13_spill] sm:$0xff] }
 0x2a1   : > { %v3381_v31 = vpop.f32.mrf.mxu0  ;;  %v3574_v48 = vpop.f32.mrf.mxu1  ;;  %6340 = vmatpush2.bf16.msra.mxu0 %v9972_v58  ;;  %6533 = vmatpush2.bf16.msra.mxu1 %v9975_v17  ;;  %v9984_v17 = vld [vmem:[%s15135_s5 + $0x180] ss:$16 sps:$4 sm:$0xff]  }
 0x2a2   : > { %15518 = vst [vmem:[#allocation83_spill] sm:$0xff] %v12569_v40  ;;  %v3573_v16 = vadd.f32 %v3572_v30, %v3380_v21  ;;  %v3382_v35 = vadd.f32 %v3381_v31, %v12294_v6  ;;  %6341 = vmatprep.subr.bf16.mxu0 %v9980_v62  ;;  %6534 = vmatprep.subr.bf16.mxu1 %v9983_v18  ;;  %v4574_v20 = vmax.f32 %v3571_v34, 0.0  ;;  %v9992_v62 = vld [vmem:[%s15135_s5 + $0x164] ss:$16 sps:$4 sm:$0xff]  }
 0x2a3   : > { %v3385_v50 = vpop.f32.mrf.mxu0  ;;  %v3578_v39 = vpop.f32.mrf.mxu1  ;;  %4076 = vmatmul.mubr.bf16.gmra.mxu0 %v15519_v44  ;;  %4269 = vmatmul.mubr.bf16.gmra.mxu1 %v15452_v19  ;;  %v9987_v19 = vld [vmem:[%s15135_s5 + $0x380] ss:$16 sps:$4 sm:$0xff]   ;;  %v9995_v18 = vld [vmem:[%s15135_s5 + $0x364] ss:$16 sps:$4 sm:$0xff]  }
 0x2a4   : > { %v4581_v33 = vmax.f32 %v3573_v16, 0.0  ;;  %v3575_v37 = vadd.f32 %v3574_v48, %v3382_v35  ;;  %v3386_v38 = vadd.f32 %v3385_v50, %v12288_v9  ;;  %4085 = vmatprep.mubr.bf16.mxu0 %v15453_v51  ;;  %4278 = vmatprep.mubr.bf16.mxu1 %v15520_v55  ;;  %v9993_v16 = vld [vmem:[%s15135_s5 + $0x360] ss:$16 sps:$4 sm:$0xff]   ;;  %v10001_v50 = vld [vmem:[%s15135_s5 + $0x344] ss:$16 sps:$4 sm:$0xff]  }
 0x2a5   : > { %v3387_v54 = vpop.f32.mrf.mxu0  ;;  %v3580_v58 = vpop.f32.mrf.mxu1  ;;  %6342 = vmatpush2.bf16.msra.mxu0 %v9978_v28  ;;  %6535 = vmatpush2.bf16.msra.mxu1 %v9981_v45  ;;  %v9990_v45 = vld [vmem:[%s15135_s5 + $0x160] ss:$16 sps:$4 sm:$0xff]  }
 0x2a6   : > { %v12595_v59 = vpack.c.bf16 %v4581_v33, %v4573_v13  ;;  %v4582_v2 = vmax.f32 %v3575_v37, 0.0  ;;  %v3579_v60 = vadd.f32 %v3578_v39, %v3386_v38  ;;  %v3388_v51 = vadd.f32 %v3387_v54, %v12294_v6  ;;  %6343 = vmatprep.subr.bf16.mxu0 %v9986_v41  ;;  %6536 = vmatprep.subr.bf16.mxu1 %v9989_v36  ;;  %v9998_v36 = vld [vmem:[%s15135_s5 + $0x144] ss:$16 sps:$4 sm:$0xff]   ;;  %v15524_v33 = vld [vmem:[#allocation15_spill] sm:$0xff] }
 0x2a7   : > { %v3389_v47 = vpop.f32.mrf.mxu0  ;;  %v3582_v30 = vpop.f32.mrf.mxu1  ;;  %v15523_v13 = vld [vmem:[#allocation14_spill] sm:$0xff] }
 0x2a8   : > { %15521 = vst [vmem:[#allocation10_spill] sm:$0xff] %v12595_v59  ;;  %v3581_v34 = vadd.f32 %v3580_v58, %v3388_v51  ;;  %v3390_v21 = vadd.f32 %v3389_v47, %v12288_v9  ;;  %v12605_v31 = vpack.c.bf16 %v4582_v2, %v4574_v20  ;;  %v4589_v37 = vmax.f32 %v3579_v60, 0.0  ;;  %v9999_v2 = vld [vmem:[%s15135_s5 + $0x340] ss:$16 sps:$4 sm:$0xff]  }
 0x2a9   : > { %v3391_v48 = vpop.f32.mrf.mxu0  ;;  %v3584_v28 = vpop.f32.mrf.mxu1  ;;  %6344 = vmatpush2.bf16.msra.mxu0 %v9984_v17  ;;  %6537 = vmatpush2.bf16.msra.mxu1 %v9987_v19  ;;  %v9996_v19 = vld [vmem:[%s15135_s5 + $0x140] ss:$16 sps:$4 sm:$0xff]  }
 0x2aa   : > { %15522 = vst [vmem:[#allocation13_spill] sm:$0xff] %v12605_v31  ;;  %v3583_v35 = vadd.f32 %v3582_v30, %v3390_v21  ;;  %v3392_v41 = vadd.f32 %v3391_v48, %v12294_v6  ;;  %6345 = vmatprep.subr.bf16.mxu0 %v9992_v62  ;;  %6538 = vmatprep.subr.bf16.mxu1 %v9995_v18  ;;  %v4590_v54 = vmax.f32 %v3581_v34, 0.0  ;;  %v10007_v18 = vld [vmem:[%s15135_s5 + $0x324] ss:$16 sps:$4 sm:$0xff]  }
 0x2ab   : > { %v3395_v39 = vpop.f32.mrf.mxu0  ;;  %v3588_v44 = vpop.f32.mrf.mxu1  ;;  %4086 = vmatmul.mubr.bf16.gmra.mxu0 %v15523_v13  ;;  %4279 = vmatmul.mubr.bf16.gmra.mxu1 %v15524_v33  ;;  %v15527_v33 = vld [vmem:[#allocation2_spill] sm:$0xff] }
 0x2ac   : > { %v4597_v38 = vmax.f32 %v3583_v35, 0.0  ;;  %v3585_v55 = vadd.f32 %v3584_v28, %v3392_v41  ;;  %v3396_v20 = vadd.f32 %v3395_v39, %v12288_v9  ;;  %4095 = vmatprep.mubr.bf16.mxu0 %v11368_v52  ;;  %4288 = vmatprep.mubr.bf16.mxu1 %v15457_v10  ;;  %v10004_v10 = vld [vmem:[%s15135_s5 + $0x124] ss:$16 sps:$4 sm:$0xff]   ;;  %v10005_v35 = vld [vmem:[%s15135_s5 + $0x320] ss:$16 sps:$4 sm:$0xff]  }
 0x2ad   : > { %v3397_v58 = vpop.f32.mrf.mxu0  ;;  %v3590_v17 = vpop.f32.mrf.mxu1  ;;  %6346 = vmatpush2.bf16.msra.mxu0 %v9990_v45  ;;  %6539 = vmatpush2.bf16.msra.mxu1 %v9993_v16  ;;  %v10002_v16 = vld [vmem:[%s15135_s5 + $0x120] ss:$16 sps:$4 sm:$0xff]   ;;  %v10013_v39 = vld [vmem:[%s15135_s5 + $0x304] ss:$16 sps:$4 sm:$0xff]  }
 0x2ae   : > { %v12631_v60 = vpack.c.bf16 %v4597_v38, %v4589_v37  ;;  %v4598_v51 = vmax.f32 %v3585_v55, 0.0  ;;  %v3589_v62 = vadd.f32 %v3588_v44, %v3396_v20  ;;  %v3398_v52 = vadd.f32 %v3397_v58, %v12294_v6  ;;  %6347 = vmatprep.subr.bf16.mxu0 %v9998_v36  ;;  %6540 = vmatprep.subr.bf16.mxu1 %v10001_v50  ;;  %v10010_v50 = vld [vmem:[%s15135_s5 + $0x104] ss:$16 sps:$4 sm:$0xff]  }
 0x2af   : > { %v3399_v47 = vpop.f32.mrf.mxu0  ;;  %v3592_v30 = vpop.f32.mrf.mxu1  ;;  %v1533_v37 = vsub.s32 4, %v15527_v33 }
 0x2b0   : > { %15525 = vst [vmem:[#allocation14_spill] sm:$0xff] %v12631_v60  ;;  %v3591_v34 = vadd.f32 %v3590_v17, %v3398_v52  ;;  %v3400_v21 = vadd.f32 %v3399_v47, %v12288_v9  ;;  %v12641_v48 = vpack.c.bf16 %v4598_v51, %v4590_v54  ;;  %v4605_v38 = vmax.f32 %v3589_v62, 0.0  ;;  %v10016_v52 = vld [vmem:[%s15135_s5 + $0x4e4] ss:$16 sps:$4 sm:$0xff]  }
 0x2b1   : > { %v3401_v28 = vpop.f32.mrf.mxu0  ;;  %v3594_v45 = vpop.f32.mrf.mxu1  ;;  %6348 = vmatpush2.bf16.msra.mxu0 %v9996_v19  ;;  %6541 = vmatpush2.bf16.msra.mxu1 %v9999_v2  ;;  %v1537_v2 = vsub.s32 5, %v15527_v33 }
 0x2b2   : > { %15526 = vst [vmem:[#allocation15_spill] sm:$0xff] %v12641_v48  ;;  %v3593_v41 = vadd.f32 %v3592_v30, %v3400_v21  ;;  %v3402_v36 = vadd.f32 %v3401_v28, %v12294_v6  ;;  %6349 = vmatprep.subr.bf16.mxu0 %v10004_v10  ;;  %6542 = vmatprep.subr.bf16.mxu1 %v10007_v18  ;;  %v4606_v58 = vmax.f32 %v3591_v34, 0.0  ;;  %v10019_v10 = vld [vmem:[%s15135_s5 + $0x6e4] ss:$16 sps:$4 sm:$0xff]  }
 0x2b3   : > { %v3405_v44 = vpop.f32.mrf.mxu0  ;;  %v3598_v13 = vpop.f32.mrf.mxu1  ;;  %4096 = vmatmul.mubr.bf16.gmra.mxu0 %v11375_v12  ;;  %4289 = vmatmul.mubr.bf16.gmra.mxu1 %v15460_v49  ;;  %v10008_v12 = vld [vmem:[%s15135_s5 + $0x100] ss:$16 sps:$4 sm:$0xff]  }
 0x2b4   : > { %v4613_v55 = vmax.f32 %v3593_v41, 0.0  ;;  %v3595_v20 = vadd.f32 %v3594_v45, %v3402_v36  ;;  %v3406_v54 = vadd.f32 %v3405_v44, %v12288_v9  ;;  %4105 = vmatprep.mubr.bf16.mxu0 %v15461_v0  ;;  %4298 = vmatprep.mubr.bf16.mxu1 %v15462_v11  ;;  %v10011_v49 = vld [vmem:[%s15135_s5 + $0x300] ss:$16 sps:$4 sm:$0xff]  }
 0x2b5   : > { %v3407_v17 = vpop.f32.mrf.mxu0  ;;  %v3600_v19 = vpop.f32.mrf.mxu1  ;;  %6350 = vmatpush2.bf16.msra.mxu0 %v10002_v16  ;;  %6543 = vmatpush2.bf16.msra.mxu1 %v10005_v35  ;;  %v10335_v21 = vld [vmem:[%s15134_s4] sm:$0xff] }
 0x2b6   : > { %v12669_v51 = vpack.c.bf16 %v4613_v55, %v4605_v38  ;;  %v4614_v0 = vmax.f32 %v3595_v20, 0.0  ;;  %v3599_v62 = vadd.f32 %v3598_v13, %v3406_v54  ;;  %v3408_v11 = vadd.f32 %v3407_v17, %v12294_v6  ;;  %6351 = vmatprep.subr.bf16.mxu0 %v10010_v50  ;;  %6544 = vmatprep.subr.bf16.mxu1 %v10013_v39 }
 0x2b7   : > { %v3409_v18 = vpop.f32.mrf.mxu0  ;;  %v3602_v47 = vpop.f32.mrf.mxu1  ;;  %v12682_v28 = vrot.slane %v10335_v21, %v1533_v37  ;;  %v12687_v50 = vrot.slane %v10335_v21, %v1537_v2  ;;  %v15533_v21 = vld [vmem:[#allocation26_spill] sm:$0xff] }
 0x2b8   : > { %15528 = vst [vmem:[#allocation2_spill] sm:$0xff] %v12669_v51  ;;  %v3601_v30 = vadd.f32 %v3600_v19, %v3408_v11  ;;  %v3410_v34 = vadd.f32 %v3409_v18, %v12288_v9  ;;  %v12684_v45 = vpack.c.bf16 %v4614_v0, %v4606_v58  ;;  %v4621_v44 = vmax.f32 %v3599_v62, 0.0 }
 0x2b9   : > { %v3411_v16 = vpop.f32.mrf.mxu0  ;;  %v3604_v35 = vpop.f32.mrf.mxu1  ;;  %6352 = vmatpush2.bf16.msra.mxu0 %v10008_v12  ;;  %6545 = vmatpush2.bf16.msra.mxu1 %v10011_v49 }
 0x2ba   : > { %15529 = vst [vmem:[#allocation84_spill] sm:$0xff] %v12684_v45  ;;  %v3603_v41 = vadd.f32 %v3602_v47, %v3410_v34  ;;  %v3412_v36 = vadd.f32 %v3411_v16, %v12294_v6  ;;  %6707 = vmatprep.subr.bf16.mxu0 %v10016_v52  ;;  %6900 = vmatprep.subr.bf16.mxu1 %v10019_v10  ;;  %v4622_v6 = vmax.f32 %v3601_v30, 0.0  ;;  %v15532_v10 = vld [vmem:[#allocation25_spill] sm:$0xff]  ;;  %v15534_v16 = vld [vmem:[#allocation27_spill] sm:$0xff] }
 0x2bb   : > { %v3641_v9 = vpop.f32.mrf.mxu0  ;;  %v3834_v39 = vpop.f32.mrf.mxu1  ;;  %4106 = vmatmul.mubr.bf16.gmra.mxu0 %v15467_v63  ;;  %4299 = vmatmul.mubr.bf16.gmra.mxu1 %v15468_v42 }
 0x2bc   : > { %v4629_v13 = vmax.f32 %v3603_v41, 0.0  ;;  %v3605_v37 = vadd.f32 %v3604_v35, %v3412_v36  ;;  %v3642_v38 = vadd.f32 %v3641_v9, %v12682_v28  ;;  %4115 = vmatprep.mubr.bf16.mxu0 %v15469_v3  ;;  %4308 = vmatprep.mubr.bf16.mxu1 %v15470_v5 }
 0x2bd   : > { %v3643_v55 = vpop.f32.mrf.mxu0  ;;  %v3836_v20 = vpop.f32.mrf.mxu1 }
 0x2be   : > { %v12694_v54 = vpack.c.bf16 %v4629_v13, %v4621_v44  ;;  %v4630_v58 = vmax.f32 %v3605_v37, 0.0  ;;  %v3835_v17 = vadd.f32 %v3834_v39, %v3642_v38  ;;  %v3644_v63 = vadd.f32 %v3643_v55, %v12687_v50 }
 0x2bf   : > { %v3645_v19 = vpop.f32.mrf.mxu0  ;;  %v3838_v42 = vpop.f32.mrf.mxu1 }
 0x2c0   : > { %15530 = vst [vmem:[#allocation85_spill] sm:$0xff] %v12694_v54  ;;  %v3837_v2 = vadd.f32 %v3836_v20, %v3644_v63  ;;  %v3646_v12 = vadd.f32 %v3645_v19, %v12682_v28  ;;  %v12698_v49 = vpack.c.bf16 %v4630_v58, %v4622_v6  ;;  %v4383_v18 = vmax.f32 %v3835_v17, 0.0 }
 0x2c1   : > { %v3647_v0 = vpop.f32.mrf.mxu0  ;;  %v3840_v3 = vpop.f32.mrf.mxu1 }
 0x2c2   : > { %15531 = vst [vmem:[#allocation86_spill] sm:$0xff] %v12698_v49  ;;  %v3839_v62 = vadd.f32 %v3838_v42, %v3646_v12  ;;  %v3648_v5 = vadd.f32 %v3647_v0, %v12687_v50  ;;  %v4384_v35 = vmax.f32 %v3837_v2, 0.0  ;;  %v15537_v2 = vld [vmem:[#allocation28_spill] sm:$0xff]  ;;  %v15538_v12 = vld [vmem:[#allocation29_spill] sm:$0xff] }
 0x2c3   : > { %v3651_v11 = vpop.f32.mrf.mxu0  ;;  %v3844_v52 = vpop.f32.mrf.mxu1  ;;  %4116 = vmatmul.mubr.bf16.gmra.mxu0 %v15473_v57  ;;  %4309 = vmatmul.mubr.bf16.gmra.mxu1 %v15532_v10 }
 0x2c4   : > { %v4391_v47 = vmax.f32 %v3839_v62, 0.0  ;;  %v3841_v30 = vadd.f32 %v3840_v3, %v3648_v5  ;;  %v3652_v34 = vadd.f32 %v3651_v11, %v12682_v28  ;;  %4125 = vmatprep.mubr.bf16.mxu0 %v15533_v21  ;;  %4318 = vmatprep.mubr.bf16.mxu1 %v15534_v16  ;;  %v15539_v11 = vld [vmem:[#allocation30_spill] sm:$0xff] }
 0x2c5   : > { %v3653_v41 = vpop.f32.mrf.mxu0  ;;  %v3846_v36 = vpop.f32.mrf.mxu1 }
 0x2c6   : > { %v12706_v9 = vpack.c.bf16 %v4391_v47, %v4383_v18  ;;  %v4392_v39 = vmax.f32 %v3841_v30, 0.0  ;;  %v3845_v44 = vadd.f32 %v3844_v52, %v3652_v34  ;;  %v3654_v57 = vadd.f32 %v3653_v41, %v12687_v50  ;;  %v15540_v52 = vld [vmem:[#allocation31_spill] sm:$0xff] }
 0x2c7   : > { %v3655_v13 = vpop.f32.mrf.mxu0  ;;  %v3848_v37 = vpop.f32.mrf.mxu1 }
 0x2c8   : > { %15535 = vst [vmem:[#allocation25_spill] sm:$0xff] %v12706_v9  ;;  %v3847_v38 = vadd.f32 %v3846_v36, %v3654_v57  ;;  %v3656_v6 = vadd.f32 %v3655_v13, %v12682_v28  ;;  %v12710_v55 = vpack.c.bf16 %v4392_v39, %v4384_v35  ;;  %v4399_v0 = vmax.f32 %v3845_v44, 0.0 }
 0x2c9   : > { %v3657_v20 = vpop.f32.mrf.mxu0  ;;  %v3850_v58 = vpop.f32.mrf.mxu1 }
 0x2ca   : > { %15536 = vst [vmem:[#allocation26_spill] sm:$0xff] %v12710_v55  ;;  %v3849_v17 = vadd.f32 %v3848_v37, %v3656_v6  ;;  %v3658_v63 = vadd.f32 %v3657_v20, %v12687_v50  ;;  %v4400_v10 = vmax.f32 %v3847_v38, 0.0 }
 0x2cb   : > { %v3661_v19 = vpop.f32.mrf.mxu0  ;;  %v3854_v42 = vpop.f32.mrf.mxu1  ;;  %4126 = vmatmul.mubr.bf16.gmra.mxu0 %v15537_v2  ;;  %4319 = vmatmul.mubr.bf16.gmra.mxu1 %v15538_v12  ;;  %v15545_v12 = vld [vmem:[#allocation34_spill] sm:$0xff] }
 0x2cc   : > { %v4407_v3 = vmax.f32 %v3849_v17, 0.0  ;;  %v3851_v62 = vadd.f32 %v3850_v58, %v3658_v63  ;;  %v3662_v5 = vadd.f32 %v3661_v19, %v12682_v28  ;;  %4135 = vmatprep.mubr.bf16.mxu0 %v15539_v11  ;;  %4328 = vmatprep.mubr.bf16.mxu1 %v15540_v52  ;;  %v15543_v58 = vld [vmem:[#allocation32_spill] sm:$0xff]  ;;  %v15544_v17 = vld [vmem:[#allocation33_spill] sm:$0xff] }
 0x2cd   : > { %v3663_v18 = vpop.f32.mrf.mxu0  ;;  %v3856_v47 = vpop.f32.mrf.mxu1 }
 0x2ce   : > { %v12718_v30 = vpack.c.bf16 %v4407_v3, %v4399_v0  ;;  %v4408_v34 = vmax.f32 %v3851_v62, 0.0  ;;  %v3855_v21 = vadd.f32 %v3854_v42, %v3662_v5  ;;  %v3664_v16 = vadd.f32 %v3663_v18, %v12687_v50  ;;  %v15546_v0 = vld [vmem:[#allocation35_spill] sm:$0xff] }
 0x2cf   : > { %v3665_v35 = vpop.f32.mrf.mxu0  ;;  %v3858_v41 = vpop.f32.mrf.mxu1 }
 0x2d0   : > { %15541 = vst [vmem:[#allocation27_spill] sm:$0xff] %v12718_v30  ;;  %v3857_v36 = vadd.f32 %v3856_v47, %v3664_v16  ;;  %v3666_v39 = vadd.f32 %v3665_v35, %v12682_v28  ;;  %v12722_v44 = vpack.c.bf16 %v4408_v34, %v4400_v10  ;;  %v4415_v63 = vmax.f32 %v3855_v21, 0.0 }
 0x2d1   : > { %v3667_v57 = vpop.f32.mrf.mxu0  ;;  %v3860_v13 = vpop.f32.mrf.mxu1 }
 0x2d2   : > { %15542 = vst [vmem:[#allocation28_spill] sm:$0xff] %v12722_v44  ;;  %v3859_v37 = vadd.f32 %v3858_v41, %v3666_v39  ;;  %v3668_v38 = vadd.f32 %v3667_v57, %v12687_v50  ;;  %v4416_v3 = vmax.f32 %v3857_v36, 0.0 }
 0x2d3   : > { %v3671_v6 = vpop.f32.mrf.mxu0  ;;  %v3864_v20 = vpop.f32.mrf.mxu1  ;;  %4136 = vmatmul.mubr.bf16.gmra.mxu0 %v15543_v58  ;;  %4329 = vmatmul.mubr.bf16.gmra.mxu1 %v15544_v17 }
 0x2d4   : > { %v4423_v19 = vmax.f32 %v3859_v37, 0.0  ;;  %v3861_v42 = vadd.f32 %v3860_v13, %v3668_v38  ;;  %v3672_v2 = vadd.f32 %v3671_v6, %v12682_v28  ;;  %4145 = vmatprep.mubr.bf16.mxu0 %v15545_v12  ;;  %4338 = vmatprep.mubr.bf16.mxu1 %v15546_v0  ;;  %v15549_v38 = vld [vmem:[#allocation36_spill] sm:$0xff]  ;;  %v15550_v6 = vld [vmem:[#allocation37_spill] sm:$0xff] }
 0x2d5   : > { %v3673_v62 = vpop.f32.mrf.mxu0  ;;  %v3866_v5 = vpop.f32.mrf.mxu1 }
 0x2d6   : > { %v12730_v11 = vpack.c.bf16 %v4423_v19, %v4415_v63  ;;  %v4424_v52 = vmax.f32 %v3861_v42, 0.0  ;;  %v3865_v10 = vadd.f32 %v3864_v20, %v3672_v2  ;;  %v3674_v18 = vadd.f32 %v3673_v62, %v12687_v50  ;;  %v15551_v19 = vld [vmem:[#allocation38_spill] sm:$0xff]  ;;  %v15552_v42 = vld [vmem:[#allocation39_spill] sm:$0xff] }
 0x2d7   : > { %v3675_v47 = vpop.f32.mrf.mxu0  ;;  %v3868_v34 = vpop.f32.mrf.mxu1 }
 0x2d8   : > { %15547 = vst [vmem:[#allocation29_spill] sm:$0xff] %v12730_v11  ;;  %v3867_v21 = vadd.f32 %v3866_v5, %v3674_v18  ;;  %v3676_v16 = vadd.f32 %v3675_v47, %v12682_v28  ;;  %v12734_v35 = vpack.c.bf16 %v4424_v52, %v4416_v3  ;;  %v4431_v20 = vmax.f32 %v3865_v10, 0.0 }
 0x2d9   : > { %v3677_v41 = vpop.f32.mrf.mxu0  ;;  %v3870_v39 = vpop.f32.mrf.mxu1 }
 0x2da   : > { %15548 = vst [vmem:[#allocation30_spill] sm:$0xff] %v12734_v35  ;;  %v3869_v57 = vadd.f32 %v3868_v34, %v3676_v16  ;;  %v3678_v36 = vadd.f32 %v3677_v41, %v12687_v50  ;;  %v4432_v2 = vmax.f32 %v3867_v21, 0.0 }
 0x2db   : > { %v3681_v13 = vpop.f32.mrf.mxu0  ;;  %v3874_v37 = vpop.f32.mrf.mxu1  ;;  %4146 = vmatmul.mubr.bf16.gmra.mxu0 %v15549_v38  ;;  %4339 = vmatmul.mubr.bf16.gmra.mxu1 %v15550_v6 }
 0x2dc   : > { %v4439_v58 = vmax.f32 %v3869_v57, 0.0  ;;  %v3871_v17 = vadd.f32 %v3870_v39, %v3678_v36  ;;  %v3682_v63 = vadd.f32 %v3681_v13, %v12682_v28  ;;  %4155 = vmatprep.mubr.bf16.mxu0 %v15551_v19  ;;  %4348 = vmatprep.mubr.bf16.mxu1 %v15552_v42 }
 0x2dd   : > { %v3683_v12 = vpop.f32.mrf.mxu0  ;;  %v3876_v0 = vpop.f32.mrf.mxu1 }
 0x2de   : > { %v12742_v3 = vpack.c.bf16 %v4439_v58, %v4431_v20  ;;  %v4440_v62 = vmax.f32 %v3871_v17, 0.0  ;;  %v3875_v5 = vadd.f32 %v3874_v37, %v3682_v63  ;;  %v3684_v52 = vadd.f32 %v3683_v12, %v12687_v50  ;;  %v15555_v58 = vld [vmem:[#allocation42_spill] sm:$0xff]  ;;  %v15556_v17 = vld [vmem:[#allocation43_spill] sm:$0xff] }
 0x2df   : > { %v3685_v18 = vpop.f32.mrf.mxu0  ;;  %v3878_v47 = vpop.f32.mrf.mxu1 }
 0x2e0   : > { %15553 = vst [vmem:[#allocation31_spill] sm:$0xff] %v12742_v3  ;;  %v3877_v10 = vadd.f32 %v3876_v0, %v3684_v52  ;;  %v3686_v34 = vadd.f32 %v3685_v18, %v12682_v28  ;;  %v12746_v16 = vpack.c.bf16 %v4440_v62, %v4432_v2  ;;  %v4447_v37 = vmax.f32 %v3875_v5, 0.0 }
 0x2e1   : > { %v3687_v41 = vpop.f32.mrf.mxu0  ;;  %v3880_v39 = vpop.f32.mrf.mxu1 }
 0x2e2   : > { %15554 = vst [vmem:[#allocation32_spill] sm:$0xff] %v12746_v16  ;;  %v3879_v57 = vadd.f32 %v3878_v47, %v3686_v34  ;;  %v3688_v21 = vadd.f32 %v3687_v41, %v12687_v50  ;;  %v4448_v63 = vmax.f32 %v3877_v10, 0.0 }
 0x2e3   : > { %v3691_v36 = vpop.f32.mrf.mxu0  ;;  %v3884_v13 = vpop.f32.mrf.mxu1  ;;  %4156 = vmatmul.mubr.bf16.gmra.mxu0 %v15432_v26  ;;  %4349 = vmatmul.mubr.bf16.gmra.mxu1 %v15433_v25 }
 0x2e4   : > { %v4455_v38 = vmax.f32 %v3879_v57, 0.0  ;;  %v3881_v6 = vadd.f32 %v3880_v39, %v3688_v21  ;;  %v3692_v20 = vadd.f32 %v3691_v36, %v12682_v28  ;;  %4165 = vmatprep.mubr.bf16.mxu0 %v15555_v58  ;;  %4358 = vmatprep.mubr.bf16.mxu1 %v15556_v17 }
 0x2e5   : > { %v3693_v19 = vpop.f32.mrf.mxu0  ;;  %v3886_v42 = vpop.f32.mrf.mxu1 }
 0x2e6   : > { %v12754_v2 = vpack.c.bf16 %v4455_v38, %v4447_v37  ;;  %v4456_v12 = vmax.f32 %v3881_v6, 0.0  ;;  %v3885_v0 = vadd.f32 %v3884_v13, %v3692_v20  ;;  %v3694_v26 = vadd.f32 %v3693_v19, %v12687_v50 }
 0x2e7   : > { %v3695_v62 = vpop.f32.mrf.mxu0  ;;  %v3888_v25 = vpop.f32.mrf.mxu1 }
 0x2e8   : > { %15557 = vst [vmem:[#allocation33_spill] sm:$0xff] %v12754_v2  ;;  %v3887_v5 = vadd.f32 %v3886_v42, %v3694_v26  ;;  %v3696_v52 = vadd.f32 %v3695_v62, %v12682_v28  ;;  %v12758_v18 = vpack.c.bf16 %v4456_v12, %v4448_v63  ;;  %v4463_v21 = vmax.f32 %v3885_v0, 0.0 }
 0x2e9   : > { %v3697_v47 = vpop.f32.mrf.mxu0  ;;  %v3890_v34 = vpop.f32.mrf.mxu1 }
 0x2ea   : > { %15558 = vst [vmem:[#allocation34_spill] sm:$0xff] %v12758_v18  ;;  %v3889_v41 = vadd.f32 %v3888_v25, %v3696_v52  ;;  %v3698_v10 = vadd.f32 %v3697_v47, %v12687_v50  ;;  %v4464_v38 = vmax.f32 %v3887_v5, 0.0 }
 0x2eb   : > { %v3701_v39 = vpop.f32.mrf.mxu0  ;;  %v3894_v57 = vpop.f32.mrf.mxu1  ;;  %4166 = vmatmul.mubr.bf16.gmra.mxu0 %v11522_v56  ;;  %4359 = vmatmul.mubr.bf16.gmra.mxu1 %v11524_v27 }
 0x2ec   : > { %v4471_v36 = vmax.f32 %v3889_v41, 0.0  ;;  %v3891_v13 = vadd.f32 %v3890_v34, %v3698_v10  ;;  %v3702_v37 = vadd.f32 %v3701_v39, %v12682_v28  ;;  %4175 = vmatprep.mubr.bf16.mxu0 %v11538_v8  ;;  %4368 = vmatprep.mubr.bf16.mxu1 %v11540_v7  ;;  %v15561_v10 = vld [vmem:[#allocation46_spill] sm:$0xff] }
 0x2ed   : > { %v3703_v6 = vpop.f32.mrf.mxu0  ;;  %v3896_v20 = vpop.f32.mrf.mxu1  ;;  %v15562_v39 = vld [vmem:[#allocation22_spill] sm:$0xff] }
 0x2ee   : > { %v12766_v58 = vpack.c.bf16 %v4471_v36, %v4463_v21  ;;  %v4472_v17 = vmax.f32 %v3891_v13, 0.0  ;;  %v3895_v63 = vadd.f32 %v3894_v57, %v3702_v37  ;;  %v3704_v56 = vadd.f32 %v3703_v6, %v12687_v50 }
 0x2ef   : > { %v3705_v19 = vpop.f32.mrf.mxu0  ;;  %v3898_v27 = vpop.f32.mrf.mxu1 }
 0x2f0   : > { %15559 = vst [vmem:[#allocation35_spill] sm:$0xff] %v12766_v58  ;;  %v3897_v42 = vadd.f32 %v3896_v20, %v3704_v56  ;;  %v3706_v12 = vadd.f32 %v3705_v19, %v12682_v28  ;;  %v12770_v0 = vpack.c.bf16 %v4472_v17, %v4464_v38  ;;  %v4479_v52 = vmax.f32 %v3895_v63, 0.0  ;;  %v10014_v63 = vld [vmem:[%s15135_s5 + $0x4e0] ss:$16 sps:$4 sm:$0xff]  }
 0x2f1   : > { %v3707_v26 = vpop.f32.mrf.mxu0  ;;  %v3900_v8 = vpop.f32.mrf.mxu1  ;;  %v15623_v58 = vld [vmem:[#allocation18_spill] sm:$0xff] }
 0x2f2   : > { %15560 = vst [vmem:[#allocation36_spill] sm:$0xff] %v12770_v0  ;;  %v3899_v62 = vadd.f32 %v3898_v27, %v3706_v12  ;;  %v3708_v7 = vadd.f32 %v3707_v26, %v12687_v50  ;;  %v4480_v57 = vmax.f32 %v3897_v42, 0.0  ;;  %v10017_v42 = vld [vmem:[%s15135_s5 + $0x6e0] ss:$16 sps:$4 sm:$0xff]  }
 0x2f3   : > { %v3711_v25 = vpop.f32.mrf.mxu0  ;;  %v3904_v5 = vpop.f32.mrf.mxu1  ;;  %4176 = vmatmul.mubr.bf16.gmra.mxu0 %v11542_v43  ;;  %4369 = vmatmul.mubr.bf16.gmra.mxu1 %v15503_v24 }
 0x2f4   : > { %v4487_v47 = vmax.f32 %v3899_v62, 0.0  ;;  %v3901_v34 = vadd.f32 %v3900_v8, %v3708_v7  ;;  %v3712_v41 = vadd.f32 %v3711_v25, %v12682_v28  ;;  %6353 = vmatprep.mubr.bf16.mxu0 %v15561_v10  ;;  %6546 = vmatprep.mubr.bf16.mxu1 %v15562_v39  ;;  %v10022_v8 = vld [vmem:[%s15135_s5 + $0x4c4] ss:$16 sps:$4 sm:$0xff]  }
 0x2f5   : > { %v3713_v21 = vpop.f32.mrf.mxu0  ;;  %v3906_v36 = vpop.f32.mrf.mxu1  ;;  %v10025_v62 = vld [vmem:[%s15135_s5 + $0x6c4] ss:$16 sps:$4 sm:$0xff]  }
 0x2f6   : > { %v12778_v13 = vpack.c.bf16 %v4487_v47, %v4479_v52  ;;  %v4488_v37 = vmax.f32 %v3901_v34, 0.0  ;;  %v3905_v38 = vadd.f32 %v3904_v5, %v3712_v41  ;;  %v3714_v43 = vadd.f32 %v3713_v21, %v12687_v50  ;;  %v15565_v5 = vld [vmem:[#allocation45_spill] sm:$0xff]  ;;  %v15567_v21 = vld [vmem:[#allocation48_spill] sm:$0xff] }
 0x2f7   : > { %v3715_v6 = vpop.f32.mrf.mxu0  ;;  %v3908_v24 = vpop.f32.mrf.mxu1  ;;  %v15566_v52 = vld [vmem:[#allocation21_spill] sm:$0xff] }
 0x2f8   : > { %15563 = vst [vmem:[#allocation37_spill] sm:$0xff] %v12778_v13  ;;  %v3907_v20 = vadd.f32 %v3906_v36, %v3714_v43  ;;  %v3716_v17 = vadd.f32 %v3715_v6, %v12682_v28  ;;  %v12785_v56 = vpack.c.bf16 %v4488_v37, %v4480_v57  ;;  %v4495_v47 = vmax.f32 %v3905_v38, 0.0  ;;  %v10020_v36 = vld [vmem:[%s15135_s5 + $0x4c0] ss:$16 sps:$4 sm:$0xff]  }
 0x2f9   : > { %v3717_v19 = vpop.f32.mrf.mxu0  ;;  %v3910_v27 = vpop.f32.mrf.mxu1  ;;  %v15568_v43 = vld [vmem:[#allocation24_spill] sm:$0xff] }
 0x2fa   : > { %15564 = vst [vmem:[#allocation38_spill] sm:$0xff] %v12785_v56  ;;  %v3909_v12 = vadd.f32 %v3908_v24, %v3716_v17  ;;  %v3718_v26 = vadd.f32 %v3717_v19, %v12687_v50  ;;  %v4496_v37 = vmax.f32 %v3907_v20, 0.0  ;;  %v10023_v38 = vld [vmem:[%s15135_s5 + $0x6c0] ss:$16 sps:$4 sm:$0xff]   ;;  %v10028_v17 = vld [vmem:[%s15135_s5 + $0x4a4] ss:$16 sps:$4 sm:$0xff]  }
 0x2fb   : > { %v3721_v7 = vpop.f32.mrf.mxu0  ;;  %v3914_v25 = vpop.f32.mrf.mxu1  ;;  %6354 = vmatmul.mubr.bf16.vlgmr.msra.gmra.mxu0 %v15565_v5  ;;  %6547 = vmatmul.mubr.bf16.vlgmr.msra.gmra.mxu1 %v15566_v52  ;;  %v10031_v20 = vld [vmem:[%s15135_s5 + $0x6a4] ss:$16 sps:$4 sm:$0xff]  }
 0x2fc   : > { %v4503_v34 = vmax.f32 %v3909_v12, 0.0  ;;  %v3911_v41 = vadd.f32 %v3910_v27, %v3718_v26  ;;  %v3722_v57 = vadd.f32 %v3721_v7, %v12682_v28  ;;  %6708 = vmatpush1.bf16.msra.mxu0 %v10014_v63  ;;  %6363 = vmatprep.mubr.bf16.mxu0 %v15567_v21 }
 0x2fd   : > { %6556 = vmatprep.mubr.bf16.mxu1 %v15568_v43  ;;  %v3723_v6 = vpop.f32.mrf.mxu0  ;;  %v3916_v24 = vpop.f32.mrf.mxu1  ;;  %6901 = vmatpush1.bf16.msra.mxu1 %v10017_v42 }
 0x2fe   : > { %v12811_v63 = vpack.c.bf16 %v4503_v34, %v4495_v47  ;;  %v4504_v19 = vmax.f32 %v3911_v41, 0.0  ;;  %v3915_v27 = vadd.f32 %v3914_v25, %v3722_v57  ;;  %v3724_v12 = vadd.f32 %v3723_v6, %v12687_v50  ;;  %6709 = vmatprep.subr.bf16.mxu0 %v10022_v8  ;;  %6902 = vmatprep.subr.bf16.mxu1 %v10025_v62  ;;  %v10026_v8 = vld [vmem:[%s15135_s5 + $0x4a0] ss:$16 sps:$4 sm:$0xff]   ;;  %v10034_v57 = vld [vmem:[%s15135_s5 + $0x484] ss:$16 sps:$4 sm:$0xff]  }
 0x2ff   : > { %v3725_v42 = vpop.f32.mrf.mxu0  ;;  %v3918_v26 = vpop.f32.mrf.mxu1  ;;  %v10029_v62 = vld [vmem:[%s15135_s5 + $0x6a0] ss:$16 sps:$4 sm:$0xff]  }
 0x300   : > { %15569 = vst [vmem:[#allocation39_spill] sm:$0xff] %v12811_v63  ;;  %v3917_v7 = vadd.f32 %v3916_v24, %v3724_v12  ;;  %v3726_v43 = vadd.f32 %v3725_v42, %v12682_v28  ;;  %6710 = vmatpush1.bf16.msra.mxu0 %v10020_v36  ;;  %v12818_v21 = vpack.c.bf16 %v4504_v19, %v4496_v37  ;;  %v10037_v36 = vld [vmem:[%s15135_s5 + $0x684] ss:$16 sps:$4 sm:$0xff]   ;;  %v15571_v24 = vld [vmem:[#allocation47_spill] sm:$0xff]  ;;  %v15574_v42 = vld [vmem:[#allocation69_spill] sm:$0xff]  ;;  %v1545_v63 = vsub.s32 7, %v15527_v33 }
 0x301   : > { %v3727_v47 = vpop.f32.mrf.mxu0  ;;  %v3920_v34 = vpop.f32.mrf.mxu1  ;;  %6903 = vmatpush1.bf16.msra.mxu1 %v10023_v38  ;;  %6711 = vmatprep.subr.bf16.mxu0 %v10028_v17  ;;  %v15572_v38 = vld [vmem:[#allocation23_spill] sm:$0xff]  ;;  %v4511_v17 = vmax.f32 %v3915_v27, 0.0  ;;  %v10035_v27 = vld [vmem:[%s15135_s5 + $0x680] ss:$16 sps:$4 sm:$0xff]  }
 0x302   : > { %15570 = vst [vmem:[#allocation42_spill] sm:$0xff] %v12818_v21  ;;  %v3919_v25 = vadd.f32 %v3918_v26, %v3726_v43  ;;  %v3728_v41 = vadd.f32 %v3727_v47, %v12687_v50  ;;  %6904 = vmatprep.subr.bf16.mxu1 %v10031_v20  ;;  %v15573_v20 = vld [vmem:[#allocation50_spill] sm:$0xff]  ;;  %v4512_v26 = vmax.f32 %v3917_v7, 0.0 }
 0x303   : > { %v3731_v37 = vpop.f32.mrf.mxu0  ;;  %v3924_v6 = vpop.f32.mrf.mxu1  ;;  %6364 = vmatmul.mubr.bf16.gmra.mxu0 %v15571_v24  ;;  %6557 = vmatmul.mubr.bf16.gmra.mxu1 %v15572_v38  ;;  %v10032_v24 = vld [vmem:[%s15135_s5 + $0x480] ss:$16 sps:$4 sm:$0xff]   ;;  %v10040_v7 = vld [vmem:[%s15135_s5 + $0x464] ss:$16 sps:$4 sm:$0xff]  }
 0x304   : > { %v4519_v19 = vmax.f32 %v3919_v25, 0.0  ;;  %v3921_v43 = vadd.f32 %v3920_v34, %v3728_v41  ;;  %v3732_v12 = vadd.f32 %v3731_v37, %v12682_v28  ;;  %6373 = vmatprep.mubr.bf16.mxu0 %v15573_v20  ;;  %6566 = vmatprep.mubr.bf16.mxu1 %v15574_v42 }
 0x305   : > { %v3733_v47 = vpop.f32.mrf.mxu0  ;;  %v3926_v52 = vpop.f32.mrf.mxu1  ;;  %6712 = vmatpush1.bf16.msra.mxu0 %v10026_v8  ;;  %6905 = vmatpush1.bf16.msra.mxu1 %v10029_v62  ;;  %v10043_v8 = vld [vmem:[%s15135_s5 + $0x664] ss:$16 sps:$4 sm:$0xff]  }
 0x306   : > { %v12844_v34 = vpack.c.bf16 %v4519_v19, %v4511_v17  ;;  %v4520_v25 = vmax.f32 %v3921_v43, 0.0  ;;  %v3925_v41 = vadd.f32 %v3924_v6, %v3732_v12  ;;  %v3734_v37 = vadd.f32 %v3733_v47, %v12687_v50  ;;  %6713 = vmatprep.subr.bf16.mxu0 %v10034_v57  ;;  %6906 = vmatprep.subr.bf16.mxu1 %v10037_v36  ;;  %v10038_v57 = vld [vmem:[%s15135_s5 + $0x460] ss:$16 sps:$4 sm:$0xff]  }
 0x307   : > { %v3735_v62 = vpop.f32.mrf.mxu0  ;;  %v3928_v42 = vpop.f32.mrf.mxu1  ;;  %v10041_v36 = vld [vmem:[%s15135_s5 + $0x660] ss:$16 sps:$4 sm:$0xff]  }
 0x308   : > { %15575 = vst [vmem:[#allocation43_spill] sm:$0xff] %v12844_v34  ;;  %v3927_v20 = vadd.f32 %v3926_v52, %v3734_v37  ;;  %v3736_v17 = vadd.f32 %v3735_v62, %v12682_v28  ;;  %v12854_v19 = vpack.c.bf16 %v4520_v25, %v4512_v26  ;;  %v10046_v52 = vld [vmem:[%s15135_s5 + $0x444] ss:$16 sps:$4 sm:$0xff]   ;;  %v15577_v25 = vld [vmem:[#allocation49_spill] sm:$0xff]  ;;  %v4527_v62 = vmax.f32 %v3925_v41, 0.0 }
 0x309   : > { %v3737_v6 = vpop.f32.mrf.mxu0  ;;  %v3930_v43 = vpop.f32.mrf.mxu1  ;;  %6714 = vmatpush1.bf16.msra.mxu0 %v10032_v24  ;;  %6907 = vmatpush1.bf16.msra.mxu1 %v10035_v27  ;;  %v10049_v24 = vld [vmem:[%s15135_s5 + $0x644] ss:$16 sps:$4 sm:$0xff]   ;;  %v10047_v41 = vld [vmem:[%s15135_s5 + $0x640] ss:$16 sps:$4 sm:$0xff]  }
 0x30a   : > { %15576 = vst [vmem:[#allocation87_spill] sm:$0xff] %v12854_v19  ;;  %v3929_v12 = vadd.f32 %v3928_v42, %v3736_v17  ;;  %v3738_v47 = vadd.f32 %v3737_v6, %v12687_v50  ;;  %6715 = vmatprep.subr.bf16.mxu0 %v10040_v7  ;;  %6908 = vmatprep.subr.bf16.mxu1 %v10043_v8  ;;  %v15578_v37 = vld [vmem:[#allocation68_spill] sm:$0xff]  ;;  %v15580_v6 = vld [vmem:[#allocation71_spill] sm:$0xff]  ;;  %v4528_v38 = vmax.f32 %v3927_v20, 0.0 }
 0x30b   : > { %v3741_v26 = vpop.f32.mrf.mxu0  ;;  %v3934_v27 = vpop.f32.mrf.mxu1  ;;  %6374 = vmatmul.mubr.bf16.gmra.mxu0 %v15577_v25  ;;  %6567 = vmatmul.mubr.bf16.gmra.mxu1 %v15578_v37  ;;  %v15579_v8 = vld [vmem:[#allocation52_spill] sm:$0xff] }
 0x30c   : > { %v4535_v42 = vmax.f32 %v3929_v12, 0.0  ;;  %v3931_v17 = vadd.f32 %v3930_v43, %v3738_v47  ;;  %v3742_v7 = vadd.f32 %v3741_v26, %v12682_v28  ;;  %6383 = vmatprep.mubr.bf16.mxu0 %v15579_v8  ;;  %6576 = vmatprep.mubr.bf16.mxu1 %v15580_v6  ;;  %v10044_v25 = vld [vmem:[%s15135_s5 + $0x440] ss:$16 sps:$4 sm:$0xff]   ;;  %v10052_v20 = vld [vmem:[%s15135_s5 + $0x424] ss:$16 sps:$4 sm:$0xff]  }
 0x30d   : > { %v3743_v5 = vpop.f32.mrf.mxu0  ;;  %v3936_v39 = vpop.f32.mrf.mxu1  ;;  %6716 = vmatpush1.bf16.msra.mxu0 %v10038_v57  ;;  %6909 = vmatpush1.bf16.msra.mxu1 %v10041_v36  ;;  %v10055_v57 = vld [vmem:[%s15135_s5 + $0x624] ss:$16 sps:$4 sm:$0xff]  }
 0x30e   : > { %v12880_v43 = vpack.c.bf16 %v4535_v42, %v4527_v62  ;;  %v4536_v12 = vmax.f32 %v3931_v17, 0.0  ;;  %v3935_v47 = vadd.f32 %v3934_v27, %v3742_v7  ;;  %v3744_v26 = vadd.f32 %v3743_v5, %v12687_v50  ;;  %6717 = vmatprep.subr.bf16.mxu0 %v10046_v52  ;;  %6910 = vmatprep.subr.bf16.mxu1 %v10049_v24  ;;  %v10050_v5 = vld [vmem:[%s15135_s5 + $0x420] ss:$16 sps:$4 sm:$0xff]  }
 0x30f   : > { %v3745_v36 = vpop.f32.mrf.mxu0  ;;  %v3938_v6 = vpop.f32.mrf.mxu1  ;;  %v10053_v52 = vld [vmem:[%s15135_s5 + $0x620] ss:$16 sps:$4 sm:$0xff]  }
 0x310   : > { %15581 = vst [vmem:[#allocation88_spill] sm:$0xff] %v12880_v43  ;;  %v3937_v8 = vadd.f32 %v3936_v39, %v3744_v26  ;;  %v3746_v62 = vadd.f32 %v3745_v36, %v12682_v28  ;;  %v12890_v42 = vpack.c.bf16 %v4536_v12, %v4528_v38  ;;  %v10058_v39 = vld [vmem:[%s15135_s5 + $0x404] ss:$16 sps:$4 sm:$0xff]   ;;  %v15583_v12 = vld [vmem:[#allocation51_spill] sm:$0xff]  ;;  %v4543_v36 = vmax.f32 %v3935_v47, 0.0 }
 0x311   : > { %v3747_v27 = vpop.f32.mrf.mxu0  ;;  %v3940_v17 = vpop.f32.mrf.mxu1  ;;  %6718 = vmatpush1.bf16.msra.mxu0 %v10044_v25  ;;  %6911 = vmatpush1.bf16.msra.mxu1 %v10047_v41  ;;  %v10061_v38 = vld [vmem:[%s15135_s5 + $0x604] ss:$16 sps:$4 sm:$0xff]   ;;  %v10059_v47 = vld [vmem:[%s15135_s5 + $0x600] ss:$16 sps:$4 sm:$0xff]  }
 0x312   : > { %15582 = vst [vmem:[#allocation89_spill] sm:$0xff] %v12890_v42  ;;  %v3939_v24 = vadd.f32 %v3938_v6, %v3746_v62  ;;  %v3748_v7 = vadd.f32 %v3747_v27, %v12687_v50  ;;  %6719 = vmatprep.subr.bf16.mxu0 %v10052_v20  ;;  %6912 = vmatprep.subr.bf16.mxu1 %v10055_v57  ;;  %v15584_v26 = vld [vmem:[#allocation70_spill] sm:$0xff]  ;;  %v15585_v57 = vld [vmem:[#allocation41_spill] sm:$0xff]  ;;  %v4544_v37 = vmax.f32 %v3937_v8, 0.0 }
 0x313   : > { %v3751_v25 = vpop.f32.mrf.mxu0  ;;  %v3944_v41 = vpop.f32.mrf.mxu1  ;;  %6384 = vmatmul.mubr.bf16.gmra.mxu0 %v15583_v12  ;;  %6577 = vmatmul.mubr.bf16.gmra.mxu1 %v15584_v26  ;;  %v15586_v27 = vld [vmem:[#allocation73_spill] sm:$0xff]  ;;  %v10056_v12 = vld [vmem:[%s15135_s5 + $0x400] ss:$16 sps:$4 sm:$0xff]   ;;  %v10064_v8 = vld [vmem:[%s15135_s5 + $0x5e4] ss:$16 sps:$4 sm:$0xff]  }
 0x314   : > { %v4551_v6 = vmax.f32 %v3939_v24, 0.0  ;;  %v3941_v62 = vadd.f32 %v3940_v17, %v3748_v7  ;;  %v3752_v20 = vadd.f32 %v3751_v25, %v12682_v28  ;;  %6393 = vmatprep.mubr.bf16.mxu0 %v15585_v57  ;;  %6586 = vmatprep.mubr.bf16.mxu1 %v15586_v27 }
 0x315   : > { %v3753_v10 = vpop.f32.mrf.mxu0  ;;  %v3946_v43 = vpop.f32.mrf.mxu1  ;;  %6720 = vmatpush1.bf16.msra.mxu0 %v10050_v5  ;;  %6913 = vmatpush1.bf16.msra.mxu1 %v10053_v52  ;;  %v10067_v5 = vld [vmem:[%s15135_s5 + $0x7e4] ss:$16 sps:$4 sm:$0xff]  }
 0x316   : > { %v12916_v17 = vpack.c.bf16 %v4551_v6, %v4543_v36  ;;  %v4552_v24 = vmax.f32 %v3941_v62, 0.0  ;;  %v3945_v7 = vadd.f32 %v3944_v41, %v3752_v20  ;;  %v3754_v25 = vadd.f32 %v3753_v10, %v12687_v50  ;;  %6721 = vmatprep.subr.bf16.mxu0 %v10058_v39  ;;  %6914 = vmatprep.subr.bf16.mxu1 %v10061_v38  ;;  %v10062_v10 = vld [vmem:[%s15135_s5 + $0x5e0] ss:$16 sps:$4 sm:$0xff]  }
 0x317   : > { %v3755_v52 = vpop.f32.mrf.mxu0  ;;  %v3948_v27 = vpop.f32.mrf.mxu1  ;;  %v10065_v39 = vld [vmem:[%s15135_s5 + $0x7e0] ss:$16 sps:$4 sm:$0xff]  }
 0x318   : > { %15587 = vst [vmem:[#allocation90_spill] sm:$0xff] %v12916_v17  ;;  %v3947_v57 = vadd.f32 %v3946_v43, %v3754_v25  ;;  %v3756_v36 = vadd.f32 %v3755_v52, %v12682_v28  ;;  %v12926_v6 = vpack.c.bf16 %v4552_v24, %v4544_v37  ;;  %v10070_v37 = vld [vmem:[%s15135_s5 + $0x5c4] ss:$16 sps:$4 sm:$0xff]   ;;  %v4559_v52 = vmax.f32 %v3945_v7, 0.0  ;;  %v10071_v7 = vld [vmem:[%s15135_s5 + $0x7c0] ss:$16 sps:$4 sm:$0xff]  }
 0x319   : > { %v3757_v41 = vpop.f32.mrf.mxu0  ;;  %v3950_v62 = vpop.f32.mrf.mxu1  ;;  %6722 = vmatpush1.bf16.msra.mxu0 %v10056_v12  ;;  %6915 = vmatpush1.bf16.msra.mxu1 %v10059_v47  ;;  %v10073_v43 = vld [vmem:[%s15135_s5 + $0x7c4] ss:$16 sps:$4 sm:$0xff]  }
 0x31a   : > { %15588 = vst [vmem:[#allocation91_spill] sm:$0xff] %v12926_v6  ;;  %v3949_v38 = vadd.f32 %v3948_v27, %v3756_v36  ;;  %v3758_v20 = vadd.f32 %v3757_v41, %v12687_v50  ;;  %6723 = vmatprep.subr.bf16.mxu0 %v10064_v8  ;;  %6916 = vmatprep.subr.bf16.mxu1 %v10067_v5  ;;  %v15589_v24 = vld [vmem:[#allocation40_spill] sm:$0xff]  ;;  %v15591_v5 = vld [vmem:[#allocation54_spill] sm:$0xff]  ;;  %v15592_v41 = vld [vmem:[#allocation75_spill] sm:$0xff]  ;;  %v4560_v26 = vmax.f32 %v3947_v57, 0.0 }
 0x31b   : > { %v3761_v12 = vpop.f32.mrf.mxu0  ;;  %v3954_v47 = vpop.f32.mrf.mxu1  ;;  %6394 = vmatmul.mubr.bf16.gmra.mxu0 %v15589_v24  ;;  %v15590_v25 = vld [vmem:[#allocation72_spill] sm:$0xff] }
 0x31c   : > { %6587 = vmatmul.mubr.bf16.gmra.mxu1 %v15590_v25  ;;  %v4567_v27 = vmax.f32 %v3949_v38, 0.0  ;;  %v3951_v36 = vadd.f32 %v3950_v62, %v3758_v20  ;;  %v3762_v8 = vadd.f32 %v3761_v12, %v12682_v28  ;;  %6403 = vmatprep.mubr.bf16.mxu0 %v15591_v5  ;;  %v10068_v24 = vld [vmem:[%s15135_s5 + $0x5c0] ss:$16 sps:$4 sm:$0xff]   ;;  %v10076_v57 = vld [vmem:[%s15135_s5 + $0x5a4] ss:$16 sps:$4 sm:$0xff]  }
 0x31d   : > { %6596 = vmatprep.mubr.bf16.mxu1 %v15592_v41  ;;  %v3763_v17 = vpop.f32.mrf.mxu0  ;;  %v3956_v6 = vpop.f32.mrf.mxu1  ;;  %6724 = vmatpush2.bf16.msra.mxu0 %v10062_v10  ;;  %v10079_v10 = vld [vmem:[%s15135_s5 + $0x7a4] ss:$16 sps:$4 sm:$0xff]  }
 0x31e   : > { %6917 = vmatpush2.bf16.msra.mxu1 %v10065_v39  ;;  %v12952_v62 = vpack.c.bf16 %v4567_v27, %v4559_v52  ;;  %v4568_v38 = vmax.f32 %v3951_v36, 0.0  ;;  %v3955_v20 = vadd.f32 %v3954_v47, %v3762_v8  ;;  %v3764_v12 = vadd.f32 %v3763_v17, %v12687_v50  ;;  %6725 = vmatprep.subr.bf16.mxu0 %v10070_v37  ;;  %v10074_v17 = vld [vmem:[%s15135_s5 + $0x5a0] ss:$16 sps:$4 sm:$0xff]  }
 0x31f   : > { %6918 = vmatprep.subr.bf16.mxu1 %v10073_v43  ;;  %v3765_v39 = vpop.f32.mrf.mxu0  ;;  %v3958_v41 = vpop.f32.mrf.mxu1  ;;  %v10077_v37 = vld [vmem:[%s15135_s5 + $0x7a0] ss:$16 sps:$4 sm:$0xff]  }
 0x320   : > { %15593 = vst [vmem:[#allocation92_spill] sm:$0xff] %v12952_v62  ;;  %v3957_v5 = vadd.f32 %v3956_v6, %v3764_v12  ;;  %v3766_v52 = vadd.f32 %v3765_v39, %v12682_v28  ;;  %v12962_v27 = vpack.c.bf16 %v4568_v38, %v4560_v26  ;;  %v10082_v26 = vld [vmem:[%s15135_s5 + $0x584] ss:$16 sps:$4 sm:$0xff]   ;;  %v15595_v38 = vld [vmem:[#allocation53_spill] sm:$0xff]  ;;  %v4575_v39 = vmax.f32 %v3955_v20, 0.0 }
 0x321   : > { %v3767_v47 = vpop.f32.mrf.mxu0  ;;  %v3960_v36 = vpop.f32.mrf.mxu1  ;;  %6726 = vmatpush2.bf16.msra.mxu0 %v10068_v24  ;;  %v10085_v6 = vld [vmem:[%s15135_s5 + $0x784] ss:$16 sps:$4 sm:$0xff]   ;;  %v10083_v20 = vld [vmem:[%s15135_s5 + $0x780] ss:$16 sps:$4 sm:$0xff]  }
 0x322   : > { %15594 = vst [vmem:[#allocation93_spill] sm:$0xff] %v12962_v27  ;;  %6919 = vmatpush2.bf16.msra.mxu1 %v10071_v7  ;;  %v3959_v43 = vadd.f32 %v3958_v41, %v3766_v52  ;;  %v3768_v8 = vadd.f32 %v3767_v47, %v12687_v50  ;;  %6727 = vmatprep.subr.bf16.mxu0 %v10076_v57  ;;  %v15596_v12 = vld [vmem:[#allocation74_spill] sm:$0xff]  ;;  %v4576_v47 = vmax.f32 %v3957_v5, 0.0 }
 0x323   : > { %6920 = vmatprep.subr.bf16.mxu1 %v10079_v10  ;;  %v3771_v24 = vpop.f32.mrf.mxu0  ;;  %v3964_v7 = vpop.f32.mrf.mxu1  ;;  %6404 = vmatmul.mubr.bf16.gmra.mxu0 %v15595_v38  ;;  %v15597_v10 = vld [vmem:[#allocation56_spill] sm:$0xff] }
 0x324   : > { %6597 = vmatmul.mubr.bf16.gmra.mxu1 %v15596_v12  ;;  %v4583_v41 = vmax.f32 %v3959_v43, 0.0  ;;  %v3961_v52 = vadd.f32 %v3960_v36, %v3768_v8  ;;  %v3772_v57 = vadd.f32 %v3771_v24, %v12682_v28  ;;  %6413 = vmatprep.mubr.bf16.mxu0 %v15597_v10  ;;  %v10080_v38 = vld [vmem:[%s15135_s5 + $0x580] ss:$16 sps:$4 sm:$0xff]   ;;  %v10088_v5 = vld [vmem:[%s15135_s5 + $0x564] ss:$16 sps:$4 sm:$0xff]  }
 0x325   : > { %6606 = vmatprep.mubr.bf16.mxu1 %v12392_v46  ;;  %v3773_v25 = vpop.f32.mrf.mxu0  ;;  %v3966_v62 = vpop.f32.mrf.mxu1  ;;  %6728 = vmatpush2.bf16.msra.mxu0 %v10074_v17  ;;  %v10091_v17 = vld [vmem:[%s15135_s5 + $0x764] ss:$16 sps:$4 sm:$0xff]  }
 0x326   : > { %6921 = vmatpush2.bf16.msra.mxu1 %v10077_v37  ;;  %v12988_v36 = vpack.c.bf16 %v4583_v41, %v4575_v39  ;;  %v4584_v43 = vmax.f32 %v3961_v52, 0.0  ;;  %v3965_v8 = vadd.f32 %v3964_v7, %v3772_v57  ;;  %v3774_v24 = vadd.f32 %v3773_v25, %v12687_v50  ;;  %6729 = vmatprep.subr.bf16.mxu0 %v10082_v26  ;;  %v10086_v25 = vld [vmem:[%s15135_s5 + $0x560] ss:$16 sps:$4 sm:$0xff]  }
 0x327   : > { %6922 = vmatprep.subr.bf16.mxu1 %v10085_v6  ;;  %v3775_v37 = vpop.f32.mrf.mxu0  ;;  %v3968_v46 = vpop.f32.mrf.mxu1  ;;  %v10089_v26 = vld [vmem:[%s15135_s5 + $0x760] ss:$16 sps:$4 sm:$0xff]  }
 0x328   : > { %15598 = vst [vmem:[#allocation94_spill] sm:$0xff] %v12988_v36  ;;  %v3967_v10 = vadd.f32 %v3966_v62, %v3774_v24  ;;  %v3776_v39 = vadd.f32 %v3775_v37, %v12682_v28  ;;  %v12998_v41 = vpack.c.bf16 %v4584_v43, %v4576_v47  ;;  %v10094_v62 = vld [vmem:[%s15135_s5 + $0x544] ss:$16 sps:$4 sm:$0xff]   ;;  %v15600_v43 = vld [vmem:[#allocation55_spill] sm:$0xff]  ;;  %v4591_v24 = vmax.f32 %v3965_v8, 0.0 }
 0x329   : > { %v3777_v7 = vpop.f32.mrf.mxu0  ;;  %v3970_v52 = vpop.f32.mrf.mxu1  ;;  %6730 = vmatpush2.bf16.msra.mxu0 %v10080_v38  ;;  %v10097_v38 = vld [vmem:[%s15135_s5 + $0x744] ss:$16 sps:$4 sm:$0xff]   ;;  %v10095_v8 = vld [vmem:[%s15135_s5 + $0x740] ss:$16 sps:$4 sm:$0xff]  }
 0x32a   : > { %15599 = vst [vmem:[#allocation95_spill] sm:$0xff] %v12998_v41  ;;  %6923 = vmatpush2.bf16.msra.mxu1 %v10083_v20  ;;  %v3969_v6 = vadd.f32 %v3968_v46, %v3776_v39  ;;  %v3778_v57 = vadd.f32 %v3777_v7, %v12687_v50  ;;  %6731 = vmatprep.subr.bf16.mxu0 %v10088_v5  ;;  %v4592_v39 = vmax.f32 %v3967_v10, 0.0  ;;  %v10100_v10 = vld [vmem:[%s15135_s5 + $0x524] ss:$16 sps:$4 sm:$0xff]  }
 0x32b   : > { %6924 = vmatprep.subr.bf16.mxu1 %v10091_v17  ;;  %v3781_v47 = vpop.f32.mrf.mxu0  ;;  %v3974_v20 = vpop.f32.mrf.mxu1  ;;  %6414 = vmatmul.mubr.bf16.gmra.mxu0 %v15600_v43  ;;  %v15601_v17 = vld [vmem:[#allocation58_spill] sm:$0xff] }
 0x32c   : > { %6607 = vmatmul.mubr.bf16.gmra.mxu1 %v12385_v15  ;;  %v4599_v46 = vmax.f32 %v3969_v6, 0.0  ;;  %v3971_v37 = vadd.f32 %v3970_v52, %v3778_v57  ;;  %v3782_v5 = vadd.f32 %v3781_v47, %v12682_v28  ;;  %6423 = vmatprep.mubr.bf16.mxu0 %v15601_v17  ;;  %v10092_v43 = vld [vmem:[%s15135_s5 + $0x540] ss:$16 sps:$4 sm:$0xff]  }
 0x32d   : > { %6616 = vmatprep.mubr.bf16.mxu1 %v12425_v32  ;;  %v3783_v7 = vpop.f32.mrf.mxu0  ;;  %v3976_v12 = vpop.f32.mrf.mxu1  ;;  %6732 = vmatpush2.bf16.msra.mxu0 %v10086_v25  ;;  %v10103_v25 = vld [vmem:[%s15135_s5 + $0x724] ss:$16 sps:$4 sm:$0xff]  }
 0x32e   : > { %6925 = vmatpush2.bf16.msra.mxu1 %v10089_v26  ;;  %v13024_v52 = vpack.c.bf16 %v4599_v46, %v4591_v24  ;;  %v4600_v6 = vmax.f32 %v3971_v37, 0.0  ;;  %v3975_v57 = vadd.f32 %v3974_v20, %v3782_v5  ;;  %v3784_v47 = vadd.f32 %v3783_v7, %v12687_v50  ;;  %6733 = vmatprep.subr.bf16.mxu0 %v10094_v62  ;;  %v10098_v62 = vld [vmem:[%s15135_s5 + $0x520] ss:$16 sps:$4 sm:$0xff]  }
 0x32f   : > { %6926 = vmatprep.subr.bf16.mxu1 %v10097_v38  ;;  %v3785_v26 = vpop.f32.mrf.mxu0  ;;  %v3978_v32 = vpop.f32.mrf.mxu1  ;;  %v10101_v38 = vld [vmem:[%s15135_s5 + $0x720] ss:$16 sps:$4 sm:$0xff]  }
 0x330   : > { %15602 = vst [vmem:[#allocation96_spill] sm:$0xff] %v13024_v52  ;;  %v3977_v17 = vadd.f32 %v3976_v12, %v3784_v47  ;;  %v3786_v24 = vadd.f32 %v3785_v26, %v12682_v28  ;;  %v13034_v46 = vpack.c.bf16 %v4600_v6, %v4592_v39  ;;  %v10106_v12 = vld [vmem:[%s15135_s5 + $0x504] ss:$16 sps:$4 sm:$0xff]   ;;  %v15604_v6 = vld [vmem:[#allocation57_spill] sm:$0xff]  ;;  %v4607_v47 = vmax.f32 %v3975_v57, 0.0 }
 0x331   : > { %v3787_v20 = vpop.f32.mrf.mxu0  ;;  %v3980_v37 = vpop.f32.mrf.mxu1  ;;  %6734 = vmatpush2.bf16.msra.mxu0 %v10092_v43  ;;  %v10109_v43 = vld [vmem:[%s15135_s5 + $0x704] ss:$16 sps:$4 sm:$0xff]   ;;  %v10107_v57 = vld [vmem:[%s15135_s5 + $0x700] ss:$16 sps:$4 sm:$0xff]  }
 0x332   : > { %15603 = vst [vmem:[#allocation97_spill] sm:$0xff] %v13034_v46  ;;  %6927 = vmatpush2.bf16.msra.mxu1 %v10095_v8  ;;  %v3979_v5 = vadd.f32 %v3978_v32, %v3786_v24  ;;  %v3788_v7 = vadd.f32 %v3787_v20, %v12687_v50  ;;  %6735 = vmatprep.subr.bf16.mxu0 %v10100_v10  ;;  %v4608_v24 = vmax.f32 %v3977_v17, 0.0  ;;  %v10112_v17 = vld [vmem:[%s15135_s5 + $0xec] ss:$16 sps:$4 sm:$0xff]  }
 0x333   : > { %6928 = vmatprep.subr.bf16.mxu1 %v10103_v25  ;;  %v3791_v39 = vpop.f32.mrf.mxu0  ;;  %v3984_v8 = vpop.f32.mrf.mxu1  ;;  %6424 = vmatmul.mubr.bf16.gmra.mxu0 %v15604_v6  ;;  %v15605_v25 = vld [vmem:[#allocation60_spill] sm:$0xff] }
 0x334   : > { %6617 = vmatmul.mubr.bf16.gmra.mxu1 %v12418_v22  ;;  %v4615_v32 = vmax.f32 %v3979_v5, 0.0  ;;  %v3981_v26 = vadd.f32 %v3980_v37, %v3788_v7  ;;  %v3792_v10 = vadd.f32 %v3791_v39, %v12682_v28  ;;  %6433 = vmatprep.mubr.bf16.mxu0 %v15605_v25  ;;  %v10104_v6 = vld [vmem:[%s15135_s5 + $0x500] ss:$16 sps:$4 sm:$0xff]   ;;  %v15608_v22 = vld [vmem:[#allocation59_spill] sm:$0xff] }
 0x335   : > { %6626 = vmatprep.mubr.bf16.mxu1 %v12461_v4  ;;  %v3793_v20 = vpop.f32.mrf.mxu0  ;;  %v3986_v15 = vpop.f32.mrf.mxu1  ;;  %6736 = vmatpush2.bf16.msra.mxu0 %v10098_v62  ;;  %v10115_v62 = vld [vmem:[%s15135_s5 + $0x2ec] ss:$16 sps:$4 sm:$0xff]  }
 0x336   : > { %6929 = vmatpush2.bf16.msra.mxu1 %v10101_v38  ;;  %v13060_v37 = vpack.c.bf16 %v4615_v32, %v4607_v47  ;;  %v4616_v5 = vmax.f32 %v3981_v26, 0.0  ;;  %v3985_v7 = vadd.f32 %v3984_v8, %v3792_v10  ;;  %v3794_v39 = vadd.f32 %v3793_v20, %v12687_v50  ;;  %6737 = vmatprep.subr.bf16.mxu0 %v10106_v12 }
 0x337   : > { %6930 = vmatprep.subr.bf16.mxu1 %v10109_v43  ;;  %v3795_v38 = vpop.f32.mrf.mxu0  ;;  %v3988_v4 = vpop.f32.mrf.mxu1 }
 0x338   : > { %15606 = vst [vmem:[#allocation98_spill] sm:$0xff] %v13060_v37  ;;  %v3987_v25 = vadd.f32 %v3986_v15, %v3794_v39  ;;  %v3796_v47 = vadd.f32 %v3795_v38, %v12682_v28  ;;  %v13070_v32 = vpack.c.bf16 %v4616_v5, %v4608_v24  ;;  %v4623_v15 = vmax.f32 %v3985_v7, 0.0  ;;  %v15609_v5 = vld [vmem:[#allocation62_spill] sm:$0xff] }
 0x339   : > { %v3797_v8 = vpop.f32.mrf.mxu0  ;;  %v3990_v26 = vpop.f32.mrf.mxu1  ;;  %6738 = vmatpush2.bf16.msra.mxu0 %v10104_v6 }
 0x33a   : > { %15607 = vst [vmem:[#allocation99_spill] sm:$0xff] %v13070_v32  ;;  %6931 = vmatpush2.bf16.msra.mxu1 %v10107_v57  ;;  %v3989_v12 = vadd.f32 %v3988_v4, %v3796_v47  ;;  %v3798_v43 = vadd.f32 %v3797_v8, %v12687_v50  ;;  %7093 = vmatprep.subr.bf16.mxu0 %v10112_v17  ;;  %v4624_v6 = vmax.f32 %v3987_v25, 0.0  ;;  %v15613_v25 = vld [vmem:[#allocation64_spill] sm:$0xff] }
 0x33b   : > { %7286 = vmatprep.subr.bf16.mxu1 %v10115_v62  ;;  %v13073_v10 = vpop.f32.mrf.mxu0  ;;  %v13075_v20 = vpop.f32.mrf.mxu1  ;;  %6434 = vmatmul.mubr.bf16.gmra.mxu0 %v15608_v22 }
 0x33c   : > { %6627 = vmatmul.mubr.bf16.gmra.mxu1 %v12451_v14  ;;  %v4631_v28 = vmax.f32 %v3989_v12, 0.0  ;;  %v3991_v24 = vadd.f32 %v3990_v26, %v3798_v43  ;;  %6443 = vmatprep.mubr.bf16.mxu0 %v15609_v5  ;;  %v15612_v12 = vld [vmem:[#allocation61_spill] sm:$0xff] }
 0x33d   : > { %6636 = vmatprep.mubr.bf16.mxu1 %v12497_v53  ;;  %v13081_v4 = vpop.f32.mrf.mxu0  ;;  %v13083_v50 = vpop.f32.mrf.mxu1 }
 0x33e   : > { %v13085_v57 = vpack.c.bf16 %v4631_v28, %v4623_v15  ;;  %v4632_v39 = vmax.f32 %v3991_v24, 0.0 }
 0x33f   : > { %v13087_v17 = vpop.f32.mrf.mxu0  ;;  %v13089_v62 = vpop.f32.mrf.mxu1 }
 0x340   : > { %15610 = vst [vmem:[#allocation100_spill] sm:$0xff] %v13085_v57  ;;  %v13091_v38 = vpack.c.bf16 %v4632_v39, %v4624_v6 }
 0x341   : > { %v4033_v7 = vpop.f32.mrf.mxu0  ;;  %v13093_v47 = vpop.f32.mrf.mxu1 }
 0x342   : > { %15611 = vst [vmem:[#allocation101_spill] sm:$0xff] %v13091_v38 }
 0x343   : > { %v13095_v8 = vpop.f32.mrf.mxu0  ;;  %v13097_v26 = vpop.f32.mrf.mxu1  ;;  %6444 = vmatmul.mubr.bf16.gmra.mxu0 %v15612_v12 }
 0x344   : > { %6637 = vmatmul.mubr.bf16.gmra.mxu1 %v12487_v61  ;;  %6453 = vmatprep.mubr.bf16.mxu0 %v15613_v25  ;;  %v15614_v61 = vld [vmem:[#allocation63_spill] sm:$0xff] }
 0x345   : > { %6646 = vmatprep.mubr.bf16.mxu1 %v12533_v29  ;;  %v13103_v43 = vpop.f32.mrf.mxu0  ;;  %v13105_v15 = vpop.f32.mrf.mxu1  ;;  %v15615_v29 = vld [vmem:[#allocation66_spill] sm:$0xff] }
 0x347   : > { %v13107_v28 = vpop.f32.mrf.mxu0  ;;  %v13109_v24 = vpop.f32.mrf.mxu1 }
 0x349   : > { %v13111_v6 = vpop.f32.mrf.mxu0  ;;  %v13113_v39 = vpop.f32.mrf.mxu1 }
 0x34b   : > { %v13115_v53 = vpop.f32.mrf.mxu0  ;;  %v13117_v12 = vpop.f32.mrf.mxu1  ;;  %6454 = vmatmul.mubr.bf16.gmra.mxu0 %v15614_v61 }
 0x34c   : > { %6647 = vmatmul.mubr.bf16.gmra.mxu1 %v12523_v23  ;;  %6463 = vmatprep.mubr.bf16.mxu0 %v15615_v29  ;;  %v15616_v23 = vld [vmem:[#allocation65_spill] sm:$0xff] }
 0x34d   : > { %6656 = vmatprep.mubr.bf16.mxu1 %v12569_v40  ;;  %v13123_v25 = vpop.f32.mrf.mxu0  ;;  %v13125_v5 = vpop.f32.mrf.mxu1  ;;  %v15617_v40 = vld [vmem:[#allocation12_spill] sm:$0xff] }
 0x34f   : > { %v13127_v14 = vpop.f32.mrf.mxu0  ;;  %v13129_v22 = vpop.f32.mrf.mxu1 }
 0x351   : > { %v13131_v57 = vpop.f32.mrf.mxu0  ;;  %v13133_v38 = vpop.f32.mrf.mxu1 }
 0x353   : > { %v13135_v37 = vpop.f32.mrf.mxu0  ;;  %v13137_v61 = vpop.f32.mrf.mxu1  ;;  %6464 = vmatmul.mubr.bf16.gmra.mxu0 %v15616_v23 }
 0x354   : > { %6657 = vmatmul.mubr.bf16.gmra.mxu1 %v12559_v1  ;;  %6473 = vmatprep.mubr.bf16.mxu0 %v15617_v40  ;;  %v15618_v1 = vld [vmem:[#allocation11_spill] sm:$0xff] }
 0x355   : > { %6666 = vmatprep.mubr.bf16.mxu1 %v12605_v31  ;;  %v13143_v29 = vpop.f32.mrf.mxu0  ;;  %v13145_v32 = vpop.f32.mrf.mxu1  ;;  %v15619_v31 = vld [vmem:[#allocation67_spill] sm:$0xff] }
 0x357   : > { %v13147_v52 = vpop.f32.mrf.mxu0  ;;  %v13149_v46 = vpop.f32.mrf.mxu1 }
 0x359   : > { %v13151_v36 = vpop.f32.mrf.mxu0  ;;  %v13153_v41 = vpop.f32.mrf.mxu1 }
 0x35b   : > { %v13155_v27 = vpop.f32.mrf.mxu0  ;;  %v13157_v23 = vpop.f32.mrf.mxu1  ;;  %6474 = vmatmul.mubr.bf16.gmra.mxu0 %v15618_v1 }
 0x35c   : > { %6667 = vmatmul.mubr.bf16.gmra.mxu1 %v12595_v59  ;;  %6483 = vmatprep.mubr.bf16.mxu0 %v15619_v31  ;;  %v15622_v31 = vld [vmem:[#allocation16_spill] sm:$0xff] }
 0x35d   : > { %6676 = vmatprep.mubr.bf16.mxu1 %v12641_v48  ;;  %v13163_v40 = vpop.f32.mrf.mxu0  ;;  %v13165_v42 = vpop.f32.mrf.mxu1  ;;  %v10336_v48 = vld [vmem:[%s15134_s4] sm:$0xff] }
 0x35e   : > { %v13185_v56 = vrot.slane %v10336_v48, %v1545_v63 }
 0x35f   : > { %v13167_v34 = vpop.f32.mrf.mxu0  ;;  %v13169_v19 = vpop.f32.mrf.mxu1 }
 0x360   : > { %v4030_v63 = vadd.f32 %v13081_v4, %v13185_v56 }
 0x361   : > { %v13172_v21 = vpop.f32.mrf.mxu0  ;;  %v13174_v13 = vpop.f32.mrf.mxu1 }
 0x363   : > { %v13176_v1 = vpop.f32.mrf.mxu0  ;;  %v13178_v59 = vpop.f32.mrf.mxu1  ;;  %6484 = vmatmul.mubr.bf16.gmra.mxu0 %v15622_v31  ;;  %v1541_v31 = vsub.s32 6, %v15527_v33  ;;  %v15629_v33 = vld [vmem:[#allocation17_spill] sm:$0xff] }
 0x364   : > { %15620 = vst [vmem:[#allocation102_spill] sm:$0xff] %v13176_v1  ;;  %15621 = vst [vmem:[#allocation103_spill] sm:$0xff] %v13178_v59  ;;  %6677 = vmatmul.mubr.bf16.gmra.mxu1 %v12631_v60  ;;  %6493 = vmatprep.mubr.bf16.mxu0 %v15623_v58  ;;  %v4034_v59 = vadd.f32 %v4033_v7, %v13185_v56 }
 0x365   : > { %6686 = vmatprep.mubr.bf16.mxu1 %v12684_v45  ;;  %v13189_v0 = vpop.f32.mrf.mxu0  ;;  %v13191_v2 = vpop.f32.mrf.mxu1  ;;  %v13206_v3 = vrot.slane %v10336_v48, %v1541_v31 }
 0x366   : > { %15624 = vst [vmem:[#allocation104_spill] sm:$0xff] %v13191_v2  ;;  %v4227_v45 = vadd.f32 %v13093_v47, %v4034_v59 }
 0x367   : > { %v13195_v1 = vpop.f32.mrf.mxu0  ;;  %v13197_v60 = vpop.f32.mrf.mxu1  ;;  %v4032_v4 = vadd.f32 %v13087_v17, %v13206_v3  ;;  %v4028_v47 = vadd.f32 %v13073_v10, %v13206_v3  ;;  %v4040_v17 = vadd.f32 %v13103_v43, %v13185_v56 }
 0x368   : > { %15625 = vst [vmem:[#allocation105_spill] sm:$0xff] %v13195_v1  ;;  %15626 = vst [vmem:[#allocation106_spill] sm:$0xff] %v13197_v60  ;;  %v4223_v60 = vadd.f32 %v13083_v50, %v4030_v63  ;;  %v15630_v1 = vld [vmem:[#allocation20_spill] sm:$0xff]  ;;  %v4394_v48 = vmax.f32 %v4227_v45, 0.0 }
 0x369   : > { %v13201_v18 = vpop.f32.mrf.mxu0  ;;  %v13203_v58 = vpop.f32.mrf.mxu1  ;;  %v4221_v10 = vadd.f32 %v13075_v20, %v4028_v47  ;;  %v4233_v43 = vadd.f32 %v13105_v15, %v4040_v17  ;;  %v4042_v20 = vadd.f32 %v13107_v28, %v13206_v3  ;;  %v4038_v47 = vadd.f32 %v13095_v8, %v13206_v3  ;;  %v10110_v28 = vld [vmem:[%s15135_s5 + $0xe8] ss:$16 sps:$4 sm:$0xff]  }
 0x36a   : > { %v4386_v63 = vmax.f32 %v4223_v60, 0.0  ;;  %v15633_v60 = vld [vmem:[#allocation19_spill] sm:$0xff]  ;;  %v4050_v15 = vadd.f32 %v13123_v25, %v13185_v56 }
 0x36b   : > { %v13208_v2 = vpop.f32.mrf.mxu0  ;;  %v13210_v7 = vpop.f32.mrf.mxu1  ;;  %6494 = vmatmul.mubr.bf16.gmra.mxu0 %v15629_v33  ;;  %v10118_v25 = vld [vmem:[%s15135_s5 + $0xcc] ss:$16 sps:$4 sm:$0xff]  }
 0x36c   : > { %15627 = vst [vmem:[#allocation107_spill] sm:$0xff] %v13208_v2  ;;  %15628 = vst [vmem:[#allocation108_spill] sm:$0xff] %v13210_v7  ;;  %6687 = vmatmul.mubr.bf16.gmra.mxu1 %v12669_v51  ;;  %6503 = vmatprep.mubr.bf16.mxu0 %v15630_v1  ;;  %v4044_v51 = vadd.f32 %v13111_v6, %v13185_v56  ;;  %v13238_v45 = vpack.c.bf16 %v4394_v48, %v4386_v63  ;;  %v4385_v48 = vmax.f32 %v4221_v10, 0.0 }
 0x36d   : > { %6696 = vmatprep.mubr.bf16.mxu1 %v12698_v49  ;;  %v13219_v59 = vpop.f32.mrf.mxu0  ;;  %v13221_v31 = vpop.f32.mrf.mxu1  ;;  %v4225_v49 = vadd.f32 %v13089_v62, %v4032_v4 }
 0x36e   : > { %15632 = vst [vmem:[#allocation110_spill] sm:$0xff] %v13238_v45  ;;  %v4237_v6 = vadd.f32 %v13113_v39, %v4044_v51  ;;  %v4054_v39 = vadd.f32 %v13131_v57, %v13185_v56  ;;  %v4235_v57 = vadd.f32 %v13109_v24, %v4042_v20  ;;  %v4231_v24 = vadd.f32 %v13097_v26, %v4038_v47 }
 0x36f   : > { %v13227_v33 = vpop.f32.mrf.mxu0  ;;  %v13229_v50 = vpop.f32.mrf.mxu1  ;;  %v4393_v62 = vmax.f32 %v4225_v49, 0.0  ;;  %v4052_v47 = vadd.f32 %v13127_v14, %v13206_v3  ;;  %v10127_v14 = vld [vmem:[%s15135_s5 + $0x2ac] ss:$16 sps:$4 sm:$0xff]  }
 0x370   : > { %15631 = vst [vmem:[#allocation109_spill] sm:$0xff] %v13227_v33  ;;  %v4410_v63 = vmax.f32 %v4237_v6, 0.0  ;;  %v10113_v6 = vld [vmem:[%s15135_s5 + $0x2e8] ss:$16 sps:$4 sm:$0xff]   ;;  %v4409_v26 = vmax.f32 %v4235_v57, 0.0  ;;  %v4048_v57 = vadd.f32 %v13115_v53, %v13206_v3 }
 0x371   : > { %v13234_v1 = vpop.f32.mrf.mxu0  ;;  %v13236_v7 = vpop.f32.mrf.mxu1  ;;  %v13270_v17 = vpack.c.bf16 %v4393_v62, %v4385_v48  ;;  %v10121_v62 = vld [vmem:[%s15135_s5 + $0x2cc] ss:$16 sps:$4 sm:$0xff]   ;;  %v10122_v53 = vld [vmem:[%s15135_s5 + $0xa8] ss:$16 sps:$4 sm:$0xff]  }
 0x373   : > { %v13242_v2 = vpop.f32.mrf.mxu0  ;;  %v13244_v33 = vpop.f32.mrf.mxu1  ;;  %6504 = vmatmul.mubr.bf16.gmra.mxu0 %v15633_v60  ;;  %15634 = vst [vmem:[#allocation111_spill] sm:$0xff] %v13270_v17 }
 0x374   : > { %6697 = vmatmul.mubr.bf16.gmra.mxu1 %v12694_v54  ;;  %6739 = vmatprep.mubr.bf16.mxu0 %v12710_v55  ;;  %v4247_v54 = vadd.f32 %v13133_v38, %v4054_v39  ;;  %v4243_v38 = vadd.f32 %v13125_v5, %v4050_v15  ;;  %v10116_v39 = vld [vmem:[%s15135_s5 + $0xc8] ss:$16 sps:$4 sm:$0xff]   ;;  %v4064_v15 = vadd.f32 %v13151_v36, %v13185_v56 }
 0x375   : > { %6932 = vmatprep.mubr.bf16.mxu1 %v13238_v45  ;;  %v13253_v4 = vpop.f32.mrf.mxu0  ;;  %v13255_v51 = vpop.f32.mrf.mxu1  ;;  %v4402_v45 = vmax.f32 %v4233_v43, 0.0  ;;  %v10119_v5 = vld [vmem:[%s15135_s5 + $0x2c8] ss:$16 sps:$4 sm:$0xff]  }
 0x377   : > { %v13261_v55 = vpop.f32.mrf.mxu0  ;;  %v13263_v49 = vpop.f32.mrf.mxu1  ;;  %v13294_v48 = vpack.c.bf16 %v4410_v63, %v4402_v45  ;;  %v10124_v45 = vld [vmem:[%s15135_s5 + $0xac] ss:$16 sps:$4 sm:$0xff]   ;;  %v4426_v63 = vmax.f32 %v4247_v54, 0.0  ;;  %v4060_v54 = vadd.f32 %v13143_v29, %v13185_v56  ;;  %v4257_v29 = vadd.f32 %v13153_v41, %v4064_v15  ;;  %v10128_v15 = vld [vmem:[%s15135_s5 + $0x88] ss:$16 sps:$4 sm:$0xff]  }
 0x379   : > { %v13273_v10 = vpop.f32.mrf.mxu0  ;;  %v13275_v8 = vpop.f32.mrf.mxu1  ;;  %15635 = vst [vmem:[#allocation112_spill] sm:$0xff] %v13294_v48 }
 0x37b   : > { %v13288_v43 = vpop.f32.mrf.mxu0  ;;  %v13290_v20 = vpop.f32.mrf.mxu1  ;;  %6740 = vmatmul.mubr.bf16.vlgmr.msra.gmra.mxu0 %v12706_v9 }
 0x37c   : > { %6933 = vmatmul.mubr.bf16.vlgmr.msra.gmra.mxu1 %v13270_v17  ;;  %7094 = vmatpush1.bf16.msra.mxu0 %v10110_v28  ;;  %v4401_v28 = vmax.f32 %v4231_v24, 0.0  ;;  %v10125_v24 = vld [vmem:[%s15135_s5 + $0x2a8] ss:$16 sps:$4 sm:$0xff]  }
 0x37d   : > { %6749 = vmatprep.mubr.bf16.mxu0 %v12722_v44  ;;  %6942 = vmatprep.mubr.bf16.mxu1 %v13294_v48  ;;  %v13304_v9 = vpop.f32.mrf.mxu0  ;;  %v13306_v17 = vpop.f32.mrf.mxu1  ;;  %v4418_v44 = vmax.f32 %v4243_v38, 0.0 }
 0x37e   : > { %7287 = vmatpush1.bf16.msra.mxu1 %v10113_v6  ;;  %7095 = vmatprep.subr.bf16.mxu0 %v10118_v25  ;;  %v13327_v36 = vpack.c.bf16 %v4409_v26, %v4401_v28  ;;  %v4245_v25 = vadd.f32 %v13129_v22, %v4052_v47  ;;  %v10130_v22 = vld [vmem:[%s15135_s5 + $0x8c] ss:$16 sps:$4 sm:$0xff]   ;;  %v4241_v26 = vadd.f32 %v13117_v12, %v4048_v57 }
 0x37f   : > { %7288 = vmatprep.subr.bf16.mxu1 %v10121_v62  ;;  %v13321_v6 = vpop.f32.mrf.mxu0  ;;  %v13323_v48 = vpop.f32.mrf.mxu1  ;;  %v13341_v38 = vpack.c.bf16 %v4426_v63, %v4418_v44  ;;  %v4253_v44 = vadd.f32 %v13145_v32, %v4060_v54  ;;  %v10131_v32 = vld [vmem:[%s15135_s5 + $0x288] ss:$16 sps:$4 sm:$0xff]   ;;  %v4074_v28 = vadd.f32 %v13172_v21, %v13185_v56  ;;  %v10139_v57 = vld [vmem:[%s15135_s5 + $0x26c] ss:$16 sps:$4 sm:$0xff]   ;;  %v4070_v21 = vadd.f32 %v13163_v40, %v13185_v56 }
 0x380   : > { %7096 = vmatpush1.bf16.msra.mxu0 %v10116_v39  ;;  %15636 = vst [vmem:[#allocation113_spill] sm:$0xff] %v13327_v36  ;;  %v10133_v39 = vld [vmem:[%s15135_s5 + $0x28c] ss:$16 sps:$4 sm:$0xff]   ;;  %v4425_v41 = vmax.f32 %v4245_v25, 0.0  ;;  %v4417_v54 = vmax.f32 %v4241_v26, 0.0  ;;  %v4058_v25 = vadd.f32 %v13135_v37, %v13206_v3 }
 0x381   : > { %v13330_v62 = vpop.f32.mrf.mxu0  ;;  %v13332_v60 = vpop.f32.mrf.mxu1  ;;  %7097 = vmatprep.subr.bf16.mxu0 %v10124_v45  ;;  %15637 = vst [vmem:[#allocation114_spill] sm:$0xff] %v13341_v38  ;;  %v4062_v45 = vadd.f32 %v13147_v52, %v13206_v3  ;;  %v10136_v52 = vld [vmem:[%s15135_s5 + $0x6c] ss:$16 sps:$4 sm:$0xff]   ;;  %v10134_v37 = vld [vmem:[%s15135_s5 + $0x68] ss:$16 sps:$4 sm:$0xff]   ;;  %v4267_v40 = vadd.f32 %v13174_v13, %v4074_v28  ;;  %v4263_v13 = vadd.f32 %v13165_v42, %v4070_v21 }
 0x382   : > { %7289 = vmatpush1.bf16.msra.mxu1 %v10119_v5  ;;  %v10137_v26 = vld [vmem:[%s15135_s5 + $0x268] ss:$16 sps:$4 sm:$0xff]   ;;  %v4072_v28 = vadd.f32 %v13167_v34, %v13206_v3  ;;  %v10148_v34 = vld [vmem:[%s15135_s5 + $0x2c] ss:$16 sps:$4 sm:$0xff]  }
 0x383   : > { %7290 = vmatprep.subr.bf16.mxu1 %v10127_v14  ;;  %v13350_v47 = vpop.f32.mrf.mxu0  ;;  %v13352_v5 = vpop.f32.mrf.mxu1  ;;  %6750 = vmatmul.mubr.bf16.gmra.mxu0 %v12718_v30  ;;  %v4442_v14 = vmax.f32 %v4257_v29, 0.0  ;;  %v4434_v29 = vmax.f32 %v4253_v44, 0.0  ;;  %v10143_v42 = vld [vmem:[%s15135_s5 + $0x248] ss:$16 sps:$4 sm:$0xff]  }
 0x384   : > { %6943 = vmatmul.mubr.bf16.gmra.mxu1 %v13327_v36  ;;  %6759 = vmatprep.mubr.bf16.mxu0 %v12734_v35 }
 0x385   : > { %6952 = vmatprep.mubr.bf16.mxu1 %v13341_v38  ;;  %v13361_v63 = vpop.f32.mrf.mxu0  ;;  %v13363_v12 = vpop.f32.mrf.mxu1  ;;  %7098 = vmatpush1.bf16.msra.mxu0 %v10122_v53  ;;  %v13401_v44 = vpack.c.bf16 %v4442_v14, %v4434_v29  ;;  %v10151_v29 = vld [vmem:[%s15135_s5 + $0x22c] ss:$16 sps:$4 sm:$0xff]  }
 0x386   : > { %7291 = vmatpush1.bf16.msra.mxu1 %v10125_v24  ;;  %7099 = vmatprep.subr.bf16.mxu0 %v10130_v22  ;;  %v13387_v22 = vpack.c.bf16 %v4425_v41, %v4417_v54  ;;  %v10145_v41 = vld [vmem:[%s15135_s5 + $0x24c] ss:$16 sps:$4 sm:$0xff]   ;;  %v4458_v54 = vmax.f32 %v4267_v40, 0.0  ;;  %v4450_v40 = vmax.f32 %v4263_v13, 0.0 }
 0x387   : > { %7292 = vmatprep.subr.bf16.mxu1 %v10133_v39  ;;  %v13381_v53 = vpop.f32.mrf.mxu0  ;;  %v13383_v24 = vpop.f32.mrf.mxu1  ;;  %v4255_v39 = vadd.f32 %v13149_v46, %v4062_v45  ;;  %15639 = vst [vmem:[#allocation116_spill] sm:$0xff] %v13401_v44  ;;  %v10142_v46 = vld [vmem:[%s15135_s5 + $0x4c] ss:$16 sps:$4 sm:$0xff]   ;;  %v4251_v45 = vadd.f32 %v13137_v61, %v4058_v25  ;;  %v4084_v25 = vadd.f32 %v13201_v18, %v13185_v56 }
 0x388   : > { %15638 = vst [vmem:[#allocation115_spill] sm:$0xff] %v13387_v22  ;;  %v4080_v18 = vadd.f32 %v13189_v0, %v13185_v56  ;;  %v13461_v13 = vpack.c.bf16 %v4458_v54, %v4450_v40 }
 0x389   : > { %v13390_v38 = vpop.f32.mrf.mxu0  ;;  %v13392_v35 = vpop.f32.mrf.mxu1  ;;  %7100 = vmatpush1.bf16.msra.mxu0 %v10128_v15  ;;  %v4441_v14 = vmax.f32 %v4255_v39, 0.0  ;;  %v4433_v21 = vmax.f32 %v4251_v45, 0.0  ;;  %v4068_v39 = vadd.f32 %v13155_v27, %v13206_v3  ;;  %v10146_v27 = vld [vmem:[%s15135_s5 + $0x28] ss:$16 sps:$4 sm:$0xff]   ;;  %v4277_v0 = vadd.f32 %v13203_v58, %v4084_v25  ;;  %v15644_v58 = vld [vmem:[#allocation104_spill] sm:$0xff]  ;;  %v15645_v25 = vld [vmem:[#allocation34_spill] sm:$0xff] }
 0x38a   : > { %7293 = vmatpush1.bf16.msra.mxu1 %v10131_v32  ;;  %7101 = vmatprep.subr.bf16.mxu0 %v10136_v52  ;;  %v10149_v45 = vld [vmem:[%s15135_s5 + $0x228] ss:$16 sps:$4 sm:$0xff]   ;;  %15641 = vst [vmem:[#allocation118_spill] sm:$0xff] %v13461_v13  ;;  %v4273_v54 = vadd.f32 %v15644_v58, %v4080_v18 }
 0x38b   : > { %7294 = vmatprep.subr.bf16.mxu1 %v10139_v57  ;;  %v13410_v15 = vpop.f32.mrf.mxu0  ;;  %v13412_v32 = vpop.f32.mrf.mxu1  ;;  %6760 = vmatmul.mubr.bf16.gmra.mxu0 %v12730_v11  ;;  %v10140_v57 = vld [vmem:[%s15135_s5 + $0x48] ss:$16 sps:$4 sm:$0xff]   ;;  %v4474_v58 = vmax.f32 %v4277_v0, 0.0 }
 0x38c   : > { %6953 = vmatmul.mubr.bf16.gmra.mxu1 %v13387_v22  ;;  %6769 = vmatprep.mubr.bf16.mxu0 %v12746_v16  ;;  %v10155_v18 = vld [vmem:[%s15135_s5 + $0x208] ss:$16 sps:$4 sm:$0xff]  }
 0x38d   : > { %6962 = vmatprep.mubr.bf16.mxu1 %v13401_v44  ;;  %v13421_v52 = vpop.f32.mrf.mxu0  ;;  %v13423_v61 = vpop.f32.mrf.mxu1  ;;  %7102 = vmatpush1.bf16.msra.mxu0 %v10134_v37 }
 0x38e   : > { %7295 = vmatpush1.bf16.msra.mxu1 %v10137_v26  ;;  %7103 = vmatprep.subr.bf16.mxu0 %v10142_v46  ;;  %v13447_v46 = vpack.c.bf16 %v4441_v14, %v4433_v21  ;;  %v10157_v14 = vld [vmem:[%s15135_s5 + $0x20c] ss:$16 sps:$4 sm:$0xff]  }
 0x38f   : > { %7296 = vmatprep.subr.bf16.mxu1 %v10145_v41  ;;  %v13441_v37 = vpop.f32.mrf.mxu0  ;;  %v13443_v26 = vpop.f32.mrf.mxu1  ;;  %v4265_v41 = vadd.f32 %v13169_v19, %v4072_v28  ;;  %v10154_v19 = vld [vmem:[%s15135_s5 + $0xc] ss:$16 sps:$4 sm:$0xff]   ;;  %v4261_v28 = vadd.f32 %v13157_v23, %v4068_v39  ;;  %v10152_v39 = vld [vmem:[%s15135_s5 + $0x8] ss:$16 sps:$4 sm:$0xff]  }
 0x390   : > { %15640 = vst [vmem:[#allocation117_spill] sm:$0xff] %v13447_v46  ;;  %v15643_v21 = vld [vmem:[#allocation31_spill] sm:$0xff] }
 0x391   : > { %v13450_v44 = vpop.f32.mrf.mxu0  ;;  %v13452_v16 = vpop.f32.mrf.mxu1  ;;  %7104 = vmatpush1.bf16.msra.mxu0 %v10140_v57 }
 0x392   : > { %7297 = vmatpush1.bf16.msra.mxu1 %v10143_v42  ;;  %7105 = vmatprep.subr.bf16.mxu0 %v10148_v34  ;;  %v4457_v34 = vmax.f32 %v4265_v41, 0.0  ;;  %v4094_v41 = vadd.f32 %v13234_v1, %v13185_v56  ;;  %v4090_v1 = vadd.f32 %v13219_v59, %v13185_v56 }
 0x393   : > { %7298 = vmatprep.subr.bf16.mxu1 %v10151_v29  ;;  %v13470_v57 = vpop.f32.mrf.mxu0  ;;  %v13472_v42 = vpop.f32.mrf.mxu1  ;;  %6770 = vmatmul.mubr.bf16.gmra.mxu0 %v15643_v21  ;;  %v15646_v29 = vld [vmem:[#allocation105_spill] sm:$0xff]  ;;  %v4466_v21 = vmax.f32 %v4273_v54, 0.0 }
 0x394   : > { %15642 = vst [vmem:[#allocation119_spill] sm:$0xff] %v13472_v42  ;;  %6963 = vmatmul.mubr.bf16.gmra.mxu1 %v13447_v46  ;;  %6779 = vmatprep.mubr.bf16.mxu0 %v15645_v25  ;;  %v4082_v40 = vadd.f32 %v15646_v29, %v13206_v3  ;;  %v10160_v29 = vld [vmem:[%s15135_s5 + $0x1ec] ss:$16 sps:$4 sm:$0xff]   ;;  %v4287_v59 = vadd.f32 %v13236_v7, %v4094_v41 }
 0x395   : > { %6972 = vmatprep.mubr.bf16.mxu1 %v13461_v13  ;;  %v13481_v22 = vpop.f32.mrf.mxu0  ;;  %v13483_v23 = vpop.f32.mrf.mxu1  ;;  %7106 = vmatpush1.bf16.msra.mxu0 %v10146_v27  ;;  %v10163_v27 = vld [vmem:[%s15135_s5 + $0x3ec] ss:$16 sps:$4 sm:$0xff]   ;;  %v15647_v13 = vld [vmem:[#allocation102_spill] sm:$0xff]  ;;  %v13521_v54 = vpack.c.bf16 %v4474_v58, %v4466_v21  ;;  %v4283_v7 = vadd.f32 %v13221_v31, %v4090_v1  ;;  %v15655_v21 = vld [vmem:[#allocation36_spill] sm:$0xff] }
 0x396   : > { %7299 = vmatpush1.bf16.msra.mxu1 %v10149_v45  ;;  %7107 = vmatprep.subr.bf16.mxu0 %v10154_v19  ;;  %v4449_v45 = vmax.f32 %v4261_v28, 0.0  ;;  %v4078_v25 = vadd.f32 %v15647_v13, %v13206_v3  ;;  %v10158_v13 = vld [vmem:[%s15135_s5 + $0x1e8] ss:$16 sps:$4 sm:$0xff]   ;;  %v4490_v1 = vmax.f32 %v4287_v59, 0.0 }
 0x397   : > { %7300 = vmatprep.subr.bf16.mxu1 %v10157_v14  ;;  %v13501_v46 = vpop.f32.mrf.mxu0  ;;  %v13503_v0 = vpop.f32.mrf.mxu1  ;;  %v15649_v14 = vld [vmem:[#allocation106_spill] sm:$0xff]  ;;  %v10161_v28 = vld [vmem:[%s15135_s5 + $0x3e8] ss:$16 sps:$4 sm:$0xff]   ;;  %15650 = vst [vmem:[#allocation105_spill] sm:$0xff] %v13521_v54 }
 0x398   : > { %v13507_v19 = vpack.c.bf16 %v4457_v34, %v4449_v45  ;;  %v4275_v11 = vadd.f32 %v15649_v14, %v4082_v40  ;;  %v10166_v34 = vld [vmem:[%s15135_s5 + $0x1cc] ss:$16 sps:$4 sm:$0xff]   ;;  %v10167_v31 = vld [vmem:[%s15135_s5 + $0x3c8] ss:$16 sps:$4 sm:$0xff]  }
 0x399   : > { %v13510_v36 = vpop.f32.mrf.mxu0  ;;  %v13512_v30 = vpop.f32.mrf.mxu1  ;;  %7108 = vmatpush1.bf16.msra.mxu0 %v10152_v39  ;;  %v10169_v40 = vld [vmem:[%s15135_s5 + $0x3cc] ss:$16 sps:$4 sm:$0xff]  }
 0x39a   : > { %15648 = vst [vmem:[#allocation104_spill] sm:$0xff] %v13507_v19  ;;  %7301 = vmatpush1.bf16.msra.mxu1 %v10155_v18  ;;  %7109 = vmatprep.subr.bf16.mxu0 %v10160_v29  ;;  %v15651_v39 = vld [vmem:[#allocation103_spill] sm:$0xff]  ;;  %v15654_v42 = vld [vmem:[#allocation33_spill] sm:$0xff]  ;;  %v4473_v58 = vmax.f32 %v4275_v11, 0.0  ;;  %v4104_v11 = vadd.f32 %v13273_v10, %v13185_v56  ;;  %v4100_v10 = vadd.f32 %v13253_v4, %v13185_v56 }
 0x39b   : > { %7302 = vmatprep.subr.bf16.mxu1 %v10163_v27  ;;  %v4271_v18 = vadd.f32 %v15651_v39, %v4078_v25  ;;  %v13530_v45 = vpop.f32.mrf.mxu0  ;;  %v13532_v14 = vpop.f32.mrf.mxu1  ;;  %6780 = vmatmul.mubr.bf16.gmra.mxu0 %v15654_v42  ;;  %v15656_v41 = vld [vmem:[#allocation109_spill] sm:$0xff]  ;;  %v4482_v42 = vmax.f32 %v4283_v7, 0.0 }
 0x39c   : > { %15652 = vst [vmem:[#allocation102_spill] sm:$0xff] %v13530_v45  ;;  %15653 = vst [vmem:[#allocation106_spill] sm:$0xff] %v13532_v14  ;;  %6973 = vmatmul.mubr.bf16.gmra.mxu1 %v13507_v19  ;;  %6789 = vmatprep.mubr.bf16.mxu0 %v15655_v21  ;;  %v4092_v29 = vadd.f32 %v15656_v41, %v13206_v3  ;;  %v10164_v39 = vld [vmem:[%s15135_s5 + $0x1c8] ss:$16 sps:$4 sm:$0xff]   ;;  %v10172_v41 = vld [vmem:[%s15135_s5 + $0x1ac] ss:$16 sps:$4 sm:$0xff]   ;;  %v4297_v4 = vadd.f32 %v13275_v8, %v4104_v11 }
 0x39d   : > { %6982 = vmatprep.mubr.bf16.mxu1 %v13521_v54  ;;  %v13541_v27 = vpop.f32.mrf.mxu0  ;;  %v13543_v25 = vpop.f32.mrf.mxu1  ;;  %7110 = vmatpush2.bf16.msra.mxu0 %v10158_v13  ;;  %v10175_v13 = vld [vmem:[%s15135_s5 + $0x3ac] ss:$16 sps:$4 sm:$0xff]   ;;  %v13581_v7 = vpack.c.bf16 %v4490_v1, %v4482_v42  ;;  %v4293_v8 = vadd.f32 %v13255_v51, %v4100_v10  ;;  %v15663_v42 = vld [vmem:[#allocation38_spill] sm:$0xff]  ;;  %v4102_v11 = vadd.f32 %v13261_v55, %v13206_v3  ;;  %v10179_v51 = vld [vmem:[%s15135_s5 + $0x388] ss:$16 sps:$4 sm:$0xff]  }
 0x39e   : > { %7303 = vmatpush2.bf16.msra.mxu1 %v10161_v28  ;;  %7111 = vmatprep.subr.bf16.mxu0 %v10166_v34  ;;  %v4465_v28 = vmax.f32 %v4271_v18, 0.0  ;;  %v15657_v54 = vld [vmem:[#allocation107_spill] sm:$0xff]  ;;  %v4506_v10 = vmax.f32 %v4297_v4, 0.0 }
 0x39f   : > { %7304 = vmatprep.subr.bf16.mxu1 %v10169_v40  ;;  %v4088_v21 = vadd.f32 %v15657_v54, %v13206_v3  ;;  %v13561_v19 = vpop.f32.mrf.mxu0  ;;  %v13563_v59 = vpop.f32.mrf.mxu1  ;;  %v4285_v40 = vadd.f32 %v13229_v50, %v4092_v29  ;;  %v10170_v54 = vld [vmem:[%s15135_s5 + $0x1a8] ss:$16 sps:$4 sm:$0xff]   ;;  %15660 = vst [vmem:[#allocation107_spill] sm:$0xff] %v13581_v7  ;;  %v10178_v50 = vld [vmem:[%s15135_s5 + $0x18c] ss:$16 sps:$4 sm:$0xff]   ;;  %v15661_v29 = vld [vmem:[#allocation108_spill] sm:$0xff] }
 0x3a0   : > { %15658 = vst [vmem:[#allocation103_spill] sm:$0xff] %v13563_v59  ;;  %v13567_v34 = vpack.c.bf16 %v4473_v58, %v4465_v28  ;;  %v10173_v18 = vld [vmem:[%s15135_s5 + $0x3a8] ss:$16 sps:$4 sm:$0xff]   ;;  %v10181_v58 = vld [vmem:[%s15135_s5 + $0x38c] ss:$16 sps:$4 sm:$0xff]  }
 0x3a1   : > { %v13570_v14 = vpop.f32.mrf.mxu0  ;;  %v13572_v45 = vpop.f32.mrf.mxu1  ;;  %7112 = vmatpush2.bf16.msra.mxu0 %v10164_v39  ;;  %v4281_v39 = vadd.f32 %v15661_v29, %v4088_v21  ;;  %v15662_v59 = vld [vmem:[#allocation35_spill] sm:$0xff]  ;;  %v4489_v1 = vmax.f32 %v4285_v40, 0.0  ;;  %v4114_v40 = vadd.f32 %v13330_v62, %v13185_v56  ;;  %v4098_v29 = vadd.f32 %v13242_v2, %v13206_v3 }
 0x3a2   : > { %15659 = vst [vmem:[#allocation109_spill] sm:$0xff] %v13567_v34  ;;  %7305 = vmatpush2.bf16.msra.mxu1 %v10167_v31  ;;  %7113 = vmatprep.subr.bf16.mxu0 %v10172_v41  ;;  %v10184_v55 = vld [vmem:[%s15135_s5 + $0x16c] ss:$16 sps:$4 sm:$0xff]   ;;  %v4110_v62 = vadd.f32 %v13304_v9, %v13185_v56  ;;  %v10182_v2 = vld [vmem:[%s15135_s5 + $0x168] ss:$16 sps:$4 sm:$0xff]  }
 0x3a3   : > { %7306 = vmatprep.subr.bf16.mxu1 %v10175_v13  ;;  %v13590_v31 = vpop.f32.mrf.mxu0  ;;  %v13592_v28 = vpop.f32.mrf.mxu1  ;;  %6790 = vmatmul.mubr.bf16.gmra.mxu0 %v15662_v59  ;;  %v10176_v13 = vld [vmem:[%s15135_s5 + $0x188] ss:$16 sps:$4 sm:$0xff]   ;;  %v4307_v9 = vadd.f32 %v13332_v60, %v4114_v40  ;;  %v4112_v40 = vadd.f32 %v13321_v6, %v13206_v3  ;;  %v10196_v6 = vld [vmem:[%s15135_s5 + $0x12c] ss:$16 sps:$4 sm:$0xff]  }
 0x3a4   : > { %6983 = vmatmul.mubr.bf16.gmra.mxu1 %v13567_v34  ;;  %6799 = vmatprep.mubr.bf16.mxu0 %v15663_v42  ;;  %v4498_v42 = vmax.f32 %v4293_v8, 0.0  ;;  %v4303_v60 = vadd.f32 %v13306_v17, %v4110_v62  ;;  %v10191_v17 = vld [vmem:[%s15135_s5 + $0x348] ss:$16 sps:$4 sm:$0xff]   ;;  %v4124_v62 = vadd.f32 %v13390_v38, %v13185_v56  ;;  %v4120_v38 = vadd.f32 %v13361_v63, %v13185_v56 }
 0x3a5   : > { %6992 = vmatprep.mubr.bf16.mxu1 %v13581_v7  ;;  %v13601_v41 = vpop.f32.mrf.mxu0  ;;  %v13603_v21 = vpop.f32.mrf.mxu1  ;;  %7114 = vmatpush2.bf16.msra.mxu0 %v10170_v54  ;;  %v10187_v54 = vld [vmem:[%s15135_s5 + $0x36c] ss:$16 sps:$4 sm:$0xff]  }
 0x3a6   : > { %7307 = vmatpush2.bf16.msra.mxu1 %v10173_v18  ;;  %7115 = vmatprep.subr.bf16.mxu0 %v10178_v50  ;;  %v4481_v18 = vmax.f32 %v4281_v39, 0.0  ;;  %v10185_v39 = vld [vmem:[%s15135_s5 + $0x368] ss:$16 sps:$4 sm:$0xff]   ;;  %v13641_v8 = vpack.c.bf16 %v4506_v10, %v4498_v42  ;;  %v15667_v42 = vld [vmem:[#allocation42_spill] sm:$0xff]  ;;  %v4317_v63 = vadd.f32 %v13392_v35, %v4124_v62  ;;  %v4313_v35 = vadd.f32 %v13363_v12, %v4120_v38 }
 0x3a7   : > { %7308 = vmatprep.subr.bf16.mxu1 %v10181_v58  ;;  %v13621_v7 = vpop.f32.mrf.mxu0  ;;  %v13623_v4 = vpop.f32.mrf.mxu1  ;;  %v4295_v58 = vadd.f32 %v13263_v49, %v4102_v11  ;;  %v10190_v49 = vld [vmem:[%s15135_s5 + $0x14c] ss:$16 sps:$4 sm:$0xff]   ;;  %v4291_v11 = vadd.f32 %v13244_v33, %v4098_v29  ;;  %v4522_v29 = vmax.f32 %v4307_v9, 0.0  ;;  %v10200_v12 = vld [vmem:[%s15135_s5 + $0x108] ss:$16 sps:$4 sm:$0xff]  }
 0x3a8   : > { %v13627_v50 = vpack.c.bf16 %v4489_v1, %v4481_v18  ;;  %15665 = vst [vmem:[#allocation120_spill] sm:$0xff] %v13641_v8  ;;  %v10193_v1 = vld [vmem:[%s15135_s5 + $0x34c] ss:$16 sps:$4 sm:$0xff]   ;;  %v4538_v38 = vmax.f32 %v4317_v63, 0.0 }
 0x3a9   : > { %v13630_v34 = vpop.f32.mrf.mxu0  ;;  %v13632_v59 = vpop.f32.mrf.mxu1  ;;  %7116 = vmatpush2.bf16.msra.mxu0 %v10176_v13  ;;  %v15666_v18 = vld [vmem:[#allocation37_spill] sm:$0xff]  ;;  %v4505_v10 = vmax.f32 %v4295_v58, 0.0 }
 0x3aa   : > { %15664 = vst [vmem:[#allocation108_spill] sm:$0xff] %v13627_v50  ;;  %7309 = vmatpush2.bf16.msra.mxu1 %v10179_v51  ;;  %7117 = vmatprep.subr.bf16.mxu0 %v10184_v55  ;;  %v10199_v58 = vld [vmem:[%s15135_s5 + $0x32c] ss:$16 sps:$4 sm:$0xff]  }
 0x3ab   : > { %7310 = vmatprep.subr.bf16.mxu1 %v10187_v54  ;;  %v13650_v13 = vpop.f32.mrf.mxu0  ;;  %v13652_v51 = vpop.f32.mrf.mxu1  ;;  %6800 = vmatmul.mubr.bf16.gmra.mxu0 %v15666_v18  ;;  %v10188_v54 = vld [vmem:[%s15135_s5 + $0x148] ss:$16 sps:$4 sm:$0xff]  }
 0x3ac   : > { %6993 = vmatmul.mubr.bf16.gmra.mxu1 %v13627_v50  ;;  %6809 = vmatprep.mubr.bf16.mxu0 %v15667_v42  ;;  %v4514_v42 = vmax.f32 %v4303_v60, 0.0 }
 0x3ad   : > { %7002 = vmatprep.mubr.bf16.mxu1 %v13641_v8  ;;  %v13661_v55 = vpop.f32.mrf.mxu0  ;;  %v13663_v33 = vpop.f32.mrf.mxu1  ;;  %7118 = vmatpush2.bf16.msra.mxu0 %v10182_v2  ;;  %v4497_v2 = vmax.f32 %v4291_v11, 0.0  ;;  %v10197_v11 = vld [vmem:[%s15135_s5 + $0x328] ss:$16 sps:$4 sm:$0xff]  }
 0x3ae   : > { %7311 = vmatpush2.bf16.msra.mxu1 %v10185_v39  ;;  %7119 = vmatprep.subr.bf16.mxu0 %v10190_v49  ;;  %v4108_v39 = vadd.f32 %v13288_v43, %v13206_v3  ;;  %v10194_v43 = vld [vmem:[%s15135_s5 + $0x128] ss:$16 sps:$4 sm:$0xff]   ;;  %v13701_v60 = vpack.c.bf16 %v4522_v29, %v4514_v42  ;;  %v5019_v29 = vld [vmem:[%s15136_s6] sm:$0xf] }
 0x3af   : > { %7312 = vmatprep.subr.bf16.mxu1 %v10193_v1  ;;  %v13681_v8 = vpop.f32.mrf.mxu0  ;;  %v13683_v9 = vpop.f32.mrf.mxu1  ;;  %v13687_v49 = vpack.c.bf16 %v4505_v10, %v4497_v2  ;;  %v4305_v1 = vadd.f32 %v13323_v48, %v4112_v40  ;;  %v10202_v48 = vld [vmem:[%s15135_s5 + $0x10c] ss:$16 sps:$4 sm:$0xff]  }
 0x3b0   : > { %15669 = vst [vmem:[#allocation122_spill] sm:$0xff] %v13701_v60  ;;  %v10205_v10 = vld [vmem:[%s15135_s5 + $0x30c] ss:$16 sps:$4 sm:$0xff]   ;;  %v4301_v40 = vadd.f32 %v13290_v20, %v4108_v39  ;;  %v4122_v20 = vadd.f32 %v13381_v53, %v13206_v3  ;;  %v10203_v39 = vld [vmem:[%s15135_s5 + $0x308] ss:$16 sps:$4 sm:$0xff]  }
 0x3b1   : > { %15668 = vst [vmem:[#allocation121_spill] sm:$0xff] %v13687_v49  ;;  %v13690_v50 = vpop.f32.mrf.mxu0  ;;  %v13692_v18 = vpop.f32.mrf.mxu1  ;;  %7120 = vmatpush2.bf16.msra.mxu0 %v10188_v54  ;;  %v15672_v2 = vld [vmem:[#allocation39_spill] sm:$0xff]  ;;  %v4521_v62 = vmax.f32 %v4305_v1, 0.0  ;;  %v4134_v1 = vadd.f32 %v13450_v44, %v13185_v56  ;;  %v4130_v44 = vadd.f32 %v13421_v52, %v13185_v56 }
 0x3b2   : > { %7313 = vmatpush2.bf16.msra.mxu1 %v10191_v17  ;;  %7121 = vmatprep.subr.bf16.mxu0 %v10196_v6  ;;  %v15673_v42 = vld [vmem:[#allocation87_spill] sm:$0xff] }
 0x3b3   : > { %7314 = vmatprep.subr.bf16.mxu1 %v10199_v58  ;;  %v13710_v54 = vpop.f32.mrf.mxu0  ;;  %v13712_v17 = vpop.f32.mrf.mxu1  ;;  %6810 = vmatmul.mubr.bf16.gmra.mxu0 %v15672_v2  ;;  %v10208_v53 = vld [vmem:[%s15135_s5 + $0x4ec] ss:$16 sps:$4 sm:$0xff]  }
 0x3b4   : > { %15670 = vst [vmem:[#allocation123_spill] sm:$0xff] %v13710_v54  ;;  %15671 = vst [vmem:[#allocation124_spill] sm:$0xff] %v13712_v17  ;;  %7003 = vmatmul.mubr.bf16.gmra.mxu1 %v13687_v49  ;;  %6819 = vmatprep.mubr.bf16.mxu0 %v15673_v42  ;;  %v4530_v49 = vmax.f32 %v4313_v35, 0.0  ;;  %v4315_v17 = vadd.f32 %v13383_v24, %v4122_v20  ;;  %v15679_v35 = vld [vmem:[#allocation3_spill] sm:$0xff]  ;;  %v4323_v20 = vadd.f32 %v13423_v61, %v4130_v44 }
 0x3b5   : > { %7012 = vmatprep.mubr.bf16.mxu1 %v13701_v60  ;;  %v13724_v6 = vpop.f32.mrf.mxu0  ;;  %v13726_v58 = vpop.f32.mrf.mxu1  ;;  %7122 = vmatpush2.bf16.msra.mxu0 %v10194_v43  ;;  %v10211_v43 = vld [vmem:[%s15135_s5 + $0x6ec] ss:$16 sps:$4 sm:$0xff]   ;;  %v4118_v60 = vadd.f32 %v13350_v47, %v13206_v3  ;;  %v4327_v47 = vadd.f32 %v13452_v16, %v4134_v1 }
 0x3b6   : > { %7315 = vmatpush2.bf16.msra.mxu1 %v10197_v11  ;;  %7123 = vmatprep.subr.bf16.mxu0 %v10202_v48  ;;  %v4513_v11 = vmax.f32 %v4301_v40, 0.0  ;;  %v15676_v48 = vld [vmem:[#allocation5_spill] sm:$0xff]  ;;  %v15680_v24 = vld [vmem:[#allocation43_spill] sm:$0xff] }
 0x3b7   : > { %7316 = vmatprep.subr.bf16.mxu1 %v10205_v10  ;;  %v13744_v42 = vpop.f32.mrf.mxu0  ;;  %v13746_v63 = vpop.f32.mrf.mxu1  ;;  %v13751_v10 = vrot.slane %v5019_v29, %v15676_v48  ;;  %v4311_v52 = vadd.f32 %v13352_v5, %v4118_v60  ;;  %v15681_v16 = vld [vmem:[#allocation89_spill] sm:$0xff]  ;;  %v4554_v60 = vmax.f32 %v4327_v47, 0.0 }
 0x3b8   : > { %15674 = vst [vmem:[#allocation125_spill] sm:$0xff] %v13744_v42  ;;  %15675 = vst [vmem:[#allocation126_spill] sm:$0xff] %v13746_v63  ;;  %v13753_v2 = vpack.c.bf16 %v4521_v62, %v4513_v11  ;;  %v13761_v63 = vpack.c.bf16 %v4538_v38, %v4530_v49  ;;  %v13764_v42 = vrot.slane %v5019_v29, %v15679_v35  ;;  %v4537_v49 = vmax.f32 %v4315_v17, 0.0 }
 0x3b9   : > { %v13756_v54 = vpop.f32.mrf.mxu0  ;;  %v13758_v40 = vpop.f32.mrf.mxu1  ;;  %7124 = vmatpush2.bf16.msra.mxu0 %v10200_v12  ;;  %v4132_v29 = vadd.f32 %v13441_v37, %v13206_v3  ;;  %v4144_v38 = vadd.f32 %v13510_v36, %v13185_v56  ;;  %v4546_v17 = vmax.f32 %v4323_v20, 0.0  ;;  %v4140_v37 = vadd.f32 %v13481_v22, %v13185_v56 }
 0x3ba   : > { %15677 = vst [vmem:[#allocation5_spill] sm:$0xff] %v13753_v2  ;;  %7317 = vmatpush2.bf16.msra.mxu1 %v10203_v39  ;;  %15678 = vst [vmem:[#allocation127_spill] sm:$0xff] %v13761_v63  ;;  %7479 = vmatprep.subr.bf16.mxu0 %v10208_v53  ;;  %v4529_v53 = vmax.f32 %v4311_v52, 0.0 }
 0x3bb   : > { %7672 = vmatprep.subr.bf16.mxu1 %v10211_v43  ;;  %v6355_v62 = vpop.f32.mrf.mxu0  ;;  %v6548_v11 = vpop.f32.mrf.mxu1  ;;  %6820 = vmatmul.mubr.bf16.gmra.mxu0 %v15680_v24  ;;  %v4128_v43 = vadd.f32 %v13410_v15, %v13206_v3  ;;  %v4325_v36 = vadd.f32 %v13443_v26, %v4132_v29  ;;  %v4337_v52 = vadd.f32 %v13512_v30, %v4144_v38  ;;  %v15685_v29 = vld [vmem:[#allocation91_spill] sm:$0xff]  ;;  %v15738_v24 = vld [vmem:[#allocation72_spill] sm:$0xff] }
 0x3bc   : > { %7013 = vmatmul.mubr.bf16.gmra.mxu1 %v13753_v2  ;;  %v6356_v12 = vadd.f32 %v6355_v62, %v13751_v10  ;;  %6829 = vmatprep.mubr.bf16.mxu0 %v15681_v16  ;;  %v13787_v62 = vpack.c.bf16 %v4537_v49, %v4529_v53  ;;  %v13794_v20 = vpack.c.bf16 %v4554_v60, %v4546_v17  ;;  %v10248_v16 = vld [vmem:[%s15135_s5 + $0x408] ss:$16 sps:$4 sm:$0xff]  }
 0x3bd   : > { %7022 = vmatprep.mubr.bf16.mxu1 %v13761_v63  ;;  %v6357_v39 = vpop.f32.mrf.mxu0  ;;  %v6550_v5 = vpop.f32.mrf.mxu1  ;;  %v4321_v22 = vadd.f32 %v13412_v32, %v4128_v43  ;;  %v15684_v63 = vld [vmem:[#allocation88_spill] sm:$0xff]  ;;  %v4333_v26 = vadd.f32 %v13483_v23, %v4140_v37  ;;  %v4553_v60 = vmax.f32 %v4325_v36, 0.0  ;;  %v4142_v32 = vadd.f32 %v13501_v46, %v13206_v3 }
 0x3be   : > { %v13777_v1 = vadd.f32 %v6548_v11, %v6356_v12  ;;  %v6358_v61 = vadd.f32 %v6357_v39, %v13764_v42  ;;  %15682 = vst [vmem:[#allocation3_spill] sm:$0xff] %v13787_v62  ;;  %15683 = vst [vmem:[#allocation128_spill] sm:$0xff] %v13794_v20  ;;  %v4570_v43 = vmax.f32 %v4337_v52, 0.0  ;;  %v4138_v37 = vadd.f32 %v13470_v57, %v13206_v3 }
 0x3bf   : > { %v6359_v44 = vpop.f32.mrf.mxu0  ;;  %v6552_v48 = vpop.f32.mrf.mxu1  ;;  %v4545_v17 = vmax.f32 %v4321_v22, 0.0  ;;  %v4562_v36 = vmax.f32 %v4333_v26, 0.0  ;;  %v4150_v46 = vadd.f32 %v13541_v27, %v13185_v56 }
 0x3c0   : > { %v13784_v35 = vadd.f32 %v6550_v5, %v6358_v61  ;;  %v6360_v47 = vadd.f32 %v6359_v44, %v13751_v10  ;;  %v4154_v44 = vadd.f32 %v13570_v14, %v13185_v56  ;;  %v4335_v14 = vadd.f32 %v13503_v0, %v4142_v32  ;;  %v15690_v32 = vld [vmem:[#allocation93_spill] sm:$0xff] }
 0x3c1   : > { %v6361_v11 = vpop.f32.mrf.mxu0  ;;  %v6554_v12 = vpop.f32.mrf.mxu1  ;;  %v13826_v26 = vpack.c.bf16 %v4570_v43, %v4562_v36  ;;  %v4343_v0 = vadd.f32 %v13543_v25, %v4150_v46 }
 0x3c2   : > { %v13791_v39 = vadd.f32 %v6552_v48, %v6360_v47  ;;  %v6362_v15 = vadd.f32 %v6361_v11, %v13764_v42  ;;  %v4347_v22 = vadd.f32 %v13572_v45, %v4154_v44  ;;  %v4569_v43 = vmax.f32 %v4335_v14, 0.0 }
 0x3c3   : > { %v6365_v5 = vpop.f32.mrf.mxu0  ;;  %v6558_v61 = vpop.f32.mrf.mxu1  ;;  %6830 = vmatmul.mubr.bf16.gmra.mxu0 %v15684_v63  ;;  %15687 = vst [vmem:[#allocation130_spill] sm:$0xff] %v13826_v26  ;;  %v4152_v44 = vadd.f32 %v13561_v19, %v13206_v3  ;;  %v4578_v14 = vmax.f32 %v4343_v0, 0.0  ;;  %v4160_v19 = vadd.f32 %v13601_v41, %v13185_v56 }
 0x3c4   : > { %7023 = vmatmul.mubr.bf16.gmra.mxu1 %v13787_v62  ;;  %v13800_v49 = vadd.f32 %v6554_v12, %v6362_v15  ;;  %v6366_v30 = vadd.f32 %v6365_v5, %v13751_v10  ;;  %6839 = vmatprep.mubr.bf16.mxu0 %v15685_v29  ;;  %v13819_v15 = vpack.c.bf16 %v4553_v60, %v4545_v17  ;;  %v15731_v62 = vld [vmem:[#allocation70_spill] sm:$0xff] }
 0x3c5   : > { %7032 = vmatprep.mubr.bf16.mxu1 %v13794_v20  ;;  %v6367_v38 = vpop.f32.mrf.mxu0  ;;  %v6560_v53 = vpop.f32.mrf.mxu1  ;;  %v15689_v20 = vld [vmem:[#allocation90_spill] sm:$0xff] }
 0x3c6   : > { %v13809_v48 = vadd.f32 %v6558_v61, %v6366_v30  ;;  %v6368_v23 = vadd.f32 %v6367_v38, %v13764_v42  ;;  %15686 = vst [vmem:[#allocation129_spill] sm:$0xff] %v13819_v15  ;;  %v15688_v38 = vld [vmem:[#allocation119_spill] sm:$0xff] }
 0x3c7   : > { %v6369_v47 = vpop.f32.mrf.mxu0  ;;  %v6562_v11 = vpop.f32.mrf.mxu1  ;;  %v4331_v27 = vadd.f32 %v15688_v38, %v4138_v37 }
 0x3c8   : > { %v13816_v12 = vadd.f32 %v6560_v53, %v6368_v23  ;;  %v6370_v52 = vadd.f32 %v6369_v47, %v13751_v10  ;;  %v4586_v47 = vmax.f32 %v4347_v22, 0.0 }
 0x3c9   : > { %v6371_v5 = vpop.f32.mrf.mxu0  ;;  %v6564_v61 = vpop.f32.mrf.mxu1  ;;  %v4561_v46 = vmax.f32 %v4331_v27, 0.0 }
 0x3ca   : > { %v13823_v30 = vadd.f32 %v6562_v11, %v6370_v52  ;;  %v6372_v57 = vadd.f32 %v6371_v5, %v13764_v42  ;;  %v4164_v11 = vadd.f32 %v13630_v34, %v13185_v56  ;;  %v15691_v52 = vld [vmem:[#allocation102_spill] sm:$0xff]  ;;  %v15693_v34 = vld [vmem:[#allocation103_spill] sm:$0xff]  ;;  %v13858_v0 = vpack.c.bf16 %v4586_v47, %v4578_v14 }
 0x3cb   : > { %v6375_v53 = vpop.f32.mrf.mxu0  ;;  %v6568_v23 = vpop.f32.mrf.mxu1  ;;  %6840 = vmatmul.mubr.bf16.gmra.mxu0 %v15689_v20  ;;  %v4148_v5 = vadd.f32 %v15691_v52, %v13206_v3  ;;  %v10236_v20 = vld [vmem:[%s15135_s5 + $0x448] ss:$16 sps:$4 sm:$0xff]  }
 0x3cc   : > { %7033 = vmatmul.mubr.bf16.gmra.mxu1 %v13819_v15  ;;  %v13832_v60 = vadd.f32 %v6564_v61, %v6372_v57  ;;  %v6376_v45 = vadd.f32 %v6375_v53, %v13751_v10  ;;  %6849 = vmatprep.mubr.bf16.mxu0 %v15690_v32  ;;  %v13851_v53 = vpack.c.bf16 %v4569_v43, %v4561_v46  ;;  %v15695_v32 = vld [vmem:[#allocation106_spill] sm:$0xff]  ;;  %v15696_v15 = vld [vmem:[#allocation92_spill] sm:$0xff] }
 0x3cd   : > { %7042 = vmatprep.mubr.bf16.mxu1 %v13826_v26  ;;  %v6377_v17 = vpop.f32.mrf.mxu0  ;;  %v6570_v37 = vpop.f32.mrf.mxu1  ;;  %v4357_v27 = vadd.f32 %v13632_v59, %v4164_v11  ;;  %15694 = vst [vmem:[#allocation102_spill] sm:$0xff] %v13858_v0  ;;  %v4341_v41 = vadd.f32 %v15695_v32, %v4148_v5  ;;  %v4353_v43 = vadd.f32 %v13603_v21, %v4160_v19  ;;  %v15697_v11 = vld [vmem:[#allocation95_spill] sm:$0xff] }
 0x3ce   : > { %v13841_v36 = vadd.f32 %v6568_v23, %v6376_v45  ;;  %v6378_v25 = vadd.f32 %v6377_v17, %v13764_v42  ;;  %15692 = vst [vmem:[#allocation119_spill] sm:$0xff] %v13851_v53  ;;  %v4345_v23 = vadd.f32 %v15693_v34, %v4152_v44  ;;  %v4162_v32 = vadd.f32 %v13621_v7, %v13206_v3 }
 0x3cf   : > { %v6379_v61 = vpop.f32.mrf.mxu0  ;;  %v6572_v57 = vpop.f32.mrf.mxu1  ;;  %v4577_v19 = vmax.f32 %v4341_v41, 0.0  ;;  %v4170_v7 = vadd.f32 %v13661_v55, %v13185_v56 }
 0x3d0   : > { %v13848_v38 = vadd.f32 %v6570_v37, %v6378_v25  ;;  %v6380_v22 = vadd.f32 %v6379_v61, %v13751_v10  ;;  %v4585_v47 = vmax.f32 %v4345_v23, 0.0  ;;  %v4602_v61 = vmax.f32 %v4357_v27, 0.0 }
 0x3d1   : > { %v6381_v45 = vpop.f32.mrf.mxu0  ;;  %v6574_v17 = vpop.f32.mrf.mxu1  ;;  %v4594_v23 = vmax.f32 %v4353_v43, 0.0 }
 0x3d2   : > { %v13855_v26 = vadd.f32 %v6572_v57, %v6380_v22  ;;  %v6382_v52 = vadd.f32 %v6381_v45, %v13764_v42  ;;  %v4174_v57 = vadd.f32 %v13690_v50, %v13185_v56  ;;  %v4158_v22 = vadd.f32 %v13590_v31, %v13206_v3 }
 0x3d3   : > { %v6385_v37 = vpop.f32.mrf.mxu0  ;;  %v6578_v25 = vpop.f32.mrf.mxu1  ;;  %6850 = vmatmul.mubr.bf16.gmra.mxu0 %v15696_v15  ;;  %v4355_v50 = vadd.f32 %v13623_v4, %v4162_v32  ;;  %v13890_v43 = vpack.c.bf16 %v4602_v61, %v4594_v23  ;;  %v4363_v4 = vadd.f32 %v13663_v33, %v4170_v7  ;;  %v15701_v32 = vld [vmem:[#allocation97_spill] sm:$0xff]  ;;  %v4168_v7 = vadd.f32 %v13650_v13, %v13206_v3 }
 0x3d4   : > { %7043 = vmatmul.mubr.bf16.gmra.mxu1 %v13851_v53  ;;  %v13864_v44 = vadd.f32 %v6574_v17, %v6382_v52  ;;  %v6386_v59 = vadd.f32 %v6385_v37, %v13751_v10  ;;  %6859 = vmatprep.mubr.bf16.mxu0 %v15697_v11  ;;  %v13883_v52 = vpack.c.bf16 %v4585_v47, %v4577_v19  ;;  %v15727_v53 = vld [vmem:[#allocation68_spill] sm:$0xff] }
 0x3d5   : > { %7052 = vmatprep.mubr.bf16.mxu1 %v13858_v0  ;;  %v6387_v46 = vpop.f32.mrf.mxu0  ;;  %v6580_v5 = vpop.f32.mrf.mxu1  ;;  %v4367_v41 = vadd.f32 %v13692_v18, %v4174_v57  ;;  %15699 = vst [vmem:[#allocation106_spill] sm:$0xff] %v13890_v43  ;;  %v4351_v55 = vadd.f32 %v13592_v28, %v4158_v22  ;;  %v4601_v61 = vmax.f32 %v4355_v50, 0.0  ;;  %v4172_v28 = vadd.f32 %v13681_v8, %v13206_v3  ;;  %v10224_v0 = vld [vmem:[%s15135_s5 + $0x488] ss:$16 sps:$4 sm:$0xff]  }
 0x3d6   : > { %v13873_v14 = vadd.f32 %v6578_v25, %v6386_v59  ;;  %v6388_v21 = vadd.f32 %v6387_v46, %v13764_v42  ;;  %15698 = vst [vmem:[#allocation103_spill] sm:$0xff] %v13883_v52  ;;  %v4610_v50 = vmax.f32 %v4363_v4, 0.0  ;;  %v4180_v8 = vadd.f32 %v13724_v6, %v13185_v56 }
 0x3d7   : > { %v6389_v34 = vpop.f32.mrf.mxu0  ;;  %v6582_v45 = vpop.f32.mrf.mxu1  ;;  %v4618_v22 = vmax.f32 %v4367_v41, 0.0  ;;  %v4593_v23 = vmax.f32 %v4351_v55, 0.0 }
 0x3d8   : > { %v13880_v17 = vadd.f32 %v6580_v5, %v6388_v21  ;;  %v6390_v27 = vadd.f32 %v6389_v34, %v13751_v10  ;;  %v15700_v21 = vld [vmem:[#allocation94_spill] sm:$0xff]  ;;  %v4184_v34 = vadd.f32 %v13756_v54, %v13185_v56  ;;  %v4365_v54 = vadd.f32 %v13683_v9, %v4172_v28  ;;  %v15705_v28 = vld [vmem:[#allocation99_spill] sm:$0xff] }
 0x3d9   : > { %v6391_v37 = vpop.f32.mrf.mxu0  ;;  %v6584_v25 = vpop.f32.mrf.mxu1  ;;  %v13922_v4 = vpack.c.bf16 %v4618_v22, %v4610_v50  ;;  %v4361_v56 = vadd.f32 %v13652_v51, %v4168_v7  ;;  %v4373_v9 = vadd.f32 %v13726_v58, %v4180_v8  ;;  %v15707_v50 = vld [vmem:[#allocation123_spill] sm:$0xff] }
 0x3da   : > { %v13887_v59 = vadd.f32 %v6582_v45, %v6390_v27  ;;  %v6392_v31 = vadd.f32 %v6391_v37, %v13764_v42  ;;  %v4377_v55 = vadd.f32 %v13758_v40, %v4184_v34  ;;  %v4617_v22 = vmax.f32 %v4365_v54, 0.0  ;;  %v15706_v34 = vld [vmem:[#allocation125_spill] sm:$0xff] }
 0x3db   : > { %v6395_v46 = vpop.f32.mrf.mxu0  ;;  %6860 = vmatmul.mubr.bf16.gmra.mxu0 %v15700_v21  ;;  %15703 = vst [vmem:[#allocation132_spill] sm:$0xff] %v13922_v4  ;;  %v4182_v51 = vadd.f32 %v15706_v34, %v13206_v3  ;;  %v4609_v58 = vmax.f32 %v4361_v56, 0.0  ;;  %v4178_v8 = vadd.f32 %v15707_v50, %v13206_v3  ;;  %v15709_v34 = vld [vmem:[#allocation126_spill] sm:$0xff]  ;;  %v15711_v3 = vld [vmem:[#allocation124_spill] sm:$0xff] }
 0x3dc   : > { %v6588_v5 = vpop.f32.mrf.mxu1  ;;  %7053 = vmatmul.mubr.bf16.gmra.mxu1 %v13883_v52  ;;  %v13896_v47 = vadd.f32 %v6584_v25, %v6392_v31  ;;  %v6396_v18 = vadd.f32 %v6395_v46, %v13751_v10  ;;  %6869 = vmatprep.mubr.bf16.mxu0 %v15701_v32  ;;  %v13915_v31 = vpack.c.bf16 %v4601_v61, %v4593_v23  ;;  %v4634_v7 = vmax.f32 %v4377_v55, 0.0 }
 0x3dd   : > { %7062 = vmatprep.mubr.bf16.mxu1 %v13890_v43  ;;  %v6397_v57 = vpop.f32.mrf.mxu0  ;;  %v4371_v50 = vadd.f32 %v15711_v3, %v4178_v8 }
 0x3de   : > { %v6590_v19 = vpop.f32.mrf.mxu1  ;;  %v13905_v45 = vadd.f32 %v6588_v5, %v6396_v18  ;;  %v6398_v33 = vadd.f32 %v6397_v57, %v13764_v42  ;;  %15702 = vst [vmem:[#allocation131_spill] sm:$0xff] %v13915_v31 }
 0x3df   : > { %v6399_v27 = vpop.f32.mrf.mxu0 }
 0x3e0   : > { %v6592_v37 = vpop.f32.mrf.mxu1  ;;  %v13912_v25 = vadd.f32 %v6590_v19, %v6398_v33  ;;  %v6400_v41 = vadd.f32 %v6399_v27, %v13751_v10  ;;  %v15704_v19 = vld [vmem:[#allocation96_spill] sm:$0xff] }
 0x3e1   : > { %v6401_v46 = vpop.f32.mrf.mxu0 }
 0x3e2   : > { %v6594_v5 = vpop.f32.mrf.mxu1  ;;  %v13919_v18 = vadd.f32 %v6592_v37, %v6400_v41  ;;  %v6402_v13 = vadd.f32 %v6401_v46, %v13764_v42 }
 0x3e3   : > { %v6405_v6 = vpop.f32.mrf.mxu0  ;;  %6870 = vmatmul.mubr.bf16.gmra.mxu0 %v15704_v19 }
 0x3e4   : > { %v6598_v57 = vpop.f32.mrf.mxu1  ;;  %7063 = vmatmul.mubr.bf16.gmra.mxu1 %v13915_v31  ;;  %v13928_v61 = vadd.f32 %v6594_v5, %v6402_v13  ;;  %v6406_v40 = vadd.f32 %v6405_v6, %v13751_v10  ;;  %6879 = vmatprep.mubr.bf16.mxu0 %v15705_v28  ;;  %v4626_v5 = vmax.f32 %v4373_v9, 0.0  ;;  %v13943_v6 = vpack.c.bf16 %v4617_v22, %v4609_v58  ;;  %v15721_v31 = vld [vmem:[#allocation24_spill] sm:$0xff] }
 0x3e5   : > { %7072 = vmatprep.mubr.bf16.mxu1 %v13922_v4  ;;  %v6407_v33 = vpop.f32.mrf.mxu0  ;;  %v4375_v4 = vadd.f32 %v15709_v34, %v4182_v51 }
 0x3e6   : > { %v6600_v23 = vpop.f32.mrf.mxu1  ;;  %v13935_v27 = vadd.f32 %v6598_v57, %v6406_v40  ;;  %v6408_v37 = vadd.f32 %v6407_v33, %v13764_v42  ;;  %15708 = vst [vmem:[#allocation125_spill] sm:$0xff] %v13943_v6  ;;  %v13949_v33 = vpack.c.bf16 %v4634_v7, %v4626_v5  ;;  %v4625_v5 = vmax.f32 %v4371_v50, 0.0 }
 0x3e7   : > { %v6409_v41 = vpop.f32.mrf.mxu0  ;;  %v4633_v58 = vmax.f32 %v4375_v4, 0.0 }
 0x3e8   : > { %v6602_v46 = vpop.f32.mrf.mxu1  ;;  %v13940_v13 = vadd.f32 %v6600_v23, %v6408_v37  ;;  %v6410_v54 = vadd.f32 %v6409_v41, %v13751_v10  ;;  %15710 = vst [vmem:[#allocation123_spill] sm:$0xff] %v13949_v33  ;;  %v15712_v23 = vld [vmem:[#allocation98_spill] sm:$0xff]  ;;  %v15713_v37 = vld [vmem:[#allocation101_spill] sm:$0xff] }
 0x3e9   : > { %v6411_v55 = vpop.f32.mrf.mxu0 }
 0x3ea   : > { %v6604_v57 = vpop.f32.mrf.mxu1  ;;  %v13946_v40 = vadd.f32 %v6602_v46, %v6410_v54  ;;  %v6412_v56 = vadd.f32 %v6411_v55, %v13764_v42 }
 0x3eb   : > { %v6415_v28 = vpop.f32.mrf.mxu0  ;;  %6880 = vmatmul.mubr.bf16.gmra.mxu0 %v15712_v23 }
 0x3ec   : > { %v6608_v9 = vpop.f32.mrf.mxu1  ;;  %7073 = vmatmul.mubr.bf16.gmra.mxu1 %v13943_v6  ;;  %v13954_v22 = vadd.f32 %v6604_v57, %v6412_v56  ;;  %v6416_v51 = vadd.f32 %v6415_v28, %v13751_v10  ;;  %6889 = vmatprep.mubr.bf16.mxu0 %v15713_v37  ;;  %v13965_v56 = vpack.c.bf16 %v4633_v58, %v4625_v5  ;;  %v15717_v58 = vld [vmem:[#allocation22_spill] sm:$0xff] }
 0x3ed   : > { %7082 = vmatprep.mubr.bf16.mxu1 %v13949_v33  ;;  %v6417_v41 = vpop.f32.mrf.mxu0 }
 0x3ee   : > { %v6610_v7 = vpop.f32.mrf.mxu1  ;;  %v13959_v46 = vadd.f32 %v6608_v9, %v6416_v51  ;;  %v6418_v8 = vadd.f32 %v6417_v41, %v13764_v42  ;;  %15714 = vst [vmem:[#allocation126_spill] sm:$0xff] %v13965_v56  ;;  %v15715_v51 = vld [vmem:[#allocation100_spill] sm:$0xff] }
 0x3ef   : > { %v6419_v54 = vpop.f32.mrf.mxu0 }
 0x3f0   : > { %v6612_v34 = vpop.f32.mrf.mxu1  ;;  %v13962_v55 = vadd.f32 %v6610_v7, %v6418_v8  ;;  %v6420_v57 = vadd.f32 %v6419_v54, %v13751_v10  ;;  %v15716_v7 = vld [vmem:[#allocation46_spill] sm:$0xff] }
 0x3f1   : > { %v6421_v28 = vpop.f32.mrf.mxu0 }
 0x3f2   : > { %v6614_v3 = vpop.f32.mrf.mxu1  ;;  %v13967_v37 = vadd.f32 %v6612_v34, %v6420_v57  ;;  %v6422_v4 = vadd.f32 %v6421_v28, %v13764_v42 }
 0x3f3   : > { %v6425_v33 = vpop.f32.mrf.mxu0  ;;  %6890 = vmatmul.mubr.bf16.gmra.mxu0 %v15715_v51  ;;  %v15719_v51 = vld [vmem:[#allocation21_spill] sm:$0xff] }
 0x3f4   : > { %v6618_v9 = vpop.f32.mrf.mxu1  ;;  %7083 = vmatmul.mubr.bf16.gmra.mxu1 %v13965_v56  ;;  %v13972_v50 = vadd.f32 %v6614_v3, %v6422_v4  ;;  %v6426_v41 = vadd.f32 %v6425_v33, %v13751_v10  ;;  %7125 = vmatprep.mubr.bf16.mxu0 %v15716_v7  ;;  %v10206_v33 = vld [vmem:[%s15135_s5 + $0x4e8] ss:$16 sps:$4 sm:$0xff]  }
 0x3f5   : > { %7318 = vmatprep.mubr.bf16.mxu1 %v15717_v58  ;;  %v6427_v8 = vpop.f32.mrf.mxu0  ;;  %v10209_v7 = vld [vmem:[%s15135_s5 + $0x6e8] ss:$16 sps:$4 sm:$0xff]   ;;  %v10214_v58 = vld [vmem:[%s15135_s5 + $0x4cc] ss:$16 sps:$4 sm:$0xff]  }
 0x3f6   : > { %v6620_v5 = vpop.f32.mrf.mxu1  ;;  %v13977_v54 = vadd.f32 %v6618_v9, %v6426_v41  ;;  %v6428_v34 = vadd.f32 %v6427_v8, %v13764_v42  ;;  %v10217_v8 = vld [vmem:[%s15135_s5 + $0x6cc] ss:$16 sps:$4 sm:$0xff]  }
 0x3f7   : > { %v6429_v57 = vpop.f32.mrf.mxu0 }
 0x3f8   : > { %v6622_v28 = vpop.f32.mrf.mxu1  ;;  %v13980_v6 = vadd.f32 %v6620_v5, %v6428_v34  ;;  %v6430_v56 = vadd.f32 %v6429_v57, %v13751_v10  ;;  %v15718_v57 = vld [vmem:[#allocation45_spill] sm:$0xff] }
 0x3f9   : > { %v6431_v3 = vpop.f32.mrf.mxu0 }
 0x3fa   : > { %v6624_v4 = vpop.f32.mrf.mxu1  ;;  %v13989_v9 = vadd.f32 %v6622_v28, %v6430_v56  ;;  %v6432_v41 = vadd.f32 %v6431_v3, %v13764_v42  ;;  %v15720_v28 = vld [vmem:[#allocation48_spill] sm:$0xff]  ;;  %v10212_v3 = vld [vmem:[%s15135_s5 + $0x4c8] ss:$16 sps:$4 sm:$0xff]  }
 0x3fb   : > { %v6435_v5 = vpop.f32.mrf.mxu0  ;;  %7126 = vmatmul.mubr.bf16.vlgmr.msra.gmra.mxu0 %v15718_v57 }
 0x3fc   : > { %v6628_v34 = vpop.f32.mrf.mxu1  ;;  %7319 = vmatmul.mubr.bf16.vlgmr.msra.gmra.mxu1 %v15719_v51  ;;  %v14000_v23 = vadd.f32 %v6624_v4, %v6432_v41  ;;  %v6436_v56 = vadd.f32 %v6435_v5, %v13751_v10  ;;  %7480 = vmatpush1.bf16.msra.mxu0 %v10206_v33  ;;  %v10215_v51 = vld [vmem:[%s15135_s5 + $0x6c8] ss:$16 sps:$4 sm:$0xff]   ;;  %v10220_v4 = vld [vmem:[%s15135_s5 + $0x4ac] ss:$16 sps:$4 sm:$0xff]  }
 0x3fd   : > { %7135 = vmatprep.mubr.bf16.mxu0 %v15720_v28  ;;  %7328 = vmatprep.mubr.bf16.mxu1 %v15721_v31  ;;  %v6437_v19 = vpop.f32.mrf.mxu0  ;;  %v10223_v31 = vld [vmem:[%s15135_s5 + $0x6ac] ss:$16 sps:$4 sm:$0xff]  }
 0x3fe   : > { %v6630_v43 = vpop.f32.mrf.mxu1  ;;  %7673 = vmatpush1.bf16.msra.mxu1 %v10209_v7  ;;  %v14014_v33 = vadd.f32 %v6628_v34, %v6436_v56  ;;  %v6438_v41 = vadd.f32 %v6437_v19, %v13764_v42  ;;  %7481 = vmatprep.subr.bf16.mxu0 %v10214_v58  ;;  %v10218_v19 = vld [vmem:[%s15135_s5 + $0x4a8] ss:$16 sps:$4 sm:$0xff]   ;;  %v10226_v34 = vld [vmem:[%s15135_s5 + $0x48c] ss:$16 sps:$4 sm:$0xff]  }
 0x3ff   : > { %7674 = vmatprep.subr.bf16.mxu1 %v10217_v8  ;;  %v6439_v5 = vpop.f32.mrf.mxu0  ;;  %v10221_v58 = vld [vmem:[%s15135_s5 + $0x6a8] ss:$16 sps:$4 sm:$0xff]   ;;  %v10229_v56 = vld [vmem:[%s15135_s5 + $0x68c] ss:$16 sps:$4 sm:$0xff]  }
 0x400   : > { %v6632_v7 = vpop.f32.mrf.mxu1  ;;  %v14020_v57 = vadd.f32 %v6630_v43, %v6438_v41  ;;  %v6440_v28 = vadd.f32 %v6439_v5, %v13751_v10  ;;  %7482 = vmatpush1.bf16.msra.mxu0 %v10212_v3  ;;  %v15723_v41 = vld [vmem:[#allocation23_spill] sm:$0xff] }
 0x401   : > { %v6441_v32 = vpop.f32.mrf.mxu0  ;;  %7483 = vmatprep.subr.bf16.mxu0 %v10220_v4  ;;  %v15722_v4 = vld [vmem:[#allocation47_spill] sm:$0xff] }
 0x402   : > { %v6634_v52 = vpop.f32.mrf.mxu1  ;;  %7675 = vmatpush1.bf16.msra.mxu1 %v10215_v51  ;;  %v14029_v8 = vadd.f32 %v6632_v7, %v6440_v28  ;;  %v6442_v43 = vadd.f32 %v6441_v32, %v13764_v42  ;;  %v15724_v32 = vld [vmem:[#allocation50_spill] sm:$0xff] }
 0x403   : > { %7676 = vmatprep.subr.bf16.mxu1 %v10223_v31  ;;  %v6445_v3 = vpop.f32.mrf.mxu0  ;;  %7136 = vmatmul.mubr.bf16.gmra.mxu0 %v15722_v4  ;;  %v15725_v31 = vld [vmem:[#allocation69_spill] sm:$0xff] }
 0x404   : > { %v6638_v51 = vpop.f32.mrf.mxu1  ;;  %7329 = vmatmul.mubr.bf16.gmra.mxu1 %v15723_v41  ;;  %v14040_v5 = vadd.f32 %v6634_v52, %v6442_v43  ;;  %v6446_v7 = vadd.f32 %v6445_v3, %v13751_v10  ;;  %7145 = vmatprep.mubr.bf16.mxu0 %v15724_v32  ;;  %v10227_v4 = vld [vmem:[%s15135_s5 + $0x688] ss:$16 sps:$4 sm:$0xff]   ;;  %v10232_v3 = vld [vmem:[%s15135_s5 + $0x46c] ss:$16 sps:$4 sm:$0xff]  }
 0x405   : > { %7338 = vmatprep.mubr.bf16.mxu1 %v15725_v31  ;;  %v6447_v28 = vpop.f32.mrf.mxu0  ;;  %7484 = vmatpush1.bf16.msra.mxu0 %v10218_v19  ;;  %v10235_v19 = vld [vmem:[%s15135_s5 + $0x66c] ss:$16 sps:$4 sm:$0xff]  }
 0x406   : > { %v6640_v21 = vpop.f32.mrf.mxu1  ;;  %7677 = vmatpush1.bf16.msra.mxu1 %v10221_v58  ;;  %v14051_v52 = vadd.f32 %v6638_v51, %v6446_v7  ;;  %v6448_v43 = vadd.f32 %v6447_v28, %v13764_v42  ;;  %7485 = vmatprep.subr.bf16.mxu0 %v10226_v34  ;;  %v10230_v34 = vld [vmem:[%s15135_s5 + $0x468] ss:$16 sps:$4 sm:$0xff]  }
 0x407   : > { %7678 = vmatprep.subr.bf16.mxu1 %v10229_v56  ;;  %v6449_v58 = vpop.f32.mrf.mxu0  ;;  %v10233_v56 = vld [vmem:[%s15135_s5 + $0x668] ss:$16 sps:$4 sm:$0xff]  }
 0x408   : > { %v6642_v41 = vpop.f32.mrf.mxu1  ;;  %v14060_v32 = vadd.f32 %v6640_v21, %v6448_v43  ;;  %v6450_v31 = vadd.f32 %v6449_v58, %v13751_v10  ;;  %v10238_v21 = vld [vmem:[%s15135_s5 + $0x44c] ss:$16 sps:$4 sm:$0xff]  }
 0x409   : > { %v6451_v51 = vpop.f32.mrf.mxu0  ;;  %7486 = vmatpush1.bf16.msra.mxu0 %v10224_v0  ;;  %v10241_v0 = vld [vmem:[%s15135_s5 + $0x64c] ss:$16 sps:$4 sm:$0xff]  }
 0x40a   : > { %v6644_v7 = vpop.f32.mrf.mxu1  ;;  %7679 = vmatpush1.bf16.msra.mxu1 %v10227_v4  ;;  %v14069_v28 = vadd.f32 %v6642_v41, %v6450_v31  ;;  %v6452_v11 = vadd.f32 %v6451_v51, %v13764_v42  ;;  %7487 = vmatprep.subr.bf16.mxu0 %v10232_v3  ;;  %v15726_v58 = vld [vmem:[#allocation49_spill] sm:$0xff]  ;;  %v15728_v3 = vld [vmem:[#allocation52_spill] sm:$0xff] }
 0x40b   : > { %7680 = vmatprep.subr.bf16.mxu1 %v10235_v19  ;;  %v6455_v4 = vpop.f32.mrf.mxu0  ;;  %7146 = vmatmul.mubr.bf16.gmra.mxu0 %v15726_v58  ;;  %v15729_v19 = vld [vmem:[#allocation71_spill] sm:$0xff] }
 0x40c   : > { %v6648_v43 = vpop.f32.mrf.mxu1  ;;  %7339 = vmatmul.mubr.bf16.gmra.mxu1 %v15727_v53  ;;  %v14080_v41 = vadd.f32 %v6644_v7, %v6452_v11  ;;  %v6456_v31 = vadd.f32 %v6455_v4, %v13751_v10  ;;  %7155 = vmatprep.mubr.bf16.mxu0 %v15728_v3  ;;  %v10239_v53 = vld [vmem:[%s15135_s5 + $0x648] ss:$16 sps:$4 sm:$0xff]   ;;  %v10244_v4 = vld [vmem:[%s15135_s5 + $0x42c] ss:$16 sps:$4 sm:$0xff]  }
 0x40d   : > { %7348 = vmatprep.mubr.bf16.mxu1 %v15729_v19  ;;  %v6457_v51 = vpop.f32.mrf.mxu0  ;;  %7488 = vmatpush1.bf16.msra.mxu0 %v10230_v34  ;;  %v10247_v34 = vld [vmem:[%s15135_s5 + $0x62c] ss:$16 sps:$4 sm:$0xff]  }
 0x40e   : > { %v6650_v15 = vpop.f32.mrf.mxu1  ;;  %7681 = vmatpush1.bf16.msra.mxu1 %v10233_v56  ;;  %v14091_v11 = vadd.f32 %v6648_v43, %v6456_v31  ;;  %v6458_v7 = vadd.f32 %v6457_v51, %v13764_v42  ;;  %7489 = vmatprep.subr.bf16.mxu0 %v10238_v21  ;;  %v10242_v21 = vld [vmem:[%s15135_s5 + $0x428] ss:$16 sps:$4 sm:$0xff]  }
 0x40f   : > { %7682 = vmatprep.subr.bf16.mxu1 %v10241_v0  ;;  %v6459_v56 = vpop.f32.mrf.mxu0  ;;  %v10245_v0 = vld [vmem:[%s15135_s5 + $0x628] ss:$16 sps:$4 sm:$0xff]  }
 0x410   : > { %v6652_v58 = vpop.f32.mrf.mxu1  ;;  %v14100_v3 = vadd.f32 %v6650_v15, %v6458_v7  ;;  %v6460_v19 = vadd.f32 %v6459_v56, %v13751_v10  ;;  %v10250_v15 = vld [vmem:[%s15135_s5 + $0x40c] ss:$16 sps:$4 sm:$0xff]  }
 0x411   : > { %v6461_v43 = vpop.f32.mrf.mxu0  ;;  %7490 = vmatpush1.bf16.msra.mxu0 %v10236_v20  ;;  %v10253_v20 = vld [vmem:[%s15135_s5 + $0x60c] ss:$16 sps:$4 sm:$0xff]  }
 0x412   : > { %v6654_v31 = vpop.f32.mrf.mxu1  ;;  %7683 = vmatpush1.bf16.msra.mxu1 %v10239_v53  ;;  %v14109_v51 = vadd.f32 %v6652_v58, %v6460_v19  ;;  %v6462_v29 = vadd.f32 %v6461_v43, %v13764_v42  ;;  %7491 = vmatprep.subr.bf16.mxu0 %v10244_v4  ;;  %v15730_v56 = vld [vmem:[#allocation51_spill] sm:$0xff]  ;;  %v15732_v4 = vld [vmem:[#allocation41_spill] sm:$0xff] }
 0x413   : > { %7684 = vmatprep.subr.bf16.mxu1 %v10247_v34  ;;  %v6465_v53 = vpop.f32.mrf.mxu0  ;;  %7156 = vmatmul.mubr.bf16.gmra.mxu0 %v15730_v56  ;;  %v15733_v34 = vld [vmem:[#allocation73_spill] sm:$0xff] }
 0x414   : > { %v6658_v7 = vpop.f32.mrf.mxu1  ;;  %7349 = vmatmul.mubr.bf16.gmra.mxu1 %v15731_v62  ;;  %v14120_v58 = vadd.f32 %v6654_v31, %v6462_v29  ;;  %v6466_v19 = vadd.f32 %v6465_v53, %v13751_v10  ;;  %7165 = vmatprep.mubr.bf16.mxu0 %v15732_v4  ;;  %v10251_v62 = vld [vmem:[%s15135_s5 + $0x608] ss:$16 sps:$4 sm:$0xff]   ;;  %v10256_v53 = vld [vmem:[%s15135_s5 + $0x5ec] ss:$16 sps:$4 sm:$0xff]  }
 0x415   : > { %7358 = vmatprep.mubr.bf16.mxu1 %v15733_v34  ;;  %v6467_v43 = vpop.f32.mrf.mxu0  ;;  %7492 = vmatpush1.bf16.msra.mxu0 %v10242_v21  ;;  %v10259_v21 = vld [vmem:[%s15135_s5 + $0x7ec] ss:$16 sps:$4 sm:$0xff]  }
 0x416   : > { %v6660_v63 = vpop.f32.mrf.mxu1  ;;  %7685 = vmatpush1.bf16.msra.mxu1 %v10245_v0  ;;  %v14131_v29 = vadd.f32 %v6658_v7, %v6466_v19  ;;  %v6468_v31 = vadd.f32 %v6467_v43, %v13764_v42  ;;  %7493 = vmatprep.subr.bf16.mxu0 %v10250_v15  ;;  %v10254_v15 = vld [vmem:[%s15135_s5 + $0x5e8] ss:$16 sps:$4 sm:$0xff]  }
 0x417   : > { %7686 = vmatprep.subr.bf16.mxu1 %v10253_v20  ;;  %v6469_v0 = vpop.f32.mrf.mxu0  ;;  %v10257_v20 = vld [vmem:[%s15135_s5 + $0x7e8] ss:$16 sps:$4 sm:$0xff]  }
 0x418   : > { %15734 = vst [vmem:[#allocation124_spill] sm:$0xff] %v14131_v29  ;;  %v6662_v56 = vpop.f32.mrf.mxu1  ;;  %v14140_v4 = vadd.f32 %v6660_v63, %v6468_v31  ;;  %v6470_v34 = vadd.f32 %v6469_v0, %v13751_v10  ;;  %v10262_v63 = vld [vmem:[%s15135_s5 + $0x5cc] ss:$16 sps:$4 sm:$0xff]   ;;  %v15737_v0 = vld [vmem:[#allocation40_spill] sm:$0xff] }
 0x419   : > { %v6471_v7 = vpop.f32.mrf.mxu0  ;;  %7494 = vmatpush1.bf16.msra.mxu0 %v10248_v16  ;;  %v10265_v16 = vld [vmem:[%s15135_s5 + $0x7cc] ss:$16 sps:$4 sm:$0xff]  }
 0x41a   : > { %15735 = vst [vmem:[#allocation46_spill] sm:$0xff] %v14140_v4  ;;  %v6664_v19 = vpop.f32.mrf.mxu1  ;;  %7687 = vmatpush1.bf16.msra.mxu1 %v10251_v62  ;;  %v14149_v43 = vadd.f32 %v6662_v56, %v6470_v34  ;;  %v6472_v2 = vadd.f32 %v6471_v7, %v13764_v42  ;;  %7495 = vmatprep.subr.bf16.mxu0 %v10256_v53  ;;  %v15740_v53 = vld [vmem:[#allocation54_spill] sm:$0xff]  ;;  %v10260_v4 = vld [vmem:[%s15135_s5 + $0x5c8] ss:$16 sps:$4 sm:$0xff]  }
 0x41b   : > { %7688 = vmatprep.subr.bf16.mxu1 %v10259_v21  ;;  %v6475_v62 = vpop.f32.mrf.mxu0  ;;  %7166 = vmatmul.mubr.bf16.gmra.mxu0 %v15737_v0  ;;  %v15741_v21 = vld [vmem:[#allocation75_spill] sm:$0xff] }
 0x41c   : > { %15736 = vst [vmem:[#allocation22_spill] sm:$0xff] %v14149_v43  ;;  %v6668_v31 = vpop.f32.mrf.mxu1  ;;  %7359 = vmatmul.mubr.bf16.gmra.mxu1 %v15738_v24  ;;  %v14160_v56 = vadd.f32 %v6664_v19, %v6472_v2  ;;  %v6476_v34 = vadd.f32 %v6475_v62, %v13751_v10  ;;  %7175 = vmatprep.mubr.bf16.mxu0 %v15740_v53  ;;  %v10263_v24 = vld [vmem:[%s15135_s5 + $0x7c8] ss:$16 sps:$4 sm:$0xff]   ;;  %v10268_v62 = vld [vmem:[%s15135_s5 + $0x5ac] ss:$16 sps:$4 sm:$0xff]  }
 0x41d   : > { %7368 = vmatprep.mubr.bf16.mxu1 %v15741_v21  ;;  %v6477_v7 = vpop.f32.mrf.mxu0  ;;  %7496 = vmatpush2.bf16.msra.mxu0 %v10254_v15  ;;  %v10271_v15 = vld [vmem:[%s15135_s5 + $0x7ac] ss:$16 sps:$4 sm:$0xff]  }
 0x41e   : > { %15739 = vst [vmem:[#allocation45_spill] sm:$0xff] %v14160_v56  ;;  %v6670_v43 = vpop.f32.mrf.mxu1  ;;  %7689 = vmatpush2.bf16.msra.mxu1 %v10257_v20  ;;  %v14171_v2 = vadd.f32 %v6668_v31, %v6476_v34  ;;  %v6478_v19 = vadd.f32 %v6477_v7, %v13764_v42  ;;  %7497 = vmatprep.subr.bf16.mxu0 %v10262_v63  ;;  %v10266_v63 = vld [vmem:[%s15135_s5 + $0x5a8] ss:$16 sps:$4 sm:$0xff]  }
 0x41f   : > { %7690 = vmatprep.subr.bf16.mxu1 %v10265_v16  ;;  %v6479_v20 = vpop.f32.mrf.mxu0  ;;  %v10269_v16 = vld [vmem:[%s15135_s5 + $0x7a8] ss:$16 sps:$4 sm:$0xff]  }
 0x420   : > { %15742 = vst [vmem:[#allocation21_spill] sm:$0xff] %v14171_v2  ;;  %v6672_v0 = vpop.f32.mrf.mxu1  ;;  %v14180_v53 = vadd.f32 %v6670_v43, %v6478_v19  ;;  %v6480_v21 = vadd.f32 %v6479_v20, %v13751_v10  ;;  %v10274_v43 = vld [vmem:[%s15135_s5 + $0x58c] ss:$16 sps:$4 sm:$0xff]   ;;  %v10272_v56 = vld [vmem:[%s15135_s5 + $0x588] ss:$16 sps:$4 sm:$0xff]  }
 0x421   : > { %v6481_v31 = vpop.f32.mrf.mxu0  ;;  %7498 = vmatpush2.bf16.msra.mxu0 %v10260_v4  ;;  %v10277_v4 = vld [vmem:[%s15135_s5 + $0x78c] ss:$16 sps:$4 sm:$0xff]  }
 0x422   : > { %15743 = vst [vmem:[#allocation48_spill] sm:$0xff] %v14180_v53  ;;  %v6674_v34 = vpop.f32.mrf.mxu1  ;;  %7691 = vmatpush2.bf16.msra.mxu1 %v10263_v24  ;;  %v14189_v7 = vadd.f32 %v6672_v0, %v6480_v21  ;;  %v6482_v2 = vadd.f32 %v6481_v31, %v13764_v42  ;;  %7499 = vmatprep.subr.bf16.mxu0 %v10268_v62  ;;  %v15745_v20 = vld [vmem:[#allocation53_spill] sm:$0xff]  ;;  %v15746_v53 = vld [vmem:[#allocation74_spill] sm:$0xff]  ;;  %v15748_v62 = vld [vmem:[#allocation56_spill] sm:$0xff] }
 0x423   : > { %7692 = vmatprep.subr.bf16.mxu1 %v10271_v15  ;;  %v6485_v24 = vpop.f32.mrf.mxu0  ;;  %7176 = vmatmul.mubr.bf16.gmra.mxu0 %v15745_v20  ;;  %v15749_v15 = vld [vmem:[#allocation7_spill] sm:$0xff] }
 0x424   : > { %15744 = vst [vmem:[#allocation24_spill] sm:$0xff] %v14189_v7  ;;  %v6678_v19 = vpop.f32.mrf.mxu1  ;;  %7369 = vmatmul.mubr.bf16.gmra.mxu1 %v15746_v53  ;;  %v14200_v0 = vadd.f32 %v6674_v34, %v6482_v2  ;;  %v6486_v21 = vadd.f32 %v6485_v24, %v13751_v10  ;;  %7185 = vmatprep.mubr.bf16.mxu0 %v15748_v62  ;;  %v10275_v53 = vld [vmem:[%s15135_s5 + $0x788] ss:$16 sps:$4 sm:$0xff]   ;;  %v10280_v24 = vld [vmem:[%s15135_s5 + $0x56c] ss:$16 sps:$4 sm:$0xff]  }
 0x425   : > { %7378 = vmatprep.mubr.bf16.mxu1 %v15749_v15  ;;  %v6487_v31 = vpop.f32.mrf.mxu0  ;;  %7500 = vmatpush2.bf16.msra.mxu0 %v10266_v63  ;;  %v10283_v63 = vld [vmem:[%s15135_s5 + $0x76c] ss:$16 sps:$4 sm:$0xff]  }
 0x426   : > { %15747 = vst [vmem:[#allocation47_spill] sm:$0xff] %v14200_v0  ;;  %v6680_v7 = vpop.f32.mrf.mxu1  ;;  %7693 = vmatpush2.bf16.msra.mxu1 %v10269_v16  ;;  %v14211_v2 = vadd.f32 %v6678_v19, %v6486_v21  ;;  %v6488_v34 = vadd.f32 %v6487_v31, %v13764_v42  ;;  %7501 = vmatprep.subr.bf16.mxu0 %v10274_v43  ;;  %v10278_v43 = vld [vmem:[%s15135_s5 + $0x568] ss:$16 sps:$4 sm:$0xff]  }
 0x427   : > { %7694 = vmatprep.subr.bf16.mxu1 %v10277_v4  ;;  %v6489_v16 = vpop.f32.mrf.mxu0  ;;  %v10281_v4 = vld [vmem:[%s15135_s5 + $0x768] ss:$16 sps:$4 sm:$0xff]  }
 0x428   : > { %15750 = vst [vmem:[#allocation23_spill] sm:$0xff] %v14211_v2  ;;  %v6682_v20 = vpop.f32.mrf.mxu1  ;;  %v14220_v62 = vadd.f32 %v6680_v7, %v6488_v34  ;;  %v6490_v15 = vadd.f32 %v6489_v16, %v13751_v10  ;;  %v10286_v7 = vld [vmem:[%s15135_s5 + $0x54c] ss:$16 sps:$4 sm:$0xff]   ;;  %v10284_v0 = vld [vmem:[%s15135_s5 + $0x548] ss:$16 sps:$4 sm:$0xff]  }
 0x429   : > { %v6491_v19 = vpop.f32.mrf.mxu0  ;;  %7502 = vmatpush2.bf16.msra.mxu0 %v10272_v56  ;;  %v10289_v56 = vld [vmem:[%s15135_s5 + $0x74c] ss:$16 sps:$4 sm:$0xff]  }
 0x42a   : > { %15751 = vst [vmem:[#allocation50_spill] sm:$0xff] %v14220_v62  ;;  %v6684_v21 = vpop.f32.mrf.mxu1  ;;  %7695 = vmatpush2.bf16.msra.mxu1 %v10275_v53  ;;  %v14229_v31 = vadd.f32 %v6682_v20, %v6490_v15  ;;  %v6492_v2 = vadd.f32 %v6491_v19, %v13764_v42  ;;  %7503 = vmatprep.subr.bf16.mxu0 %v10280_v24  ;;  %v15753_v16 = vld [vmem:[#allocation55_spill] sm:$0xff]  ;;  %v15754_v62 = vld [vmem:[#allocation44_spill] sm:$0xff]  ;;  %v15756_v24 = vld [vmem:[#allocation58_spill] sm:$0xff] }
 0x42b   : > { %7696 = vmatprep.subr.bf16.mxu1 %v10283_v63  ;;  %v6495_v53 = vpop.f32.mrf.mxu0  ;;  %7186 = vmatmul.mubr.bf16.gmra.mxu0 %v15753_v16  ;;  %v15757_v63 = vld [vmem:[#allocation9_spill] sm:$0xff] }
 0x42c   : > { %15752 = vst [vmem:[#allocation69_spill] sm:$0xff] %v14229_v31  ;;  %v6688_v34 = vpop.f32.mrf.mxu1  ;;  %7379 = vmatmul.mubr.bf16.gmra.mxu1 %v15754_v62  ;;  %v14240_v20 = vadd.f32 %v6684_v21, %v6492_v2  ;;  %v6496_v15 = vadd.f32 %v6495_v53, %v13751_v10  ;;  %7195 = vmatprep.mubr.bf16.mxu0 %v15756_v24  ;;  %v10287_v62 = vld [vmem:[%s15135_s5 + $0x748] ss:$16 sps:$4 sm:$0xff]   ;;  %v10292_v53 = vld [vmem:[%s15135_s5 + $0x52c] ss:$16 sps:$4 sm:$0xff]  }
 0x42d   : > { %7388 = vmatprep.mubr.bf16.mxu1 %v15757_v63  ;;  %v6497_v19 = vpop.f32.mrf.mxu0  ;;  %7504 = vmatpush2.bf16.msra.mxu0 %v10278_v43  ;;  %v10295_v43 = vld [vmem:[%s15135_s5 + $0x72c] ss:$16 sps:$4 sm:$0xff]  }
 0x42e   : > { %15755 = vst [vmem:[#allocation49_spill] sm:$0xff] %v14240_v20  ;;  %v6690_v31 = vpop.f32.mrf.mxu1  ;;  %7697 = vmatpush2.bf16.msra.mxu1 %v10281_v4  ;;  %v14251_v2 = vadd.f32 %v6688_v34, %v6496_v15  ;;  %v6498_v21 = vadd.f32 %v6497_v19, %v13764_v42  ;;  %7505 = vmatprep.subr.bf16.mxu0 %v10286_v7  ;;  %v10290_v7 = vld [vmem:[%s15135_s5 + $0x528] ss:$16 sps:$4 sm:$0xff]  }
 0x42f   : > { %7698 = vmatprep.subr.bf16.mxu1 %v10289_v56  ;;  %v6499_v4 = vpop.f32.mrf.mxu0  ;;  %v10293_v56 = vld [vmem:[%s15135_s5 + $0x728] ss:$16 sps:$4 sm:$0xff]  }
 0x430   : > { %15758 = vst [vmem:[#allocation68_spill] sm:$0xff] %v14251_v2  ;;  %v6692_v16 = vpop.f32.mrf.mxu1  ;;  %v14260_v24 = vadd.f32 %v6690_v31, %v6498_v21  ;;  %v6500_v63 = vadd.f32 %v6499_v4, %v13751_v10  ;;  %v10298_v31 = vld [vmem:[%s15135_s5 + $0x50c] ss:$16 sps:$4 sm:$0xff]   ;;  %v10296_v20 = vld [vmem:[%s15135_s5 + $0x508] ss:$16 sps:$4 sm:$0xff]  }
 0x431   : > { %v6501_v34 = vpop.f32.mrf.mxu0  ;;  %7506 = vmatpush2.bf16.msra.mxu0 %v10284_v0  ;;  %v10301_v0 = vld [vmem:[%s15135_s5 + $0x70c] ss:$16 sps:$4 sm:$0xff]  }
 0x432   : > { %15759 = vst [vmem:[#allocation52_spill] sm:$0xff] %v14260_v24  ;;  %v6694_v15 = vpop.f32.mrf.mxu1  ;;  %7699 = vmatpush2.bf16.msra.mxu1 %v10287_v62  ;;  %v14269_v19 = vadd.f32 %v6692_v16, %v6500_v63  ;;  %v6502_v2 = vadd.f32 %v6501_v34, %v13764_v42  ;;  %7507 = vmatprep.subr.bf16.mxu0 %v10292_v53  ;;  %v15761_v4 = vld [vmem:[#allocation57_spill] sm:$0xff]  ;;  %v15762_v24 = vld [vmem:[#allocation8_spill] sm:$0xff] }
 0x433   : > { %7700 = vmatprep.subr.bf16.mxu1 %v10295_v43  ;;  %v6505_v62 = vpop.f32.mrf.mxu0  ;;  %7196 = vmatmul.mubr.bf16.gmra.mxu0 %v15761_v4  ;;  %v15764_v53 = vld [vmem:[#allocation60_spill] sm:$0xff]  ;;  %v15765_v43 = vld [vmem:[#allocation77_spill] sm:$0xff] }
 0x434   : > { %15760 = vst [vmem:[#allocation71_spill] sm:$0xff] %v14269_v19  ;;  %v6698_v21 = vpop.f32.mrf.mxu1  ;;  %7389 = vmatmul.mubr.bf16.gmra.mxu1 %v15762_v24  ;;  %v14280_v16 = vadd.f32 %v6694_v15, %v6502_v2  ;;  %v6506_v63 = vadd.f32 %v6505_v62, %v13751_v10  ;;  %7205 = vmatprep.mubr.bf16.mxu0 %v15764_v53  ;;  %v10299_v24 = vld [vmem:[%s15135_s5 + $0x708] ss:$16 sps:$4 sm:$0xff]  }
 0x435   : > { %7398 = vmatprep.mubr.bf16.mxu1 %v15765_v43  ;;  %v6507_v34 = vpop.f32.mrf.mxu0  ;;  %7508 = vmatpush2.bf16.msra.mxu0 %v10290_v7 }
 0x436   : > { %15763 = vst [vmem:[#allocation51_spill] sm:$0xff] %v14280_v16  ;;  %v6700_v19 = vpop.f32.mrf.mxu1  ;;  %7701 = vmatpush2.bf16.msra.mxu1 %v10293_v56  ;;  %v14291_v2 = vadd.f32 %v6698_v21, %v6506_v63  ;;  %v6508_v15 = vadd.f32 %v6507_v34, %v13764_v42  ;;  %7509 = vmatprep.subr.bf16.mxu0 %v10298_v31  ;;  %v15768_v31 = vld [vmem:[#allocation76_spill] sm:$0xff]  ;;  %v15770_v34 = vld [vmem:[#allocation62_spill] sm:$0xff] }
 0x437   : > { %7702 = vmatprep.subr.bf16.mxu1 %v10301_v0  ;;  %v6509_v62 = vpop.f32.mrf.mxu0 }
 0x438   : > { %15766 = vst [vmem:[#allocation70_spill] sm:$0xff] %v14291_v2  ;;  %v6702_v4 = vpop.f32.mrf.mxu1  ;;  %v14294_v53 = vadd.f32 %v6700_v19, %v6508_v15  ;;  %v6510_v7 = vadd.f32 %v6509_v62, %v13751_v10  ;;  %v15767_v2 = vld [vmem:[#allocation59_spill] sm:$0xff] }
 0x439   : > { %v6511_v56 = vpop.f32.mrf.mxu0  ;;  %7510 = vmatpush2.bf16.msra.mxu0 %v10296_v20  ;;  %v15771_v10 = vld [vmem:[#allocation79_spill] sm:$0xff] }
 0x43a   : > { %v6704_v43 = vpop.f32.mrf.mxu1  ;;  %7703 = vmatpush2.bf16.msra.mxu1 %v10299_v24  ;;  %v14297_v16 = vadd.f32 %v6702_v4, %v6510_v7  ;;  %v6512_v29 = vadd.f32 %v6511_v56, %v13764_v42 }
 0x43b   : > { %v6741_v21 = vpop.f32.mrf.mxu0  ;;  %7206 = vmatmul.mubr.bf16.gmra.mxu0 %v15767_v2 }
 0x43c   : > { %v6934_v63 = vpop.f32.mrf.mxu1  ;;  %7399 = vmatmul.mubr.bf16.gmra.mxu1 %v15768_v31  ;;  %v14302_v0 = vadd.f32 %v6704_v43, %v6512_v29  ;;  %v6742_v19 = vadd.f32 %v6741_v21, %v13777_v1  ;;  %7215 = vmatprep.mubr.bf16.mxu0 %v15770_v34  ;;  %v15772_v34 = vld [vmem:[#allocation61_spill] sm:$0xff] }
 0x43d   : > { %7408 = vmatprep.mubr.bf16.mxu1 %v15771_v10  ;;  %v6743_v20 = vpop.f32.mrf.mxu0  ;;  %v15773_v10 = vld [vmem:[#allocation78_spill] sm:$0xff] }
 0x43e   : > { %15769 = vst [vmem:[#allocation41_spill] sm:$0xff] %v14302_v0  ;;  %v6936_v24 = vpop.f32.mrf.mxu1  ;;  %v6935_v15 = vadd.f32 %v6934_v63, %v6742_v19  ;;  %v6744_v62 = vadd.f32 %v6743_v20, %v13784_v35  ;;  %v15774_v20 = vld [vmem:[#allocation64_spill] sm:$0xff] }
 0x43f   : > { %v6745_v42 = vpop.f32.mrf.mxu0 }
 0x440   : > { %v6938_v4 = vpop.f32.mrf.mxu1  ;;  %v6937_v7 = vadd.f32 %v6936_v24, %v6744_v62  ;;  %v6746_v2 = vadd.f32 %v6745_v42, %v13791_v39  ;;  %v7865_v0 = vmax.f32 %v6935_v15, 0.0  ;;  %v15775_v24 = vld [vmem:[#allocation81_spill] sm:$0xff] }
 0x441   : > { %v6747_v56 = vpop.f32.mrf.mxu0 }
 0x442   : > { %v6940_v31 = vpop.f32.mrf.mxu1  ;;  %v6939_v29 = vadd.f32 %v6938_v4, %v6746_v2  ;;  %v6748_v43 = vadd.f32 %v6747_v56, %v13800_v49  ;;  %v7866_v39 = vmax.f32 %v6937_v7, 0.0 }
 0x443   : > { %v6751_v1 = vpop.f32.mrf.mxu0  ;;  %7216 = vmatmul.mubr.bf16.gmra.mxu0 %v15772_v34 }
 0x444   : > { %v6944_v21 = vpop.f32.mrf.mxu1  ;;  %7409 = vmatmul.mubr.bf16.gmra.mxu1 %v15773_v10  ;;  %v7869_v63 = vmax.f32 %v6939_v29, 0.0  ;;  %v6941_v19 = vadd.f32 %v6940_v31, %v6748_v43  ;;  %v6752_v35 = vadd.f32 %v6751_v1, %v13809_v48  ;;  %7225 = vmatprep.mubr.bf16.mxu0 %v15774_v20 }
 0x445   : > { %7418 = vmatprep.mubr.bf16.mxu1 %v15775_v24  ;;  %v6753_v62 = vpop.f32.mrf.mxu0 }
 0x446   : > { %v6946_v42 = vpop.f32.mrf.mxu1  ;;  %v14315_v4 = vpack.c.bf16 %v7869_v63, %v7865_v0  ;;  %v7870_v49 = vmax.f32 %v6941_v19, 0.0  ;;  %v6945_v2 = vadd.f32 %v6944_v21, %v6752_v35  ;;  %v6754_v56 = vadd.f32 %v6753_v62, %v13816_v12  ;;  %v10302_v0 = vld [vmem:[%s15137_s7 + $0x78] sm:$0xff]   ;;  %v15776_v19 = vld [vmem:[#allocation63_spill] sm:$0xff]  ;;  %v15777_v12 = vld [vmem:[#allocation80_spill] sm:$0xff] }
 0x447   : > { %v6755_v34 = vpop.f32.mrf.mxu0  ;;  %v15779_v62 = vld [vmem:[#allocation83_spill] sm:$0xff]  ;;  %9621 = vmatprep.subr.bf16.mxu0 %v10302_v0 }
 0x448   : > { %v6948_v10 = vpop.f32.mrf.mxu1  ;;  %v6947_v15 = vadd.f32 %v6946_v42, %v6754_v56  ;;  %v6756_v31 = vadd.f32 %v6755_v34, %v13823_v30  ;;  %v14319_v29 = vpack.c.bf16 %v7870_v49, %v7866_v39  ;;  %v7873_v35 = vmax.f32 %v6945_v2, 0.0  ;;  %v15778_v39 = vld [vmem:[#allocation66_spill] sm:$0xff] }
 0x449   : > { %v6757_v48 = vpop.f32.mrf.mxu0 }
 0x44a   : > { %v6950_v43 = vpop.f32.mrf.mxu1  ;;  %v6949_v1 = vadd.f32 %v6948_v10, %v6756_v31  ;;  %v6758_v7 = vadd.f32 %v6757_v48, %v13832_v60  ;;  %v10304_v60 = vld [vmem:[%s15137_s7 + $0xf8] sm:$0xff]   ;;  %v7874_v42 = vmax.f32 %v6947_v15, 0.0 }
 0x44b   : > { %v6761_v63 = vpop.f32.mrf.mxu0  ;;  %7226 = vmatmul.mubr.bf16.gmra.mxu0 %v15776_v19  ;;  %9733 = vmatprep.subr.bf16.mxu1 %v10304_v60 }
 0x44c   : > { %v6954_v21 = vpop.f32.mrf.mxu1  ;;  %7419 = vmatmul.mubr.bf16.gmra.mxu1 %v15777_v12  ;;  %v7877_v20 = vmax.f32 %v6949_v1, 0.0  ;;  %v6951_v30 = vadd.f32 %v6950_v43, %v6758_v7  ;;  %v6762_v24 = vadd.f32 %v6761_v63, %v13841_v36  ;;  %7235 = vmatprep.mubr.bf16.mxu0 %v15778_v39 }
 0x44d   : > { %7428 = vmatprep.mubr.bf16.mxu1 %v15779_v62  ;;  %v6763_v49 = vpop.f32.mrf.mxu0  ;;  %v15782_v62 = vld [vmem:[#allocation12_spill] sm:$0xff] }
 0x44e   : > { %v6956_v56 = vpop.f32.mrf.mxu1  ;;  %v14333_v34 = vpack.c.bf16 %v7877_v20, %v7873_v35  ;;  %v7878_v10 = vmax.f32 %v6951_v30, 0.0  ;;  %v6955_v2 = vadd.f32 %v6954_v21, %v6762_v24  ;;  %v6764_v31 = vadd.f32 %v6763_v49, %v13848_v38  ;;  %v15780_v20 = vld [vmem:[#allocation65_spill] sm:$0xff]  ;;  %v15781_v21 = vld [vmem:[#allocation82_spill] sm:$0xff] }
 0x44f   : > { %v6765_v36 = vpop.f32.mrf.mxu0 }
 0x450   : > { %v6958_v48 = vpop.f32.mrf.mxu1  ;;  %v6957_v43 = vadd.f32 %v6956_v56, %v6764_v31  ;;  %v6766_v1 = vadd.f32 %v6765_v36, %v13855_v26  ;;  %v14337_v7 = vpack.c.bf16 %v7878_v10, %v7874_v42  ;;  %v7881_v38 = vmax.f32 %v6955_v2, 0.0  ;;  %v15783_v26 = vld [vmem:[#allocation13_spill] sm:$0xff] }
 0x451   : > { %v6767_v63 = vpop.f32.mrf.mxu0 }
 0x452   : > { %v6960_v19 = vpop.f32.mrf.mxu1  ;;  %v6959_v15 = vadd.f32 %v6958_v48, %v6766_v1  ;;  %v6768_v12 = vadd.f32 %v6767_v63, %v13864_v44  ;;  %v7882_v60 = vmax.f32 %v6957_v43, 0.0 }
 0x453   : > { %v6771_v0 = vpop.f32.mrf.mxu0  ;;  %7236 = vmatmul.mubr.bf16.gmra.mxu0 %v15780_v20  ;;  %v15784_v20 = vld [vmem:[#allocation11_spill] sm:$0xff] }
 0x454   : > { %v6964_v35 = vpop.f32.mrf.mxu1  ;;  %7429 = vmatmul.mubr.bf16.gmra.mxu1 %v15781_v21  ;;  %v7885_v30 = vmax.f32 %v6959_v15, 0.0  ;;  %v6961_v24 = vadd.f32 %v6960_v19, %v6768_v12  ;;  %v6772_v39 = vadd.f32 %v6771_v0, %v13873_v14  ;;  %7245 = vmatprep.mubr.bf16.mxu0 %v15782_v62  ;;  %v15785_v21 = vld [vmem:[#allocation10_spill] sm:$0xff] }
 0x455   : > { %7438 = vmatprep.mubr.bf16.mxu1 %v15783_v26  ;;  %v6773_v42 = vpop.f32.mrf.mxu0 }
 0x456   : > { %v6966_v49 = vpop.f32.mrf.mxu1  ;;  %v14345_v56 = vpack.c.bf16 %v7885_v30, %v7881_v38  ;;  %v7886_v44 = vmax.f32 %v6961_v24, 0.0  ;;  %v6965_v10 = vadd.f32 %v6964_v35, %v6772_v39  ;;  %v6774_v31 = vadd.f32 %v6773_v42, %v13880_v17  ;;  %v15786_v24 = vld [vmem:[#allocation67_spill] sm:$0xff] }
 0x457   : > { %v6775_v36 = vpop.f32.mrf.mxu0 }
 0x458   : > { %v6968_v48 = vpop.f32.mrf.mxu1  ;;  %v6967_v2 = vadd.f32 %v6966_v49, %v6774_v31  ;;  %v6776_v1 = vadd.f32 %v6775_v36, %v13887_v59  ;;  %v14349_v63 = vpack.c.bf16 %v7886_v44, %v7882_v60  ;;  %v7889_v35 = vmax.f32 %v6965_v10, 0.0  ;;  %v15787_v59 = vld [vmem:[#allocation15_spill] sm:$0xff] }
 0x459   : > { %v6777_v14 = vpop.f32.mrf.mxu0 }
 0x45a   : > { %v6970_v19 = vpop.f32.mrf.mxu1  ;;  %v6969_v15 = vadd.f32 %v6968_v48, %v6776_v1  ;;  %v6778_v43 = vadd.f32 %v6777_v14, %v13896_v47  ;;  %v7890_v39 = vmax.f32 %v6967_v2, 0.0 }
 0x45b   : > { %v6781_v12 = vpop.f32.mrf.mxu0  ;;  %7246 = vmatmul.mubr.bf16.gmra.mxu0 %v15784_v20 }
 0x45c   : > { %v6974_v0 = vpop.f32.mrf.mxu1  ;;  %7439 = vmatmul.mubr.bf16.gmra.mxu1 %v15785_v21  ;;  %v7893_v17 = vmax.f32 %v6969_v15, 0.0  ;;  %v6971_v38 = vadd.f32 %v6970_v19, %v6778_v43  ;;  %v6782_v30 = vadd.f32 %v6781_v12, %v13905_v45  ;;  %7255 = vmatprep.mubr.bf16.mxu0 %v15786_v24  ;;  %v15788_v43 = vld [vmem:[#allocation16_spill] sm:$0xff]  ;;  %v15789_v12 = vld [vmem:[#allocation14_spill] sm:$0xff] }
 0x45d   : > { %7448 = vmatprep.mubr.bf16.mxu1 %v15787_v59  ;;  %v6783_v62 = vpop.f32.mrf.mxu0 }
 0x45e   : > { %v6976_v26 = vpop.f32.mrf.mxu1  ;;  %v14357_v60 = vpack.c.bf16 %v7893_v17, %v7889_v35  ;;  %v7894_v47 = vmax.f32 %v6971_v38, 0.0  ;;  %v6975_v42 = vadd.f32 %v6974_v0, %v6782_v30  ;;  %v6784_v49 = vadd.f32 %v6783_v62, %v13912_v25  ;;  %v15790_v35 = vld [vmem:[#allocation18_spill] sm:$0xff] }
 0x45f   : > { %v6785_v44 = vpop.f32.mrf.mxu0 }
 0x460   : > { %v6978_v31 = vpop.f32.mrf.mxu1  ;;  %v6977_v10 = vadd.f32 %v6976_v26, %v6784_v49  ;;  %v6786_v36 = vadd.f32 %v6785_v44, %v13919_v18  ;;  %v14361_v48 = vpack.c.bf16 %v7894_v47, %v7890_v39  ;;  %v7897_v0 = vmax.f32 %v6975_v42, 0.0  ;;  %v15791_v18 = vld [vmem:[#allocation84_spill] sm:$0xff] }
 0x461   : > { %v6787_v45 = vpop.f32.mrf.mxu0 }
 0x462   : > { %v6980_v1 = vpop.f32.mrf.mxu1  ;;  %v6979_v14 = vadd.f32 %v6978_v31, %v6786_v36  ;;  %v6788_v2 = vadd.f32 %v6787_v45, %v13928_v61  ;;  %v7898_v17 = vmax.f32 %v6977_v10, 0.0 }
 0x463   : > { %v6791_v19 = vpop.f32.mrf.mxu0  ;;  %7256 = vmatmul.mubr.bf16.gmra.mxu0 %v15788_v43  ;;  %v15794_v43 = vld [vmem:[#allocation20_spill] sm:$0xff] }
 0x464   : > { %v6984_v15 = vpop.f32.mrf.mxu1  ;;  %7449 = vmatmul.mubr.bf16.gmra.mxu1 %v15789_v12  ;;  %v7901_v25 = vmax.f32 %v6979_v14, 0.0  ;;  %v6981_v20 = vadd.f32 %v6980_v1, %v6788_v2  ;;  %v6792_v21 = vadd.f32 %v6791_v19, %v13935_v27  ;;  %7265 = vmatprep.mubr.bf16.mxu0 %v15790_v35  ;;  %v15792_v1 = vld [vmem:[#allocation17_spill] sm:$0xff]  ;;  %v15793_v14 = vld [vmem:[#allocation2_spill] sm:$0xff] }
 0x465   : > { %7458 = vmatprep.mubr.bf16.mxu1 %v15791_v18  ;;  %v6793_v38 = vpop.f32.mrf.mxu0 }
 0x466   : > { %v6986_v30 = vpop.f32.mrf.mxu1  ;;  %v14369_v24 = vpack.c.bf16 %v7901_v25, %v7897_v0  ;;  %v7902_v61 = vmax.f32 %v6981_v20, 0.0  ;;  %v6985_v59 = vadd.f32 %v6984_v15, %v6792_v21  ;;  %v6794_v39 = vadd.f32 %v6793_v38, %v13940_v13 }
 0x467   : > { %v6795_v62 = vpop.f32.mrf.mxu0 }
 0x468   : > { %v6988_v26 = vpop.f32.mrf.mxu1  ;;  %v6987_v47 = vadd.f32 %v6986_v30, %v6794_v39  ;;  %v6796_v42 = vadd.f32 %v6795_v62, %v13946_v40  ;;  %v14373_v49 = vpack.c.bf16 %v7902_v61, %v7898_v17  ;;  %v7905_v2 = vmax.f32 %v6985_v59, 0.0  ;;  %v15795_v40 = vld [vmem:[#allocation86_spill] sm:$0xff] }
 0x469   : > { %v6797_v27 = vpop.f32.mrf.mxu0 }
 0x46a   : > { %v6990_v44 = vpop.f32.mrf.mxu1  ;;  %v6989_v31 = vadd.f32 %v6988_v26, %v6796_v42  ;;  %v6798_v10 = vadd.f32 %v6797_v27, %v13954_v22  ;;  %v7906_v12 = vmax.f32 %v6987_v47, 0.0  ;;  %v15796_v42 = vld [vmem:[#allocation19_spill] sm:$0xff]  ;;  %v15797_v27 = vld [vmem:[#allocation85_spill] sm:$0xff] }
 0x46b   : > { %v6801_v36 = vpop.f32.mrf.mxu0  ;;  %7266 = vmatmul.mubr.bf16.gmra.mxu0 %v15792_v1 }
 0x46c   : > { %v6994_v45 = vpop.f32.mrf.mxu1  ;;  %7459 = vmatmul.mubr.bf16.gmra.mxu1 %v15793_v14  ;;  %v7909_v13 = vmax.f32 %v6989_v31, 0.0  ;;  %v6991_v19 = vadd.f32 %v6990_v44, %v6798_v10  ;;  %v6802_v15 = vadd.f32 %v6801_v36, %v13959_v46  ;;  %7275 = vmatprep.mubr.bf16.mxu0 %v15794_v43  ;;  %v15798_v36 = vld [vmem:[#allocation26_spill] sm:$0xff] }
 0x46d   : > { %7468 = vmatprep.mubr.bf16.mxu1 %v15795_v40  ;;  %v6803_v0 = vpop.f32.mrf.mxu0 }
 0x46e   : > { %v6996_v25 = vpop.f32.mrf.mxu1  ;;  %v14381_v20 = vpack.c.bf16 %v7909_v13, %v7905_v2  ;;  %v7910_v22 = vmax.f32 %v6991_v19, 0.0  ;;  %v6995_v21 = vadd.f32 %v6994_v45, %v6802_v15  ;;  %v6804_v35 = vadd.f32 %v6803_v0, %v13962_v55 }
 0x46f   : > { %v6805_v18 = vpop.f32.mrf.mxu0 }
 0x470   : > { %v6998_v17 = vpop.f32.mrf.mxu1  ;;  %v6997_v38 = vadd.f32 %v6996_v25, %v6804_v35  ;;  %v6806_v30 = vadd.f32 %v6805_v18, %v13967_v37  ;;  %v14385_v61 = vpack.c.bf16 %v7910_v22, %v7906_v12  ;;  %v7913_v44 = vmax.f32 %v6995_v21, 0.0  ;;  %v15799_v37 = vld [vmem:[#allocation110_spill] sm:$0xff]  ;;  %v10303_v22 = vld [vmem:[%s15137_s7 + $0x38] sm:$0xff]   ;;  %v10306_v18 = vld [vmem:[%s15137_s7 + $0x70] sm:$0xff]  }
 0x471   : > { %v6807_v46 = vpop.f32.mrf.mxu0  ;;  %v10305_v21 = vld [vmem:[%s15137_s7 + $0xb8] sm:$0xff]  }
 0x472   : > { %v7000_v59 = vpop.f32.mrf.mxu1  ;;  %v6999_v39 = vadd.f32 %v6998_v17, %v6806_v30  ;;  %v6808_v62 = vadd.f32 %v6807_v46, %v13972_v50  ;;  %v7914_v45 = vmax.f32 %v6997_v38, 0.0  ;;  %v15800_v30 = vld [vmem:[#allocation25_spill] sm:$0xff]  ;;  %v15801_v46 = vld [vmem:[#allocation111_spill] sm:$0xff] }
 0x473   : > { %v6811_v26 = vpop.f32.mrf.mxu0  ;;  %7276 = vmatmul.mubr.bf16.gmra.mxu0 %v15796_v42 }
 0x474   : > { %v7004_v47 = vpop.f32.mrf.mxu1  ;;  %7469 = vmatmul.mubr.bf16.gmra.mxu1 %v15797_v27  ;;  %v7917_v55 = vmax.f32 %v6999_v39, 0.0  ;;  %v7001_v31 = vadd.f32 %v7000_v59, %v6808_v62  ;;  %v6812_v10 = vadd.f32 %v6811_v26, %v13977_v54  ;;  %7511 = vmatprep.mubr.bf16.mxu0 %v15798_v36 }
 0x475   : > { %7704 = vmatprep.mubr.bf16.mxu1 %v15799_v37  ;;  %v6813_v1 = vpop.f32.mrf.mxu0 }
 0x476   : > { %v7006_v14 = vpop.f32.mrf.mxu1  ;;  %v14393_v2 = vpack.c.bf16 %v7917_v55, %v7913_v44  ;;  %v7918_v50 = vmax.f32 %v7001_v31, 0.0  ;;  %v7005_v13 = vadd.f32 %v7004_v47, %v6812_v10  ;;  %v6814_v19 = vadd.f32 %v6813_v1, %v13980_v6  ;;  %v15803_v47 = vld [vmem:[#allocation112_spill] sm:$0xff]  ;;  %v10314_v1 = vld [vmem:[%s15137_s7 + $0xe8] sm:$0xff]  }
 0x477   : > { %v6815_v15 = vpop.f32.mrf.mxu0  ;;  %v10307_v55 = vld [vmem:[%s15137_s7 + $0x30] sm:$0xff]  }
 0x478   : > { %v7008_v43 = vpop.f32.mrf.mxu1  ;;  %v7007_v40 = vadd.f32 %v7006_v14, %v6814_v19  ;;  %v6816_v12 = vadd.f32 %v6815_v15, %v13989_v9  ;;  %v14397_v0 = vpack.c.bf16 %v7918_v50, %v7914_v45  ;;  %v10308_v9 = vld [vmem:[%s15137_s7 + $0xf0] sm:$0xff]   ;;  %v7921_v59 = vmax.f32 %v7005_v13, 0.0  ;;  %v10310_v45 = vld [vmem:[%s15137_s7 + $0x68] sm:$0xff]  }
 0x479   : > { %v6817_v54 = vpop.f32.mrf.mxu0  ;;  %v10309_v31 = vld [vmem:[%s15137_s7 + $0xb0] sm:$0xff]  }
 0x47a   : > { %v7010_v25 = vpop.f32.mrf.mxu1  ;;  %v7009_v35 = vadd.f32 %v7008_v43, %v6816_v12  ;;  %v6818_v6 = vadd.f32 %v6817_v54, %v14000_v23  ;;  %v15802_v23 = vld [vmem:[#allocation28_spill] sm:$0xff]  ;;  %v7922_v42 = vmax.f32 %v7007_v40, 0.0  ;;  %v10316_v12 = vld [vmem:[%s15137_s7 + $0xa8] sm:$0xff]  }
 0x47b   : > { %v6821_v17 = vpop.f32.mrf.mxu0  ;;  %7512 = vmatmul.mubr.bf16.vlgmr.msra.gmra.mxu0 %v15800_v30  ;;  %v15806_v30 = vld [vmem:[#allocation30_spill] sm:$0xff] }
 0x47c   : > { %v7014_v38 = vpop.f32.mrf.mxu1  ;;  %7705 = vmatmul.mubr.bf16.vlgmr.msra.gmra.mxu1 %v15801_v46  ;;  %v7925_v39 = vmax.f32 %v7009_v35, 0.0  ;;  %v7011_v62 = vadd.f32 %v7010_v25, %v6818_v6  ;;  %v6822_v26 = vadd.f32 %v6821_v17, %v14014_v33  ;;  %7521 = vmatprep.mubr.bf16.mxu0 %v15802_v23  ;;  %v15804_v6 = vld [vmem:[#allocation27_spill] sm:$0xff]  ;;  %v15807_v46 = vld [vmem:[#allocation114_spill] sm:$0xff] }
 0x47d   : > { %7714 = vmatprep.mubr.bf16.mxu1 %v15803_v47  ;;  %v6823_v27 = vpop.f32.mrf.mxu0  ;;  %9622 = vmatpush3.bf16.msra.mxu0 %v10303_v22  ;;  %v10324_v22 = vld [vmem:[%s15137_s7 + $0xe0] sm:$0xff]  }
 0x47e   : > { %v7016_v44 = vpop.f32.mrf.mxu1  ;;  %9734 = vmatpush3.bf16.msra.mxu1 %v10305_v21  ;;  %v14423_v10 = vpack.c.bf16 %v7925_v39, %v7921_v59  ;;  %v7926_v33 = vmax.f32 %v7011_v62, 0.0  ;;  %v7015_v36 = vadd.f32 %v7014_v38, %v6822_v26  ;;  %v6824_v37 = vadd.f32 %v6823_v27, %v14020_v57  ;;  %9623 = vmatprep.subr.bf16.mxu0 %v10306_v18  ;;  %v10311_v57 = vld [vmem:[%s15137_s7 + $0x28] sm:$0xff]   ;;  %v15805_v18 = vld [vmem:[#allocation113_spill] sm:$0xff]  ;;  %v10313_v26 = vld [vmem:[%s15137_s7 + $0x20] sm:$0xff]  }
 0x47f   : > { %9735 = vmatprep.subr.bf16.mxu1 %v10308_v9  ;;  %v6825_v14 = vpop.f32.mrf.mxu0  ;;  %v10325_v23 = vld [vmem:[%s15137_s7 + $0xa0] sm:$0xff]  }
 0x480   : > { %v7018_v50 = vpop.f32.mrf.mxu1  ;;  %v7017_v13 = vadd.f32 %v7016_v44, %v6824_v37  ;;  %v6826_v19 = vadd.f32 %v6825_v14, %v14029_v8  ;;  %v14433_v15 = vpack.c.bf16 %v7926_v33, %v7922_v42  ;;  %v10312_v8 = vld [vmem:[%s15137_s7 + $0x60] sm:$0xff]   ;;  %v7929_v9 = vmax.f32 %v7015_v36, 0.0  ;;  %v10315_v44 = vld [vmem:[%s15137_s7 + $0x58] sm:$0xff]  }
 0x481   : > { %v6827_v43 = vpop.f32.mrf.mxu0  ;;  %9624 = vmatpush3.bf16.msra.mxu0 %v10307_v55 }
 0x482   : > { %v7020_v40 = vpop.f32.mrf.mxu1  ;;  %9736 = vmatpush3.bf16.msra.mxu1 %v10309_v31  ;;  %v7019_v54 = vadd.f32 %v7018_v50, %v6826_v19  ;;  %v6828_v25 = vadd.f32 %v6827_v43, %v14040_v5  ;;  %9625 = vmatprep.subr.bf16.mxu0 %v10310_v45  ;;  %v7930_v59 = vmax.f32 %v7017_v13, 0.0  ;;  %v10318_v13 = vld [vmem:[%s15137_s7 + $0x50] sm:$0xff]   ;;  %v15808_v43 = vld [vmem:[#allocation29_spill] sm:$0xff] }
 0x483   : > { %9737 = vmatprep.subr.bf16.mxu1 %v10314_v1  ;;  %v6831_v21 = vpop.f32.mrf.mxu0  ;;  %7522 = vmatmul.mubr.bf16.gmra.mxu0 %v15804_v6 }
 0x484   : > { %v7024_v35 = vpop.f32.mrf.mxu1  ;;  %7715 = vmatmul.mubr.bf16.gmra.mxu1 %v15805_v18  ;;  %v7933_v17 = vmax.f32 %v7019_v54, 0.0  ;;  %v7021_v38 = vadd.f32 %v7020_v40, %v6828_v25  ;;  %v6832_v5 = vadd.f32 %v6831_v21, %v14051_v52  ;;  %7531 = vmatprep.mubr.bf16.mxu0 %v15806_v30  ;;  %v15809_v40 = vld [vmem:[#allocation115_spill] sm:$0xff]  ;;  %v10319_v18 = vld [vmem:[%s15137_s7 + $0x10] sm:$0xff]   ;;  %v10327_v30 = vld [vmem:[%s15137_s7 + $0x98] sm:$0xff]  }
 0x485   : > { %7724 = vmatprep.mubr.bf16.mxu1 %v15807_v46  ;;  %v6833_v39 = vpop.f32.mrf.mxu0  ;;  %9626 = vmatpush3.bf16.msra.mxu0 %v10311_v57 }
 0x486   : > { %v7026_v62 = vpop.f32.mrf.mxu1  ;;  %9738 = vmatpush3.bf16.msra.mxu1 %v10316_v12  ;;  %v14459_v47 = vpack.c.bf16 %v7933_v17, %v7929_v9  ;;  %v7934_v52 = vmax.f32 %v7021_v38, 0.0  ;;  %v7025_v42 = vadd.f32 %v7024_v35, %v6832_v5  ;;  %v6834_v27 = vadd.f32 %v6833_v39, %v14060_v32  ;;  %9627 = vmatprep.subr.bf16.mxu0 %v10312_v8  ;;  %v10317_v32 = vld [vmem:[%s15137_s7 + $0x18] sm:$0xff]   ;;  %v15810_v8 = vld [vmem:[#allocation32_spill] sm:$0xff]  ;;  %v10320_v5 = vld [vmem:[%s15137_s7 + $0x48] sm:$0xff]  }
 0x487   : > { %9739 = vmatprep.subr.bf16.mxu1 %v10324_v22  ;;  %v6835_v55 = vpop.f32.mrf.mxu0  ;;  %v15811_v22 = vld [vmem:[#allocation116_spill] sm:$0xff] }
 0x488   : > { %v7028_v31 = vpop.f32.mrf.mxu1  ;;  %v7027_v33 = vadd.f32 %v7026_v62, %v6834_v27  ;;  %v6836_v36 = vadd.f32 %v6835_v55, %v14069_v28  ;;  %v14466_v37 = vpack.c.bf16 %v7934_v52, %v7930_v59  ;;  %v7937_v57 = vmax.f32 %v7025_v42, 0.0  ;;  %v10321_v52 = vld [vmem:[%s15137_s7 + $0x8] sm:$0xff]  }
 0x489   : > { %v6837_v45 = vpop.f32.mrf.mxu0  ;;  %9628 = vmatpush3.bf16.msra.mxu0 %v10313_v26 }
 0x48a   : > { %v7030_v1 = vpop.f32.mrf.mxu1  ;;  %9740 = vmatpush3.bf16.msra.mxu1 %v10325_v23  ;;  %v7029_v14 = vadd.f32 %v7028_v31, %v6836_v36  ;;  %v6838_v50 = vadd.f32 %v6837_v45, %v14080_v41  ;;  %9629 = vmatprep.subr.bf16.mxu0 %v10315_v44  ;;  %v10326_v41 = vld [vmem:[%s15137_s7 + $0xd8] sm:$0xff]   ;;  %v7938_v21 = vmax.f32 %v7027_v33, 0.0  ;;  %v10322_v44 = vld [vmem:[%s15137_s7 + $0x40] sm:$0xff]   ;;  %v15812_v31 = vld [vmem:[#allocation31_spill] sm:$0xff] }
 0x48b   : > { %v6841_v19 = vpop.f32.mrf.mxu0  ;;  %7532 = vmatmul.mubr.bf16.gmra.mxu0 %v15808_v43  ;;  %9741 = vmatprep.subr.bf16.mxu1 %v10326_v41  ;;  %v15813_v33 = vld [vmem:[#allocation117_spill] sm:$0xff]  ;;  %v10323_v43 = vld [vmem:[%s15137_s7] sm:$0xff]  }
 0x48c   : > { %v7034_v28 = vpop.f32.mrf.mxu1  ;;  %7725 = vmatmul.mubr.bf16.gmra.mxu1 %v15809_v40  ;;  %v7941_v12 = vmax.f32 %v7029_v14, 0.0  ;;  %v7031_v54 = vadd.f32 %v7030_v1, %v6838_v50  ;;  %v6842_v25 = vadd.f32 %v6841_v19, %v14091_v11  ;;  %7541 = vmatprep.mubr.bf16.mxu0 %v15810_v8  ;;  %v15815_v50 = vld [vmem:[#allocation34_spill] sm:$0xff] }
 0x48d   : > { %7734 = vmatprep.mubr.bf16.mxu1 %v15811_v22  ;;  %v6843_v35 = vpop.f32.mrf.mxu0  ;;  %9630 = vmatpush3.bf16.msra.mxu0 %v10317_v32  ;;  %v15814_v32 = vld [vmem:[#allocation124_spill] sm:$0xff] }
 0x48e   : > { %v7036_v6 = vpop.f32.mrf.mxu1  ;;  %v14486_v9 = vpack.c.bf16 %v7941_v12, %v7937_v57  ;;  %v7942_v17 = vmax.f32 %v7031_v54, 0.0  ;;  %v7035_v11 = vadd.f32 %v7034_v28, %v6842_v25  ;;  %v6844_v38 = vadd.f32 %v6843_v35, %v14100_v3  ;;  %9631 = vmatprep.subr.bf16.mxu0 %v10318_v13  ;;  %9742 = vmatpush3.bf16.msra.mxu1 %v10327_v30  ;;  %v15816_v13 = vld [vmem:[#allocation118_spill] sm:$0xff] }
 0x48f   : > { %v6845_v46 = vpop.f32.mrf.mxu0  ;;  %v15817_v54 = vld [vmem:[#allocation46_spill] sm:$0xff] }
 0x490   : > { %v7038_v59 = vpop.f32.mrf.mxu1  ;;  %v7037_v39 = vadd.f32 %v7036_v6, %v6844_v38  ;;  %v6846_v62 = vadd.f32 %v6845_v46, %v14109_v51  ;;  %v14496_v26 = vpack.c.bf16 %v7942_v17, %v7938_v21  ;;  %v7945_v36 = vmax.f32 %v7035_v11, 0.0  ;;  %v15818_v21 = vld [vmem:[#allocation22_spill] sm:$0xff]  ;;  %v15819_v38 = vld [vmem:[#allocation45_spill] sm:$0xff] }
 0x491   : > { %v6847_v23 = vpop.f32.mrf.mxu0  ;;  %9632 = vmatpush3.bf16.msra.mxu0 %v10319_v18 }
 0x492   : > { %v7040_v3 = vpop.f32.mrf.mxu1  ;;  %v7039_v42 = vadd.f32 %v7038_v59, %v6846_v62  ;;  %v6848_v27 = vadd.f32 %v6847_v23, %v14120_v58  ;;  %9633 = vmatprep.subr.bf16.mxu0 %v10320_v5  ;;  %v7946_v58 = vmax.f32 %v7037_v39, 0.0  ;;  %v15820_v59 = vld [vmem:[#allocation33_spill] sm:$0xff]  ;;  %v15821_v39 = vld [vmem:[#allocation104_spill] sm:$0xff] }
 0x493   : > { %v6851_v55 = vpop.f32.mrf.mxu0  ;;  %7542 = vmatmul.mubr.bf16.gmra.mxu0 %v15812_v31 }
 0x494   : > { %v7044_v51 = vpop.f32.mrf.mxu1  ;;  %7735 = vmatmul.mubr.bf16.gmra.mxu1 %v15813_v33  ;;  %v7949_v45 = vmax.f32 %v7039_v42, 0.0  ;;  %v7041_v1 = vadd.f32 %v7040_v3, %v6848_v27  ;;  %v6852_v14 = vadd.f32 %v6851_v55, %v15814_v32  ;;  %7551 = vmatprep.mubr.bf16.mxu0 %v15815_v50  ;;  %v15823_v27 = vld [vmem:[#allocation36_spill] sm:$0xff] }
 0x495   : > { %7744 = vmatprep.mubr.bf16.mxu1 %v15816_v13  ;;  %v6853_v19 = vpop.f32.mrf.mxu0  ;;  %9634 = vmatpush3.bf16.msra.mxu0 %v10321_v52  ;;  %v15822_v52 = vld [vmem:[#allocation21_spill] sm:$0xff]  ;;  %v10328_v55 = vld [vmem:[%s15137_s7 + $0xd0] sm:$0xff]  }
 0x496   : > { %v7046_v28 = vpop.f32.mrf.mxu1  ;;  %v14513_v40 = vpack.c.bf16 %v7949_v45, %v7945_v36  ;;  %v7950_v57 = vmax.f32 %v7041_v1, 0.0  ;;  %v7045_v12 = vadd.f32 %v7044_v51, %v6852_v14  ;;  %v6854_v25 = vadd.f32 %v6853_v19, %v15817_v54  ;;  %9635 = vmatprep.subr.bf16.mxu0 %v10322_v44  ;;  %v15824_v44 = vld [vmem:[#allocation105_spill] sm:$0xff]  ;;  %v15825_v32 = vld [vmem:[#allocation48_spill] sm:$0xff]  ;;  %9743 = vmatprep.subr.bf16.mxu1 %v10328_v55 }
 0x497   : > { %v6855_v8 = vpop.f32.mrf.mxu0  ;;  %v10329_v50 = vld [vmem:[%s15137_s7 + $0x90] sm:$0xff]  }
 0x498   : > { %v7048_v22 = vpop.f32.mrf.mxu1  ;;  %v7047_v41 = vadd.f32 %v7046_v28, %v6854_v25  ;;  %v6856_v35 = vadd.f32 %v6855_v8, %v15818_v21  ;;  %v14517_v6 = vpack.c.bf16 %v7950_v57, %v7946_v58  ;;  %v7953_v62 = vmax.f32 %v7045_v12, 0.0  ;;  %v15826_v28 = vld [vmem:[#allocation24_spill] sm:$0xff]  ;;  %9744 = vmatpush3.bf16.msra.mxu1 %v10329_v50  ;;  %v15827_v8 = vld [vmem:[#allocation47_spill] sm:$0xff] }
 0x499   : > { %v6857_v18 = vpop.f32.mrf.mxu0  ;;  %9636 = vmatpush3.bf16.msra.mxu0 %v10323_v43 }
 0x49a   : > { %v7050_v17 = vpop.f32.mrf.mxu1  ;;  %v7049_v11 = vadd.f32 %v7048_v22, %v6856_v35  ;;  %v6858_v5 = vadd.f32 %v6857_v18, %v15819_v38  ;;  %v7954_v51 = vmax.f32 %v7047_v41, 0.0  ;;  %v15828_v35 = vld [vmem:[#allocation35_spill] sm:$0xff]  ;;  %v15829_v18 = vld [vmem:[#allocation109_spill] sm:$0xff] }
 0x49b   : > { %v6861_v30 = vpop.f32.mrf.mxu0  ;;  %7552 = vmatmul.mubr.bf16.gmra.mxu0 %v15820_v59  ;;  %v15832_v59 = vld [vmem:[#allocation107_spill] sm:$0xff] }
 0x49c   : > { %v7054_v46 = vpop.f32.mrf.mxu1  ;;  %7745 = vmatmul.mubr.bf16.gmra.mxu1 %v15821_v39  ;;  %v7957_v23 = vmax.f32 %v7049_v11, 0.0  ;;  %v7051_v3 = vadd.f32 %v7050_v17, %v6858_v5  ;;  %v6862_v42 = vadd.f32 %v6861_v30, %v15822_v52  ;;  %7561 = vmatprep.mubr.bf16.mxu0 %v15823_v27  ;;  %v15830_v5 = vld [vmem:[#allocation23_spill] sm:$0xff]  ;;  %v15833_v27 = vld [vmem:[#allocation50_spill] sm:$0xff] }
 0x49d   : > { %7754 = vmatprep.mubr.bf16.mxu1 %v15824_v44  ;;  %v6863_v31 = vpop.f32.mrf.mxu0 }
 0x49e   : > { %v7056_v33 = vpop.f32.mrf.mxu1  ;;  %v14528_v36 = vpack.c.bf16 %v7957_v23, %v7953_v62  ;;  %v7958_v45 = vmax.f32 %v7051_v3, 0.0  ;;  %v7055_v1 = vadd.f32 %v7054_v46, %v6862_v42  ;;  %v6864_v14 = vadd.f32 %v6863_v31, %v15825_v32  ;;  %v15831_v46 = vld [vmem:[#allocation38_spill] sm:$0xff] }
 0x49f   : > { %v6865_v13 = vpop.f32.mrf.mxu0 }
 0x4a0   : > { %v7058_v58 = vpop.f32.mrf.mxu1  ;;  %v7057_v19 = vadd.f32 %v7056_v33, %v6864_v14  ;;  %v6866_v43 = vadd.f32 %v6865_v13, %v15826_v28  ;;  %v14535_v57 = vpack.c.bf16 %v7958_v45, %v7954_v51  ;;  %v7961_v17 = vmax.f32 %v7055_v1, 0.0  ;;  %v15834_v33 = vld [vmem:[#allocation69_spill] sm:$0xff] }
 0x4a1   : > { %v6867_v12 = vpop.f32.mrf.mxu0  ;;  %v15835_v13 = vld [vmem:[#allocation49_spill] sm:$0xff] }
 0x4a2   : > { %v7060_v54 = vpop.f32.mrf.mxu1  ;;  %v7059_v25 = vadd.f32 %v7058_v58, %v6866_v43  ;;  %v6868_v22 = vadd.f32 %v6867_v12, %v15827_v8  ;;  %v7962_v39 = vmax.f32 %v7057_v19, 0.0  ;;  %v15836_v43 = vld [vmem:[#allocation37_spill] sm:$0xff]  ;;  %v15837_v12 = vld [vmem:[#allocation108_spill] sm:$0xff] }
 0x4a3   : > { %v6871_v41 = vpop.f32.mrf.mxu0  ;;  %7562 = vmatmul.mubr.bf16.gmra.mxu0 %v15828_v35  ;;  %v15840_v35 = vld [vmem:[#allocation120_spill] sm:$0xff] }
 0x4a4   : > { %v7064_v21 = vpop.f32.mrf.mxu1  ;;  %7755 = vmatmul.mubr.bf16.gmra.mxu1 %v15829_v18  ;;  %v7965_v11 = vmax.f32 %v7059_v25, 0.0  ;;  %v7061_v38 = vadd.f32 %v7060_v54, %v6868_v22  ;;  %v6872_v30 = vadd.f32 %v6871_v41, %v15830_v5  ;;  %7571 = vmatprep.mubr.bf16.mxu0 %v15831_v46  ;;  %v15838_v22 = vld [vmem:[#allocation68_spill] sm:$0xff]  ;;  %v10330_v18 = vld [vmem:[%s15137_s7 + $0xc8] sm:$0xff]  }
 0x4a5   : > { %7764 = vmatprep.mubr.bf16.mxu1 %v15832_v59  ;;  %v6873_v62 = vpop.f32.mrf.mxu0  ;;  %v15842_v59 = vld [vmem:[#allocation52_spill] sm:$0xff]  ;;  %9745 = vmatprep.subr.bf16.mxu1 %v10330_v18 }
 0x4a6   : > { %v7066_v23 = vpop.f32.mrf.mxu1  ;;  %v14543_v3 = vpack.c.bf16 %v7965_v11, %v7961_v17  ;;  %v7966_v52 = vmax.f32 %v7061_v38, 0.0  ;;  %v7065_v42 = vadd.f32 %v7064_v21, %v6872_v30  ;;  %v6874_v44 = vadd.f32 %v6873_v62, %v15833_v27  ;;  %v15839_v21 = vld [vmem:[#allocation42_spill] sm:$0xff]  ;;  %v10331_v62 = vld [vmem:[%s15137_s7 + $0x88] sm:$0xff]  }
 0x4a7   : > { %v6875_v55 = vpop.f32.mrf.mxu0  ;;  %v15843_v27 = vld [vmem:[#allocation71_spill] sm:$0xff]  ;;  %9746 = vmatpush3.bf16.msra.mxu1 %v10331_v62  ;;  %v15851_v62 = vld [vmem:[#allocation6_spill] sm:$0xff] }
 0x4a8   : > { %v7068_v51 = vpop.f32.mrf.mxu1  ;;  %v7067_v31 = vadd.f32 %v7066_v23, %v6874_v44  ;;  %v6876_v45 = vadd.f32 %v6875_v55, %v15834_v33  ;;  %v14547_v1 = vpack.c.bf16 %v7966_v52, %v7962_v39  ;;  %v7969_v54 = vmax.f32 %v7065_v42, 0.0 }
 0x4a9   : > { %v6877_v32 = vpop.f32.mrf.mxu0 }
 0x4aa   : > { %v7070_v14 = vpop.f32.mrf.mxu1  ;;  %v7069_v50 = vadd.f32 %v7068_v51, %v6876_v45  ;;  %v6878_v58 = vadd.f32 %v6877_v32, %v15835_v13  ;;  %v7970_v17 = vmax.f32 %v7067_v31, 0.0  ;;  %v15844_v45 = vld [vmem:[#allocation51_spill] sm:$0xff] }
 0x4ab   : > { %v6881_v19 = vpop.f32.mrf.mxu0  ;;  %7572 = vmatmul.mubr.bf16.gmra.mxu0 %v15836_v43  ;;  %v15845_v13 = vld [vmem:[#allocation39_spill] sm:$0xff] }
 0x4ac   : > { %v7074_v28 = vpop.f32.mrf.mxu1  ;;  %7765 = vmatmul.mubr.bf16.gmra.mxu1 %v15837_v12  ;;  %v7973_v25 = vmax.f32 %v7069_v50, 0.0  ;;  %v7071_v8 = vadd.f32 %v7070_v14, %v6878_v58  ;;  %v6882_v41 = vadd.f32 %v6881_v19, %v15838_v22  ;;  %7581 = vmatprep.mubr.bf16.mxu0 %v15839_v21  ;;  %v15846_v58 = vld [vmem:[#allocation121_spill] sm:$0xff]  ;;  %v15847_v12 = vld [vmem:[#allocation70_spill] sm:$0xff] }
 0x4ad   : > { %7774 = vmatprep.mubr.bf16.mxu1 %v15840_v35  ;;  %v6883_v11 = vpop.f32.mrf.mxu0 }
 0x4ae   : > { %v7076_v38 = vpop.f32.mrf.mxu1  ;;  %v14558_v5 = vpack.c.bf16 %v7973_v25, %v7969_v54  ;;  %v7974_v30 = vmax.f32 %v7071_v8, 0.0  ;;  %v7075_v46 = vadd.f32 %v7074_v28, %v6882_v41  ;;  %v6884_v39 = vadd.f32 %v6883_v11, %v15842_v59  ;;  %v15848_v25 = vld [vmem:[#allocation87_spill] sm:$0xff]  ;;  %v15849_v8 = vld [vmem:[#allocation122_spill] sm:$0xff] }
 0x4af   : > { %v6885_v23 = vpop.f32.mrf.mxu0 }
 0x4b0   : > { %15841 = vst [vmem:[#allocation73_spill] sm:$0xff] %v14558_v5  ;;  %v7078_v52 = vpop.f32.mrf.mxu1  ;;  %v7077_v42 = vadd.f32 %v7076_v38, %v6884_v39  ;;  %v6886_v44 = vadd.f32 %v6885_v23, %v15843_v27  ;;  %v14565_v55 = vpack.c.bf16 %v7974_v30, %v7970_v17  ;;  %v7977_v19 = vmax.f32 %v7075_v46, 0.0  ;;  %v10337_v39 = vld [vmem:[%s15136_s6] sm:$0xf] }
 0x4b1   : > { %v6887_v51 = vpop.f32.mrf.mxu0  ;;  %v14581_v23 = vrot.slane %v10337_v39, %v15851_v62 }
 0x4b2   : > { %v7080_v31 = vpop.f32.mrf.mxu1  ;;  %v7079_v33 = vadd.f32 %v7078_v52, %v6886_v44  ;;  %v6888_v32 = vadd.f32 %v6887_v51, %v15844_v45  ;;  %v7978_v22 = vmax.f32 %v7077_v42, 0.0  ;;  %v15853_v51 = vld [vmem:[#allocation41_spill] sm:$0xff] }
 0x4b3   : > { %v6891_v14 = vpop.f32.mrf.mxu0  ;;  %7582 = vmatmul.mubr.bf16.gmra.mxu0 %v15845_v13 }
 0x4b4   : > { %v7084_v50 = vpop.f32.mrf.mxu1  ;;  %7775 = vmatmul.mubr.bf16.gmra.mxu1 %v15846_v58  ;;  %v7981_v28 = vmax.f32 %v7079_v33, 0.0  ;;  %v7081_v43 = vadd.f32 %v7080_v31, %v6888_v32  ;;  %v6892_v54 = vadd.f32 %v6891_v14, %v15847_v12  ;;  %7591 = vmatprep.mubr.bf16.mxu0 %v15848_v25  ;;  %v15856_v14 = vld [vmem:[#allocation5_spill] sm:$0xff]  ;;  %v10332_v12 = vld [vmem:[%s15137_s7 + $0xc0] sm:$0xff]  }
 0x4b5   : > { %7784 = vmatprep.mubr.bf16.mxu1 %v15849_v8  ;;  %v6893_v41 = vpop.f32.mrf.mxu0  ;;  %9747 = vmatprep.subr.bf16.mxu1 %v10332_v12 }
 0x4b6   : > { %v7086_v21 = vpop.f32.mrf.mxu1  ;;  %v14573_v35 = vpack.c.bf16 %v7981_v28, %v7977_v19  ;;  %v7982_v18 = vmax.f32 %v7081_v43, 0.0  ;;  %v7085_v17 = vadd.f32 %v7084_v50, %v6892_v54  ;;  %v6894_v11 = vadd.f32 %v6893_v41, %v14294_v53  ;;  %v15854_v53 = vld [vmem:[#allocation4_spill] sm:$0xff]  ;;  %v15857_v28 = vld [vmem:[#allocation89_spill] sm:$0xff]  ;;  %v15858_v43 = vld [vmem:[#allocation127_spill] sm:$0xff] }
 0x4b7   : > { %v6895_v38 = vpop.f32.mrf.mxu0  ;;  %v14587_v33 = vrot.slane %v10337_v39, %v15854_v53  ;;  %v15862_v53 = vld [vmem:[#allocation3_spill] sm:$0xff] }
 0x4b8   : > { %15850 = vst [vmem:[#allocation40_spill] sm:$0xff] %v14573_v35  ;;  %v7088_v30 = vpop.f32.mrf.mxu1  ;;  %v7087_v46 = vadd.f32 %v7086_v21, %v6894_v11  ;;  %v6896_v59 = vadd.f32 %v6895_v38, %v14297_v16  ;;  %v14583_v52 = vpack.c.bf16 %v7982_v18, %v7978_v22  ;;  %v15855_v16 = vld [vmem:[#allocation43_spill] sm:$0xff]  ;;  %v7985_v50 = vmax.f32 %v7085_v17, 0.0 }
 0x4b9   : > { %v6897_v42 = vpop.f32.mrf.mxu0 }
 0x4ba   : > { %15852 = vst [vmem:[#allocation72_spill] sm:$0xff] %v14583_v52  ;;  %v7090_v27 = vpop.f32.mrf.mxu1  ;;  %v7089_v44 = vadd.f32 %v7088_v30, %v6896_v59  ;;  %v6898_v31 = vadd.f32 %v6897_v42, %v15853_v51  ;;  %v7986_v54 = vmax.f32 %v7087_v46, 0.0  ;;  %v10333_v46 = vld [vmem:[%s15137_s7 + $0x80] sm:$0xff]  }
 0x4bb   : > { %v7127_v45 = vpop.f32.mrf.mxu0  ;;  %7592 = vmatmul.mubr.bf16.gmra.mxu0 %v15855_v16  ;;  %9748 = vmatpush3.bf16.msra.mxu1 %v10333_v46  ;;  %v15863_v16 = vld [vmem:[#allocation91_spill] sm:$0xff]  ;;  %v15866_v46 = vld [vmem:[#allocation129_spill] sm:$0xff] }
 0x4bc   : > { %v7320_v32 = vpop.f32.mrf.mxu1  ;;  %7785 = vmatmul.mubr.bf16.gmra.mxu1 %v15856_v14  ;;  %v7989_v13 = vmax.f32 %v7089_v44, 0.0  ;;  %v7091_v58 = vadd.f32 %v7090_v27, %v6898_v31  ;;  %v7128_v19 = vadd.f32 %v7127_v45, %v14581_v23  ;;  %7601 = vmatprep.mubr.bf16.mxu0 %v15857_v28  ;;  %v15861_v31 = vld [vmem:[#allocation88_spill] sm:$0xff] }
 0x4bd   : > { %7794 = vmatprep.mubr.bf16.mxu1 %v15858_v43  ;;  %v7129_v25 = vpop.f32.mrf.mxu0  ;;  %v15864_v14 = vld [vmem:[#allocation128_spill] sm:$0xff] }
 0x4be   : > { %v7322_v8 = vpop.f32.mrf.mxu1  ;;  %v14597_v22 = vpack.c.bf16 %v7989_v13, %v7985_v50  ;;  %v7990_v41 = vmax.f32 %v7091_v58, 0.0  ;;  %v14599_v21 = vadd.f32 %v7320_v32, %v7128_v19  ;;  %v7130_v18 = vadd.f32 %v7129_v25, %v14587_v33 }
 0x4bf   : > { %v7131_v17 = vpop.f32.mrf.mxu0 }
 0x4c0   : > { %15859 = vst [vmem:[#allocation54_spill] sm:$0xff] %v14597_v22  ;;  %v7324_v11 = vpop.f32.mrf.mxu1  ;;  %v14602_v38 = vadd.f32 %v7322_v8, %v7130_v18  ;;  %v7132_v30 = vadd.f32 %v7131_v17, %v14581_v23  ;;  %v14608_v59 = vpack.c.bf16 %v7990_v41, %v7986_v54 }
 0x4c1   : > { %v7133_v39 = vpop.f32.mrf.mxu0 }
 0x4c2   : > { %15860 = vst [vmem:[#allocation75_spill] sm:$0xff] %v14608_v59  ;;  %v7326_v62 = vpop.f32.mrf.mxu1  ;;  %v14610_v42 = vadd.f32 %v7324_v11, %v7132_v30  ;;  %v7134_v27 = vadd.f32 %v7133_v39, %v14587_v33  ;;  %v15865_v30 = vld [vmem:[#allocation90_spill] sm:$0xff] }
 0x4c3   : > { %v7137_v44 = vpop.f32.mrf.mxu0  ;;  %7602 = vmatmul.mubr.bf16.gmra.mxu0 %v15861_v31 }
 0x4c4   : > { %v7330_v51 = vpop.f32.mrf.mxu1  ;;  %7795 = vmatmul.mubr.bf16.gmra.mxu1 %v15862_v53  ;;  %v14615_v45 = vadd.f32 %v7326_v62, %v7134_v27  ;;  %v7138_v32 = vadd.f32 %v7137_v44, %v14581_v23  ;;  %7611 = vmatprep.mubr.bf16.mxu0 %v15863_v16  ;;  %v15867_v27 = vld [vmem:[#allocation93_spill] sm:$0xff]  ;;  %v15868_v44 = vld [vmem:[#allocation130_spill] sm:$0xff] }
 0x4c5   : > { %7804 = vmatprep.mubr.bf16.mxu1 %v15864_v14  ;;  %v7139_v50 = vpop.f32.mrf.mxu0 }
 0x4c6   : > { %v7332_v13 = vpop.f32.mrf.mxu1  ;;  %v14620_v58 = vadd.f32 %v7330_v51, %v7138_v32  ;;  %v7140_v19 = vadd.f32 %v7139_v50, %v14587_v33 }
 0x4c7   : > { %v7141_v28 = vpop.f32.mrf.mxu0 }
 0x4c8   : > { %v7334_v43 = vpop.f32.mrf.mxu1  ;;  %v14623_v12 = vadd.f32 %v7332_v13, %v7140_v19  ;;  %v7142_v54 = vadd.f32 %v7141_v28, %v14581_v23 }
 0x4c9   : > { %v7143_v25 = vpop.f32.mrf.mxu0 }
 0x4ca   : > { %v7336_v8 = vpop.f32.mrf.mxu1  ;;  %v14626_v41 = vadd.f32 %v7334_v43, %v7142_v54  ;;  %v7144_v18 = vadd.f32 %v7143_v25, %v14587_v33 }
 0x4cb   : > { %v7147_v17 = vpop.f32.mrf.mxu0  ;;  %7612 = vmatmul.mubr.bf16.gmra.mxu0 %v15865_v30 }
 0x4cc   : > { %v7340_v11 = vpop.f32.mrf.mxu1  ;;  %7805 = vmatmul.mubr.bf16.gmra.mxu1 %v15866_v46  ;;  %v14631_v39 = vadd.f32 %v7336_v8, %v7144_v18  ;;  %v7148_v62 = vadd.f32 %v7147_v17, %v14581_v23  ;;  %7621 = vmatprep.mubr.bf16.mxu0 %v15867_v27  ;;  %v15869_v18 = vld [vmem:[#allocation92_spill] sm:$0xff]  ;;  %v15870_v17 = vld [vmem:[#allocation119_spill] sm:$0xff] }
 0x4cd   : > { %7814 = vmatprep.mubr.bf16.mxu1 %v15868_v44  ;;  %v7149_v51 = vpop.f32.mrf.mxu0  ;;  %v15871_v46 = vld [vmem:[#allocation95_spill] sm:$0xff] }
 0x4ce   : > { %v7342_v31 = vpop.f32.mrf.mxu1  ;;  %v14636_v53 = vadd.f32 %v7340_v11, %v7148_v62  ;;  %v7150_v32 = vadd.f32 %v7149_v51, %v14587_v33  ;;  %v15872_v62 = vld [vmem:[#allocation102_spill] sm:$0xff] }
 0x4cf   : > { %v7151_v16 = vpop.f32.mrf.mxu0 }
 0x4d0   : > { %v7344_v14 = vpop.f32.mrf.mxu1  ;;  %v14639_v50 = vadd.f32 %v7342_v31, %v7150_v32  ;;  %v7152_v13 = vadd.f32 %v7151_v16, %v14581_v23 }
 0x4d1   : > { %v7153_v19 = vpop.f32.mrf.mxu0 }
 0x4d2   : > { %v7346_v28 = vpop.f32.mrf.mxu1  ;;  %v14642_v43 = vadd.f32 %v7344_v14, %v7152_v13  ;;  %v7154_v54 = vadd.f32 %v7153_v19, %v14587_v33 }
 0x4d3   : > { %v7157_v25 = vpop.f32.mrf.mxu0  ;;  %7622 = vmatmul.mubr.bf16.gmra.mxu0 %v15869_v18 }
 0x4d4   : > { %v7350_v8 = vpop.f32.mrf.mxu1  ;;  %7815 = vmatmul.mubr.bf16.gmra.mxu1 %v15870_v17  ;;  %v14647_v11 = vadd.f32 %v7346_v28, %v7154_v54  ;;  %v7158_v30 = vadd.f32 %v7157_v25, %v14581_v23  ;;  %7631 = vmatprep.mubr.bf16.mxu0 %v15871_v46  ;;  %v15873_v46 = vld [vmem:[#allocation94_spill] sm:$0xff] }
 0x4d5   : > { %7824 = vmatprep.mubr.bf16.mxu1 %v15872_v62  ;;  %v7159_v27 = vpop.f32.mrf.mxu0 }
 0x4d6   : > { %v7352_v44 = vpop.f32.mrf.mxu1  ;;  %v14652_v51 = vadd.f32 %v7350_v8, %v7158_v30  ;;  %v7160_v31 = vadd.f32 %v7159_v27, %v14587_v33  ;;  %v15874_v8 = vld [vmem:[#allocation103_spill] sm:$0xff]  ;;  %v15875_v27 = vld [vmem:[#allocation97_spill] sm:$0xff] }
 0x4d7   : > { %v7161_v32 = vpop.f32.mrf.mxu0 }
 0x4d8   : > { %v7354_v16 = vpop.f32.mrf.mxu1  ;;  %v14655_v14 = vadd.f32 %v7352_v44, %v7160_v31  ;;  %v7162_v13 = vadd.f32 %v7161_v32, %v14581_v23  ;;  %v15876_v44 = vld [vmem:[#allocation106_spill] sm:$0xff] }
 0x4d9   : > { %v7163_v19 = vpop.f32.mrf.mxu0 }
 0x4da   : > { %v7356_v28 = vpop.f32.mrf.mxu1  ;;  %v14658_v54 = vadd.f32 %v7354_v16, %v7162_v13  ;;  %v7164_v25 = vadd.f32 %v7163_v19, %v14587_v33 }
 0x4db   : > { %v7167_v18 = vpop.f32.mrf.mxu0  ;;  %7632 = vmatmul.mubr.bf16.gmra.mxu0 %v15873_v46 }
 0x4dc   : > { %v7360_v17 = vpop.f32.mrf.mxu1  ;;  %7825 = vmatmul.mubr.bf16.gmra.mxu1 %v15874_v8  ;;  %v14663_v30 = vadd.f32 %v7356_v28, %v7164_v25  ;;  %v7168_v62 = vadd.f32 %v7167_v18, %v14581_v23  ;;  %7641 = vmatprep.mubr.bf16.mxu0 %v15875_v27 }
 0x4dd   : > { %7834 = vmatprep.mubr.bf16.mxu1 %v15876_v44  ;;  %v7169_v31 = vpop.f32.mrf.mxu0  ;;  %v15879_v44 = vld [vmem:[#allocation96_spill] sm:$0xff] }
 0x4de   : > { %v7362_v32 = vpop.f32.mrf.mxu1  ;;  %v14668_v16 = vadd.f32 %v7360_v17, %v7168_v62  ;;  %v7170_v13 = vadd.f32 %v7169_v31, %v14587_v33  ;;  %v15880_v17 = vld [vmem:[#allocation131_spill] sm:$0xff] }
 0x4df   : > { %v7171_v19 = vpop.f32.mrf.mxu0  ;;  %v15881_v31 = vld [vmem:[#allocation99_spill] sm:$0xff] }
 0x4e0   : > { %v7364_v22 = vpop.f32.mrf.mxu1  ;;  %v14671_v59 = vadd.f32 %v7362_v32, %v7170_v13  ;;  %v7172_v46 = vadd.f32 %v7171_v19, %v14581_v23  ;;  %v15882_v32 = vld [vmem:[#allocation132_spill] sm:$0xff] }
 0x4e1   : > { %v14674_v28 = vpop.f32.mrf.mxu0 }
 0x4e2   : > { %v14676_v25 = vpop.f32.mrf.mxu1  ;;  %v14678_v18 = vadd.f32 %v7364_v22, %v7172_v46 }
 0x4e3   : > { %15877 = vst [vmem:[#allocation53_spill] sm:$0xff] %v14676_v25  ;;  %v7177_v8 = vpop.f32.mrf.mxu0  ;;  %7642 = vmatmul.mubr.bf16.gmra.mxu0 %v15879_v44  ;;  %v15888_v25 = vld [vmem:[#allocation98_spill] sm:$0xff] }
 0x4e4   : > { %15878 = vst [vmem:[#allocation74_spill] sm:$0xff] %v14678_v18  ;;  %v7370_v27 = vpop.f32.mrf.mxu1  ;;  %7835 = vmatmul.mubr.bf16.gmra.mxu1 %v15880_v17  ;;  %v7178_v62 = vadd.f32 %v7177_v8, %v14581_v23  ;;  %7651 = vmatprep.mubr.bf16.mxu0 %v15881_v31 }
 0x4e5   : > { %7844 = vmatprep.mubr.bf16.mxu1 %v15882_v32  ;;  %v7179_v13 = vpop.f32.mrf.mxu0 }
 0x4e6   : > { %v7372_v19 = vpop.f32.mrf.mxu1  ;;  %v14685_v35 = vadd.f32 %v7370_v27, %v7178_v62  ;;  %v7180_v52 = vadd.f32 %v7179_v13, %v14587_v33  ;;  %v15889_v27 = vld [vmem:[#allocation125_spill] sm:$0xff] }
 0x4e7   : > { %v7181_v22 = vpop.f32.mrf.mxu0  ;;  %v15890_v13 = vld [vmem:[#allocation101_spill] sm:$0xff] }
 0x4e8   : > { %15883 = vst [vmem:[#allocation56_spill] sm:$0xff] %v14685_v35  ;;  %v7374_v46 = vpop.f32.mrf.mxu1  ;;  %v14688_v5 = vadd.f32 %v7372_v19, %v7180_v52  ;;  %v7182_v44 = vadd.f32 %v7181_v22, %v14581_v23  ;;  %v15891_v52 = vld [vmem:[#allocation123_spill] sm:$0xff] }
 0x4e9   : > { %v14691_v18 = vpop.f32.mrf.mxu0 }
 0x4ea   : > { %15884 = vst [vmem:[#allocation7_spill] sm:$0xff] %v14688_v5  ;;  %15885 = vst [vmem:[#allocation55_spill] sm:$0xff] %v14691_v18  ;;  %v14693_v17 = vpop.f32.mrf.mxu1  ;;  %v14695_v8 = vadd.f32 %v7374_v46, %v7182_v44  ;;  %v15895_v18 = vld [vmem:[#allocation100_spill] sm:$0xff] }
 0x4eb   : > { %15886 = vst [vmem:[#allocation44_spill] sm:$0xff] %v14693_v17  ;;  %v7187_v31 = vpop.f32.mrf.mxu0  ;;  %7652 = vmatmul.mubr.bf16.gmra.mxu0 %v15888_v25 }
 0x4ec   : > { %15887 = vst [vmem:[#allocation58_spill] sm:$0xff] %v14695_v8  ;;  %v7380_v32 = vpop.f32.mrf.mxu1  ;;  %7845 = vmatmul.mubr.bf16.gmra.mxu1 %v15889_v27  ;;  %v7188_v62 = vadd.f32 %v7187_v31, %v14581_v23  ;;  %7661 = vmatprep.mubr.bf16.mxu0 %v15890_v13 }
 0x4ed   : > { %7854 = vmatprep.mubr.bf16.mxu1 %v15891_v52  ;;  %v7189_v19 = vpop.f32.mrf.mxu0 }
 0x4ee   : > { %v7382_v22 = vpop.f32.mrf.mxu1  ;;  %v14702_v5 = vadd.f32 %v7380_v32, %v7188_v62  ;;  %v7190_v17 = vadd.f32 %v7189_v19, %v14587_v33  ;;  %v15896_v32 = vld [vmem:[#allocation126_spill] sm:$0xff] }
 0x4ef   : > { %v7191_v46 = vpop.f32.mrf.mxu0 }
 0x4f0   : > { %v7384_v44 = vpop.f32.mrf.mxu1  ;;  %v14705_v8 = vadd.f32 %v7382_v22, %v7190_v17  ;;  %v7192_v25 = vadd.f32 %v7191_v46, %v14581_v23 }
 0x4f1   : > { %v14708_v35 = vpop.f32.mrf.mxu0 }
 0x4f2   : > { %15892 = vst [vmem:[#allocation9_spill] sm:$0xff] %v14705_v8  ;;  %v14710_v27 = vpop.f32.mrf.mxu1  ;;  %v14712_v31 = vadd.f32 %v7384_v44, %v7192_v25 }
 0x4f3   : > { %15893 = vst [vmem:[#allocation57_spill] sm:$0xff] %v14710_v27  ;;  %v7197_v13 = vpop.f32.mrf.mxu0  ;;  %7662 = vmatmul.mubr.bf16.gmra.mxu0 %v15895_v18 }
 0x4f4   : > { %15894 = vst [vmem:[#allocation8_spill] sm:$0xff] %v14712_v31  ;;  %v7390_v52 = vpop.f32.mrf.mxu1  ;;  %7855 = vmatmul.mubr.bf16.gmra.mxu1 %v15896_v32  ;;  %v7198_v62 = vadd.f32 %v7197_v13, %v14581_v23  ;;  %8352 = vmatprep.mubr.bf16.mxu0 %v14319_v29 }
 0x4f5   : > { %v7199_v17 = vpop.f32.mrf.mxu0 }
 0x4f6   : > { %v7392_v19 = vpop.f32.mrf.mxu1  ;;  %v14718_v22 = vadd.f32 %v7390_v52, %v7198_v62  ;;  %v7200_v46 = vadd.f32 %v7199_v17, %v14587_v33 }
 0x4f7   : > { %v7201_v8 = vpop.f32.mrf.mxu0 }
 0x4f8   : > { %15897 = vst [vmem:[#allocation60_spill] sm:$0xff] %v14718_v22  ;;  %v7394_v27 = vpop.f32.mrf.mxu1  ;;  %v14721_v44 = vadd.f32 %v7392_v19, %v7200_v46  ;;  %v7202_v25 = vadd.f32 %v7201_v8, %v14581_v23 }
 0x4f9   : > { %v14724_v31 = vpop.f32.mrf.mxu0 }
 0x4fa   : > { %15898 = vst [vmem:[#allocation77_spill] sm:$0xff] %v14721_v44  ;;  %v14726_v18 = vpop.f32.mrf.mxu1  ;;  %v14728_v32 = vadd.f32 %v7394_v27, %v7202_v25 }
 0x4fb   : > { %v7207_v13 = vpop.f32.mrf.mxu0  ;;  %8353 = vmatmul.mubr.bf16.vlgmr.msra.gmra.mxu0 %v14315_v4 }
 0x4fc   : > { %15899 = vst [vmem:[#allocation59_spill] sm:$0xff] %v14728_v32  ;;  %v7400_v29 = vpop.f32.mrf.mxu1  ;;  %v7208_v52 = vadd.f32 %v7207_v13, %v14581_v23  ;;  %8360 = vmatprep.mubr.bf16.mxu0 %v14337_v7 }
 0x4fd   : > { %v7209_v62 = vpop.f32.mrf.mxu0 }
 0x4fe   : > { %v7402_v17 = vpop.f32.mrf.mxu1  ;;  %v14733_v19 = vadd.f32 %v7400_v29, %v7208_v52  ;;  %v7210_v8 = vadd.f32 %v7209_v62, %v14587_v33 }
 0x4ff   : > { %v7211_v46 = vpop.f32.mrf.mxu0 }
 0x500   : > { %15900 = vst [vmem:[#allocation76_spill] sm:$0xff] %v14733_v19  ;;  %v7404_v44 = vpop.f32.mrf.mxu1  ;;  %v14736_v22 = vadd.f32 %v7402_v17, %v7210_v8  ;;  %v7212_v27 = vadd.f32 %v7211_v46, %v14581_v23 }
 0x501   : > { %v14739_v25 = vpop.f32.mrf.mxu0 }
 0x502   : > { %15901 = vst [vmem:[#allocation62_spill] sm:$0xff] %v14736_v22  ;;  %v14741_v32 = vpop.f32.mrf.mxu1  ;;  %v14743_v4 = vadd.f32 %v7404_v44, %v7212_v27 }
 0x503   : > { %v7217_v13 = vpop.f32.mrf.mxu0  ;;  %8361 = vmatmul.mubr.bf16.gmra.mxu0 %v14333_v34 }
 0x504   : > { %15902 = vst [vmem:[#allocation79_spill] sm:$0xff] %v14743_v4  ;;  %v7410_v7 = vpop.f32.mrf.mxu1  ;;  %v7218_v29 = vadd.f32 %v7217_v13, %v14581_v23  ;;  %8368 = vmatprep.mubr.bf16.mxu0 %v14349_v63 }
 0x505   : > { %v7219_v52 = vpop.f32.mrf.mxu0 }
 0x506   : > { %v7412_v62 = vpop.f32.mrf.mxu1  ;;  %v14748_v17 = vadd.f32 %v7410_v7, %v7218_v29  ;;  %v7220_v8 = vadd.f32 %v7219_v52, %v14587_v33 }
 0x507   : > { %v7221_v46 = vpop.f32.mrf.mxu0 }
 0x508   : > { %15903 = vst [vmem:[#allocation61_spill] sm:$0xff] %v14748_v17  ;;  %v7414_v22 = vpop.f32.mrf.mxu1  ;;  %v14751_v19 = vadd.f32 %v7412_v62, %v7220_v8  ;;  %v7222_v44 = vadd.f32 %v7221_v46, %v14581_v23 }
 0x509   : > { %v14754_v27 = vpop.f32.mrf.mxu0 }
 0x50a   : > { %15904 = vst [vmem:[#allocation78_spill] sm:$0xff] %v14751_v19  ;;  %v14756_v4 = vpop.f32.mrf.mxu1  ;;  %v14758_v34 = vadd.f32 %v7414_v22, %v7222_v44 }
 0x50b   : > { %v7227_v13 = vpop.f32.mrf.mxu0  ;;  %8369 = vmatmul.mubr.bf16.gmra.mxu0 %v14345_v56 }
 0x50c   : > { %15905 = vst [vmem:[#allocation64_spill] sm:$0xff] %v14758_v34  ;;  %v7420_v63 = vpop.f32.mrf.mxu1  ;;  %v7228_v7 = vadd.f32 %v7227_v13, %v14581_v23  ;;  %8376 = vmatprep.mubr.bf16.mxu0 %v14361_v48 }
 0x50d   : > { %v7229_v29 = vpop.f32.mrf.mxu0 }
 0x50e   : > { %v7422_v52 = vpop.f32.mrf.mxu1  ;;  %v14763_v62 = vadd.f32 %v7420_v63, %v7228_v7  ;;  %v7230_v8 = vadd.f32 %v7229_v29, %v14587_v33 }
 0x50f   : > { %v7231_v46 = vpop.f32.mrf.mxu0 }
 0x510   : > { %15906 = vst [vmem:[#allocation81_spill] sm:$0xff] %v14763_v62  ;;  %v7424_v19 = vpop.f32.mrf.mxu1  ;;  %v14766_v17 = vadd.f32 %v7422_v52, %v7230_v8  ;;  %v7232_v22 = vadd.f32 %v7231_v46, %v14581_v23 }
 0x511   : > { %v14769_v44 = vpop.f32.mrf.mxu0 }
 0x512   : > { %15907 = vst [vmem:[#allocation63_spill] sm:$0xff] %v14766_v17  ;;  %v14771_v34 = vpop.f32.mrf.mxu1  ;;  %v14773_v56 = vadd.f32 %v7424_v19, %v7232_v22 }
 0x513   : > { %v7237_v13 = vpop.f32.mrf.mxu0  ;;  %8377 = vmatmul.mubr.bf16.gmra.mxu0 %v14357_v60 }
 0x514   : > { %15908 = vst [vmem:[#allocation80_spill] sm:$0xff] %v14773_v56  ;;  %v7430_v48 = vpop.f32.mrf.mxu1  ;;  %v7238_v63 = vadd.f32 %v7237_v13, %v14581_v23  ;;  %8384 = vmatprep.mubr.bf16.mxu0 %v14373_v49 }
 0x515   : > { %v7239_v7 = vpop.f32.mrf.mxu0 }
 0x516   : > { %v7432_v29 = vpop.f32.mrf.mxu1  ;;  %v14778_v52 = vadd.f32 %v7430_v48, %v7238_v63  ;;  %v7240_v8 = vadd.f32 %v7239_v7, %v14587_v33 }
 0x517   : > { %v7241_v46 = vpop.f32.mrf.mxu0 }
 0x518   : > { %15909 = vst [vmem:[#allocation66_spill] sm:$0xff] %v14778_v52  ;;  %v7434_v17 = vpop.f32.mrf.mxu1  ;;  %v14781_v62 = vadd.f32 %v7432_v29, %v7240_v8  ;;  %v7242_v19 = vadd.f32 %v7241_v46, %v14581_v23 }
 0x519   : > { %v14784_v22 = vpop.f32.mrf.mxu0 }
 0x51a   : > { %15910 = vst [vmem:[#allocation83_spill] sm:$0xff] %v14781_v62  ;;  %v14786_v56 = vpop.f32.mrf.mxu1  ;;  %v14788_v60 = vadd.f32 %v7434_v17, %v7242_v19 }
 0x51b   : > { %v7247_v13 = vpop.f32.mrf.mxu0  ;;  %8385 = vmatmul.mubr.bf16.gmra.mxu0 %v14369_v24 }
 0x51c   : > { %15911 = vst [vmem:[#allocation65_spill] sm:$0xff] %v14788_v60  ;;  %v7440_v49 = vpop.f32.mrf.mxu1  ;;  %v7248_v48 = vadd.f32 %v7247_v13, %v14581_v23  ;;  %8392 = vmatprep.mubr.bf16.mxu0 %v14385_v61 }
 0x51d   : > { %v7249_v63 = vpop.f32.mrf.mxu0 }
 0x51e   : > { %v7442_v7 = vpop.f32.mrf.mxu1  ;;  %v14793_v29 = vadd.f32 %v7440_v49, %v7248_v48  ;;  %v7250_v8 = vadd.f32 %v7249_v63, %v14587_v33 }
 0x51f   : > { %v7251_v46 = vpop.f32.mrf.mxu0 }
 0x520   : > { %15912 = vst [vmem:[#allocation82_spill] sm:$0xff] %v14793_v29  ;;  %v7444_v62 = vpop.f32.mrf.mxu1  ;;  %v14796_v52 = vadd.f32 %v7442_v7, %v7250_v8  ;;  %v7252_v17 = vadd.f32 %v7251_v46, %v14581_v23 }
 0x521   : > { %v14799_v19 = vpop.f32.mrf.mxu0 }
 0x522   : > { %15913 = vst [vmem:[#allocation12_spill] sm:$0xff] %v14796_v52  ;;  %v14801_v60 = vpop.f32.mrf.mxu1  ;;  %v14803_v24 = vadd.f32 %v7444_v62, %v7252_v17 }
 0x523   : > { %v7257_v13 = vpop.f32.mrf.mxu0  ;;  %8393 = vmatmul.mubr.bf16.gmra.mxu0 %v14381_v20 }
 0x524   : > { %15914 = vst [vmem:[#allocation13_spill] sm:$0xff] %v14803_v24  ;;  %v7450_v61 = vpop.f32.mrf.mxu1  ;;  %v7258_v49 = vadd.f32 %v7257_v13, %v14581_v23  ;;  %8400 = vmatprep.mubr.bf16.mxu0 %v14397_v0 }
 0x525   : > { %v7259_v48 = vpop.f32.mrf.mxu0 }
 0x526   : > { %v7452_v63 = vpop.f32.mrf.mxu1  ;;  %v14808_v7 = vadd.f32 %v7450_v61, %v7258_v49  ;;  %v7260_v8 = vadd.f32 %v7259_v48, %v14587_v33 }
 0x527   : > { %v7261_v46 = vpop.f32.mrf.mxu0 }
 0x528   : > { %15915 = vst [vmem:[#allocation11_spill] sm:$0xff] %v14808_v7  ;;  %v7454_v52 = vpop.f32.mrf.mxu1  ;;  %v14811_v29 = vadd.f32 %v7452_v63, %v7260_v8  ;;  %v7262_v62 = vadd.f32 %v7261_v46, %v14581_v23 }
 0x529   : > { %v14814_v17 = vpop.f32.mrf.mxu0 }
 0x52a   : > { %15916 = vst [vmem:[#allocation10_spill] sm:$0xff] %v14811_v29  ;;  %v14816_v24 = vpop.f32.mrf.mxu1  ;;  %v14818_v20 = vadd.f32 %v7454_v52, %v7262_v62 }
 0x52b   : > { %v7267_v13 = vpop.f32.mrf.mxu0  ;;  %8401 = vmatmul.mubr.bf16.gmra.mxu0 %v14393_v2 }
 0x52c   : > { %15917 = vst [vmem:[#allocation67_spill] sm:$0xff] %v14818_v20  ;;  %v7460_v0 = vpop.f32.mrf.mxu1  ;;  %v7268_v61 = vadd.f32 %v7267_v13, %v14581_v23  ;;  %8408 = vmatprep.mubr.bf16.mxu0 %v14433_v15 }
 0x52d   : > { %v7269_v49 = vpop.f32.mrf.mxu0 }
 0x52e   : > { %v7462_v48 = vpop.f32.mrf.mxu1  ;;  %v14823_v63 = vadd.f32 %v7460_v0, %v7268_v61  ;;  %v7270_v8 = vadd.f32 %v7269_v49, %v14587_v33 }
 0x52f   : > { %v7271_v46 = vpop.f32.mrf.mxu0 }
 0x530   : > { %15918 = vst [vmem:[#allocation15_spill] sm:$0xff] %v14823_v63  ;;  %v7464_v29 = vpop.f32.mrf.mxu1  ;;  %v14826_v7 = vadd.f32 %v7462_v48, %v7270_v8  ;;  %v7272_v52 = vadd.f32 %v7271_v46, %v14581_v23 }
 0x531   : > { %v14829_v62 = vpop.f32.mrf.mxu0 }
 0x532   : > { %15919 = vst [vmem:[#allocation16_spill] sm:$0xff] %v14826_v7  ;;  %v14831_v20 = vpop.f32.mrf.mxu1  ;;  %v14833_v2 = vadd.f32 %v7464_v29, %v7272_v52 }
 0x533   : > { %v7277_v13 = vpop.f32.mrf.mxu0  ;;  %8409 = vmatmul.mubr.bf16.gmra.mxu0 %v14423_v10 }
 0x534   : > { %15920 = vst [vmem:[#allocation14_spill] sm:$0xff] %v14833_v2  ;;  %v7470_v15 = vpop.f32.mrf.mxu1  ;;  %v7278_v0 = vadd.f32 %v7277_v13, %v14581_v23  ;;  %8416 = vmatprep.mubr.bf16.mxu0 %v14466_v37 }
 0x535   : > { %v7279_v61 = vpop.f32.mrf.mxu0 }
 0x536   : > { %v7472_v49 = vpop.f32.mrf.mxu1  ;;  %v14838_v48 = vadd.f32 %v7470_v15, %v7278_v0  ;;  %v7280_v8 = vadd.f32 %v7279_v61, %v14587_v33 }
 0x537   : > { %v7281_v46 = vpop.f32.mrf.mxu0 }
 0x538   : > { %15921 = vst [vmem:[#allocation18_spill] sm:$0xff] %v14838_v48  ;;  %v7474_v7 = vpop.f32.mrf.mxu1  ;;  %v14841_v63 = vadd.f32 %v7472_v49, %v7280_v8  ;;  %v7282_v29 = vadd.f32 %v7281_v46, %v14581_v23 }
 0x539   : > { %v14844_v52 = vpop.f32.mrf.mxu0 }
 0x53a   : > { %15922 = vst [vmem:[#allocation84_spill] sm:$0xff] %v14841_v63  ;;  %15923 = vst [vmem:[#allocation17_spill] sm:$0xff] %v14844_v52  ;;  %v14846_v2 = vpop.f32.mrf.mxu1  ;;  %v14848_v10 = vadd.f32 %v7474_v7, %v7282_v29 }
 0x53b   : > { %15924 = vst [vmem:[#allocation2_spill] sm:$0xff] %v14846_v2  ;;  %v7513_v13 = vpop.f32.mrf.mxu0  ;;  %8417 = vmatmul.mubr.bf16.gmra.mxu0 %v14459_v47 }
 0x53c   : > { %15925 = vst [vmem:[#allocation20_spill] sm:$0xff] %v14848_v10  ;;  %v7706_v37 = vpop.f32.mrf.mxu1  ;;  %v7514_v15 = vadd.f32 %v7513_v13, %v14599_v21  ;;  %8424 = vmatprep.mubr.bf16.mxu0 %v14496_v26 }
 0x53d   : > { %v7515_v0 = vpop.f32.mrf.mxu0 }
 0x53e   : > { %v7708_v61 = vpop.f32.mrf.mxu1  ;;  %v7516_v49 = vadd.f32 %v7515_v0, %v14602_v38  ;;  %v7707_v46 = vadd.f32 %v7706_v37, %v7514_v15 }
 0x53f   : > { %v7517_v8 = vpop.f32.mrf.mxu0 }
 0x540   : > { %v7710_v23 = vpop.f32.mrf.mxu1  ;;  %v7518_v63 = vadd.f32 %v7517_v8, %v14610_v42  ;;  %v7709_v29 = vadd.f32 %v7708_v61, %v7516_v49  ;;  %v7867_v26 = vmax.f32 %v7707_v46, 0.0 }
 0x541   : > { %v7519_v2 = vpop.f32.mrf.mxu0 }
 0x542   : > { %v7712_v7 = vpop.f32.mrf.mxu1  ;;  %v7711_v10 = vadd.f32 %v7710_v23, %v7518_v63  ;;  %v7520_v48 = vadd.f32 %v7519_v2, %v14615_v45  ;;  %v7868_v42 = vmax.f32 %v7709_v29, 0.0 }
 0x543   : > { %v7523_v47 = vpop.f32.mrf.mxu0  ;;  %8425 = vmatmul.mubr.bf16.gmra.mxu0 %v14486_v9 }
 0x544   : > { %v7716_v52 = vpop.f32.mrf.mxu1  ;;  %v7871_v21 = vmax.f32 %v7711_v10, 0.0  ;;  %v7713_v13 = vadd.f32 %v7712_v7, %v7520_v48  ;;  %v7524_v38 = vadd.f32 %v7523_v47, %v14620_v58  ;;  %8432 = vmatprep.mubr.bf16.mxu0 %v14517_v6 }
 0x545   : > { %v7525_v37 = vpop.f32.mrf.mxu0 }
 0x546   : > { %v7718_v15 = vpop.f32.mrf.mxu1  ;;  %v7995_v0 = vpack.c.bf16 %v7871_v21, %v7867_v26  ;;  %v7872_v8 = vmax.f32 %v7713_v13, 0.0  ;;  %v7526_v63 = vadd.f32 %v7525_v37, %v14623_v12  ;;  %v7717_v2 = vadd.f32 %v7716_v52, %v7524_v38 }
 0x547   : > { %v7527_v61 = vpop.f32.mrf.mxu0 }
 0x548   : > { %v7720_v45 = vpop.f32.mrf.mxu1  ;;  %v7528_v49 = vadd.f32 %v7527_v61, %v14626_v41  ;;  %v7996_v9 = vpack.c.bf16 %v7872_v8, %v7868_v42  ;;  %v7719_v48 = vadd.f32 %v7718_v15, %v7526_v63  ;;  %v7875_v29 = vmax.f32 %v7717_v2, 0.0 }
 0x549   : > { %v7529_v23 = vpop.f32.mrf.mxu0 }
 0x54a   : > { %v7722_v10 = vpop.f32.mrf.mxu1  ;;  %v7721_v46 = vadd.f32 %v7720_v45, %v7528_v49  ;;  %v7530_v58 = vadd.f32 %v7529_v23, %v14631_v39  ;;  %8513 = vmatprep.mubr.bf16.mxu1 %v7996_v9  ;;  %v7876_v21 = vmax.f32 %v7719_v48, 0.0 }
 0x54b   : > { %v7533_v6 = vpop.f32.mrf.mxu0  ;;  %8433 = vmatmul.mubr.bf16.gmra.mxu0 %v14513_v40  ;;  %8514 = vmatmul.mubr.bf16.vlgmr.msra.gmra.mxu1 %v7995_v0 }
 0x54c   : > { %v7726_v7 = vpop.f32.mrf.mxu1  ;;  %v7879_v12 = vmax.f32 %v7721_v46, 0.0  ;;  %v7723_v47 = vadd.f32 %v7722_v10, %v7530_v58  ;;  %v7534_v52 = vadd.f32 %v7533_v6, %v14636_v53  ;;  %8440 = vmatprep.mubr.bf16.mxu0 %v14535_v57 }
 0x54d   : > { %v7535_v41 = vpop.f32.mrf.mxu0 }
 0x54e   : > { %v7728_v26 = vpop.f32.mrf.mxu1  ;;  %v7999_v13 = vpack.c.bf16 %v7879_v12, %v7875_v29  ;;  %v7880_v38 = vmax.f32 %v7723_v47, 0.0  ;;  %v7536_v39 = vadd.f32 %v7535_v41, %v14639_v50  ;;  %v7727_v42 = vadd.f32 %v7726_v7, %v7534_v52 }
 0x54f   : > { %v7537_v37 = vpop.f32.mrf.mxu0 }
 0x550   : > { %v7730_v15 = vpop.f32.mrf.mxu1  ;;  %v7538_v40 = vadd.f32 %v7537_v37, %v14642_v43  ;;  %v8000_v0 = vpack.c.bf16 %v7880_v38, %v7876_v21  ;;  %v7729_v61 = vadd.f32 %v7728_v26, %v7536_v39  ;;  %v7883_v49 = vmax.f32 %v7727_v42, 0.0 }
 0x551   : > { %v7539_v8 = vpop.f32.mrf.mxu0 }
 0x552   : > { %v7732_v63 = vpop.f32.mrf.mxu1  ;;  %v7731_v45 = vadd.f32 %v7730_v15, %v7538_v40  ;;  %v7540_v53 = vadd.f32 %v7539_v8, %v14647_v11  ;;  %8521 = vmatprep.mubr.bf16.mxu1 %v8000_v0  ;;  %v7884_v48 = vmax.f32 %v7729_v61, 0.0 }
 0x553   : > { %v7543_v57 = vpop.f32.mrf.mxu0  ;;  %8441 = vmatmul.mubr.bf16.gmra.mxu0 %v14528_v36  ;;  %8522 = vmatmul.mubr.bf16.gmra.mxu1 %v7999_v13 }
 0x554   : > { %v7736_v2 = vpop.f32.mrf.mxu1  ;;  %v7887_v50 = vmax.f32 %v7731_v45, 0.0  ;;  %v7733_v9 = vadd.f32 %v7732_v63, %v7540_v53  ;;  %v7544_v23 = vadd.f32 %v7543_v57, %v14652_v51  ;;  %8448 = vmatprep.mubr.bf16.mxu0 %v14547_v1  ;;  %v7174_v1 = vadd.f32 %v14674_v28, %v14587_v33  ;;  %v15926_v63 = vld [vmem:[#allocation53_spill] sm:$0xff]  ;;  %v15927_v45 = vld [vmem:[#allocation74_spill] sm:$0xff] }
 0x555   : > { %v7545_v43 = vpop.f32.mrf.mxu0 }
 0x556   : > { %v7738_v10 = vpop.f32.mrf.mxu1  ;;  %v8003_v46 = vpack.c.bf16 %v7887_v50, %v7883_v49  ;;  %v7888_v58 = vmax.f32 %v7733_v9, 0.0  ;;  %v7546_v11 = vadd.f32 %v7545_v43, %v14655_v14  ;;  %v7737_v29 = vadd.f32 %v7736_v2, %v7544_v23  ;;  %v15928_v9 = vld [vmem:[#allocation55_spill] sm:$0xff] }
 0x557   : > { %v7547_v6 = vpop.f32.mrf.mxu0  ;;  %v7367_v61 = vadd.f32 %v15926_v63, %v7174_v1  ;;  %v7184_v23 = vadd.f32 %v15928_v9, %v14587_v33  ;;  %v15935_v63 = vld [vmem:[#allocation40_spill] sm:$0xff]  ;;  %v15937_v9 = vld [vmem:[#allocation9_spill] sm:$0xff] }
 0x558   : > { %v7740_v7 = vpop.f32.mrf.mxu1  ;;  %v7548_v36 = vadd.f32 %v7547_v6, %v14658_v54  ;;  %v8004_v12 = vpack.c.bf16 %v7888_v58, %v7884_v48  ;;  %v7739_v41 = vadd.f32 %v7738_v10, %v7546_v11  ;;  %v7891_v14 = vmax.f32 %v7737_v29, 0.0  ;;  %v15930_v11 = vld [vmem:[#allocation56_spill] sm:$0xff] }
 0x559   : > { %v7549_v47 = vpop.f32.mrf.mxu0 }
 0x55a   : > { %v7742_v52 = vpop.f32.mrf.mxu1  ;;  %v7741_v26 = vadd.f32 %v7740_v7, %v7548_v36  ;;  %v7550_v51 = vadd.f32 %v7549_v47, %v14663_v30  ;;  %8529 = vmatprep.mubr.bf16.mxu1 %v8004_v12  ;;  %v7892_v42 = vmax.f32 %v7739_v41, 0.0  ;;  %v15931_v7 = vld [vmem:[#allocation72_spill] sm:$0xff]  ;;  %v15932_v41 = vld [vmem:[#allocation7_spill] sm:$0xff] }
 0x55b   : > { %v7553_v21 = vpop.f32.mrf.mxu0  ;;  %8449 = vmatmul.mubr.bf16.gmra.mxu0 %v14543_v3  ;;  %8530 = vmatmul.mubr.bf16.gmra.mxu1 %v8003_v46 }
 0x55c   : > { %v7746_v13 = vpop.f32.mrf.mxu1  ;;  %v7895_v38 = vmax.f32 %v7741_v26, 0.0  ;;  %v7743_v39 = vadd.f32 %v7742_v52, %v7550_v51  ;;  %v7554_v54 = vadd.f32 %v7553_v21, %v14668_v16  ;;  %8456 = vmatprep.mubr.bf16.mxu0 %v14565_v55  ;;  %v15933_v21 = vld [vmem:[#allocation44_spill] sm:$0xff] }
 0x55d   : > { %v7555_v37 = vpop.f32.mrf.mxu0 }
 0x55e   : > { %v7748_v15 = vpop.f32.mrf.mxu1  ;;  %v8007_v30 = vpack.c.bf16 %v7895_v38, %v7891_v14  ;;  %v7896_v40 = vmax.f32 %v7743_v39, 0.0  ;;  %v7556_v0 = vadd.f32 %v7555_v37, %v14671_v59  ;;  %v7747_v3 = vadd.f32 %v7746_v13, %v7554_v54  ;;  %v15929_v59 = vld [vmem:[#allocation73_spill] sm:$0xff]  ;;  %v15934_v39 = vld [vmem:[#allocation58_spill] sm:$0xff] }
 0x55f   : > { %v7557_v28 = vpop.f32.mrf.mxu0  ;;  %v7377_v13 = vadd.f32 %v15933_v21, %v7184_v23  ;;  %v15941_v21 = vld [vmem:[#allocation60_spill] sm:$0xff] }
 0x560   : > { %v7750_v8 = vpop.f32.mrf.mxu1  ;;  %v7558_v53 = vadd.f32 %v7557_v28, %v15927_v45  ;;  %v8008_v57 = vpack.c.bf16 %v7896_v40, %v7892_v42  ;;  %v7749_v16 = vadd.f32 %v7748_v15, %v7556_v0  ;;  %v7899_v48 = vmax.f32 %v7747_v3, 0.0 }
 0x561   : > { %v7559_v2 = vpop.f32.mrf.mxu0  ;;  %v7194_v0 = vadd.f32 %v14708_v35, %v14587_v33 }
 0x562   : > { %v7752_v49 = vpop.f32.mrf.mxu1  ;;  %v7751_v50 = vadd.f32 %v7750_v8, %v7558_v53  ;;  %v7560_v55 = vadd.f32 %v7559_v2, %v7367_v61  ;;  %8537 = vmatprep.mubr.bf16.mxu1 %v8008_v57  ;;  %v7900_v12 = vmax.f32 %v7749_v16, 0.0  ;;  %v15936_v57 = vld [vmem:[#allocation75_spill] sm:$0xff] }
 0x563   : > { %v7563_v43 = vpop.f32.mrf.mxu0  ;;  %8457 = vmatmul.mubr.bf16.gmra.mxu0 %v15929_v59  ;;  %8538 = vmatmul.mubr.bf16.gmra.mxu1 %v8007_v30 }
 0x564   : > { %v7756_v10 = vpop.f32.mrf.mxu1  ;;  %v7903_v46 = vmax.f32 %v7751_v50, 0.0  ;;  %v7753_v58 = vadd.f32 %v7752_v49, %v7560_v55  ;;  %v7564_v6 = vadd.f32 %v7563_v43, %v15930_v11  ;;  %8464 = vmatprep.mubr.bf16.mxu0 %v15931_v7 }
 0x565   : > { %v7565_v29 = vpop.f32.mrf.mxu0 }
 0x566   : > { %v7758_v36 = vpop.f32.mrf.mxu1  ;;  %v8011_v47 = vpack.c.bf16 %v7903_v46, %v7899_v48  ;;  %v7904_v52 = vmax.f32 %v7753_v58, 0.0  ;;  %v7566_v26 = vadd.f32 %v7565_v29, %v15932_v41  ;;  %v7757_v38 = vadd.f32 %v7756_v10, %v7564_v6  ;;  %v15938_v10 = vld [vmem:[#allocation57_spill] sm:$0xff]  ;;  %v15939_v58 = vld [vmem:[#allocation8_spill] sm:$0xff]  ;;  %v15940_v41 = vld [vmem:[#allocation54_spill] sm:$0xff] }
 0x567   : > { %v7567_v51 = vpop.f32.mrf.mxu0  ;;  %v7387_v59 = vadd.f32 %v15938_v10, %v7194_v0 }
 0x568   : > { %v7760_v1 = vpop.f32.mrf.mxu1  ;;  %v8012_v14 = vpack.c.bf16 %v7904_v52, %v7900_v12  ;;  %v7568_v54 = vadd.f32 %v7567_v51, %v15934_v39  ;;  %v7759_v42 = vadd.f32 %v7758_v36, %v7566_v26  ;;  %v7907_v61 = vmax.f32 %v7757_v38, 0.0 }
 0x569   : > { %v7569_v37 = vpop.f32.mrf.mxu0  ;;  %v7204_v12 = vadd.f32 %v14724_v31, %v14587_v33 }
 0x56a   : > { %v7762_v15 = vpop.f32.mrf.mxu1  ;;  %v7761_v30 = vadd.f32 %v7760_v1, %v7568_v54  ;;  %v7570_v40 = vadd.f32 %v7569_v37, %v7377_v13  ;;  %8545 = vmatprep.mubr.bf16.mxu1 %v8012_v14  ;;  %v7908_v16 = vmax.f32 %v7759_v42, 0.0 }
 0x56b   : > { %v7573_v28 = vpop.f32.mrf.mxu0  ;;  %8465 = vmatmul.mubr.bf16.gmra.mxu0 %v15935_v63  ;;  %8546 = vmatmul.mubr.bf16.gmra.mxu1 %v8011_v47  ;;  %v7397_v31 = vadd.f32 %v14726_v18, %v7204_v12  ;;  %v15944_v18 = vld [vmem:[#allocation76_spill] sm:$0xff] }
 0x56c   : > { %v7766_v8 = vpop.f32.mrf.mxu1  ;;  %v7911_v3 = vmax.f32 %v7761_v30, 0.0  ;;  %v7763_v45 = vadd.f32 %v7762_v15, %v7570_v40  ;;  %v7574_v53 = vadd.f32 %v7573_v28, %v14702_v5  ;;  %8472 = vmatprep.mubr.bf16.mxu0 %v15936_v57  ;;  %v15942_v15 = vld [vmem:[#allocation77_spill] sm:$0xff] }
 0x56d   : > { %v7575_v2 = vpop.f32.mrf.mxu0 }
 0x56e   : > { %v7768_v49 = vpop.f32.mrf.mxu1  ;;  %v8015_v50 = vpack.c.bf16 %v7911_v3, %v7907_v61  ;;  %v7912_v55 = vmax.f32 %v7763_v45, 0.0  ;;  %v7576_v23 = vadd.f32 %v7575_v2, %v15937_v9  ;;  %v7767_v46 = vadd.f32 %v7766_v8, %v7574_v53  ;;  %v15943_v8 = vld [vmem:[#allocation59_spill] sm:$0xff] }
 0x56f   : > { %v7577_v35 = vpop.f32.mrf.mxu0  ;;  %v7214_v2 = vadd.f32 %v14739_v25, %v14587_v33 }
 0x570   : > { %v7770_v43 = vpop.f32.mrf.mxu1  ;;  %v8016_v48 = vpack.c.bf16 %v7912_v55, %v7908_v16  ;;  %v7578_v11 = vadd.f32 %v7577_v35, %v15939_v58  ;;  %v7769_v5 = vadd.f32 %v7768_v49, %v7576_v23  ;;  %v7915_v26 = vmax.f32 %v7767_v46, 0.0  ;;  %v15945_v46 = vld [vmem:[#allocation62_spill] sm:$0xff] }
 0x571   : > { %v7579_v6 = vpop.f32.mrf.mxu0 }
 0x572   : > { %v7772_v7 = vpop.f32.mrf.mxu1  ;;  %v7771_v29 = vadd.f32 %v7770_v43, %v7578_v11  ;;  %v7580_v36 = vadd.f32 %v7579_v6, %v7387_v59  ;;  %8553 = vmatprep.mubr.bf16.mxu1 %v8016_v48  ;;  %v7916_v39 = vmax.f32 %v7769_v5, 0.0 }
 0x573   : > { %v7583_v47 = vpop.f32.mrf.mxu0  ;;  %8473 = vmatmul.mubr.bf16.gmra.mxu0 %v15940_v41  ;;  %8554 = vmatmul.mubr.bf16.gmra.mxu1 %v8015_v50 }
 0x574   : > { %v7776_v52 = vpop.f32.mrf.mxu1  ;;  %v7919_v51 = vmax.f32 %v7771_v29, 0.0  ;;  %v7773_v1 = vadd.f32 %v7772_v7, %v7580_v36  ;;  %v7584_v13 = vadd.f32 %v7583_v47, %v15941_v21  ;;  %v7407_v7 = vadd.f32 %v14741_v32, %v7214_v2  ;;  %v15946_v29 = vld [vmem:[#allocation79_spill] sm:$0xff]  ;;  %v15947_v32 = vld [vmem:[#allocation61_spill] sm:$0xff] }
 0x575   : > { %v7585_v14 = vpop.f32.mrf.mxu0 }
 0x576   : > { %v7778_v38 = vpop.f32.mrf.mxu1  ;;  %v8019_v54 = vpack.c.bf16 %v7919_v51, %v7915_v26  ;;  %v7920_v37 = vmax.f32 %v7773_v1, 0.0  ;;  %v7586_v42 = vadd.f32 %v7585_v14, %v15942_v15  ;;  %v7777_v28 = vadd.f32 %v7776_v52, %v7584_v13 }
 0x577   : > { %v7587_v30 = vpop.f32.mrf.mxu0  ;;  %v7224_v51 = vadd.f32 %v14754_v27, %v14587_v33 }
 0x578   : > { %v7780_v40 = vpop.f32.mrf.mxu1  ;;  %v8020_v0 = vpack.c.bf16 %v7920_v37, %v7916_v39  ;;  %v7588_v63 = vadd.f32 %v7587_v30, %v15943_v8  ;;  %v7779_v45 = vadd.f32 %v7778_v38, %v7586_v42  ;;  %v7923_v50 = vmax.f32 %v7777_v28, 0.0 }
 0x579   : > { %v7589_v61 = vpop.f32.mrf.mxu0  ;;  %v7417_v8 = vadd.f32 %v14756_v4, %v7224_v51  ;;  %v15950_v4 = vld [vmem:[#allocation81_spill] sm:$0xff]  ;;  %v7244_v51 = vadd.f32 %v14784_v22, %v14587_v33 }
 0x57a   : > { %v7782_v3 = vpop.f32.mrf.mxu1  ;;  %v7781_v53 = vadd.f32 %v7780_v40, %v7588_v63  ;;  %v7590_v57 = vadd.f32 %v7589_v61, %v7397_v31  ;;  %8561 = vmatprep.mubr.bf16.mxu1 %v8020_v0  ;;  %v7924_v10 = vmax.f32 %v7779_v45, 0.0  ;;  %v15948_v40 = vld [vmem:[#allocation78_spill] sm:$0xff]  ;;  %v15949_v61 = vld [vmem:[#allocation64_spill] sm:$0xff] }
 0x57b   : > { %v7593_v49 = vpop.f32.mrf.mxu0  ;;  %8562 = vmatmul.mubr.bf16.gmra.mxu1 %v8019_v54 }
 0x57c   : > { %v7786_v16 = vpop.f32.mrf.mxu1  ;;  %v7927_v55 = vmax.f32 %v7781_v53, 0.0  ;;  %v7783_v9 = vadd.f32 %v7782_v3, %v7590_v57  ;;  %v7594_v23 = vadd.f32 %v7593_v49, %v15944_v18 }
 0x57d   : > { %v7595_v35 = vpop.f32.mrf.mxu0 }
 0x57e   : > { %v7788_v43 = vpop.f32.mrf.mxu1  ;;  %v8023_v59 = vpack.c.bf16 %v7927_v55, %v7923_v50  ;;  %v7928_v48 = vmax.f32 %v7783_v9, 0.0  ;;  %v7596_v58 = vadd.f32 %v7595_v35, %v15945_v46  ;;  %v7787_v5 = vadd.f32 %v7786_v16, %v7594_v23 }
 0x57f   : > { %v7597_v11 = vpop.f32.mrf.mxu0  ;;  %v7234_v16 = vadd.f32 %v14769_v44, %v14587_v33 }
 0x580   : > { %v7790_v6 = vpop.f32.mrf.mxu1  ;;  %v8024_v25 = vpack.c.bf16 %v7928_v48, %v7924_v10  ;;  %v7598_v36 = vadd.f32 %v7597_v11, %v15946_v29  ;;  %v7789_v52 = vadd.f32 %v7788_v43, %v7596_v58  ;;  %v7931_v13 = vmax.f32 %v7787_v5, 0.0  ;;  %v15951_v58 = vld [vmem:[#allocation63_spill] sm:$0xff]  ;;  %v15952_v29 = vld [vmem:[#allocation80_spill] sm:$0xff] }
 0x581   : > { %v7599_v12 = vpop.f32.mrf.mxu0 }
 0x582   : > { %v7792_v47 = vpop.f32.mrf.mxu1  ;;  %v7791_v41 = vadd.f32 %v7790_v6, %v7598_v36  ;;  %v7600_v26 = vadd.f32 %v7599_v12, %v7407_v7  ;;  %8569 = vmatprep.mubr.bf16.mxu1 %v8024_v25  ;;  %v7932_v15 = vmax.f32 %v7789_v52, 0.0  ;;  %v7427_v25 = vadd.f32 %v14771_v34, %v7234_v16  ;;  %v15953_v34 = vld [vmem:[#allocation66_spill] sm:$0xff] }
 0x583   : > { %v7603_v1 = vpop.f32.mrf.mxu0  ;;  %8570 = vmatmul.mubr.bf16.gmra.mxu1 %v8023_v59 }
 0x584   : > { %v7796_v21 = vpop.f32.mrf.mxu1  ;;  %v7935_v14 = vmax.f32 %v7791_v41, 0.0  ;;  %v7793_v38 = vadd.f32 %v7792_v47, %v7600_v26  ;;  %v7604_v39 = vadd.f32 %v7603_v1, %v15947_v32 }
 0x585   : > { %v7605_v54 = vpop.f32.mrf.mxu0 }
 0x586   : > { %v7798_v37 = vpop.f32.mrf.mxu1  ;;  %v8027_v42 = vpack.c.bf16 %v7935_v14, %v7931_v13  ;;  %v7936_v30 = vmax.f32 %v7793_v38, 0.0  ;;  %v7606_v31 = vadd.f32 %v7605_v54, %v15948_v40  ;;  %v7797_v63 = vadd.f32 %v7796_v21, %v7604_v39 }
 0x587   : > { %v7607_v0 = vpop.f32.mrf.mxu0 }
 0x588   : > { %v7800_v28 = vpop.f32.mrf.mxu1  ;;  %v8028_v27 = vpack.c.bf16 %v7936_v30, %v7932_v15  ;;  %v7608_v3 = vadd.f32 %v7607_v0, %v15949_v61  ;;  %v7799_v57 = vadd.f32 %v7798_v37, %v7606_v31  ;;  %v7939_v9 = vmax.f32 %v7797_v63, 0.0  ;;  %v15954_v30 = vld [vmem:[#allocation83_spill] sm:$0xff] }
 0x589   : > { %v7609_v45 = vpop.f32.mrf.mxu0 }
 0x58a   : > { %v7802_v53 = vpop.f32.mrf.mxu1  ;;  %v7801_v2 = vadd.f32 %v7800_v28, %v7608_v3  ;;  %v7610_v49 = vadd.f32 %v7609_v45, %v7417_v8  ;;  %8577 = vmatprep.mubr.bf16.mxu1 %v8028_v27  ;;  %v7940_v59 = vmax.f32 %v7799_v57, 0.0  ;;  %v7437_v28 = vadd.f32 %v14786_v56, %v7244_v51  ;;  %v15955_v27 = vld [vmem:[#allocation65_spill] sm:$0xff]  ;;  %v15956_v56 = vld [vmem:[#allocation82_spill] sm:$0xff] }
 0x58b   : > { %v7613_v50 = vpop.f32.mrf.mxu0  ;;  %8578 = vmatmul.mubr.bf16.gmra.mxu1 %v8027_v42 }
 0x58c   : > { %v7806_v55 = vpop.f32.mrf.mxu1  ;;  %v7943_v18 = vmax.f32 %v7801_v2, 0.0  ;;  %v7803_v23 = vadd.f32 %v7802_v53, %v7610_v49  ;;  %v7614_v35 = vadd.f32 %v7613_v50, %v15950_v4  ;;  %v7254_v2 = vadd.f32 %v14799_v19, %v14587_v33 }
 0x58d   : > { %v7615_v43 = vpop.f32.mrf.mxu0 }
 0x58e   : > { %v7808_v10 = vpop.f32.mrf.mxu1  ;;  %v8031_v48 = vpack.c.bf16 %v7943_v18, %v7939_v9  ;;  %v7944_v46 = vmax.f32 %v7803_v23, 0.0  ;;  %v7616_v11 = vadd.f32 %v7615_v43, %v15951_v58  ;;  %v7807_v5 = vadd.f32 %v7806_v55, %v7614_v35 }
 0x58f   : > { %v7617_v6 = vpop.f32.mrf.mxu0 }
 0x590   : > { %v7810_v7 = vpop.f32.mrf.mxu1  ;;  %v8032_v44 = vpack.c.bf16 %v7944_v46, %v7940_v59  ;;  %v7618_v36 = vadd.f32 %v7617_v6, %v15952_v29  ;;  %v7809_v52 = vadd.f32 %v7808_v10, %v7616_v11  ;;  %v7947_v13 = vmax.f32 %v7807_v5, 0.0  ;;  %v15957_v59 = vld [vmem:[#allocation12_spill] sm:$0xff] }
 0x591   : > { %v7619_v12 = vpop.f32.mrf.mxu0  ;;  %v7447_v11 = vadd.f32 %v14801_v60, %v7254_v2  ;;  %v15959_v60 = vld [vmem:[#allocation11_spill] sm:$0xff] }
 0x592   : > { %v7812_v47 = vpop.f32.mrf.mxu1  ;;  %v7811_v41 = vadd.f32 %v7810_v7, %v7618_v36  ;;  %v7620_v26 = vadd.f32 %v7619_v12, %v7427_v25  ;;  %8585 = vmatprep.mubr.bf16.mxu1 %v8032_v44  ;;  %v7948_v37 = vmax.f32 %v7809_v52, 0.0  ;;  %v15958_v7 = vld [vmem:[#allocation13_spill] sm:$0xff] }
 0x593   : > { %v7623_v1 = vpop.f32.mrf.mxu0  ;;  %8586 = vmatmul.mubr.bf16.gmra.mxu1 %v8031_v48 }
 0x594   : > { %v7816_v21 = vpop.f32.mrf.mxu1  ;;  %v7951_v14 = vmax.f32 %v7811_v41, 0.0  ;;  %v7813_v38 = vadd.f32 %v7812_v47, %v7620_v26  ;;  %v7624_v32 = vadd.f32 %v7623_v1, %v15953_v34  ;;  %v7264_v47 = vadd.f32 %v14814_v17, %v14587_v33 }
 0x595   : > { %v7625_v39 = vpop.f32.mrf.mxu0 }
 0x596   : > { %v7818_v54 = vpop.f32.mrf.mxu1  ;;  %v8035_v15 = vpack.c.bf16 %v7951_v14, %v7947_v13  ;;  %v7952_v42 = vmax.f32 %v7813_v38, 0.0  ;;  %v7626_v40 = vadd.f32 %v7625_v39, %v15954_v30  ;;  %v7817_v8 = vadd.f32 %v7816_v21, %v7624_v32  ;;  %v15960_v39 = vld [vmem:[#allocation10_spill] sm:$0xff] }
 0x597   : > { %v7627_v31 = vpop.f32.mrf.mxu0 }
 0x598   : > { %v7820_v0 = vpop.f32.mrf.mxu1  ;;  %v8036_v22 = vpack.c.bf16 %v7952_v42, %v7948_v37  ;;  %v7628_v63 = vadd.f32 %v7627_v31, %v15955_v27  ;;  %v7819_v45 = vadd.f32 %v7818_v54, %v7626_v40  ;;  %v7955_v50 = vmax.f32 %v7817_v8, 0.0  ;;  %v15961_v40 = vld [vmem:[#allocation67_spill] sm:$0xff] }
 0x599   : > { %v7629_v61 = vpop.f32.mrf.mxu0  ;;  %v7457_v42 = vadd.f32 %v14816_v24, %v7264_v47  ;;  %v15962_v24 = vld [vmem:[#allocation15_spill] sm:$0xff] }
 0x59a   : > { %v7822_v3 = vpop.f32.mrf.mxu1  ;;  %v7821_v53 = vadd.f32 %v7820_v0, %v7628_v63  ;;  %v7630_v57 = vadd.f32 %v7629_v61, %v7437_v28  ;;  %8593 = vmatprep.mubr.bf16.mxu1 %v8036_v22  ;;  %v7956_v35 = vmax.f32 %v7819_v45, 0.0  ;;  %v7274_v63 = vadd.f32 %v14829_v62, %v14587_v33 }
 0x59b   : > { %v7633_v49 = vpop.f32.mrf.mxu0  ;;  %8594 = vmatmul.mubr.bf16.gmra.mxu1 %v8035_v15 }
 0x59c   : > { %v7826_v16 = vpop.f32.mrf.mxu1  ;;  %v7959_v55 = vmax.f32 %v7821_v53, 0.0  ;;  %v7823_v9 = vadd.f32 %v7822_v3, %v7630_v57  ;;  %v7634_v18 = vadd.f32 %v7633_v49, %v15956_v56  ;;  %v15963_v56 = vld [vmem:[#allocation16_spill] sm:$0xff] }
 0x59d   : > { %v7635_v23 = vpop.f32.mrf.mxu0 }
 0x59e   : > { %v7828_v4 = vpop.f32.mrf.mxu1  ;;  %v8039_v43 = vpack.c.bf16 %v7959_v55, %v7955_v50  ;;  %v7960_v10 = vmax.f32 %v7823_v9, 0.0  ;;  %v7636_v48 = vadd.f32 %v7635_v23, %v15957_v59  ;;  %v7827_v6 = vadd.f32 %v7826_v16, %v7634_v18 }
 0x59f   : > { %v7637_v46 = vpop.f32.mrf.mxu0 }
 0x5a0   : > { %v7830_v58 = vpop.f32.mrf.mxu1  ;;  %v8040_v19 = vpack.c.bf16 %v7960_v10, %v7956_v35  ;;  %v7638_v25 = vadd.f32 %v7637_v46, %v15958_v7  ;;  %v7829_v29 = vadd.f32 %v7828_v4, %v7636_v48  ;;  %v7963_v26 = vmax.f32 %v7827_v6, 0.0  ;;  %v15964_v10 = vld [vmem:[#allocation14_spill] sm:$0xff]  ;;  %v15965_v6 = vld [vmem:[#allocation17_spill] sm:$0xff] }
 0x5a1   : > { %v7639_v44 = vpop.f32.mrf.mxu0  ;;  %v7467_v35 = vadd.f32 %v14831_v20, %v7274_v63  ;;  %v7284_v7 = vadd.f32 %v15965_v6, %v14587_v33  ;;  %v15966_v20 = vld [vmem:[#allocation18_spill] sm:$0xff] }
 0x5a2   : > { %v7832_v5 = vpop.f32.mrf.mxu1  ;;  %v7831_v36 = vadd.f32 %v7830_v58, %v7638_v25  ;;  %v7640_v12 = vadd.f32 %v7639_v44, %v7447_v11  ;;  %8601 = vmatprep.mubr.bf16.mxu1 %v8040_v19  ;;  %v7964_v38 = vmax.f32 %v7829_v29, 0.0 }
 0x5a3   : > { %v7643_v52 = vpop.f32.mrf.mxu0  ;;  %8602 = vmatmul.mubr.bf16.gmra.mxu1 %v8039_v43 }
 0x5a4   : > { %v7836_v41 = vpop.f32.mrf.mxu1  ;;  %v7967_v51 = vmax.f32 %v7831_v36, 0.0  ;;  %v7833_v1 = vadd.f32 %v7832_v5, %v7640_v12  ;;  %v7644_v21 = vadd.f32 %v7643_v52, %v15959_v60 }
 0x5a5   : > { %v7645_v13 = vpop.f32.mrf.mxu0 }
 0x5a6   : > { %v7838_v14 = vpop.f32.mrf.mxu1  ;;  %v8043_v34 = vpack.c.bf16 %v7967_v51, %v7963_v26  ;;  %v7968_v32 = vmax.f32 %v7833_v1, 0.0  ;;  %v7646_v54 = vadd.f32 %v7645_v13, %v15960_v39  ;;  %v7837_v30 = vadd.f32 %v7836_v41, %v7644_v21  ;;  %v15967_v1 = vld [vmem:[#allocation84_spill] sm:$0xff] }
 0x5a7   : > { %v7647_v37 = vpop.f32.mrf.mxu0 }
 0x5a8   : > { %v7840_v15 = vpop.f32.mrf.mxu1  ;;  %v8044_v17 = vpack.c.bf16 %v7968_v32, %v7964_v38  ;;  %v7648_v31 = vadd.f32 %v7647_v37, %v15961_v40  ;;  %v7839_v22 = vadd.f32 %v7838_v14, %v7646_v54  ;;  %v7971_v45 = vmax.f32 %v7837_v30, 0.0  ;;  %v15968_v14 = vld [vmem:[#allocation2_spill] sm:$0xff]  ;;  %v15969_v32 = vld [vmem:[#allocation20_spill] sm:$0xff] }
 0x5a9   : > { %v7649_v0 = vpop.f32.mrf.mxu0  ;;  %v7477_v38 = vadd.f32 %v15968_v14, %v7284_v7 }
 0x5aa   : > { %v7842_v28 = vpop.f32.mrf.mxu1  ;;  %v7841_v8 = vadd.f32 %v7840_v15, %v7648_v31  ;;  %v7650_v27 = vadd.f32 %v7649_v0, %v7457_v42  ;;  %8609 = vmatprep.mubr.bf16.mxu1 %v8044_v17  ;;  %v7972_v50 = vmax.f32 %v7839_v22, 0.0 }
 0x5ab   : > { %v7653_v61 = vpop.f32.mrf.mxu0  ;;  %8610 = vmatmul.mubr.bf16.gmra.mxu1 %v8043_v34 }
 0x5ac   : > { %v7846_v3 = vpop.f32.mrf.mxu1  ;;  %v7975_v53 = vmax.f32 %v7841_v8, 0.0  ;;  %v7843_v57 = vadd.f32 %v7842_v28, %v7650_v27  ;;  %v7654_v2 = vadd.f32 %v7653_v61, %v15962_v24 }
 0x5ad   : > { %v7655_v49 = vpop.f32.mrf.mxu0 }
 0x5ae   : > { %v7848_v16 = vpop.f32.mrf.mxu1  ;;  %v8047_v55 = vpack.c.bf16 %v7975_v53, %v7971_v45  ;;  %v7976_v9 = vmax.f32 %v7843_v57, 0.0  ;;  %v7656_v18 = vadd.f32 %v7655_v49, %v15963_v56  ;;  %v7847_v43 = vadd.f32 %v7846_v3, %v7654_v2 }
 0x5af   : > { %v7657_v23 = vpop.f32.mrf.mxu0 }
 0x5b0   : > { %v7850_v4 = vpop.f32.mrf.mxu1  ;;  %v8048_v62 = vpack.c.bf16 %v7976_v9, %v7972_v50  ;;  %v7658_v59 = vadd.f32 %v7657_v23, %v15964_v10  ;;  %v7849_v58 = vadd.f32 %v7848_v16, %v7656_v18  ;;  %v7979_v5 = vmax.f32 %v7847_v43, 0.0 }
 0x5b1   : > { %v7659_v48 = vpop.f32.mrf.mxu0 }
 0x5b2   : > { %v7852_v46 = vpop.f32.mrf.mxu1  ;;  %v7851_v11 = vadd.f32 %v7850_v4, %v7658_v59  ;;  %v7660_v19 = vadd.f32 %v7659_v48, %v7467_v35  ;;  %8617 = vmatprep.mubr.bf16.mxu1 %v8048_v62  ;;  %v7980_v41 = vmax.f32 %v7849_v58, 0.0 }
 0x5b3   : > { %v7663_v25 = vpop.f32.mrf.mxu0  ;;  %8618 = vmatmul.mubr.bf16.gmra.mxu1 %v8047_v55 }
 0x5b4   : > { %v7856_v44 = vpop.f32.mrf.mxu1  ;;  %v7983_v29 = vmax.f32 %v7851_v11, 0.0  ;;  %v7853_v36 = vadd.f32 %v7852_v46, %v7660_v19  ;;  %v7664_v12 = vadd.f32 %v7663_v25, %v15966_v20 }
 0x5b5   : > { %v7665_v47 = vpop.f32.mrf.mxu0 }
 0x5b6   : > { %v7858_v52 = vpop.f32.mrf.mxu1  ;;  %v8051_v26 = vpack.c.bf16 %v7983_v29, %v7979_v5  ;;  %v7984_v51 = vmax.f32 %v7853_v36, 0.0  ;;  %v7666_v60 = vadd.f32 %v7665_v47, %v15967_v1  ;;  %v7857_v34 = vadd.f32 %v7856_v44, %v7664_v12 }
 0x5b7   : > { %v7667_v21 = vpop.f32.mrf.mxu0 }
 0x5b8   : > { %v7860_v13 = vpop.f32.mrf.mxu1  ;;  %v8052_v33 = vpack.c.bf16 %v7984_v51, %v7980_v41  ;;  %v7668_v39 = vadd.f32 %v7667_v21, %v15969_v32  ;;  %v7859_v37 = vadd.f32 %v7858_v52, %v7666_v60  ;;  %v7987_v40 = vmax.f32 %v7857_v34, 0.0  ;;  %v15000_v52 = vld [vmem:[%s15138_s8] ss:$0 sm:$0xff] }
 0x5b9   : > { %v7669_v54 = vpop.f32.mrf.mxu0 }
 0x5ba   : > { %v7861_v15 = vadd.f32 %v7860_v13, %v7668_v39  ;;  %v7670_v42 = vadd.f32 %v7669_v54, %v7477_v38  ;;  %8625 = vmatprep.mubr.bf16.mxu1 %v8052_v33  ;;  %v7862_v17 = vpop.f32.mrf.mxu1  ;;  %v7988_v22 = vmax.f32 %v7859_v37, 0.0 }
 0x5bb   : > { %v9637_v30 = vpop.f32.mrf.mxu0  ;;  %8626 = vmatmul.mubr.bf16.gmra.mxu1 %v8051_v26 }
 0x5bc   : > { %v7991_v31 = vmax.f32 %v7861_v15, 0.0  ;;  %v7863_v0 = vadd.f32 %v7862_v17, %v7670_v42 }
 0x5bd   : > { %v9638_v28 = vpop.f32.mrf.mxu0 }
 0x5be   : > { %v8055_v8 = vpack.c.bf16 %v7991_v31, %v7987_v40  ;;  %v7992_v27 = vmax.f32 %v7863_v0, 0.0  ;;  %v9639_v12 = vadd.f32 %v9638_v28, %v9637_v30 }
 0x5bf   : > { %v9640_v63 = vpop.f32.mrf.mxu0 }
 0x5c0   : > { %v8056_v61 = vpack.c.bf16 %v7992_v27, %v7988_v22  ;;  %v8355_v60 = vadd.f32 %v9639_v12, %v15000_v52 }
 0x5c1   : > { %v9641_v3 = vpop.f32.mrf.mxu0 }
 0x5c2   : > { %8633 = vmatprep.mubr.bf16.mxu1 %v8056_v61  ;;  %v9642_v47 = vadd.f32 %v9641_v3, %v9640_v63 }
 0x5c3   : > { %v9643_v45 = vpop.f32.mrf.mxu0  ;;  %8634 = vmatmul.mubr.bf16.gmra.mxu1 %v8055_v8 }
 0x5c4   : > { %v8358_v21 = vadd.f32 %v9642_v47, %v15000_v52 }
 0x5c5   : > { %v9644_v53 = vpop.f32.mrf.mxu0 }
 0x5c6   : > { %v9645_v39 = vadd.f32 %v9644_v53, %v9643_v45 }
 0x5c7   : > { %v9646_v57 = vpop.f32.mrf.mxu0 }
 0x5c8   : > { %v8363_v40 = vadd.f32 %v9645_v39, %v15000_v52 }
 0x5c9   : > { %v9647_v24 = vpop.f32.mrf.mxu0 }
 0x5ca   : > { %v9648_v54 = vadd.f32 %v9647_v24, %v9646_v57 }
 0x5cb   : > { %v9649_v2 = vpop.f32.mrf.mxu0 }
 0x5cc   : > { %v8366_v31 = vadd.f32 %v9648_v54, %v15000_v52 }
 0x5cd   : > { %v9650_v49 = vpop.f32.mrf.mxu0 }
 0x5ce   : > { %v9651_v61 = vadd.f32 %v9650_v49, %v9649_v2 }
 0x5cf   : > { %v9652_v16 = vpop.f32.mrf.mxu0 }
 0x5d1   : > { %v9653_v50 = vpop.f32.mrf.mxu0 }
 0x5d2   : > { %v9654_v3 = vadd.f32 %v9653_v50, %v9652_v16 }
 0x5d3   : > { %v14953_v55 = vpop.f32.mrf.mxu0 }
 0x5d4   : > { %v8374_v12 = vadd.f32 %v9654_v3, %v15000_v52 }
 0x5d5   : > { %v14955_v9 = vpop.f32.mrf.mxu0 }
 0x5d6   : > { %v9657_v49 = vadd.f32 %v14955_v9, %v14953_v55 }
 0x5d7   : > { %v14957_v56 = vpop.f32.mrf.mxu0 }
 0x5d9   : > { %v14959_v18 = vpop.f32.mrf.mxu0 }
 0x5da   : > { %v9660_v16 = vadd.f32 %v14959_v18, %v14957_v56 }
 0x5db   : > { %v14961_v23 = vpop.f32.mrf.mxu0 }
 0x5dd   : > { %v14963_v4 = vpop.f32.mrf.mxu0 }
 0x5de   : > { %v9663_v56 = vadd.f32 %v14963_v4, %v14961_v23 }
 0x5df   : > { %v14965_v35 = vpop.f32.mrf.mxu0 }
 0x5e1   : > { %v14967_v62 = vpop.f32.mrf.mxu0 }
 0x5e2   : > { %v9666_v18 = vadd.f32 %v14967_v62, %v14965_v35 }
 0x5e3   : > { %v14969_v43 = vpop.f32.mrf.mxu0 }
 0x5e5   : > { %v14971_v10 = vpop.f32.mrf.mxu0 }
 0x5e6   : > { %v9669_v35 = vadd.f32 %v14971_v10, %v14969_v43 }
 0x5e7   : > { %v14973_v59 = vpop.f32.mrf.mxu0 }
 0x5e9   : > { %v14975_v48 = vpop.f32.mrf.mxu0 }
 0x5ea   : > { %v9672_v62 = vadd.f32 %v14975_v48, %v14973_v59 }
 0x5eb   : > { %v14977_v46 = vpop.f32.mrf.mxu0 }
 0x5ed   : > { %v14979_v58 = vpop.f32.mrf.mxu0 }
 0x5ee   : > { %v9675_v59 = vadd.f32 %v14979_v58, %v14977_v46 }
 0x5ef   : > { %v14981_v11 = vpop.f32.mrf.mxu0 }
 0x5f1   : > { %v14983_v19 = vpop.f32.mrf.mxu0 }
 0x5f2   : > { %v9678_v48 = vadd.f32 %v14983_v19, %v14981_v11 }
 0x5f3   : > { %v14985_v6 = vpop.f32.mrf.mxu0 }
 0x5f5   : > { %v14987_v7 = vpop.f32.mrf.mxu0 }
 0x5f6   : > { %v9681_v11 = vadd.f32 %v14987_v7, %v14985_v6 }
 0x5f7   : > { %v14989_v25 = vpop.f32.mrf.mxu0 }
 0x5f9   : > { %v14991_v44 = vpop.f32.mrf.mxu0 }
 0x5fa   : > { %v9684_v19 = vadd.f32 %v14991_v44, %v14989_v25 }
 0x5fb   : > { %v14993_v5 = vpop.f32.mrf.mxu0 }
 0x5fd   : > { %v14995_v29 = vpop.f32.mrf.mxu0 }
 0x5fe   : > { %v9687_v25 = vadd.f32 %v14995_v29, %v14993_v5 }
 0x5ff   : > { %v15002_v41 = vpop.f32.mrf.mxu0 }
 0x601   : > { %v15006_v14 = vpop.f32.mrf.mxu0 }
 0x602   : > { %v9690_v44 = vadd.f32 %v15006_v14, %v15002_v41 }
 0x603   : > { %v15015_v15 = vpop.f32.mrf.mxu0 }
 0x605   : > { %v15020_v28 = vpop.f32.mrf.mxu0 }
 0x606   : > { %v9693_v29 = vadd.f32 %v15020_v28, %v15015_v15 }
 0x607   : > { %v15022_v53 = vpop.f32.mrf.mxu0 }
 0x60b   : > { %v9749_v36 = vpop.f32.mrf.mxu1 }
 0x60d   : > { %v9750_v20 = vpop.f32.mrf.mxu1 }
 0x60e   : > { %v9751_v51 = vadd.f32 %v9750_v20, %v9749_v36  ;;  %v8371_v20 = vadd.f32 %v9651_v61, %v15000_v52 }
 0x60f   : > { %v9752_v26 = vpop.f32.mrf.mxu1 }
 0x610   : > { %v8516_v33 = vadd.f32 %v9751_v51, %v8355_v60 }
 0x611   : > { %v9753_v1 = vpop.f32.mrf.mxu1 }
 0x612   : > { %v9754_v13 = vadd.f32 %v9753_v1, %v9752_v26  ;;  %v15027_v26 = vpop.f32.mrf.mxu0 }
 0x613   : > { %v9755_v38 = vpop.f32.mrf.mxu1  ;;  %v9696_v41 = vadd.f32 %v15027_v26, %v15022_v53 }
 0x614   : > { %v8519_v34 = vadd.f32 %v9754_v13, %v8358_v21  ;;  %v15033_v21 = vpop.f32.mrf.mxu0 }
 0x615   : > { %v9756_v32 = vpop.f32.mrf.mxu1 }
 0x616   : > { %v9529_v37 = vpack.c.bf16 %v8519_v34, %v8516_v33  ;;  %v9757_v17 = vadd.f32 %v9756_v32, %v9755_v38  ;;  %v8379_v34 = vadd.f32 %v9657_v49, %v15000_v52  ;;  %v8382_v32 = vadd.f32 %v9660_v16, %v15000_v52  ;;  %v15038_v54 = vpop.f32.mrf.mxu0 }
 0x617   : > { %v9758_v42 = vpop.f32.mrf.mxu1  ;;  %v9699_v28 = vadd.f32 %v15038_v54, %v15033_v21 }
 0x618   : > { %9530 = vst [vmem:[%s15013_s21] sm:$0xff] %v9529_v37   ;;  %v8524_v8 = vadd.f32 %v9757_v17, %v8363_v40 }
 0x619   : > { %v9759_v30 = vpop.f32.mrf.mxu1 }
 0x61a   : > { %v9760_v0 = vadd.f32 %v9759_v30, %v9758_v42  ;;  %v15044_v30 = vpop.f32.mrf.mxu0 }
 0x61b   : > { %v9761_v22 = vpop.f32.mrf.mxu1 }
 0x61c   : > { %v8527_v27 = vadd.f32 %v9760_v0, %v8366_v31 }
 0x61d   : > { %v9762_v63 = vpop.f32.mrf.mxu1 }
 0x61e   : > { %v9534_v45 = vpack.c.bf16 %v8527_v27, %v8524_v8  ;;  %v9763_v24 = vadd.f32 %v9762_v63, %v9761_v22  ;;  %v8387_v22 = vadd.f32 %v9663_v56, %v15000_v52  ;;  %v8390_v8 = vadd.f32 %v9666_v18, %v15000_v52  ;;  %v15049_v63 = vpop.f32.mrf.mxu0 }
 0x61f   : > { %v9764_v57 = vpop.f32.mrf.mxu1  ;;  %v9702_v53 = vadd.f32 %v15049_v63, %v15044_v30 }
 0x620   : > { %9606 = vst [vmem:[%s15013_s21 + $0x8] sm:$0xff] %v9534_v45   ;;  %v8532_v1 = vadd.f32 %v9763_v24, %v8371_v20 }
 0x621   : > { %v9765_v36 = vpop.f32.mrf.mxu1 }
 0x622   : > { %v9766_v47 = vadd.f32 %v9765_v36, %v9764_v57  ;;  %v15055_v57 = vpop.f32.mrf.mxu0 }
 0x623   : > { %v9767_v51 = vpop.f32.mrf.mxu1 }
 0x624   : > { %v8535_v60 = vadd.f32 %v9766_v47, %v8374_v12  ;;  %v8395_v12 = vadd.f32 %v9669_v35, %v15000_v52  ;;  %v8398_v47 = vadd.f32 %v9672_v62, %v15000_v52  ;;  %v8419_v62 = vadd.f32 %v9687_v25, %v15000_v52 }
 0x625   : > { %v9768_v2 = vpop.f32.mrf.mxu1 }
 0x626   : > { %v9539_v50 = vpack.c.bf16 %v8535_v60, %v8532_v1  ;;  %v9769_v38 = vadd.f32 %v9768_v2, %v9767_v51  ;;  %v15060_v1 = vpop.f32.mrf.mxu0 }
 0x627   : > { %v9770_v13 = vpop.f32.mrf.mxu1  ;;  %v9705_v54 = vadd.f32 %v15060_v1, %v15055_v57 }
 0x628   : > { %9607 = vst [vmem:[%s15013_s21 + $0x10] sm:$0xff] %v9539_v50   ;;  %v8540_v55 = vadd.f32 %v9769_v38, %v8379_v34  ;;  %v15066_v16 = vpop.f32.mrf.mxu0  ;;  %v8406_v34 = vadd.f32 %v9678_v48, %v15000_v52 }
 0x629   : > { %v9771_v33 = vpop.f32.mrf.mxu1 }
 0x62a   : > { %v9772_v39 = vadd.f32 %v9771_v33, %v9770_v13  ;;  %v8403_v33 = vadd.f32 %v9675_v59, %v15000_v52  ;;  %v8430_v59 = vadd.f32 %v9696_v41, %v15000_v52 }
 0x62b   : > { %v9773_v37 = vpop.f32.mrf.mxu1 }
 0x62c   : > { %v8543_v9 = vadd.f32 %v9772_v39, %v8382_v32  ;;  %v15071_v39 = vpop.f32.mrf.mxu0 }
 0x62d   : > { %v9774_v42 = vpop.f32.mrf.mxu1  ;;  %v9708_v30 = vadd.f32 %v15071_v39, %v15066_v16 }
 0x62e   : > { %v9544_v17 = vpack.c.bf16 %v8543_v9, %v8540_v55  ;;  %v9775_v31 = vadd.f32 %v9774_v42, %v9773_v37  ;;  %v15077_v42 = vpop.f32.mrf.mxu0 }
 0x62f   : > { %v9776_v40 = vpop.f32.mrf.mxu1 }
 0x630   : > { %9608 = vst [vmem:[%s15013_s21 + $0x18] sm:$0xff] %v9544_v17   ;;  %v8548_v23 = vadd.f32 %v9775_v31, %v8387_v22  ;;  %v8414_v31 = vadd.f32 %v9684_v19, %v15000_v52  ;;  %v15082_v22 = vpop.f32.mrf.mxu0 }
 0x631   : > { %v9777_v0 = vpop.f32.mrf.mxu1  ;;  %v9711_v1 = vadd.f32 %v15082_v22, %v15077_v42 }
 0x632   : > { %v9778_v27 = vadd.f32 %v9777_v0, %v9776_v40  ;;  %v8411_v40 = vadd.f32 %v9681_v11, %v15000_v52 }
 0x633   : > { %v9779_v61 = vpop.f32.mrf.mxu1 }
 0x634   : > { %v8551_v4 = vadd.f32 %v9778_v27, %v8390_v8 }
 0x635   : > { %v9780_v3 = vpop.f32.mrf.mxu1 }
 0x636   : > { %v9549_v45 = vpack.c.bf16 %v8551_v4, %v8548_v23  ;;  %v9781_v36 = vadd.f32 %v9780_v3, %v9779_v61  ;;  %v9712_v23 = vpop.f32.mrf.mxu0 }
 0x637   : > { %v9782_v24 = vpop.f32.mrf.mxu1 }
 0x638   : > { %9609 = vst [vmem:[%s15013_s21 + $0x20] sm:$0xff] %v9549_v45   ;;  %v8556_v43 = vadd.f32 %v9781_v36, %v8395_v12  ;;  %v8422_v45 = vadd.f32 %v9690_v44, %v15000_v52  ;;  %v9713_v36 = vpop.f32.mrf.mxu0 }
 0x639   : > { %v9783_v20 = vpop.f32.mrf.mxu1  ;;  %v9714_v16 = vadd.f32 %v9713_v36, %v9712_v23 }
 0x63a   : > { %v9784_v51 = vadd.f32 %v9783_v20, %v9782_v24 }
 0x63b   : > { %v9785_v60 = vpop.f32.mrf.mxu1 }
 0x63c   : > { %v8559_v10 = vadd.f32 %v9784_v51, %v8398_v47  ;;  %v9715_v51 = vpop.f32.mrf.mxu0 }
 0x63d   : > { %v9786_v2 = vpop.f32.mrf.mxu1 }
 0x63e   : > { %v9554_v49 = vpack.c.bf16 %v8559_v10, %v8556_v43  ;;  %v9787_v13 = vadd.f32 %v9786_v2, %v9785_v60  ;;  %v8427_v2 = vadd.f32 %v9693_v29, %v15000_v52 }
 0x63f   : > { %v9788_v50 = vpop.f32.mrf.mxu1 }
 0x640   : > { %9610 = vst [vmem:[%s15013_s21 + $0x28] sm:$0xff] %v9554_v49   ;;  %v8564_v46 = vadd.f32 %v9787_v13, %v8403_v33  ;;  %v9716_v49 = vpop.f32.mrf.mxu0 }
 0x641   : > { %v9789_v38 = vpop.f32.mrf.mxu1  ;;  %v9717_v41 = vadd.f32 %v9716_v49, %v9715_v51 }
 0x642   : > { %v9790_v32 = vadd.f32 %v9789_v38, %v9788_v50  ;;  %v9718_v33 = vpop.f32.mrf.mxu0 }
 0x643   : > { %v9791_v37 = vpop.f32.mrf.mxu1 }
 0x644   : > { %v8567_v58 = vadd.f32 %v9790_v32, %v8406_v34  ;;  %v9719_v11 = vpop.f32.mrf.mxu0 }
 0x645   : > { %v9792_v55 = vpop.f32.mrf.mxu1  ;;  %v9720_v42 = vadd.f32 %v9719_v11, %v9718_v33 }
 0x646   : > { %v9559_v9 = vpack.c.bf16 %v8567_v58, %v8564_v46  ;;  %v9793_v18 = vadd.f32 %v9792_v55, %v9791_v37  ;;  %v8435_v46 = vadd.f32 %v9699_v28, %v15000_v52  ;;  %v8438_v58 = vadd.f32 %v9702_v53, %v15000_v52 }
 0x647   : > { %v9794_v56 = vpop.f32.mrf.mxu1 }
 0x648   : > { %9611 = vst [vmem:[%s15013_s21 + $0x30] sm:$0xff] %v9559_v9   ;;  %v8572_v6 = vadd.f32 %v9793_v18, %v8411_v40  ;;  %v9721_v18 = vpop.f32.mrf.mxu0 }
 0x649   : > { %v9795_v17 = vpop.f32.mrf.mxu1 }
 0x64a   : > { %v9796_v0 = vadd.f32 %v9795_v17, %v9794_v56 }
 0x64b   : > { %v9797_v8 = vpop.f32.mrf.mxu1 }
 0x64c   : > { %v8575_v7 = vadd.f32 %v9796_v0, %v8414_v31  ;;  %v8443_v0 = vadd.f32 %v9705_v54, %v15000_v52 }
 0x64d   : > { %v9798_v27 = vpop.f32.mrf.mxu1 }
 0x64e   : > { %v9564_v61 = vpack.c.bf16 %v8575_v7, %v8572_v6  ;;  %v9799_v3 = vadd.f32 %v9798_v27, %v9797_v8  ;;  %v8446_v8 = vadd.f32 %v9708_v30, %v15000_v52  ;;  %v9722_v7 = vpop.f32.mrf.mxu0 }
 0x64f   : > { %v9800_v4 = vpop.f32.mrf.mxu1 }
 0x650   : > { %9612 = vst [vmem:[%s15013_s21 + $0x38] sm:$0xff] %v9564_v61   ;;  %v8580_v12 = vadd.f32 %v9799_v3, %v8419_v62  ;;  %v9724_v61 = vpop.f32.mrf.mxu0  ;;  %v8451_v62 = vadd.f32 %v9711_v1, %v15000_v52 }
 0x651   : > { %v9801_v35 = vpop.f32.mrf.mxu1 }
 0x652   : > { %v9802_v24 = vadd.f32 %v9801_v35, %v9800_v4 }
 0x653   : > { %v9803_v20 = vpop.f32.mrf.mxu1 }
 0x654   : > { %v8583_v47 = vadd.f32 %v9802_v24, %v8422_v45  ;;  %v8454_v45 = vadd.f32 %v9714_v16, %v15000_v52 }
 0x655   : > { %v9804_v5 = vpop.f32.mrf.mxu1 }
 0x656   : > { %v9569_v14 = vpack.c.bf16 %v8583_v47, %v8580_v12  ;;  %v9805_v43 = vadd.f32 %v9804_v5, %v9803_v20  ;;  %v9725_v20 = vpop.f32.mrf.mxu0 }
 0x657   : > { %v9806_v60 = vpop.f32.mrf.mxu1  ;;  %v9726_v51 = vadd.f32 %v9725_v20, %v9724_v61 }
 0x658   : > { %9613 = vst [vmem:[%s15013_s21 + $0x40] sm:$0xff] %v9569_v14   ;;  %v8588_v13 = vadd.f32 %v9805_v43, %v8427_v2  ;;  %v9727_v23 = vpop.f32.mrf.mxu0  ;;  %v8459_v43 = vadd.f32 %v9717_v41, %v15000_v52 }
 0x659   : > { %v9807_v10 = vpop.f32.mrf.mxu1 }
 0x65a   : > { %v9808_v48 = vadd.f32 %v9807_v10, %v9806_v60  ;;  %v8462_v10 = vadd.f32 %v9720_v42, %v15000_v52 }
 0x65b   : > { %v9809_v50 = vpop.f32.mrf.mxu1 }
 0x65c   : > { %v8591_v38 = vadd.f32 %v9808_v48, %v8430_v59  ;;  %v9728_v59 = vpop.f32.mrf.mxu0 }
 0x65d   : > { %v9810_v15 = vpop.f32.mrf.mxu1 }
 0x65e   : > { %v9574_v26 = vpack.c.bf16 %v8591_v38, %v8588_v13  ;;  %v9811_v32 = vadd.f32 %v9810_v15, %v9809_v50  ;;  %v9723_v15 = vadd.f32 %v9722_v7, %v9721_v18  ;;  %v9730_v28 = vpop.f32.mrf.mxu0 }
 0x65f   : > { %v9812_v34 = vpop.f32.mrf.mxu1 }
 0x660   : > { %9614 = vst [vmem:[%s15013_s21 + $0x48] sm:$0xff] %v9574_v26   ;;  %v8596_v9 = vadd.f32 %v9811_v32, %v8435_v46  ;;  %v8470_v32 = vadd.f32 %v9726_v51, %v15000_v52  ;;  %v9731_v46 = vpop.f32.mrf.mxu0 }
 0x661   : > { %v9813_v37 = vpop.f32.mrf.mxu1 }
 0x662   : > { %v9814_v55 = vadd.f32 %v9813_v37, %v9812_v34  ;;  %v8467_v34 = vadd.f32 %v9723_v15, %v15000_v52 }
 0x663   : > { %v9815_v19 = vpop.f32.mrf.mxu1 }
 0x664   : > { %v8599_v56 = vadd.f32 %v9814_v55, %v8438_v58 }
 0x665   : > { %v9816_v21 = vpop.f32.mrf.mxu1 }
 0x666   : > { %v9579_v63 = vpack.c.bf16 %v8599_v56, %v8596_v9  ;;  %v9817_v40 = vadd.f32 %v9816_v21, %v9815_v19  ;;  %v9729_v9 = vadd.f32 %v9728_v59, %v9727_v23  ;;  %v9732_v56 = vadd.f32 %v9731_v46, %v9730_v28 }
 0x667   : > { %v9818_v17 = vpop.f32.mrf.mxu1 }
 0x668   : > { %9615 = vst [vmem:[%s15013_s21 + $0x50] sm:$0xff] %v9579_v63   ;;  %v8604_v25 = vadd.f32 %v9817_v40, %v8443_v0  ;;  %v8475_v18 = vadd.f32 %v9729_v9, %v15000_v52 }
 0x669   : > { %v9819_v31 = vpop.f32.mrf.mxu1 }
 0x66a   : > { %v9820_v6 = vadd.f32 %v9819_v31, %v9818_v17  ;;  %v8478_v17 = vadd.f32 %v9732_v56, %v15000_v52 }
 0x66b   : > { %v9821_v27 = vpop.f32.mrf.mxu1 }
 0x66c   : > { %v8607_v44 = vadd.f32 %v9820_v6, %v8446_v8 }
 0x66d   : > { %v9822_v57 = vpop.f32.mrf.mxu1 }
 0x66e   : > { %v9584_v39 = vpack.c.bf16 %v8607_v44, %v8604_v25  ;;  %v9823_v3 = vadd.f32 %v9822_v57, %v9821_v27 }
 0x66f   : > { %v9824_v4 = vpop.f32.mrf.mxu1 }
 0x670   : > { %9616 = vst [vmem:[%s15013_s21 + $0x58] sm:$0xff] %v9584_v39   ;;  %v8612_v47 = vadd.f32 %v9823_v3, %v8451_v62 }
 0x671   : > { %v9825_v35 = vpop.f32.mrf.mxu1 }
 0x672   : > { %v9826_v24 = vadd.f32 %v9825_v35, %v9824_v4 }
 0x673   : > { %v9827_v12 = vpop.f32.mrf.mxu1 }
 0x674   : > { %v8615_v5 = vadd.f32 %v9826_v24, %v8454_v45 }
 0x675   : > { %v9828_v29 = vpop.f32.mrf.mxu1 }
 0x676   : > { %v9589_v22 = vpack.c.bf16 %v8615_v5, %v8612_v47  ;;  %v9829_v14 = vadd.f32 %v9828_v29, %v9827_v12 }
 0x677   : > { %v9830_v36 = vpop.f32.mrf.mxu1 }
 0x678   : > { %9617 = vst [vmem:[%s15013_s21 + $0x60] sm:$0xff] %v9589_v22   ;;  %v8620_v50 = vadd.f32 %v9829_v14, %v8459_v43 }
 0x679   : > { %v9831_v60 = vpop.f32.mrf.mxu1 }
 0x67a   : > { %v9832_v2 = vadd.f32 %v9831_v60, %v9830_v36 }
 0x67b   : > { %v9833_v48 = vpop.f32.mrf.mxu1 }
 0x67c   : > { %v8623_v13 = vadd.f32 %v9832_v2, %v8462_v10 }
 0x67d   : > { %v9834_v38 = vpop.f32.mrf.mxu1 }
 0x67e   : > { %v9594_v49 = vpack.c.bf16 %v8623_v13, %v8620_v50  ;;  %v9835_v26 = vadd.f32 %v9834_v38, %v9833_v48 }
 0x67f   : > { %v9836_v53 = vpop.f32.mrf.mxu1 }
 0x680   : > { %9618 = vst [vmem:[%s15013_s21 + $0x68] sm:$0xff] %v9594_v49   ;;  %v8628_v55 = vadd.f32 %v9835_v26, %v8467_v34 }
 0x681   : > { %v9837_v33 = vpop.f32.mrf.mxu1 }
 0x682   : > { %v9838_v37 = vadd.f32 %v9837_v33, %v9836_v53 }
 0x683   : > { %v9839_v58 = vpop.f32.mrf.mxu1 }
 0x684   : > { %v8631_v11 = vadd.f32 %v9838_v37, %v8470_v32 }
 0x685   : > { %v9840_v19 = vpop.f32.mrf.mxu1 }
 0x686   : > { %v9599_v21 = vpack.c.bf16 %v8631_v11, %v8628_v55  ;;  %v9841_v30 = vadd.f32 %v9840_v19, %v9839_v58 }
 0x687   : > { %v9842_v54 = vpop.f32.mrf.mxu1 }
 0x688   : > { %9619 = vst [vmem:[%s15013_s21 + $0x70] sm:$0xff] %v9599_v21   ;;  %v8636_v31 = vadd.f32 %v9841_v30, %v8475_v18 }
 0x689   : > { %v9843_v63 = vpop.f32.mrf.mxu1 }
 0x68a   : > { %v9844_v40 = vadd.f32 %v9843_v63, %v9842_v54 }
 0x68c   : > { %v8639_v0 = vadd.f32 %v9844_v40, %v8478_v17 }
 0x68e   : > { %v9604_v8 = vpack.c.bf16 %v8639_v0, %v8636_v31 }
 0x690   : > { %9620 = vst [vmem:[%s15013_s21 + $0x78] sm:$0xff] %v9604_v8  }
 0x691 PF: > { %s19_s30 = sadd.s32 1, %s10344_s30  }
 0x692   : > { %p16_p4 = scmp.ge.s32.totalorder %s19_s30, 4  }
 0x694   :  { %18 = sbr.rel (!%p16_p4) target bundleno = 1 (0x1), region = 86 }

</bundles_post_ra>
